<compile_context>
chip_gen: v7x
topology: tpu7x:2x2x1
jax: 0.10.0
libtpu: 0.0.40
codegen_flags: <defaults>
</compile_context>

<pallas_src>
import numpy as np
import jax
import jax.numpy as jnp
from jax.experimental import pallas as pl
from jax.experimental.pallas import tpu as pltpu


MM_DTYPE = jnp.bfloat16   # matmul operand dtype (f32 accumulation on the MXU)


# ------------------------- PIC conv kernel ---------------------------------

def _pic_kernel(ke_ref, bias_ref, xsh_ref, o_ref):
    # ke_ref:   SMEM (6*16,) f32   effective 4x4 (conv3x3 * avgpool2x2) kernel, flat
    # bias_ref: SMEM (6,)    f32   per-channel bias
    # xsh_ref:  VMEM (16, B, 14, 14) f32  stride-2 shifted input taps
    # o_ref:    VMEM (6, B, 14, 14) f32   sigmoid(conv+pool+bias)
    n_taps = xsh_ref.shape[0]
    n_ch = o_ref.shape[0]
    taps = [xsh_ref[t] for t in range(n_taps)]            # each (B, 14, 14)
    for c in range(n_ch):
        acc = jnp.zeros_like(taps[0])
        for t in range(n_taps):
            acc = acc + ke_ref[c * n_taps + t] * taps[t]   # scalar * tensor (VPU)
        o_ref[c] = jax.nn.sigmoid(acc + bias_ref[c])


def pic_conv(ke_flat, bias, xsh):
    T, B, H, W = xsh.shape
    return pl.pallas_call(
        _pic_kernel,
        out_shape=jax.ShapeDtypeStruct((6, B, H, W), jnp.float32),
        grid=(1,),
        in_specs=[
            pl.BlockSpec(memory_space=pltpu.MemorySpace.SMEM),
            pl.BlockSpec(memory_space=pltpu.MemorySpace.SMEM),
            pl.BlockSpec((T, B, H, W), lambda i: (0, 0, 0, 0)),
        ],
        out_specs=pl.BlockSpec((6, B, H, W), lambda i: (0, 0, 0, 0)),
        compiler_params=pltpu.CompilerParams(dimension_semantics=("arbitrary",)),
    )(ke_flat, bias, xsh)


# ------------------ fused EIC(1..4) + output softmax kernel -----------------

def _fused_eic_kernel(xs1_ref, w1_ref, w2_ref, w3_ref, w4_ref, wo_ref, bo_ref,
                      out_ref):
    B = xs1_ref.shape[1]
    mm_dtype = w1_ref.dtype

    def core(x, w):
        # Core: y = x @ W.T (W pre-transposed -> x @ w); y += -0.5*max(y); sigmoid.
        y = jnp.dot(x.astype(mm_dtype), w, preferred_element_type=jnp.float32)
        m = jnp.max(y, axis=1, keepdims=True)
        return jax.nn.sigmoid(y - 0.5 * m)

    zeros256 = jnp.zeros((B, 256), jnp.float32)
    zeros64 = jnp.zeros((B, 64), jnp.float32)

    # ---- EIC layer 1: 9 cores at grid positions with row != 3 and col != 3.
    # TODO(synk): reference grid is torch.empty; positions (r,3)/(3,c) are never
    # written (uninitialized memory) -> treated as zeros here.
    grid1 = {}
    ci = 0
    for row in range(4):
        for col in range(4):
            if row != 3 and col != 3:
                grid1[(row, col)] = core(xs1_ref[ci], w1_ref[ci])   # (B, 256)
                ci += 1

    # ---- EIC layer 2: row-wise 64-wide gathers (all in registers/VMEM values).
    grid2 = {}
    ci = 0
    for row in range(4):
        n_cols = 3 if row == 3 else 4
        for col2 in range(4):
            s = col2 * 64
            parts = [grid1.get((row, c1), zeros256)[:, s:s + 64]
                     for c1 in range(n_cols)]
            if row == 3:                       # 192-input cores: zero-pad to 256
                parts.append(zeros64)
            chunk = jnp.concatenate(parts, axis=1)           # (B, 256)
            grid2[(row, col2)] = core(chunk, w2_ref[ci])
            ci += 1

    # ---- EIC layer 3: column-wise 64-wide gathers.
    grid3 = {}
    ci = 0
    for col in range(4):
        for r3 in range(4):
            s = r3 * 64
            chunk = jnp.concatenate(
                [grid2[(r2, col)][:, s:s + 64] for r2 in range(4)], axis=1)
            grid3[(r3, col)] = core(chunk, w3_ref[ci])        # (B, 64)
            ci += 1

    # ---- EIC layer 4 + flatten (row-major over the 4 rows -> (B, 256)).
    feats = jnp.concatenate(
        [core(jnp.concatenate([grid3[(row, c3)] for c3 in range(4)], axis=1),
              w4_ref[row])
         for row in range(4)], axis=1)

    # ---- Output Linear(256, 10) + Softmax(dim=1), f32 math, exact division.
    logits = jnp.dot(feats.astype(mm_dtype), wo_ref[...],
                     preferred_element_type=jnp.float32) + bo_ref[...]
    m = jnp.max(logits, axis=1, keepdims=True)
    e = jnp.exp(logits - m)
    out_ref[...] = e / jnp.sum(e, axis=1, keepdims=True)


def fused_eic_forward(xs1, w1, w2, w3, w4, wo, bo):
    B = xs1.shape[1]
    return pl.pallas_call(
        _fused_eic_kernel,
        out_shape=jax.ShapeDtypeStruct((B, 10), jnp.float32),
        grid=(1,),
        in_specs=[
            pl.BlockSpec(xs1.shape, lambda i: (0, 0, 0)),
            pl.BlockSpec(w1.shape, lambda i: (0, 0, 0)),
            pl.BlockSpec(w2.shape, lambda i: (0, 0, 0)),
            pl.BlockSpec(w3.shape, lambda i: (0, 0, 0)),
            pl.BlockSpec(w4.shape, lambda i: (0, 0, 0)),
            pl.BlockSpec(wo.shape, lambda i: (0, 0)),
            pl.BlockSpec(bo.shape, lambda i: (0, 0)),
        ],
        out_specs=pl.BlockSpec((B, 10), lambda i: (0, 0)),
        # bf16 weights (~4 MB) keep us well under every chip's default scoped
        # VMEM limit (32 MiB), including v7x's 64 MiB physical VMEM.
        compiler_params=pltpu.CompilerParams(dimension_semantics=("parallel",)),
    )(xs1, w1, w2, w3, w4, wo, bo)


# ------------------------- parameters ---------------------------------------

def init_params(key):
    ks = iter(jax.random.split(key, 64))

    def lin_t(fan_in, fan_out, pad_in_to=None):
        # torch.nn.Linear default init, then pre-transpose to (Fin, Fout)
        # so the kernel computes y = x @ w (K on sublanes, N on lanes).
        bound = 1.0 / np.sqrt(fan_in)
        w = jax.random.uniform(next(ks), (fan_out, fan_in), jnp.float32,
                               -bound, bound)
        wt = w.T
        if pad_in_to is not None and pad_in_to > fan_in:
            wt = jnp.pad(wt, ((0, pad_in_to - fan_in), (0, 0)))
        return wt

    params = {}
    # PICConvLayer: Conv2d(1, 6, 3, padding=1, bias=False) + bias zeros(1,6,1,1)
    cb = 1.0 / np.sqrt(1 * 3 * 3)
    params["conv_w"] = jax.random.uniform(next(ks), (6, 1, 3, 3), jnp.float32,
                                          -cb, cb)
    params["conv_bias"] = jnp.zeros((1, 6, 1, 1), jnp.float32)
    # EIC layer 1: only cores 0..8 are ever invoked by the reference forward.
    params["w1"] = jnp.stack([lin_t(256, 256) for _ in range(9)]).astype(MM_DTYPE)
    # EIC layer 2: 12 cores of 256 inputs + 4 cores of 192 inputs (zero-padded Fin)
    w2 = [lin_t(256, 256) for _ in range(12)] + \
         [lin_t(192, 256, pad_in_to=256) for _ in range(4)]
    params["w2"] = jnp.stack(w2).astype(MM_DTYPE)                 # (16, 256, 256)
    params["w3"] = jnp.stack([lin_t(256, 64) for _ in range(16)]).astype(MM_DTYPE)
    params["w4"] = jnp.stack([lin_t(256, 64) for _ in range(4)]).astype(MM_DTYPE)
    params["out_w"] = lin_t(256, 10).astype(MM_DTYPE)             # (256, 10)
    ob = 1.0 / np.sqrt(256)
    params["out_b"] = jax.random.uniform(next(ks), (1, 10), jnp.float32, -ob, ob)
    return params


# ------------------------- forward pass -------------------------------------

def part8_cd_forward(params, x):
    # x: (B, 1, 28, 28) NCHW float32  (28x28 so that 6*14*14 + 8 == 1184)
    B = x.shape[0]

    # ---- PICConvLayer: conv(1->6,3x3,pad=1) + AvgPool2x2 + bias + sigmoid ----
    # Fold conv+pool into a 4x4 effective kernel applied with stride 2 on the
    # padded image; the Pallas kernel then only does scalar*tensor FMAs on VPU.
    xpad = jnp.pad(x[:, 0], ((0, 0), (1, 1), (1, 1)))              # (B, 30, 30)
    xsh = jnp.stack([xpad[:, oi:oi + 28:2, oj:oj + 28:2]
                     for oi in range(4) for oj in range(4)])       # (16, B, 14, 14)
    w3x3 = params["conv_w"][:, 0]                                  # (6, 3, 3)
    ke = jnp.zeros((6, 4, 4), jnp.float32)
    for dp in range(2):
        for dq in range(2):
            ke = ke.at[:, dp:dp + 3, dq:dq + 3].add(w3x3)
    ke_flat = (0.25 * ke).reshape(6 * 16)
    pic = pic_conv(ke_flat, params["conv_bias"].reshape(6), xsh)   # (6, B, 14, 14)

    # flatten in NCHW order and append 8 zeros -> (B, 1184)
    flat = pic.transpose(1, 0, 2, 3).reshape(B, 6 * 14 * 14)
    flat = jnp.concatenate([flat, jnp.zeros((B, 8), jnp.float32)], axis=1)

    # ---- EIC layer-1 input chunking (256-wide, wrap-around) ----
    chunks = []
    input_idx = 0
    for row in range(4):
        for col in range(4):
            if row != 3 and col != 3:
                if 1184 - input_idx >= 256:
                    chunk = flat[:, input_idx:input_idx + 256]
                    input_idx += 256
                else:
                    rem = 256 - (1184 - input_idx)
                    chunk = jnp.concatenate([flat[:, input_idx:], flat[:, :rem]],
                                            axis=1)
                    input_idx = rem
                chunks.append(chunk)
    xs1 = jnp.stack(chunks)                                        # (9, B, 256)

    # ---- fused EIC layers 1..4 + output Linear + Softmax (single kernel) ----
    return fused_eic_forward(xs1, params["w1"], params["w2"], params["w3"],
                             params["w4"], params["out_w"], params["out_b"])


# ------------------------- main ----------------------------------------------

if __name__ == "__main__":
    key = jax.random.PRNGKey(0)
    pkey, xkey = jax.random.split(key)
    params = init_params(pkey)
    x = jax.random.uniform(xkey, (2, 1, 28, 28), jnp.float32)  # small MNIST-like batch
    fwd = jax.jit(part8_cd_forward)
    y = fwd(params, x)
    jax.block_until_ready(y)
    assert y.shape == (2, 10)
    assert bool(jnp.all(jnp.isfinite(y)))
    # softmax rows sum to ~1 (softmax computed in f32 with exact division)
    assert bool(jnp.allclose(jnp.sum(y, axis=1), 1.0, atol=1e-5))
    print("KERNEL_OK")
</pallas_src>

<mosaic_0001>
module attributes {stable_mosaic.version = 11 : i64} {
  func.func @_pic_kernel(%arg0: i32, %arg1: memref<96xf32, #tpu.memory_space<smem>>, %arg2: memref<6xf32, #tpu.memory_space<smem>>, %arg3: memref<16x2x14x14xf32, #tpu.memory_space<vmem>>, %arg4: memref<6x2x14x14xf32, #tpu.memory_space<vmem>>) attributes {dimension_semantics = [#tpu.dimension_semantics<arbitrary>], iteration_bounds = array<i64: 1>, scalar_prefetch = 0 : i64, scratch_operands = 0 : i64, tpu.core_type = #tpu.core_type<tc>, window_params = [{transform_indices = @transform_0, window_bounds = array<i64: 96>}, {transform_indices = @transform_1, window_bounds = array<i64: 6>}, {pipeline_mode = #tpu.pipeline_mode<synchronous>, transform_indices = @transform_2, window_bounds = array<i64: 16, 2, 14, 14>}, {pipeline_mode = #tpu.pipeline_mode<synchronous>, transform_indices = @transform_3, window_bounds = array<i64: 6, 2, 14, 14>}]} {
    %c0 = arith.constant 0 : index
    %c0_0 = arith.constant 0 : index
    %c0_1 = arith.constant 0 : index
    %c0_2 = arith.constant 0 : index
    %0 = vector.load %arg3[%c0, %c0_0, %c0_1, %c0_2] : memref<16x2x14x14xf32, #tpu.memory_space<vmem>>, vector<1x2x14x14xf32>
    %1 = vector.shape_cast %0 : vector<1x2x14x14xf32> to vector<2x14x14xf32>
    %c1 = arith.constant 1 : index
    %c0_3 = arith.constant 0 : index
    %c0_4 = arith.constant 0 : index
    %c0_5 = arith.constant 0 : index
    %2 = vector.load %arg3[%c1, %c0_3, %c0_4, %c0_5] : memref<16x2x14x14xf32, #tpu.memory_space<vmem>>, vector<1x2x14x14xf32>
    %3 = vector.shape_cast %2 : vector<1x2x14x14xf32> to vector<2x14x14xf32>
    %c2 = arith.constant 2 : index
    %c0_6 = arith.constant 0 : index
    %c0_7 = arith.constant 0 : index
    %c0_8 = arith.constant 0 : index
    %4 = vector.load %arg3[%c2, %c0_6, %c0_7, %c0_8] : memref<16x2x14x14xf32, #tpu.memory_space<vmem>>, vector<1x2x14x14xf32>
    %5 = vector.shape_cast %4 : vector<1x2x14x14xf32> to vector<2x14x14xf32>
    %c3 = arith.constant 3 : index
    %c0_9 = arith.constant 0 : index
    %c0_10 = arith.constant 0 : index
    %c0_11 = arith.constant 0 : index
    %6 = vector.load %arg3[%c3, %c0_9, %c0_10, %c0_11] : memref<16x2x14x14xf32, #tpu.memory_space<vmem>>, vector<1x2x14x14xf32>
    %7 = vector.shape_cast %6 : vector<1x2x14x14xf32> to vector<2x14x14xf32>
    %c4 = arith.constant 4 : index
    %c0_12 = arith.constant 0 : index
    %c0_13 = arith.constant 0 : index
    %c0_14 = arith.constant 0 : index
    %8 = vector.load %arg3[%c4, %c0_12, %c0_13, %c0_14] : memref<16x2x14x14xf32, #tpu.memory_space<vmem>>, vector<1x2x14x14xf32>
    %9 = vector.shape_cast %8 : vector<1x2x14x14xf32> to vector<2x14x14xf32>
    %c5 = arith.constant 5 : index
    %c0_15 = arith.constant 0 : index
    %c0_16 = arith.constant 0 : index
    %c0_17 = arith.constant 0 : index
    %10 = vector.load %arg3[%c5, %c0_15, %c0_16, %c0_17] : memref<16x2x14x14xf32, #tpu.memory_space<vmem>>, vector<1x2x14x14xf32>
    %11 = vector.shape_cast %10 : vector<1x2x14x14xf32> to vector<2x14x14xf32>
    %c6 = arith.constant 6 : index
    %c0_18 = arith.constant 0 : index
    %c0_19 = arith.constant 0 : index
    %c0_20 = arith.constant 0 : index
    %12 = vector.load %arg3[%c6, %c0_18, %c0_19, %c0_20] : memref<16x2x14x14xf32, #tpu.memory_space<vmem>>, vector<1x2x14x14xf32>
    %13 = vector.shape_cast %12 : vector<1x2x14x14xf32> to vector<2x14x14xf32>
    %c7 = arith.constant 7 : index
    %c0_21 = arith.constant 0 : index
    %c0_22 = arith.constant 0 : index
    %c0_23 = arith.constant 0 : index
    %14 = vector.load %arg3[%c7, %c0_21, %c0_22, %c0_23] : memref<16x2x14x14xf32, #tpu.memory_space<vmem>>, vector<1x2x14x14xf32>
    %15 = vector.shape_cast %14 : vector<1x2x14x14xf32> to vector<2x14x14xf32>
    %c8 = arith.constant 8 : index
    %c0_24 = arith.constant 0 : index
    %c0_25 = arith.constant 0 : index
    %c0_26 = arith.constant 0 : index
    %16 = vector.load %arg3[%c8, %c0_24, %c0_25, %c0_26] : memref<16x2x14x14xf32, #tpu.memory_space<vmem>>, vector<1x2x14x14xf32>
    %17 = vector.shape_cast %16 : vector<1x2x14x14xf32> to vector<2x14x14xf32>
    %c9 = arith.constant 9 : index
    %c0_27 = arith.constant 0 : index
    %c0_28 = arith.constant 0 : index
    %c0_29 = arith.constant 0 : index
    %18 = vector.load %arg3[%c9, %c0_27, %c0_28, %c0_29] : memref<16x2x14x14xf32, #tpu.memory_space<vmem>>, vector<1x2x14x14xf32>
    %19 = vector.shape_cast %18 : vector<1x2x14x14xf32> to vector<2x14x14xf32>
    %c10 = arith.constant 10 : index
    %c0_30 = arith.constant 0 : index
    %c0_31 = arith.constant 0 : index
    %c0_32 = arith.constant 0 : index
    %20 = vector.load %arg3[%c10, %c0_30, %c0_31, %c0_32] : memref<16x2x14x14xf32, #tpu.memory_space<vmem>>, vector<1x2x14x14xf32>
    %21 = vector.shape_cast %20 : vector<1x2x14x14xf32> to vector<2x14x14xf32>
    %c11 = arith.constant 11 : index
    %c0_33 = arith.constant 0 : index
    %c0_34 = arith.constant 0 : index
    %c0_35 = arith.constant 0 : index
    %22 = vector.load %arg3[%c11, %c0_33, %c0_34, %c0_35] : memref<16x2x14x14xf32, #tpu.memory_space<vmem>>, vector<1x2x14x14xf32>
    %23 = vector.shape_cast %22 : vector<1x2x14x14xf32> to vector<2x14x14xf32>
    %c12 = arith.constant 12 : index
    %c0_36 = arith.constant 0 : index
    %c0_37 = arith.constant 0 : index
    %c0_38 = arith.constant 0 : index
    %24 = vector.load %arg3[%c12, %c0_36, %c0_37, %c0_38] : memref<16x2x14x14xf32, #tpu.memory_space<vmem>>, vector<1x2x14x14xf32>
    %25 = vector.shape_cast %24 : vector<1x2x14x14xf32> to vector<2x14x14xf32>
    %c13 = arith.constant 13 : index
    %c0_39 = arith.constant 0 : index
    %c0_40 = arith.constant 0 : index
    %c0_41 = arith.constant 0 : index
    %26 = vector.load %arg3[%c13, %c0_39, %c0_40, %c0_41] : memref<16x2x14x14xf32, #tpu.memory_space<vmem>>, vector<1x2x14x14xf32>
    %27 = vector.shape_cast %26 : vector<1x2x14x14xf32> to vector<2x14x14xf32>
    %c14 = arith.constant 14 : index
    %c0_42 = arith.constant 0 : index
    %c0_43 = arith.constant 0 : index
    %c0_44 = arith.constant 0 : index
    %28 = vector.load %arg3[%c14, %c0_42, %c0_43, %c0_44] : memref<16x2x14x14xf32, #tpu.memory_space<vmem>>, vector<1x2x14x14xf32>
    %29 = vector.shape_cast %28 : vector<1x2x14x14xf32> to vector<2x14x14xf32>
    %c15 = arith.constant 15 : index
    %c0_45 = arith.constant 0 : index
    %c0_46 = arith.constant 0 : index
    %c0_47 = arith.constant 0 : index
    %30 = vector.load %arg3[%c15, %c0_45, %c0_46, %c0_47] : memref<16x2x14x14xf32, #tpu.memory_space<vmem>>, vector<1x2x14x14xf32>
    %31 = vector.shape_cast %30 : vector<1x2x14x14xf32> to vector<2x14x14xf32>
    %cst = arith.constant 0.000000e+00 : f32
    %32 = vector.broadcast %cst : f32 to vector<2x14x14xf32>
    %c0_48 = arith.constant 0 : index
    %33 = memref.load %arg1[%c0_48] : memref<96xf32, #tpu.memory_space<smem>>
    %34 = vector.broadcast %33 : f32 to vector<2x14x14xf32>
    %35 = arith.mulf %34, %1 : vector<2x14x14xf32>
    %36 = arith.addf %32, %35 : vector<2x14x14xf32>
    %c1_49 = arith.constant 1 : index
    %37 = memref.load %arg1[%c1_49] : memref<96xf32, #tpu.memory_space<smem>>
    %38 = vector.broadcast %37 : f32 to vector<2x14x14xf32>
    %39 = arith.mulf %38, %3 : vector<2x14x14xf32>
    %40 = arith.addf %36, %39 : vector<2x14x14xf32>
    %c2_50 = arith.constant 2 : index
    %41 = memref.load %arg1[%c2_50] : memref<96xf32, #tpu.memory_space<smem>>
    %42 = vector.broadcast %41 : f32 to vector<2x14x14xf32>
    %43 = arith.mulf %42, %5 : vector<2x14x14xf32>
    %44 = arith.addf %40, %43 : vector<2x14x14xf32>
    %c3_51 = arith.constant 3 : index
    %45 = memref.load %arg1[%c3_51] : memref<96xf32, #tpu.memory_space<smem>>
    %46 = vector.broadcast %45 : f32 to vector<2x14x14xf32>
    %47 = arith.mulf %46, %7 : vector<2x14x14xf32>
    %48 = arith.addf %44, %47 : vector<2x14x14xf32>
    %c4_52 = arith.constant 4 : index
    %49 = memref.load %arg1[%c4_52] : memref<96xf32, #tpu.memory_space<smem>>
    %50 = vector.broadcast %49 : f32 to vector<2x14x14xf32>
    %51 = arith.mulf %50, %9 : vector<2x14x14xf32>
    %52 = arith.addf %48, %51 : vector<2x14x14xf32>
    %c5_53 = arith.constant 5 : index
    %53 = memref.load %arg1[%c5_53] : memref<96xf32, #tpu.memory_space<smem>>
    %54 = vector.broadcast %53 : f32 to vector<2x14x14xf32>
    %55 = arith.mulf %54, %11 : vector<2x14x14xf32>
    %56 = arith.addf %52, %55 : vector<2x14x14xf32>
    %c6_54 = arith.constant 6 : index
    %57 = memref.load %arg1[%c6_54] : memref<96xf32, #tpu.memory_space<smem>>
    %58 = vector.broadcast %57 : f32 to vector<2x14x14xf32>
    %59 = arith.mulf %58, %13 : vector<2x14x14xf32>
    %60 = arith.addf %56, %59 : vector<2x14x14xf32>
    %c7_55 = arith.constant 7 : index
    %61 = memref.load %arg1[%c7_55] : memref<96xf32, #tpu.memory_space<smem>>
    %62 = vector.broadcast %61 : f32 to vector<2x14x14xf32>
    %63 = arith.mulf %62, %15 : vector<2x14x14xf32>
    %64 = arith.addf %60, %63 : vector<2x14x14xf32>
    %c8_56 = arith.constant 8 : index
    %65 = memref.load %arg1[%c8_56] : memref<96xf32, #tpu.memory_space<smem>>
    %66 = vector.broadcast %65 : f32 to vector<2x14x14xf32>
    %67 = arith.mulf %66, %17 : vector<2x14x14xf32>
    %68 = arith.addf %64, %67 : vector<2x14x14xf32>
    %c9_57 = arith.constant 9 : index
    %69 = memref.load %arg1[%c9_57] : memref<96xf32, #tpu.memory_space<smem>>
    %70 = vector.broadcast %69 : f32 to vector<2x14x14xf32>
    %71 = arith.mulf %70, %19 : vector<2x14x14xf32>
    %72 = arith.addf %68, %71 : vector<2x14x14xf32>
    %c10_58 = arith.constant 10 : index
    %73 = memref.load %arg1[%c10_58] : memref<96xf32, #tpu.memory_space<smem>>
    %74 = vector.broadcast %73 : f32 to vector<2x14x14xf32>
    %75 = arith.mulf %74, %21 : vector<2x14x14xf32>
    %76 = arith.addf %72, %75 : vector<2x14x14xf32>
    %c11_59 = arith.constant 11 : index
    %77 = memref.load %arg1[%c11_59] : memref<96xf32, #tpu.memory_space<smem>>
    %78 = vector.broadcast %77 : f32 to vector<2x14x14xf32>
    %79 = arith.mulf %78, %23 : vector<2x14x14xf32>
    %80 = arith.addf %76, %79 : vector<2x14x14xf32>
    %c12_60 = arith.constant 12 : index
    %81 = memref.load %arg1[%c12_60] : memref<96xf32, #tpu.memory_space<smem>>
    %82 = vector.broadcast %81 : f32 to vector<2x14x14xf32>
    %83 = arith.mulf %82, %25 : vector<2x14x14xf32>
    %84 = arith.addf %80, %83 : vector<2x14x14xf32>
    %c13_61 = arith.constant 13 : index
    %85 = memref.load %arg1[%c13_61] : memref<96xf32, #tpu.memory_space<smem>>
    %86 = vector.broadcast %85 : f32 to vector<2x14x14xf32>
    %87 = arith.mulf %86, %27 : vector<2x14x14xf32>
    %88 = arith.addf %84, %87 : vector<2x14x14xf32>
    %c14_62 = arith.constant 14 : index
    %89 = memref.load %arg1[%c14_62] : memref<96xf32, #tpu.memory_space<smem>>
    %90 = vector.broadcast %89 : f32 to vector<2x14x14xf32>
    %91 = arith.mulf %90, %29 : vector<2x14x14xf32>
    %92 = arith.addf %88, %91 : vector<2x14x14xf32>
    %c15_63 = arith.constant 15 : index
    %93 = memref.load %arg1[%c15_63] : memref<96xf32, #tpu.memory_space<smem>>
    %94 = vector.broadcast %93 : f32 to vector<2x14x14xf32>
    %95 = arith.mulf %94, %31 : vector<2x14x14xf32>
    %96 = arith.addf %92, %95 : vector<2x14x14xf32>
    %c0_64 = arith.constant 0 : index
    %97 = memref.load %arg2[%c0_64] : memref<6xf32, #tpu.memory_space<smem>>
    %98 = vector.broadcast %97 : f32 to vector<2x14x14xf32>
    %99 = arith.addf %96, %98 : vector<2x14x14xf32>
    %100 = arith.negf %99 : vector<2x14x14xf32>
    %101 = math.exp %100 : vector<2x14x14xf32>
    %cst_65 = arith.constant 1.000000e+00 : f32
    %102 = vector.broadcast %cst_65 : f32 to vector<2x14x14xf32>
    %103 = arith.addf %102, %101 : vector<2x14x14xf32>
    %104 = arith.divf %102, %103 : vector<2x14x14xf32>
    %c0_66 = arith.constant 0 : index
    %c0_67 = arith.constant 0 : index
    %c0_68 = arith.constant 0 : index
    %c0_69 = arith.constant 0 : index
    %105 = vector.load %arg4[%c0_66, %c0_67, %c0_68, %c0_69] : memref<6x2x14x14xf32, #tpu.memory_space<vmem>>, vector<1x2x14x14xf32>
    %106 = vector.shape_cast %105 : vector<1x2x14x14xf32> to vector<2x14x14xf32>
    %107 = vector.shape_cast %104 : vector<2x14x14xf32> to vector<1x2x14x14xf32>
    tpu.vector_store %arg4[%c0_66, %c0_67, %c0_68, %c0_69], %107 {strides = array<i32>} : memref<6x2x14x14xf32, #tpu.memory_space<vmem>>, vector<1x2x14x14xf32>,
    %cst_70 = arith.constant 0.000000e+00 : f32
    %108 = vector.broadcast %cst_70 : f32 to vector<2x14x14xf32>
    %c16 = arith.constant 16 : index
    %109 = memref.load %arg1[%c16] : memref<96xf32, #tpu.memory_space<smem>>
    %110 = vector.broadcast %109 : f32 to vector<2x14x14xf32>
    %111 = arith.mulf %110, %1 : vector<2x14x14xf32>
    %112 = arith.addf %108, %111 : vector<2x14x14xf32>
    %c17 = arith.constant 17 : index
    %113 = memref.load %arg1[%c17] : memref<96xf32, #tpu.memory_space<smem>>
    %114 = vector.broadcast %113 : f32 to vector<2x14x14xf32>
    %115 = arith.mulf %114, %3 : vector<2x14x14xf32>
    %116 = arith.addf %112, %115 : vector<2x14x14xf32>
    %c18 = arith.constant 18 : index
    %117 = memref.load %arg1[%c18] : memref<96xf32, #tpu.memory_space<smem>>
    %118 = vector.broadcast %117 : f32 to vector<2x14x14xf32>
    %119 = arith.mulf %118, %5 : vector<2x14x14xf32>
    %120 = arith.addf %116, %119 : vector<2x14x14xf32>
    %c19 = arith.constant 19 : index
    %121 = memref.load %arg1[%c19] : memref<96xf32, #tpu.memory_space<smem>>
    %122 = vector.broadcast %121 : f32 to vector<2x14x14xf32>
    %123 = arith.mulf %122, %7 : vector<2x14x14xf32>
    %124 = arith.addf %120, %123 : vector<2x14x14xf32>
    %c20 = arith.constant 20 : index
    %125 = memref.load %arg1[%c20] : memref<96xf32, #tpu.memory_space<smem>>
    %126 = vector.broadcast %125 : f32 to vector<2x14x14xf32>
    %127 = arith.mulf %126, %9 : vector<2x14x14xf32>
    %128 = arith.addf %124, %127 : vector<2x14x14xf32>
    %c21 = arith.constant 21 : index
    %129 = memref.load %arg1[%c21] : memref<96xf32, #tpu.memory_space<smem>>
    %130 = vector.broadcast %129 : f32 to vector<2x14x14xf32>
    %131 = arith.mulf %130, %11 : vector<2x14x14xf32>
    %132 = arith.addf %128, %131 : vector<2x14x14xf32>
    %c22 = arith.constant 22 : index
    %133 = memref.load %arg1[%c22] : memref<96xf32, #tpu.memory_space<smem>>
    %134 = vector.broadcast %133 : f32 to vector<2x14x14xf32>
    %135 = arith.mulf %134, %13 : vector<2x14x14xf32>
    %136 = arith.addf %132, %135 : vector<2x14x14xf32>
    %c23 = arith.constant 23 : index
    %137 = memref.load %arg1[%c23] : memref<96xf32, #tpu.memory_space<smem>>
    %138 = vector.broadcast %137 : f32 to vector<2x14x14xf32>
    %139 = arith.mulf %138, %15 : vector<2x14x14xf32>
    %140 = arith.addf %136, %139 : vector<2x14x14xf32>
    %c24 = arith.constant 24 : index
    %141 = memref.load %arg1[%c24] : memref<96xf32, #tpu.memory_space<smem>>
    %142 = vector.broadcast %141 : f32 to vector<2x14x14xf32>
    %143 = arith.mulf %142, %17 : vector<2x14x14xf32>
    %144 = arith.addf %140, %143 : vector<2x14x14xf32>
    %c25 = arith.constant 25 : index
    %145 = memref.load %arg1[%c25] : memref<96xf32, #tpu.memory_space<smem>>
    %146 = vector.broadcast %145 : f32 to vector<2x14x14xf32>
    %147 = arith.mulf %146, %19 : vector<2x14x14xf32>
    %148 = arith.addf %144, %147 : vector<2x14x14xf32>
    %c26 = arith.constant 26 : index
    %149 = memref.load %arg1[%c26] : memref<96xf32, #tpu.memory_space<smem>>
    %150 = vector.broadcast %149 : f32 to vector<2x14x14xf32>
    %151 = arith.mulf %150, %21 : vector<2x14x14xf32>
    %152 = arith.addf %148, %151 : vector<2x14x14xf32>
    %c27 = arith.constant 27 : index
    %153 = memref.load %arg1[%c27] : memref<96xf32, #tpu.memory_space<smem>>
    %154 = vector.broadcast %153 : f32 to vector<2x14x14xf32>
    %155 = arith.mulf %154, %23 : vector<2x14x14xf32>
    %156 = arith.addf %152, %155 : vector<2x14x14xf32>
    %c28 = arith.constant 28 : index
    %157 = memref.load %arg1[%c28] : memref<96xf32, #tpu.memory_space<smem>>
    %158 = vector.broadcast %157 : f32 to vector<2x14x14xf32>
    %159 = arith.mulf %158, %25 : vector<2x14x14xf32>
    %160 = arith.addf %156, %159 : vector<2x14x14xf32>
    %c29 = arith.constant 29 : index
    %161 = memref.load %arg1[%c29] : memref<96xf32, #tpu.memory_space<smem>>
    %162 = vector.broadcast %161 : f32 to vector<2x14x14xf32>
    %163 = arith.mulf %162, %27 : vector<2x14x14xf32>
    %164 = arith.addf %160, %163 : vector<2x14x14xf32>
    %c30 = arith.constant 30 : index
    %165 = memref.load %arg1[%c30] : memref<96xf32, #tpu.memory_space<smem>>
    %166 = vector.broadcast %165 : f32 to vector<2x14x14xf32>
    %167 = arith.mulf %166, %29 : vector<2x14x14xf32>
    %168 = arith.addf %164, %167 : vector<2x14x14xf32>
    %c31 = arith.constant 31 : index
    %169 = memref.load %arg1[%c31] : memref<96xf32, #tpu.memory_space<smem>>
    %170 = vector.broadcast %169 : f32 to vector<2x14x14xf32>
    %171 = arith.mulf %170, %31 : vector<2x14x14xf32>
    %172 = arith.addf %168, %171 : vector<2x14x14xf32>
    %c1_71 = arith.constant 1 : index
    %173 = memref.load %arg2[%c1_71] : memref<6xf32, #tpu.memory_space<smem>>
    %174 = vector.broadcast %173 : f32 to vector<2x14x14xf32>
    %175 = arith.addf %172, %174 : vector<2x14x14xf32>
    %176 = arith.negf %175 : vector<2x14x14xf32>
    %177 = math.exp %176 : vector<2x14x14xf32>
    %cst_72 = arith.constant 1.000000e+00 : f32
    %178 = vector.broadcast %cst_72 : f32 to vector<2x14x14xf32>
    %179 = arith.addf %178, %177 : vector<2x14x14xf32>
    %180 = arith.divf %178, %179 : vector<2x14x14xf32>
    %c1_73 = arith.constant 1 : index
    %c0_74 = arith.constant 0 : index
    %c0_75 = arith.constant 0 : index
    %c0_76 = arith.constant 0 : index
    %181 = vector.load %arg4[%c1_73, %c0_74, %c0_75, %c0_76] : memref<6x2x14x14xf32, #tpu.memory_space<vmem>>, vector<1x2x14x14xf32>
    %182 = vector.shape_cast %181 : vector<1x2x14x14xf32> to vector<2x14x14xf32>
    %183 = vector.shape_cast %180 : vector<2x14x14xf32> to vector<1x2x14x14xf32>
    tpu.vector_store %arg4[%c1_73, %c0_74, %c0_75, %c0_76], %183 {strides = array<i32>} : memref<6x2x14x14xf32, #tpu.memory_space<vmem>>, vector<1x2x14x14xf32>,
    %cst_77 = arith.constant 0.000000e+00 : f32
    %184 = vector.broadcast %cst_77 : f32 to vector<2x14x14xf32>
    %c32 = arith.constant 32 : index
    %185 = memref.load %arg1[%c32] : memref<96xf32, #tpu.memory_space<smem>>
    %186 = vector.broadcast %185 : f32 to vector<2x14x14xf32>
    %187 = arith.mulf %186, %1 : vector<2x14x14xf32>
    %188 = arith.addf %184, %187 : vector<2x14x14xf32>
    %c33 = arith.constant 33 : index
    %189 = memref.load %arg1[%c33] : memref<96xf32, #tpu.memory_space<smem>>
    %190 = vector.broadcast %189 : f32 to vector<2x14x14xf32>
    %191 = arith.mulf %190, %3 : vector<2x14x14xf32>
    %192 = arith.addf %188, %191 : vector<2x14x14xf32>
    %c34 = arith.constant 34 : index
    %193 = memref.load %arg1[%c34] : memref<96xf32, #tpu.memory_space<smem>>
    %194 = vector.broadcast %193 : f32 to vector<2x14x14xf32>
    %195 = arith.mulf %194, %5 : vector<2x14x14xf32>
    %196 = arith.addf %192, %195 : vector<2x14x14xf32>
    %c35 = arith.constant 35 : index
    %197 = memref.load %arg1[%c35] : memref<96xf32, #tpu.memory_space<smem>>
    %198 = vector.broadcast %197 : f32 to vector<2x14x14xf32>
    %199 = arith.mulf %198, %7 : vector<2x14x14xf32>
    %200 = arith.addf %196, %199 : vector<2x14x14xf32>
    %c36 = arith.constant 36 : index
    %201 = memref.load %arg1[%c36] : memref<96xf32, #tpu.memory_space<smem>>
    %202 = vector.broadcast %201 : f32 to vector<2x14x14xf32>
    %203 = arith.mulf %202, %9 : vector<2x14x14xf32>
    %204 = arith.addf %200, %203 : vector<2x14x14xf32>
    %c37 = arith.constant 37 : index
    %205 = memref.load %arg1[%c37] : memref<96xf32, #tpu.memory_space<smem>>
    %206 = vector.broadcast %205 : f32 to vector<2x14x14xf32>
    %207 = arith.mulf %206, %11 : vector<2x14x14xf32>
    %208 = arith.addf %204, %207 : vector<2x14x14xf32>
    %c38 = arith.constant 38 : index
    %209 = memref.load %arg1[%c38] : memref<96xf32, #tpu.memory_space<smem>>
    %210 = vector.broadcast %209 : f32 to vector<2x14x14xf32>
    %211 = arith.mulf %210, %13 : vector<2x14x14xf32>
    %212 = arith.addf %208, %211 : vector<2x14x14xf32>
    %c39 = arith.constant 39 : index
    %213 = memref.load %arg1[%c39] : memref<96xf32, #tpu.memory_space<smem>>
    %214 = vector.broadcast %213 : f32 to vector<2x14x14xf32>
    %215 = arith.mulf %214, %15 : vector<2x14x14xf32>
    %216 = arith.addf %212, %215 : vector<2x14x14xf32>
    %c40 = arith.constant 40 : index
    %217 = memref.load %arg1[%c40] : memref<96xf32, #tpu.memory_space<smem>>
    %218 = vector.broadcast %217 : f32 to vector<2x14x14xf32>
    %219 = arith.mulf %218, %17 : vector<2x14x14xf32>
    %220 = arith.addf %216, %219 : vector<2x14x14xf32>
    %c41 = arith.constant 41 : index
    %221 = memref.load %arg1[%c41] : memref<96xf32, #tpu.memory_space<smem>>
    %222 = vector.broadcast %221 : f32 to vector<2x14x14xf32>
    %223 = arith.mulf %222, %19 : vector<2x14x14xf32>
    %224 = arith.addf %220, %223 : vector<2x14x14xf32>
    %c42 = arith.constant 42 : index
    %225 = memref.load %arg1[%c42] : memref<96xf32, #tpu.memory_space<smem>>
    %226 = vector.broadcast %225 : f32 to vector<2x14x14xf32>
    %227 = arith.mulf %226, %21 : vector<2x14x14xf32>
    %228 = arith.addf %224, %227 : vector<2x14x14xf32>
    %c43 = arith.constant 43 : index
    %229 = memref.load %arg1[%c43] : memref<96xf32, #tpu.memory_space<smem>>
    %230 = vector.broadcast %229 : f32 to vector<2x14x14xf32>
    %231 = arith.mulf %230, %23 : vector<2x14x14xf32>
    %232 = arith.addf %228, %231 : vector<2x14x14xf32>
    %c44 = arith.constant 44 : index
    %233 = memref.load %arg1[%c44] : memref<96xf32, #tpu.memory_space<smem>>
    %234 = vector.broadcast %233 : f32 to vector<2x14x14xf32>
    %235 = arith.mulf %234, %25 : vector<2x14x14xf32>
    %236 = arith.addf %232, %235 : vector<2x14x14xf32>
    %c45 = arith.constant 45 : index
    %237 = memref.load %arg1[%c45] : memref<96xf32, #tpu.memory_space<smem>>
    %238 = vector.broadcast %237 : f32 to vector<2x14x14xf32>
    %239 = arith.mulf %238, %27 : vector<2x14x14xf32>
    %240 = arith.addf %236, %239 : vector<2x14x14xf32>
    %c46 = arith.constant 46 : index
    %241 = memref.load %arg1[%c46] : memref<96xf32, #tpu.memory_space<smem>>
    %242 = vector.broadcast %241 : f32 to vector<2x14x14xf32>
    %243 = arith.mulf %242, %29 : vector<2x14x14xf32>
    %244 = arith.addf %240, %243 : vector<2x14x14xf32>
    %c47 = arith.constant 47 : index
    %245 = memref.load %arg1[%c47] : memref<96xf32, #tpu.memory_space<smem>>
    %246 = vector.broadcast %245 : f32 to vector<2x14x14xf32>
    %247 = arith.mulf %246, %31 : vector<2x14x14xf32>
    %248 = arith.addf %244, %247 : vector<2x14x14xf32>
    %c2_78 = arith.constant 2 : index
    %249 = memref.load %arg2[%c2_78] : memref<6xf32, #tpu.memory_space<smem>>
    %250 = vector.broadcast %249 : f32 to vector<2x14x14xf32>
    %251 = arith.addf %248, %250 : vector<2x14x14xf32>
    %252 = arith.negf %251 : vector<2x14x14xf32>
    %253 = math.exp %252 : vector<2x14x14xf32>
    %cst_79 = arith.constant 1.000000e+00 : f32
    %254 = vector.broadcast %cst_79 : f32 to vector<2x14x14xf32>
    %255 = arith.addf %254, %253 : vector<2x14x14xf32>
    %256 = arith.divf %254, %255 : vector<2x14x14xf32>
    %c2_80 = arith.constant 2 : index
    %c0_81 = arith.constant 0 : index
    %c0_82 = arith.constant 0 : index
    %c0_83 = arith.constant 0 : index
    %257 = vector.load %arg4[%c2_80, %c0_81, %c0_82, %c0_83] : memref<6x2x14x14xf32, #tpu.memory_space<vmem>>, vector<1x2x14x14xf32>
    %258 = vector.shape_cast %257 : vector<1x2x14x14xf32> to vector<2x14x14xf32>
    %259 = vector.shape_cast %256 : vector<2x14x14xf32> to vector<1x2x14x14xf32>
    tpu.vector_store %arg4[%c2_80, %c0_81, %c0_82, %c0_83], %259 {strides = array<i32>} : memref<6x2x14x14xf32, #tpu.memory_space<vmem>>, vector<1x2x14x14xf32>,
    %cst_84 = arith.constant 0.000000e+00 : f32
    %260 = vector.broadcast %cst_84 : f32 to vector<2x14x14xf32>
    %c48 = arith.constant 48 : index
    %261 = memref.load %arg1[%c48] : memref<96xf32, #tpu.memory_space<smem>>
    %262 = vector.broadcast %261 : f32 to vector<2x14x14xf32>
    %263 = arith.mulf %262, %1 : vector<2x14x14xf32>
    %264 = arith.addf %260, %263 : vector<2x14x14xf32>
    %c49 = arith.constant 49 : index
    %265 = memref.load %arg1[%c49] : memref<96xf32, #tpu.memory_space<smem>>
    %266 = vector.broadcast %265 : f32 to vector<2x14x14xf32>
    %267 = arith.mulf %266, %3 : vector<2x14x14xf32>
    %268 = arith.addf %264, %267 : vector<2x14x14xf32>
    %c50 = arith.constant 50 : index
    %269 = memref.load %arg1[%c50] : memref<96xf32, #tpu.memory_space<smem>>
    %270 = vector.broadcast %269 : f32 to vector<2x14x14xf32>
    %271 = arith.mulf %270, %5 : vector<2x14x14xf32>
    %272 = arith.addf %268, %271 : vector<2x14x14xf32>
    %c51 = arith.constant 51 : index
    %273 = memref.load %arg1[%c51] : memref<96xf32, #tpu.memory_space<smem>>
    %274 = vector.broadcast %273 : f32 to vector<2x14x14xf32>
    %275 = arith.mulf %274, %7 : vector<2x14x14xf32>
    %276 = arith.addf %272, %275 : vector<2x14x14xf32>
    %c52 = arith.constant 52 : index
    %277 = memref.load %arg1[%c52] : memref<96xf32, #tpu.memory_space<smem>>
    %278 = vector.broadcast %277 : f32 to vector<2x14x14xf32>
    %279 = arith.mulf %278, %9 : vector<2x14x14xf32>
    %280 = arith.addf %276, %279 : vector<2x14x14xf32>
    %c53 = arith.constant 53 : index
    %281 = memref.load %arg1[%c53] : memref<96xf32, #tpu.memory_space<smem>>
    %282 = vector.broadcast %281 : f32 to vector<2x14x14xf32>
    %283 = arith.mulf %282, %11 : vector<2x14x14xf32>
    %284 = arith.addf %280, %283 : vector<2x14x14xf32>
    %c54 = arith.constant 54 : index
    %285 = memref.load %arg1[%c54] : memref<96xf32, #tpu.memory_space<smem>>
    %286 = vector.broadcast %285 : f32 to vector<2x14x14xf32>
    %287 = arith.mulf %286, %13 : vector<2x14x14xf32>
    %288 = arith.addf %284, %287 : vector<2x14x14xf32>
    %c55 = arith.constant 55 : index
    %289 = memref.load %arg1[%c55] : memref<96xf32, #tpu.memory_space<smem>>
    %290 = vector.broadcast %289 : f32 to vector<2x14x14xf32>
    %291 = arith.mulf %290, %15 : vector<2x14x14xf32>
    %292 = arith.addf %288, %291 : vector<2x14x14xf32>
    %c56 = arith.constant 56 : index
    %293 = memref.load %arg1[%c56] : memref<96xf32, #tpu.memory_space<smem>>
    %294 = vector.broadcast %293 : f32 to vector<2x14x14xf32>
    %295 = arith.mulf %294, %17 : vector<2x14x14xf32>
    %296 = arith.addf %292, %295 : vector<2x14x14xf32>
    %c57 = arith.constant 57 : index
    %297 = memref.load %arg1[%c57] : memref<96xf32, #tpu.memory_space<smem>>
    %298 = vector.broadcast %297 : f32 to vector<2x14x14xf32>
    %299 = arith.mulf %298, %19 : vector<2x14x14xf32>
    %300 = arith.addf %296, %299 : vector<2x14x14xf32>
    %c58 = arith.constant 58 : index
    %301 = memref.load %arg1[%c58] : memref<96xf32, #tpu.memory_space<smem>>
    %302 = vector.broadcast %301 : f32 to vector<2x14x14xf32>
    %303 = arith.mulf %302, %21 : vector<2x14x14xf32>
    %304 = arith.addf %300, %303 : vector<2x14x14xf32>
    %c59 = arith.constant 59 : index
    %305 = memref.load %arg1[%c59] : memref<96xf32, #tpu.memory_space<smem>>
    %306 = vector.broadcast %305 : f32 to vector<2x14x14xf32>
    %307 = arith.mulf %306, %23 : vector<2x14x14xf32>
    %308 = arith.addf %304, %307 : vector<2x14x14xf32>
    %c60 = arith.constant 60 : index
    %309 = memref.load %arg1[%c60] : memref<96xf32, #tpu.memory_space<smem>>
    %310 = vector.broadcast %309 : f32 to vector<2x14x14xf32>
    %311 = arith.mulf %310, %25 : vector<2x14x14xf32>
    %312 = arith.addf %308, %311 : vector<2x14x14xf32>
    %c61 = arith.constant 61 : index
    %313 = memref.load %arg1[%c61] : memref<96xf32, #tpu.memory_space<smem>>
    %314 = vector.broadcast %313 : f32 to vector<2x14x14xf32>
    %315 = arith.mulf %314, %27 : vector<2x14x14xf32>
    %316 = arith.addf %312, %315 : vector<2x14x14xf32>
    %c62 = arith.constant 62 : index
    %317 = memref.load %arg1[%c62] : memref<96xf32, #tpu.memory_space<smem>>
    %318 = vector.broadcast %317 : f32 to vector<2x14x14xf32>
    %319 = arith.mulf %318, %29 : vector<2x14x14xf32>
    %320 = arith.addf %316, %319 : vector<2x14x14xf32>
    %c63 = arith.constant 63 : index
    %321 = memref.load %arg1[%c63] : memref<96xf32, #tpu.memory_space<smem>>
    %322 = vector.broadcast %321 : f32 to vector<2x14x14xf32>
    %323 = arith.mulf %322, %31 : vector<2x14x14xf32>
    %324 = arith.addf %320, %323 : vector<2x14x14xf32>
    %c3_85 = arith.constant 3 : index
    %325 = memref.load %arg2[%c3_85] : memref<6xf32, #tpu.memory_space<smem>>
    %326 = vector.broadcast %325 : f32 to vector<2x14x14xf32>
    %327 = arith.addf %324, %326 : vector<2x14x14xf32>
    %328 = arith.negf %327 : vector<2x14x14xf32>
    %329 = math.exp %328 : vector<2x14x14xf32>
    %cst_86 = arith.constant 1.000000e+00 : f32
    %330 = vector.broadcast %cst_86 : f32 to vector<2x14x14xf32>
    %331 = arith.addf %330, %329 : vector<2x14x14xf32>
    %332 = arith.divf %330, %331 : vector<2x14x14xf32>
    %c3_87 = arith.constant 3 : index
    %c0_88 = arith.constant 0 : index
    %c0_89 = arith.constant 0 : index
    %c0_90 = arith.constant 0 : index
    %333 = vector.load %arg4[%c3_87, %c0_88, %c0_89, %c0_90] : memref<6x2x14x14xf32, #tpu.memory_space<vmem>>, vector<1x2x14x14xf32>
    %334 = vector.shape_cast %333 : vector<1x2x14x14xf32> to vector<2x14x14xf32>
    %335 = vector.shape_cast %332 : vector<2x14x14xf32> to vector<1x2x14x14xf32>
    tpu.vector_store %arg4[%c3_87, %c0_88, %c0_89, %c0_90], %335 {strides = array<i32>} : memref<6x2x14x14xf32, #tpu.memory_space<vmem>>, vector<1x2x14x14xf32>,
    %cst_91 = arith.constant 0.000000e+00 : f32
    %336 = vector.broadcast %cst_91 : f32 to vector<2x14x14xf32>
    %c64 = arith.constant 64 : index
    %337 = memref.load %arg1[%c64] : memref<96xf32, #tpu.memory_space<smem>>
    %338 = vector.broadcast %337 : f32 to vector<2x14x14xf32>
    %339 = arith.mulf %338, %1 : vector<2x14x14xf32>
    %340 = arith.addf %336, %339 : vector<2x14x14xf32>
    %c65 = arith.constant 65 : index
    %341 = memref.load %arg1[%c65] : memref<96xf32, #tpu.memory_space<smem>>
    %342 = vector.broadcast %341 : f32 to vector<2x14x14xf32>
    %343 = arith.mulf %342, %3 : vector<2x14x14xf32>
    %344 = arith.addf %340, %343 : vector<2x14x14xf32>
    %c66 = arith.constant 66 : index
    %345 = memref.load %arg1[%c66] : memref<96xf32, #tpu.memory_space<smem>>
    %346 = vector.broadcast %345 : f32 to vector<2x14x14xf32>
    %347 = arith.mulf %346, %5 : vector<2x14x14xf32>
    %348 = arith.addf %344, %347 : vector<2x14x14xf32>
    %c67 = arith.constant 67 : index
    %349 = memref.load %arg1[%c67] : memref<96xf32, #tpu.memory_space<smem>>
    %350 = vector.broadcast %349 : f32 to vector<2x14x14xf32>
    %351 = arith.mulf %350, %7 : vector<2x14x14xf32>
    %352 = arith.addf %348, %351 : vector<2x14x14xf32>
    %c68 = arith.constant 68 : index
    %353 = memref.load %arg1[%c68] : memref<96xf32, #tpu.memory_space<smem>>
    %354 = vector.broadcast %353 : f32 to vector<2x14x14xf32>
    %355 = arith.mulf %354, %9 : vector<2x14x14xf32>
    %356 = arith.addf %352, %355 : vector<2x14x14xf32>
    %c69 = arith.constant 69 : index
    %357 = memref.load %arg1[%c69] : memref<96xf32, #tpu.memory_space<smem>>
    %358 = vector.broadcast %357 : f32 to vector<2x14x14xf32>
    %359 = arith.mulf %358, %11 : vector<2x14x14xf32>
    %360 = arith.addf %356, %359 : vector<2x14x14xf32>
    %c70 = arith.constant 70 : index
    %361 = memref.load %arg1[%c70] : memref<96xf32, #tpu.memory_space<smem>>
    %362 = vector.broadcast %361 : f32 to vector<2x14x14xf32>
    %363 = arith.mulf %362, %13 : vector<2x14x14xf32>
    %364 = arith.addf %360, %363 : vector<2x14x14xf32>
    %c71 = arith.constant 71 : index
    %365 = memref.load %arg1[%c71] : memref<96xf32, #tpu.memory_space<smem>>
    %366 = vector.broadcast %365 : f32 to vector<2x14x14xf32>
    %367 = arith.mulf %366, %15 : vector<2x14x14xf32>
    %368 = arith.addf %364, %367 : vector<2x14x14xf32>
    %c72 = arith.constant 72 : index
    %369 = memref.load %arg1[%c72] : memref<96xf32, #tpu.memory_space<smem>>
    %370 = vector.broadcast %369 : f32 to vector<2x14x14xf32>
    %371 = arith.mulf %370, %17 : vector<2x14x14xf32>
    %372 = arith.addf %368, %371 : vector<2x14x14xf32>
    %c73 = arith.constant 73 : index
    %373 = memref.load %arg1[%c73] : memref<96xf32, #tpu.memory_space<smem>>
    %374 = vector.broadcast %373 : f32 to vector<2x14x14xf32>
    %375 = arith.mulf %374, %19 : vector<2x14x14xf32>
    %376 = arith.addf %372, %375 : vector<2x14x14xf32>
    %c74 = arith.constant 74 : index
    %377 = memref.load %arg1[%c74] : memref<96xf32, #tpu.memory_space<smem>>
    %378 = vector.broadcast %377 : f32 to vector<2x14x14xf32>
    %379 = arith.mulf %378, %21 : vector<2x14x14xf32>
    %380 = arith.addf %376, %379 : vector<2x14x14xf32>
    %c75 = arith.constant 75 : index
    %381 = memref.load %arg1[%c75] : memref<96xf32, #tpu.memory_space<smem>>
    %382 = vector.broadcast %381 : f32 to vector<2x14x14xf32>
    %383 = arith.mulf %382, %23 : vector<2x14x14xf32>
    %384 = arith.addf %380, %383 : vector<2x14x14xf32>
    %c76 = arith.constant 76 : index
    %385 = memref.load %arg1[%c76] : memref<96xf32, #tpu.memory_space<smem>>
    %386 = vector.broadcast %385 : f32 to vector<2x14x14xf32>
    %387 = arith.mulf %386, %25 : vector<2x14x14xf32>
    %388 = arith.addf %384, %387 : vector<2x14x14xf32>
    %c77 = arith.constant 77 : index
    %389 = memref.load %arg1[%c77] : memref<96xf32, #tpu.memory_space<smem>>
    %390 = vector.broadcast %389 : f32 to vector<2x14x14xf32>
    %391 = arith.mulf %390, %27 : vector<2x14x14xf32>
    %392 = arith.addf %388, %391 : vector<2x14x14xf32>
    %c78 = arith.constant 78 : index
    %393 = memref.load %arg1[%c78] : memref<96xf32, #tpu.memory_space<smem>>
    %394 = vector.broadcast %393 : f32 to vector<2x14x14xf32>
    %395 = arith.mulf %394, %29 : vector<2x14x14xf32>
    %396 = arith.addf %392, %395 : vector<2x14x14xf32>
    %c79 = arith.constant 79 : index
    %397 = memref.load %arg1[%c79] : memref<96xf32, #tpu.memory_space<smem>>
    %398 = vector.broadcast %397 : f32 to vector<2x14x14xf32>
    %399 = arith.mulf %398, %31 : vector<2x14x14xf32>
    %400 = arith.addf %396, %399 : vector<2x14x14xf32>
    %c4_92 = arith.constant 4 : index
    %401 = memref.load %arg2[%c4_92] : memref<6xf32, #tpu.memory_space<smem>>
    %402 = vector.broadcast %401 : f32 to vector<2x14x14xf32>
    %403 = arith.addf %400, %402 : vector<2x14x14xf32>
    %404 = arith.negf %403 : vector<2x14x14xf32>
    %405 = math.exp %404 : vector<2x14x14xf32>
    %cst_93 = arith.constant 1.000000e+00 : f32
    %406 = vector.broadcast %cst_93 : f32 to vector<2x14x14xf32>
    %407 = arith.addf %406, %405 : vector<2x14x14xf32>
    %408 = arith.divf %406, %407 : vector<2x14x14xf32>
    %c4_94 = arith.constant 4 : index
    %c0_95 = arith.constant 0 : index
    %c0_96 = arith.constant 0 : index
    %c0_97 = arith.constant 0 : index
    %409 = vector.load %arg4[%c4_94, %c0_95, %c0_96, %c0_97] : memref<6x2x14x14xf32, #tpu.memory_space<vmem>>, vector<1x2x14x14xf32>
    %410 = vector.shape_cast %409 : vector<1x2x14x14xf32> to vector<2x14x14xf32>
    %411 = vector.shape_cast %408 : vector<2x14x14xf32> to vector<1x2x14x14xf32>
    tpu.vector_store %arg4[%c4_94, %c0_95, %c0_96, %c0_97], %411 {strides = array<i32>} : memref<6x2x14x14xf32, #tpu.memory_space<vmem>>, vector<1x2x14x14xf32>,
    %cst_98 = arith.constant 0.000000e+00 : f32
    %412 = vector.broadcast %cst_98 : f32 to vector<2x14x14xf32>
    %c80 = arith.constant 80 : index
    %413 = memref.load %arg1[%c80] : memref<96xf32, #tpu.memory_space<smem>>
    %414 = vector.broadcast %413 : f32 to vector<2x14x14xf32>
    %415 = arith.mulf %414, %1 : vector<2x14x14xf32>
    %416 = arith.addf %412, %415 : vector<2x14x14xf32>
    %c81 = arith.constant 81 : index
    %417 = memref.load %arg1[%c81] : memref<96xf32, #tpu.memory_space<smem>>
    %418 = vector.broadcast %417 : f32 to vector<2x14x14xf32>
    %419 = arith.mulf %418, %3 : vector<2x14x14xf32>
    %420 = arith.addf %416, %419 : vector<2x14x14xf32>
    %c82 = arith.constant 82 : index
    %421 = memref.load %arg1[%c82] : memref<96xf32, #tpu.memory_space<smem>>
    %422 = vector.broadcast %421 : f32 to vector<2x14x14xf32>
    %423 = arith.mulf %422, %5 : vector<2x14x14xf32>
    %424 = arith.addf %420, %423 : vector<2x14x14xf32>
    %c83 = arith.constant 83 : index
    %425 = memref.load %arg1[%c83] : memref<96xf32, #tpu.memory_space<smem>>
    %426 = vector.broadcast %425 : f32 to vector<2x14x14xf32>
    %427 = arith.mulf %426, %7 : vector<2x14x14xf32>
    %428 = arith.addf %424, %427 : vector<2x14x14xf32>
    %c84 = arith.constant 84 : index
    %429 = memref.load %arg1[%c84] : memref<96xf32, #tpu.memory_space<smem>>
    %430 = vector.broadcast %429 : f32 to vector<2x14x14xf32>
    %431 = arith.mulf %430, %9 : vector<2x14x14xf32>
    %432 = arith.addf %428, %431 : vector<2x14x14xf32>
    %c85 = arith.constant 85 : index
    %433 = memref.load %arg1[%c85] : memref<96xf32, #tpu.memory_space<smem>>
    %434 = vector.broadcast %433 : f32 to vector<2x14x14xf32>
    %435 = arith.mulf %434, %11 : vector<2x14x14xf32>
    %436 = arith.addf %432, %435 : vector<2x14x14xf32>
    %c86 = arith.constant 86 : index
    %437 = memref.load %arg1[%c86] : memref<96xf32, #tpu.memory_space<smem>>
    %438 = vector.broadcast %437 : f32 to vector<2x14x14xf32>
    %439 = arith.mulf %438, %13 : vector<2x14x14xf32>
    %440 = arith.addf %436, %439 : vector<2x14x14xf32>
    %c87 = arith.constant 87 : index
    %441 = memref.load %arg1[%c87] : memref<96xf32, #tpu.memory_space<smem>>
    %442 = vector.broadcast %441 : f32 to vector<2x14x14xf32>
    %443 = arith.mulf %442, %15 : vector<2x14x14xf32>
    %444 = arith.addf %440, %443 : vector<2x14x14xf32>
    %c88 = arith.constant 88 : index
    %445 = memref.load %arg1[%c88] : memref<96xf32, #tpu.memory_space<smem>>
    %446 = vector.broadcast %445 : f32 to vector<2x14x14xf32>
    %447 = arith.mulf %446, %17 : vector<2x14x14xf32>
    %448 = arith.addf %444, %447 : vector<2x14x14xf32>
    %c89 = arith.constant 89 : index
    %449 = memref.load %arg1[%c89] : memref<96xf32, #tpu.memory_space<smem>>
    %450 = vector.broadcast %449 : f32 to vector<2x14x14xf32>
    %451 = arith.mulf %450, %19 : vector<2x14x14xf32>
    %452 = arith.addf %448, %451 : vector<2x14x14xf32>
    %c90 = arith.constant 90 : index
    %453 = memref.load %arg1[%c90] : memref<96xf32, #tpu.memory_space<smem>>
    %454 = vector.broadcast %453 : f32 to vector<2x14x14xf32>
    %455 = arith.mulf %454, %21 : vector<2x14x14xf32>
    %456 = arith.addf %452, %455 : vector<2x14x14xf32>
    %c91 = arith.constant 91 : index
    %457 = memref.load %arg1[%c91] : memref<96xf32, #tpu.memory_space<smem>>
    %458 = vector.broadcast %457 : f32 to vector<2x14x14xf32>
    %459 = arith.mulf %458, %23 : vector<2x14x14xf32>
    %460 = arith.addf %456, %459 : vector<2x14x14xf32>
    %c92 = arith.constant 92 : index
    %461 = memref.load %arg1[%c92] : memref<96xf32, #tpu.memory_space<smem>>
    %462 = vector.broadcast %461 : f32 to vector<2x14x14xf32>
    %463 = arith.mulf %462, %25 : vector<2x14x14xf32>
    %464 = arith.addf %460, %463 : vector<2x14x14xf32>
    %c93 = arith.constant 93 : index
    %465 = memref.load %arg1[%c93] : memref<96xf32, #tpu.memory_space<smem>>
    %466 = vector.broadcast %465 : f32 to vector<2x14x14xf32>
    %467 = arith.mulf %466, %27 : vector<2x14x14xf32>
    %468 = arith.addf %464, %467 : vector<2x14x14xf32>
    %c94 = arith.constant 94 : index
    %469 = memref.load %arg1[%c94] : memref<96xf32, #tpu.memory_space<smem>>
    %470 = vector.broadcast %469 : f32 to vector<2x14x14xf32>
    %471 = arith.mulf %470, %29 : vector<2x14x14xf32>
    %472 = arith.addf %468, %471 : vector<2x14x14xf32>
    %c95 = arith.constant 95 : index
    %473 = memref.load %arg1[%c95] : memref<96xf32, #tpu.memory_space<smem>>
    %474 = vector.broadcast %473 : f32 to vector<2x14x14xf32>
    %475 = arith.mulf %474, %31 : vector<2x14x14xf32>
    %476 = arith.addf %472, %475 : vector<2x14x14xf32>
    %c5_99 = arith.constant 5 : index
    %477 = memref.load %arg2[%c5_99] : memref<6xf32, #tpu.memory_space<smem>>
    %478 = vector.broadcast %477 : f32 to vector<2x14x14xf32>
    %479 = arith.addf %476, %478 : vector<2x14x14xf32>
    %480 = arith.negf %479 : vector<2x14x14xf32>
    %481 = math.exp %480 : vector<2x14x14xf32>
    %cst_100 = arith.constant 1.000000e+00 : f32
    %482 = vector.broadcast %cst_100 : f32 to vector<2x14x14xf32>
    %483 = arith.addf %482, %481 : vector<2x14x14xf32>
    %484 = arith.divf %482, %483 : vector<2x14x14xf32>
    %c5_101 = arith.constant 5 : index
    %c0_102 = arith.constant 0 : index
    %c0_103 = arith.constant 0 : index
    %c0_104 = arith.constant 0 : index
    %485 = vector.load %arg4[%c5_101, %c0_102, %c0_103, %c0_104] : memref<6x2x14x14xf32, #tpu.memory_space<vmem>>, vector<1x2x14x14xf32>
    %486 = vector.shape_cast %485 : vector<1x2x14x14xf32> to vector<2x14x14xf32>
    %487 = vector.shape_cast %484 : vector<2x14x14xf32> to vector<1x2x14x14xf32>
    tpu.vector_store %arg4[%c5_101, %c0_102, %c0_103, %c0_104], %487 {strides = array<i32>} : memref<6x2x14x14xf32, #tpu.memory_space<vmem>>, vector<1x2x14x14xf32>,
    return
  }
  func.func @transform_0(%arg0: i32) -> i32 {
    %c0_i32 = arith.constant 0 : i32
    %c0_i32_0 = arith.constant 0 : i32
    return %c0_i32 : i32
  }
  func.func @transform_1(%arg0: i32) -> i32 {
    %c0_i32 = arith.constant 0 : i32
    %c0_i32_0 = arith.constant 0 : i32
    return %c0_i32 : i32
  }
  func.func @transform_2(%arg0: i32) -> (i32, i32, i32, i32) {
    %c0_i32 = arith.constant 0 : i32
    %c0_i32_0 = arith.constant 0 : i32
    %c0_i32_1 = arith.constant 0 : i32
    %c0_i32_2 = arith.constant 0 : i32
    %c0_i32_3 = arith.constant 0 : i32
    return %c0_i32, %c0_i32_0, %c0_i32_1, %c0_i32_2 : i32, i32, i32, i32
  }
  func.func @transform_3(%arg0: i32) -> (i32, i32, i32, i32) {
    %c0_i32 = arith.constant 0 : i32
    %c0_i32_0 = arith.constant 0 : i32
    %c0_i32_1 = arith.constant 0 : i32
    %c0_i32_2 = arith.constant 0 : i32
    %c0_i32_3 = arith.constant 0 : i32
    return %c0_i32, %c0_i32_0, %c0_i32_1, %c0_i32_2 : i32, i32, i32, i32
  }
}

module attributes {stable_mosaic.version = 11 : i64} {
  func.func @_fused_eic_kernel(%arg0: i32, %arg1: memref<9x2x256xf32, #tpu.memory_space<vmem>>, %arg2: memref<9x256x256xbf16, #tpu.memory_space<vmem>>, %arg3: memref<16x256x256xbf16, #tpu.memory_space<vmem>>, %arg4: memref<16x256x64xbf16, #tpu.memory_space<vmem>>, %arg5: memref<4x256x64xbf16, #tpu.memory_space<vmem>>, %arg6: memref<256x10xbf16, #tpu.memory_space<vmem>>, %arg7: memref<1x10xf32, #tpu.memory_space<vmem>>, %arg8: memref<2x10xf32, #tpu.memory_space<vmem>>) attributes {dimension_semantics = [#tpu.dimension_semantics<parallel>], iteration_bounds = array<i64: 1>, scalar_prefetch = 0 : i64, scratch_operands = 0 : i64, tpu.core_type = #tpu.core_type<tc>, window_params = [{pipeline_mode = #tpu.pipeline_mode<synchronous>, transform_indices = @transform_0, window_bounds = array<i64: 9, 2, 256>}, {pipeline_mode = #tpu.pipeline_mode<synchronous>, transform_indices = @transform_1, window_bounds = array<i64: 9, 256, 256>}, {pipeline_mode = #tpu.pipeline_mode<synchronous>, transform_indices = @transform_2, window_bounds = array<i64: 16, 256, 256>}, {pipeline_mode = #tpu.pipeline_mode<synchronous>, transform_indices = @transform_3, window_bounds = array<i64: 16, 256, 64>}, {pipeline_mode = #tpu.pipeline_mode<synchronous>, transform_indices = @transform_4, window_bounds = array<i64: 4, 256, 64>}, {pipeline_mode = #tpu.pipeline_mode<synchronous>, transform_indices = @transform_5, window_bounds = array<i64: 256, 10>}, {pipeline_mode = #tpu.pipeline_mode<synchronous>, transform_indices = @transform_6, window_bounds = array<i64: 1, 10>}, {pipeline_mode = #tpu.pipeline_mode<synchronous>, transform_indices = @transform_7, window_bounds = array<i64: 2, 10>}]} {
    %cst = arith.constant 0.000000e+00 : f32
    %0 = vector.broadcast %cst : f32 to vector<2x256xf32>
    %cst_0 = arith.constant 0.000000e+00 : f32
    %1 = vector.broadcast %cst_0 : f32 to vector<2x64xf32>
    %c0 = arith.constant 0 : index
    %c0_1 = arith.constant 0 : index
    %c0_2 = arith.constant 0 : index
    %2 = vector.load %arg1[%c0, %c0_1, %c0_2] : memref<9x2x256xf32, #tpu.memory_space<vmem>>, vector<1x2x256xf32>
    %3 = vector.shape_cast %2 : vector<1x2x256xf32> to vector<2x256xf32>
    %c0_3 = arith.constant 0 : index
    %c0_4 = arith.constant 0 : index
    %c0_5 = arith.constant 0 : index
    %4 = vector.load %arg2[%c0_3, %c0_4, %c0_5] : memref<9x256x256xbf16, #tpu.memory_space<vmem>>, vector<1x256x256xbf16>
    %5 = vector.shape_cast %4 : vector<1x256x256xbf16> to vector<256x256xbf16>
    %6 = arith.truncf %3 : vector<2x256xf32> to vector<2x256xbf16>
    %cst_6 = arith.constant dense<0.000000e+00> : vector<2x256xf32>
    %7 = tpu.matmul %6, %5, %cst_6 {dimension_numbers = #tpu.dot_dimension_numbers<[1], [0], [0], [1], [0, 0, 1, 1], [], []>} : vector<2x256xbf16>, vector<256x256xbf16>, vector<2x256xf32> -> vector<2x256xf32>
    %cst_7 = arith.constant dense<0xFF800000> : vector<2xf32>
    %8 = vector.multi_reduction <maximumf>, %7, %cst_7 [1] : vector<2x256xf32> to vector<2xf32>
    %9 = vector.shape_cast %8 : vector<2xf32> to vector<2x1xf32>
    %cst_8 = arith.constant 5.000000e-01 : f32
    %10 = vector.broadcast %cst_8 : f32 to vector<2x1xf32>
    %11 = arith.mulf %10, %9 : vector<2x1xf32>
    %12 = vector.broadcast %11 : vector<2x1xf32> to vector<2x256xf32>
    %13 = arith.subf %7, %12 : vector<2x256xf32>
    %14 = arith.negf %13 : vector<2x256xf32>
    %15 = math.exp %14 : vector<2x256xf32>
    %cst_9 = arith.constant 1.000000e+00 : f32
    %16 = vector.broadcast %cst_9 : f32 to vector<2x256xf32>
    %17 = arith.addf %16, %15 : vector<2x256xf32>
    %18 = arith.divf %16, %17 : vector<2x256xf32>
    %c1 = arith.constant 1 : index
    %c0_10 = arith.constant 0 : index
    %c0_11 = arith.constant 0 : index
    %19 = vector.load %arg1[%c1, %c0_10, %c0_11] : memref<9x2x256xf32, #tpu.memory_space<vmem>>, vector<1x2x256xf32>
    %20 = vector.shape_cast %19 : vector<1x2x256xf32> to vector<2x256xf32>
    %c1_12 = arith.constant 1 : index
    %c0_13 = arith.constant 0 : index
    %c0_14 = arith.constant 0 : index
    %21 = vector.load %arg2[%c1_12, %c0_13, %c0_14] : memref<9x256x256xbf16, #tpu.memory_space<vmem>>, vector<1x256x256xbf16>
    %22 = vector.shape_cast %21 : vector<1x256x256xbf16> to vector<256x256xbf16>
    %23 = arith.truncf %20 : vector<2x256xf32> to vector<2x256xbf16>
    %cst_15 = arith.constant dense<0.000000e+00> : vector<2x256xf32>
    %24 = tpu.matmul %23, %22, %cst_15 {dimension_numbers = #tpu.dot_dimension_numbers<[1], [0], [0], [1], [0, 0, 1, 1], [], []>} : vector<2x256xbf16>, vector<256x256xbf16>, vector<2x256xf32> -> vector<2x256xf32>
    %cst_16 = arith.constant dense<0xFF800000> : vector<2xf32>
    %25 = vector.multi_reduction <maximumf>, %24, %cst_16 [1] : vector<2x256xf32> to vector<2xf32>
    %26 = vector.shape_cast %25 : vector<2xf32> to vector<2x1xf32>
    %cst_17 = arith.constant 5.000000e-01 : f32
    %27 = vector.broadcast %cst_17 : f32 to vector<2x1xf32>
    %28 = arith.mulf %27, %26 : vector<2x1xf32>
    %29 = vector.broadcast %28 : vector<2x1xf32> to vector<2x256xf32>
    %30 = arith.subf %24, %29 : vector<2x256xf32>
    %31 = arith.negf %30 : vector<2x256xf32>
    %32 = math.exp %31 : vector<2x256xf32>
    %cst_18 = arith.constant 1.000000e+00 : f32
    %33 = vector.broadcast %cst_18 : f32 to vector<2x256xf32>
    %34 = arith.addf %33, %32 : vector<2x256xf32>
    %35 = arith.divf %33, %34 : vector<2x256xf32>
    %c2 = arith.constant 2 : index
    %c0_19 = arith.constant 0 : index
    %c0_20 = arith.constant 0 : index
    %36 = vector.load %arg1[%c2, %c0_19, %c0_20] : memref<9x2x256xf32, #tpu.memory_space<vmem>>, vector<1x2x256xf32>
    %37 = vector.shape_cast %36 : vector<1x2x256xf32> to vector<2x256xf32>
    %c2_21 = arith.constant 2 : index
    %c0_22 = arith.constant 0 : index
    %c0_23 = arith.constant 0 : index
    %38 = vector.load %arg2[%c2_21, %c0_22, %c0_23] : memref<9x256x256xbf16, #tpu.memory_space<vmem>>, vector<1x256x256xbf16>
    %39 = vector.shape_cast %38 : vector<1x256x256xbf16> to vector<256x256xbf16>
    %40 = arith.truncf %37 : vector<2x256xf32> to vector<2x256xbf16>
    %cst_24 = arith.constant dense<0.000000e+00> : vector<2x256xf32>
    %41 = tpu.matmul %40, %39, %cst_24 {dimension_numbers = #tpu.dot_dimension_numbers<[1], [0], [0], [1], [0, 0, 1, 1], [], []>} : vector<2x256xbf16>, vector<256x256xbf16>, vector<2x256xf32> -> vector<2x256xf32>
    %cst_25 = arith.constant dense<0xFF800000> : vector<2xf32>
    %42 = vector.multi_reduction <maximumf>, %41, %cst_25 [1] : vector<2x256xf32> to vector<2xf32>
    %43 = vector.shape_cast %42 : vector<2xf32> to vector<2x1xf32>
    %cst_26 = arith.constant 5.000000e-01 : f32
    %44 = vector.broadcast %cst_26 : f32 to vector<2x1xf32>
    %45 = arith.mulf %44, %43 : vector<2x1xf32>
    %46 = vector.broadcast %45 : vector<2x1xf32> to vector<2x256xf32>
    %47 = arith.subf %41, %46 : vector<2x256xf32>
    %48 = arith.negf %47 : vector<2x256xf32>
    %49 = math.exp %48 : vector<2x256xf32>
    %cst_27 = arith.constant 1.000000e+00 : f32
    %50 = vector.broadcast %cst_27 : f32 to vector<2x256xf32>
    %51 = arith.addf %50, %49 : vector<2x256xf32>
    %52 = arith.divf %50, %51 : vector<2x256xf32>
    %c3 = arith.constant 3 : index
    %c0_28 = arith.constant 0 : index
    %c0_29 = arith.constant 0 : index
    %53 = vector.load %arg1[%c3, %c0_28, %c0_29] : memref<9x2x256xf32, #tpu.memory_space<vmem>>, vector<1x2x256xf32>
    %54 = vector.shape_cast %53 : vector<1x2x256xf32> to vector<2x256xf32>
    %c3_30 = arith.constant 3 : index
    %c0_31 = arith.constant 0 : index
    %c0_32 = arith.constant 0 : index
    %55 = vector.load %arg2[%c3_30, %c0_31, %c0_32] : memref<9x256x256xbf16, #tpu.memory_space<vmem>>, vector<1x256x256xbf16>
    %56 = vector.shape_cast %55 : vector<1x256x256xbf16> to vector<256x256xbf16>
    %57 = arith.truncf %54 : vector<2x256xf32> to vector<2x256xbf16>
    %cst_33 = arith.constant dense<0.000000e+00> : vector<2x256xf32>
    %58 = tpu.matmul %57, %56, %cst_33 {dimension_numbers = #tpu.dot_dimension_numbers<[1], [0], [0], [1], [0, 0, 1, 1], [], []>} : vector<2x256xbf16>, vector<256x256xbf16>, vector<2x256xf32> -> vector<2x256xf32>
    %cst_34 = arith.constant dense<0xFF800000> : vector<2xf32>
    %59 = vector.multi_reduction <maximumf>, %58, %cst_34 [1] : vector<2x256xf32> to vector<2xf32>
    %60 = vector.shape_cast %59 : vector<2xf32> to vector<2x1xf32>
    %cst_35 = arith.constant 5.000000e-01 : f32
    %61 = vector.broadcast %cst_35 : f32 to vector<2x1xf32>
    %62 = arith.mulf %61, %60 : vector<2x1xf32>
    %63 = vector.broadcast %62 : vector<2x1xf32> to vector<2x256xf32>
    %64 = arith.subf %58, %63 : vector<2x256xf32>
    %65 = arith.negf %64 : vector<2x256xf32>
    %66 = math.exp %65 : vector<2x256xf32>
    %cst_36 = arith.constant 1.000000e+00 : f32
    %67 = vector.broadcast %cst_36 : f32 to vector<2x256xf32>
    %68 = arith.addf %67, %66 : vector<2x256xf32>
    %69 = arith.divf %67, %68 : vector<2x256xf32>
    %c4 = arith.constant 4 : index
    %c0_37 = arith.constant 0 : index
    %c0_38 = arith.constant 0 : index
    %70 = vector.load %arg1[%c4, %c0_37, %c0_38] : memref<9x2x256xf32, #tpu.memory_space<vmem>>, vector<1x2x256xf32>
    %71 = vector.shape_cast %70 : vector<1x2x256xf32> to vector<2x256xf32>
    %c4_39 = arith.constant 4 : index
    %c0_40 = arith.constant 0 : index
    %c0_41 = arith.constant 0 : index
    %72 = vector.load %arg2[%c4_39, %c0_40, %c0_41] : memref<9x256x256xbf16, #tpu.memory_space<vmem>>, vector<1x256x256xbf16>
    %73 = vector.shape_cast %72 : vector<1x256x256xbf16> to vector<256x256xbf16>
    %74 = arith.truncf %71 : vector<2x256xf32> to vector<2x256xbf16>
    %cst_42 = arith.constant dense<0.000000e+00> : vector<2x256xf32>
    %75 = tpu.matmul %74, %73, %cst_42 {dimension_numbers = #tpu.dot_dimension_numbers<[1], [0], [0], [1], [0, 0, 1, 1], [], []>} : vector<2x256xbf16>, vector<256x256xbf16>, vector<2x256xf32> -> vector<2x256xf32>
    %cst_43 = arith.constant dense<0xFF800000> : vector<2xf32>
    %76 = vector.multi_reduction <maximumf>, %75, %cst_43 [1] : vector<2x256xf32> to vector<2xf32>
    %77 = vector.shape_cast %76 : vector<2xf32> to vector<2x1xf32>
    %cst_44 = arith.constant 5.000000e-01 : f32
    %78 = vector.broadcast %cst_44 : f32 to vector<2x1xf32>
    %79 = arith.mulf %78, %77 : vector<2x1xf32>
    %80 = vector.broadcast %79 : vector<2x1xf32> to vector<2x256xf32>
    %81 = arith.subf %75, %80 : vector<2x256xf32>
    %82 = arith.negf %81 : vector<2x256xf32>
    %83 = math.exp %82 : vector<2x256xf32>
    %cst_45 = arith.constant 1.000000e+00 : f32
    %84 = vector.broadcast %cst_45 : f32 to vector<2x256xf32>
    %85 = arith.addf %84, %83 : vector<2x256xf32>
    %86 = arith.divf %84, %85 : vector<2x256xf32>
    %c5 = arith.constant 5 : index
    %c0_46 = arith.constant 0 : index
    %c0_47 = arith.constant 0 : index
    %87 = vector.load %arg1[%c5, %c0_46, %c0_47] : memref<9x2x256xf32, #tpu.memory_space<vmem>>, vector<1x2x256xf32>
    %88 = vector.shape_cast %87 : vector<1x2x256xf32> to vector<2x256xf32>
    %c5_48 = arith.constant 5 : index
    %c0_49 = arith.constant 0 : index
    %c0_50 = arith.constant 0 : index
    %89 = vector.load %arg2[%c5_48, %c0_49, %c0_50] : memref<9x256x256xbf16, #tpu.memory_space<vmem>>, vector<1x256x256xbf16>
    %90 = vector.shape_cast %89 : vector<1x256x256xbf16> to vector<256x256xbf16>
    %91 = arith.truncf %88 : vector<2x256xf32> to vector<2x256xbf16>
    %cst_51 = arith.constant dense<0.000000e+00> : vector<2x256xf32>
    %92 = tpu.matmul %91, %90, %cst_51 {dimension_numbers = #tpu.dot_dimension_numbers<[1], [0], [0], [1], [0, 0, 1, 1], [], []>} : vector<2x256xbf16>, vector<256x256xbf16>, vector<2x256xf32> -> vector<2x256xf32>
    %cst_52 = arith.constant dense<0xFF800000> : vector<2xf32>
    %93 = vector.multi_reduction <maximumf>, %92, %cst_52 [1] : vector<2x256xf32> to vector<2xf32>
    %94 = vector.shape_cast %93 : vector<2xf32> to vector<2x1xf32>
    %cst_53 = arith.constant 5.000000e-01 : f32
    %95 = vector.broadcast %cst_53 : f32 to vector<2x1xf32>
    %96 = arith.mulf %95, %94 : vector<2x1xf32>
    %97 = vector.broadcast %96 : vector<2x1xf32> to vector<2x256xf32>
    %98 = arith.subf %92, %97 : vector<2x256xf32>
    %99 = arith.negf %98 : vector<2x256xf32>
    %100 = math.exp %99 : vector<2x256xf32>
    %cst_54 = arith.constant 1.000000e+00 : f32
    %101 = vector.broadcast %cst_54 : f32 to vector<2x256xf32>
    %102 = arith.addf %101, %100 : vector<2x256xf32>
    %103 = arith.divf %101, %102 : vector<2x256xf32>
    %c6 = arith.constant 6 : index
    %c0_55 = arith.constant 0 : index
    %c0_56 = arith.constant 0 : index
    %104 = vector.load %arg1[%c6, %c0_55, %c0_56] : memref<9x2x256xf32, #tpu.memory_space<vmem>>, vector<1x2x256xf32>
    %105 = vector.shape_cast %104 : vector<1x2x256xf32> to vector<2x256xf32>
    %c6_57 = arith.constant 6 : index
    %c0_58 = arith.constant 0 : index
    %c0_59 = arith.constant 0 : index
    %106 = vector.load %arg2[%c6_57, %c0_58, %c0_59] : memref<9x256x256xbf16, #tpu.memory_space<vmem>>, vector<1x256x256xbf16>
    %107 = vector.shape_cast %106 : vector<1x256x256xbf16> to vector<256x256xbf16>
    %108 = arith.truncf %105 : vector<2x256xf32> to vector<2x256xbf16>
    %cst_60 = arith.constant dense<0.000000e+00> : vector<2x256xf32>
    %109 = tpu.matmul %108, %107, %cst_60 {dimension_numbers = #tpu.dot_dimension_numbers<[1], [0], [0], [1], [0, 0, 1, 1], [], []>} : vector<2x256xbf16>, vector<256x256xbf16>, vector<2x256xf32> -> vector<2x256xf32>
    %cst_61 = arith.constant dense<0xFF800000> : vector<2xf32>
    %110 = vector.multi_reduction <maximumf>, %109, %cst_61 [1] : vector<2x256xf32> to vector<2xf32>
    %111 = vector.shape_cast %110 : vector<2xf32> to vector<2x1xf32>
    %cst_62 = arith.constant 5.000000e-01 : f32
    %112 = vector.broadcast %cst_62 : f32 to vector<2x1xf32>
    %113 = arith.mulf %112, %111 : vector<2x1xf32>
    %114 = vector.broadcast %113 : vector<2x1xf32> to vector<2x256xf32>
    %115 = arith.subf %109, %114 : vector<2x256xf32>
    %116 = arith.negf %115 : vector<2x256xf32>
    %117 = math.exp %116 : vector<2x256xf32>
    %cst_63 = arith.constant 1.000000e+00 : f32
    %118 = vector.broadcast %cst_63 : f32 to vector<2x256xf32>
    %119 = arith.addf %118, %117 : vector<2x256xf32>
    %120 = arith.divf %118, %119 : vector<2x256xf32>
    %c7 = arith.constant 7 : index
    %c0_64 = arith.constant 0 : index
    %c0_65 = arith.constant 0 : index
    %121 = vector.load %arg1[%c7, %c0_64, %c0_65] : memref<9x2x256xf32, #tpu.memory_space<vmem>>, vector<1x2x256xf32>
    %122 = vector.shape_cast %121 : vector<1x2x256xf32> to vector<2x256xf32>
    %c7_66 = arith.constant 7 : index
    %c0_67 = arith.constant 0 : index
    %c0_68 = arith.constant 0 : index
    %123 = vector.load %arg2[%c7_66, %c0_67, %c0_68] : memref<9x256x256xbf16, #tpu.memory_space<vmem>>, vector<1x256x256xbf16>
    %124 = vector.shape_cast %123 : vector<1x256x256xbf16> to vector<256x256xbf16>
    %125 = arith.truncf %122 : vector<2x256xf32> to vector<2x256xbf16>
    %cst_69 = arith.constant dense<0.000000e+00> : vector<2x256xf32>
    %126 = tpu.matmul %125, %124, %cst_69 {dimension_numbers = #tpu.dot_dimension_numbers<[1], [0], [0], [1], [0, 0, 1, 1], [], []>} : vector<2x256xbf16>, vector<256x256xbf16>, vector<2x256xf32> -> vector<2x256xf32>
    %cst_70 = arith.constant dense<0xFF800000> : vector<2xf32>
    %127 = vector.multi_reduction <maximumf>, %126, %cst_70 [1] : vector<2x256xf32> to vector<2xf32>
    %128 = vector.shape_cast %127 : vector<2xf32> to vector<2x1xf32>
    %cst_71 = arith.constant 5.000000e-01 : f32
    %129 = vector.broadcast %cst_71 : f32 to vector<2x1xf32>
    %130 = arith.mulf %129, %128 : vector<2x1xf32>
    %131 = vector.broadcast %130 : vector<2x1xf32> to vector<2x256xf32>
    %132 = arith.subf %126, %131 : vector<2x256xf32>
    %133 = arith.negf %132 : vector<2x256xf32>
    %134 = math.exp %133 : vector<2x256xf32>
    %cst_72 = arith.constant 1.000000e+00 : f32
    %135 = vector.broadcast %cst_72 : f32 to vector<2x256xf32>
    %136 = arith.addf %135, %134 : vector<2x256xf32>
    %137 = arith.divf %135, %136 : vector<2x256xf32>
    %c8 = arith.constant 8 : index
    %c0_73 = arith.constant 0 : index
    %c0_74 = arith.constant 0 : index
    %138 = vector.load %arg1[%c8, %c0_73, %c0_74] : memref<9x2x256xf32, #tpu.memory_space<vmem>>, vector<1x2x256xf32>
    %139 = vector.shape_cast %138 : vector<1x2x256xf32> to vector<2x256xf32>
    %c8_75 = arith.constant 8 : index
    %c0_76 = arith.constant 0 : index
    %c0_77 = arith.constant 0 : index
    %140 = vector.load %arg2[%c8_75, %c0_76, %c0_77] : memref<9x256x256xbf16, #tpu.memory_space<vmem>>, vector<1x256x256xbf16>
    %141 = vector.shape_cast %140 : vector<1x256x256xbf16> to vector<256x256xbf16>
    %142 = arith.truncf %139 : vector<2x256xf32> to vector<2x256xbf16>
    %cst_78 = arith.constant dense<0.000000e+00> : vector<2x256xf32>
    %143 = tpu.matmul %142, %141, %cst_78 {dimension_numbers = #tpu.dot_dimension_numbers<[1], [0], [0], [1], [0, 0, 1, 1], [], []>} : vector<2x256xbf16>, vector<256x256xbf16>, vector<2x256xf32> -> vector<2x256xf32>
    %cst_79 = arith.constant dense<0xFF800000> : vector<2xf32>
    %144 = vector.multi_reduction <maximumf>, %143, %cst_79 [1] : vector<2x256xf32> to vector<2xf32>
    %145 = vector.shape_cast %144 : vector<2xf32> to vector<2x1xf32>
    %cst_80 = arith.constant 5.000000e-01 : f32
    %146 = vector.broadcast %cst_80 : f32 to vector<2x1xf32>
    %147 = arith.mulf %146, %145 : vector<2x1xf32>
    %148 = vector.broadcast %147 : vector<2x1xf32> to vector<2x256xf32>
    %149 = arith.subf %143, %148 : vector<2x256xf32>
    %150 = arith.negf %149 : vector<2x256xf32>
    %151 = math.exp %150 : vector<2x256xf32>
    %cst_81 = arith.constant 1.000000e+00 : f32
    %152 = vector.broadcast %cst_81 : f32 to vector<2x256xf32>
    %153 = arith.addf %152, %151 : vector<2x256xf32>
    %154 = arith.divf %152, %153 : vector<2x256xf32>
    %155 = vector.extract_strided_slice %18 {offsets = [0, 0], sizes = [2, 64], strides = [1, 1]} : vector<2x256xf32> to vector<2x64xf32>
    %156 = vector.extract_strided_slice %35 {offsets = [0, 0], sizes = [2, 64], strides = [1, 1]} : vector<2x256xf32> to vector<2x64xf32>
    %157 = vector.extract_strided_slice %52 {offsets = [0, 0], sizes = [2, 64], strides = [1, 1]} : vector<2x256xf32> to vector<2x64xf32>
    %158 = vector.extract_strided_slice %0 {offsets = [0, 0], sizes = [2, 64], strides = [1, 1]} : vector<2x256xf32> to vector<2x64xf32>
    %159 = tpu.concatenate %155, %156, %157, %158 in 1 : vector<2x64xf32>, vector<2x64xf32>, vector<2x64xf32>, vector<2x64xf32> -> vector<2x256xf32>
    %c0_82 = arith.constant 0 : index
    %c0_83 = arith.constant 0 : index
    %c0_84 = arith.constant 0 : index
    %160 = vector.load %arg3[%c0_82, %c0_83, %c0_84] : memref<16x256x256xbf16, #tpu.memory_space<vmem>>, vector<1x256x256xbf16>
    %161 = vector.shape_cast %160 : vector<1x256x256xbf16> to vector<256x256xbf16>
    %162 = arith.truncf %159 : vector<2x256xf32> to vector<2x256xbf16>
    %cst_85 = arith.constant dense<0.000000e+00> : vector<2x256xf32>
    %163 = tpu.matmul %162, %161, %cst_85 {dimension_numbers = #tpu.dot_dimension_numbers<[1], [0], [0], [1], [0, 0, 1, 1], [], []>} : vector<2x256xbf16>, vector<256x256xbf16>, vector<2x256xf32> -> vector<2x256xf32>
    %cst_86 = arith.constant dense<0xFF800000> : vector<2xf32>
    %164 = vector.multi_reduction <maximumf>, %163, %cst_86 [1] : vector<2x256xf32> to vector<2xf32>
    %165 = vector.shape_cast %164 : vector<2xf32> to vector<2x1xf32>
    %cst_87 = arith.constant 5.000000e-01 : f32
    %166 = vector.broadcast %cst_87 : f32 to vector<2x1xf32>
    %167 = arith.mulf %166, %165 : vector<2x1xf32>
    %168 = vector.broadcast %167 : vector<2x1xf32> to vector<2x256xf32>
    %169 = arith.subf %163, %168 : vector<2x256xf32>
    %170 = arith.negf %169 : vector<2x256xf32>
    %171 = math.exp %170 : vector<2x256xf32>
    %cst_88 = arith.constant 1.000000e+00 : f32
    %172 = vector.broadcast %cst_88 : f32 to vector<2x256xf32>
    %173 = arith.addf %172, %171 : vector<2x256xf32>
    %174 = arith.divf %172, %173 : vector<2x256xf32>
    %175 = vector.extract_strided_slice %18 {offsets = [0, 64], sizes = [2, 64], strides = [1, 1]} : vector<2x256xf32> to vector<2x64xf32>
    %176 = vector.extract_strided_slice %35 {offsets = [0, 64], sizes = [2, 64], strides = [1, 1]} : vector<2x256xf32> to vector<2x64xf32>
    %177 = vector.extract_strided_slice %52 {offsets = [0, 64], sizes = [2, 64], strides = [1, 1]} : vector<2x256xf32> to vector<2x64xf32>
    %178 = vector.extract_strided_slice %0 {offsets = [0, 64], sizes = [2, 64], strides = [1, 1]} : vector<2x256xf32> to vector<2x64xf32>
    %179 = tpu.concatenate %175, %176, %177, %178 in 1 : vector<2x64xf32>, vector<2x64xf32>, vector<2x64xf32>, vector<2x64xf32> -> vector<2x256xf32>
    %c1_89 = arith.constant 1 : index
    %c0_90 = arith.constant 0 : index
    %c0_91 = arith.constant 0 : index
    %180 = vector.load %arg3[%c1_89, %c0_90, %c0_91] : memref<16x256x256xbf16, #tpu.memory_space<vmem>>, vector<1x256x256xbf16>
    %181 = vector.shape_cast %180 : vector<1x256x256xbf16> to vector<256x256xbf16>
    %182 = arith.truncf %179 : vector<2x256xf32> to vector<2x256xbf16>
    %cst_92 = arith.constant dense<0.000000e+00> : vector<2x256xf32>
    %183 = tpu.matmul %182, %181, %cst_92 {dimension_numbers = #tpu.dot_dimension_numbers<[1], [0], [0], [1], [0, 0, 1, 1], [], []>} : vector<2x256xbf16>, vector<256x256xbf16>, vector<2x256xf32> -> vector<2x256xf32>
    %cst_93 = arith.constant dense<0xFF800000> : vector<2xf32>
    %184 = vector.multi_reduction <maximumf>, %183, %cst_93 [1] : vector<2x256xf32> to vector<2xf32>
    %185 = vector.shape_cast %184 : vector<2xf32> to vector<2x1xf32>
    %cst_94 = arith.constant 5.000000e-01 : f32
    %186 = vector.broadcast %cst_94 : f32 to vector<2x1xf32>
    %187 = arith.mulf %186, %185 : vector<2x1xf32>
    %188 = vector.broadcast %187 : vector<2x1xf32> to vector<2x256xf32>
    %189 = arith.subf %183, %188 : vector<2x256xf32>
    %190 = arith.negf %189 : vector<2x256xf32>
    %191 = math.exp %190 : vector<2x256xf32>
    %cst_95 = arith.constant 1.000000e+00 : f32
    %192 = vector.broadcast %cst_95 : f32 to vector<2x256xf32>
    %193 = arith.addf %192, %191 : vector<2x256xf32>
    %194 = arith.divf %192, %193 : vector<2x256xf32>
    %195 = vector.extract_strided_slice %18 {offsets = [0, 128], sizes = [2, 64], strides = [1, 1]} : vector<2x256xf32> to vector<2x64xf32>
    %196 = vector.extract_strided_slice %35 {offsets = [0, 128], sizes = [2, 64], strides = [1, 1]} : vector<2x256xf32> to vector<2x64xf32>
    %197 = vector.extract_strided_slice %52 {offsets = [0, 128], sizes = [2, 64], strides = [1, 1]} : vector<2x256xf32> to vector<2x64xf32>
    %198 = vector.extract_strided_slice %0 {offsets = [0, 128], sizes = [2, 64], strides = [1, 1]} : vector<2x256xf32> to vector<2x64xf32>
    %199 = tpu.concatenate %195, %196, %197, %198 in 1 : vector<2x64xf32>, vector<2x64xf32>, vector<2x64xf32>, vector<2x64xf32> -> vector<2x256xf32>
    %c2_96 = arith.constant 2 : index
    %c0_97 = arith.constant 0 : index
    %c0_98 = arith.constant 0 : index
    %200 = vector.load %arg3[%c2_96, %c0_97, %c0_98] : memref<16x256x256xbf16, #tpu.memory_space<vmem>>, vector<1x256x256xbf16>
    %201 = vector.shape_cast %200 : vector<1x256x256xbf16> to vector<256x256xbf16>
    %202 = arith.truncf %199 : vector<2x256xf32> to vector<2x256xbf16>
    %cst_99 = arith.constant dense<0.000000e+00> : vector<2x256xf32>
    %203 = tpu.matmul %202, %201, %cst_99 {dimension_numbers = #tpu.dot_dimension_numbers<[1], [0], [0], [1], [0, 0, 1, 1], [], []>} : vector<2x256xbf16>, vector<256x256xbf16>, vector<2x256xf32> -> vector<2x256xf32>
    %cst_100 = arith.constant dense<0xFF800000> : vector<2xf32>
    %204 = vector.multi_reduction <maximumf>, %203, %cst_100 [1] : vector<2x256xf32> to vector<2xf32>
    %205 = vector.shape_cast %204 : vector<2xf32> to vector<2x1xf32>
    %cst_101 = arith.constant 5.000000e-01 : f32
    %206 = vector.broadcast %cst_101 : f32 to vector<2x1xf32>
    %207 = arith.mulf %206, %205 : vector<2x1xf32>
    %208 = vector.broadcast %207 : vector<2x1xf32> to vector<2x256xf32>
    %209 = arith.subf %203, %208 : vector<2x256xf32>
    %210 = arith.negf %209 : vector<2x256xf32>
    %211 = math.exp %210 : vector<2x256xf32>
    %cst_102 = arith.constant 1.000000e+00 : f32
    %212 = vector.broadcast %cst_102 : f32 to vector<2x256xf32>
    %213 = arith.addf %212, %211 : vector<2x256xf32>
    %214 = arith.divf %212, %213 : vector<2x256xf32>
    %215 = vector.extract_strided_slice %18 {offsets = [0, 192], sizes = [2, 64], strides = [1, 1]} : vector<2x256xf32> to vector<2x64xf32>
    %216 = vector.extract_strided_slice %35 {offsets = [0, 192], sizes = [2, 64], strides = [1, 1]} : vector<2x256xf32> to vector<2x64xf32>
    %217 = vector.extract_strided_slice %52 {offsets = [0, 192], sizes = [2, 64], strides = [1, 1]} : vector<2x256xf32> to vector<2x64xf32>
    %218 = vector.extract_strided_slice %0 {offsets = [0, 192], sizes = [2, 64], strides = [1, 1]} : vector<2x256xf32> to vector<2x64xf32>
    %219 = tpu.concatenate %215, %216, %217, %218 in 1 : vector<2x64xf32>, vector<2x64xf32>, vector<2x64xf32>, vector<2x64xf32> -> vector<2x256xf32>
    %c3_103 = arith.constant 3 : index
    %c0_104 = arith.constant 0 : index
    %c0_105 = arith.constant 0 : index
    %220 = vector.load %arg3[%c3_103, %c0_104, %c0_105] : memref<16x256x256xbf16, #tpu.memory_space<vmem>>, vector<1x256x256xbf16>
    %221 = vector.shape_cast %220 : vector<1x256x256xbf16> to vector<256x256xbf16>
    %222 = arith.truncf %219 : vector<2x256xf32> to vector<2x256xbf16>
    %cst_106 = arith.constant dense<0.000000e+00> : vector<2x256xf32>
    %223 = tpu.matmul %222, %221, %cst_106 {dimension_numbers = #tpu.dot_dimension_numbers<[1], [0], [0], [1], [0, 0, 1, 1], [], []>} : vector<2x256xbf16>, vector<256x256xbf16>, vector<2x256xf32> -> vector<2x256xf32>
    %cst_107 = arith.constant dense<0xFF800000> : vector<2xf32>
    %224 = vector.multi_reduction <maximumf>, %223, %cst_107 [1] : vector<2x256xf32> to vector<2xf32>
    %225 = vector.shape_cast %224 : vector<2xf32> to vector<2x1xf32>
    %cst_108 = arith.constant 5.000000e-01 : f32
    %226 = vector.broadcast %cst_108 : f32 to vector<2x1xf32>
    %227 = arith.mulf %226, %225 : vector<2x1xf32>
    %228 = vector.broadcast %227 : vector<2x1xf32> to vector<2x256xf32>
    %229 = arith.subf %223, %228 : vector<2x256xf32>
    %230 = arith.negf %229 : vector<2x256xf32>
    %231 = math.exp %230 : vector<2x256xf32>
    %cst_109 = arith.constant 1.000000e+00 : f32
    %232 = vector.broadcast %cst_109 : f32 to vector<2x256xf32>
    %233 = arith.addf %232, %231 : vector<2x256xf32>
    %234 = arith.divf %232, %233 : vector<2x256xf32>
    %235 = vector.extract_strided_slice %69 {offsets = [0, 0], sizes = [2, 64], strides = [1, 1]} : vector<2x256xf32> to vector<2x64xf32>
    %236 = vector.extract_strided_slice %86 {offsets = [0, 0], sizes = [2, 64], strides = [1, 1]} : vector<2x256xf32> to vector<2x64xf32>
    %237 = vector.extract_strided_slice %103 {offsets = [0, 0], sizes = [2, 64], strides = [1, 1]} : vector<2x256xf32> to vector<2x64xf32>
    %238 = vector.extract_strided_slice %0 {offsets = [0, 0], sizes = [2, 64], strides = [1, 1]} : vector<2x256xf32> to vector<2x64xf32>
    %239 = tpu.concatenate %235, %236, %237, %238 in 1 : vector<2x64xf32>, vector<2x64xf32>, vector<2x64xf32>, vector<2x64xf32> -> vector<2x256xf32>
    %c4_110 = arith.constant 4 : index
    %c0_111 = arith.constant 0 : index
    %c0_112 = arith.constant 0 : index
    %240 = vector.load %arg3[%c4_110, %c0_111, %c0_112] : memref<16x256x256xbf16, #tpu.memory_space<vmem>>, vector<1x256x256xbf16>
    %241 = vector.shape_cast %240 : vector<1x256x256xbf16> to vector<256x256xbf16>
    %242 = arith.truncf %239 : vector<2x256xf32> to vector<2x256xbf16>
    %cst_113 = arith.constant dense<0.000000e+00> : vector<2x256xf32>
    %243 = tpu.matmul %242, %241, %cst_113 {dimension_numbers = #tpu.dot_dimension_numbers<[1], [0], [0], [1], [0, 0, 1, 1], [], []>} : vector<2x256xbf16>, vector<256x256xbf16>, vector<2x256xf32> -> vector<2x256xf32>
    %cst_114 = arith.constant dense<0xFF800000> : vector<2xf32>
    %244 = vector.multi_reduction <maximumf>, %243, %cst_114 [1] : vector<2x256xf32> to vector<2xf32>
    %245 = vector.shape_cast %244 : vector<2xf32> to vector<2x1xf32>
    %cst_115 = arith.constant 5.000000e-01 : f32
    %246 = vector.broadcast %cst_115 : f32 to vector<2x1xf32>
    %247 = arith.mulf %246, %245 : vector<2x1xf32>
    %248 = vector.broadcast %247 : vector<2x1xf32> to vector<2x256xf32>
    %249 = arith.subf %243, %248 : vector<2x256xf32>
    %250 = arith.negf %249 : vector<2x256xf32>
    %251 = math.exp %250 : vector<2x256xf32>
    %cst_116 = arith.constant 1.000000e+00 : f32
    %252 = vector.broadcast %cst_116 : f32 to vector<2x256xf32>
    %253 = arith.addf %252, %251 : vector<2x256xf32>
    %254 = arith.divf %252, %253 : vector<2x256xf32>
    %255 = vector.extract_strided_slice %69 {offsets = [0, 64], sizes = [2, 64], strides = [1, 1]} : vector<2x256xf32> to vector<2x64xf32>
    %256 = vector.extract_strided_slice %86 {offsets = [0, 64], sizes = [2, 64], strides = [1, 1]} : vector<2x256xf32> to vector<2x64xf32>
    %257 = vector.extract_strided_slice %103 {offsets = [0, 64], sizes = [2, 64], strides = [1, 1]} : vector<2x256xf32> to vector<2x64xf32>
    %258 = vector.extract_strided_slice %0 {offsets = [0, 64], sizes = [2, 64], strides = [1, 1]} : vector<2x256xf32> to vector<2x64xf32>
    %259 = tpu.concatenate %255, %256, %257, %258 in 1 : vector<2x64xf32>, vector<2x64xf32>, vector<2x64xf32>, vector<2x64xf32> -> vector<2x256xf32>
    %c5_117 = arith.constant 5 : index
    %c0_118 = arith.constant 0 : index
    %c0_119 = arith.constant 0 : index
    %260 = vector.load %arg3[%c5_117, %c0_118, %c0_119] : memref<16x256x256xbf16, #tpu.memory_space<vmem>>, vector<1x256x256xbf16>
    %261 = vector.shape_cast %260 : vector<1x256x256xbf16> to vector<256x256xbf16>
    %262 = arith.truncf %259 : vector<2x256xf32> to vector<2x256xbf16>
    %cst_120 = arith.constant dense<0.000000e+00> : vector<2x256xf32>
    %263 = tpu.matmul %262, %261, %cst_120 {dimension_numbers = #tpu.dot_dimension_numbers<[1], [0], [0], [1], [0, 0, 1, 1], [], []>} : vector<2x256xbf16>, vector<256x256xbf16>, vector<2x256xf32> -> vector<2x256xf32>
    %cst_121 = arith.constant dense<0xFF800000> : vector<2xf32>
    %264 = vector.multi_reduction <maximumf>, %263, %cst_121 [1] : vector<2x256xf32> to vector<2xf32>
    %265 = vector.shape_cast %264 : vector<2xf32> to vector<2x1xf32>
    %cst_122 = arith.constant 5.000000e-01 : f32
    %266 = vector.broadcast %cst_122 : f32 to vector<2x1xf32>
    %267 = arith.mulf %266, %265 : vector<2x1xf32>
    %268 = vector.broadcast %267 : vector<2x1xf32> to vector<2x256xf32>
    %269 = arith.subf %263, %268 : vector<2x256xf32>
    %270 = arith.negf %269 : vector<2x256xf32>
    %271 = math.exp %270 : vector<2x256xf32>
    %cst_123 = arith.constant 1.000000e+00 : f32
    %272 = vector.broadcast %cst_123 : f32 to vector<2x256xf32>
    %273 = arith.addf %272, %271 : vector<2x256xf32>
    %274 = arith.divf %272, %273 : vector<2x256xf32>
    %275 = vector.extract_strided_slice %69 {offsets = [0, 128], sizes = [2, 64], strides = [1, 1]} : vector<2x256xf32> to vector<2x64xf32>
    %276 = vector.extract_strided_slice %86 {offsets = [0, 128], sizes = [2, 64], strides = [1, 1]} : vector<2x256xf32> to vector<2x64xf32>
    %277 = vector.extract_strided_slice %103 {offsets = [0, 128], sizes = [2, 64], strides = [1, 1]} : vector<2x256xf32> to vector<2x64xf32>
    %278 = vector.extract_strided_slice %0 {offsets = [0, 128], sizes = [2, 64], strides = [1, 1]} : vector<2x256xf32> to vector<2x64xf32>
    %279 = tpu.concatenate %275, %276, %277, %278 in 1 : vector<2x64xf32>, vector<2x64xf32>, vector<2x64xf32>, vector<2x64xf32> -> vector<2x256xf32>
    %c6_124 = arith.constant 6 : index
    %c0_125 = arith.constant 0 : index
    %c0_126 = arith.constant 0 : index
    %280 = vector.load %arg3[%c6_124, %c0_125, %c0_126] : memref<16x256x256xbf16, #tpu.memory_space<vmem>>, vector<1x256x256xbf16>
    %281 = vector.shape_cast %280 : vector<1x256x256xbf16> to vector<256x256xbf16>
    %282 = arith.truncf %279 : vector<2x256xf32> to vector<2x256xbf16>
    %cst_127 = arith.constant dense<0.000000e+00> : vector<2x256xf32>
    %283 = tpu.matmul %282, %281, %cst_127 {dimension_numbers = #tpu.dot_dimension_numbers<[1], [0], [0], [1], [0, 0, 1, 1], [], []>} : vector<2x256xbf16>, vector<256x256xbf16>, vector<2x256xf32> -> vector<2x256xf32>
    %cst_128 = arith.constant dense<0xFF800000> : vector<2xf32>
    %284 = vector.multi_reduction <maximumf>, %283, %cst_128 [1] : vector<2x256xf32> to vector<2xf32>
    %285 = vector.shape_cast %284 : vector<2xf32> to vector<2x1xf32>
    %cst_129 = arith.constant 5.000000e-01 : f32
    %286 = vector.broadcast %cst_129 : f32 to vector<2x1xf32>
    %287 = arith.mulf %286, %285 : vector<2x1xf32>
    %288 = vector.broadcast %287 : vector<2x1xf32> to vector<2x256xf32>
    %289 = arith.subf %283, %288 : vector<2x256xf32>
    %290 = arith.negf %289 : vector<2x256xf32>
    %291 = math.exp %290 : vector<2x256xf32>
    %cst_130 = arith.constant 1.000000e+00 : f32
    %292 = vector.broadcast %cst_130 : f32 to vector<2x256xf32>
    %293 = arith.addf %292, %291 : vector<2x256xf32>
    %294 = arith.divf %292, %293 : vector<2x256xf32>
    %295 = vector.extract_strided_slice %69 {offsets = [0, 192], sizes = [2, 64], strides = [1, 1]} : vector<2x256xf32> to vector<2x64xf32>
    %296 = vector.extract_strided_slice %86 {offsets = [0, 192], sizes = [2, 64], strides = [1, 1]} : vector<2x256xf32> to vector<2x64xf32>
    %297 = vector.extract_strided_slice %103 {offsets = [0, 192], sizes = [2, 64], strides = [1, 1]} : vector<2x256xf32> to vector<2x64xf32>
    %298 = vector.extract_strided_slice %0 {offsets = [0, 192], sizes = [2, 64], strides = [1, 1]} : vector<2x256xf32> to vector<2x64xf32>
    %299 = tpu.concatenate %295, %296, %297, %298 in 1 : vector<2x64xf32>, vector<2x64xf32>, vector<2x64xf32>, vector<2x64xf32> -> vector<2x256xf32>
    %c7_131 = arith.constant 7 : index
    %c0_132 = arith.constant 0 : index
    %c0_133 = arith.constant 0 : index
    %300 = vector.load %arg3[%c7_131, %c0_132, %c0_133] : memref<16x256x256xbf16, #tpu.memory_space<vmem>>, vector<1x256x256xbf16>
    %301 = vector.shape_cast %300 : vector<1x256x256xbf16> to vector<256x256xbf16>
    %302 = arith.truncf %299 : vector<2x256xf32> to vector<2x256xbf16>
    %cst_134 = arith.constant dense<0.000000e+00> : vector<2x256xf32>
    %303 = tpu.matmul %302, %301, %cst_134 {dimension_numbers = #tpu.dot_dimension_numbers<[1], [0], [0], [1], [0, 0, 1, 1], [], []>} : vector<2x256xbf16>, vector<256x256xbf16>, vector<2x256xf32> -> vector<2x256xf32>
    %cst_135 = arith.constant dense<0xFF800000> : vector<2xf32>
    %304 = vector.multi_reduction <maximumf>, %303, %cst_135 [1] : vector<2x256xf32> to vector<2xf32>
    %305 = vector.shape_cast %304 : vector<2xf32> to vector<2x1xf32>
    %cst_136 = arith.constant 5.000000e-01 : f32
    %306 = vector.broadcast %cst_136 : f32 to vector<2x1xf32>
    %307 = arith.mulf %306, %305 : vector<2x1xf32>
    %308 = vector.broadcast %307 : vector<2x1xf32> to vector<2x256xf32>
    %309 = arith.subf %303, %308 : vector<2x256xf32>
    %310 = arith.negf %309 : vector<2x256xf32>
    %311 = math.exp %310 : vector<2x256xf32>
    %cst_137 = arith.constant 1.000000e+00 : f32
    %312 = vector.broadcast %cst_137 : f32 to vector<2x256xf32>
    %313 = arith.addf %312, %311 : vector<2x256xf32>
    %314 = arith.divf %312, %313 : vector<2x256xf32>
    %315 = vector.extract_strided_slice %120 {offsets = [0, 0], sizes = [2, 64], strides = [1, 1]} : vector<2x256xf32> to vector<2x64xf32>
    %316 = vector.extract_strided_slice %137 {offsets = [0, 0], sizes = [2, 64], strides = [1, 1]} : vector<2x256xf32> to vector<2x64xf32>
    %317 = vector.extract_strided_slice %154 {offsets = [0, 0], sizes = [2, 64], strides = [1, 1]} : vector<2x256xf32> to vector<2x64xf32>
    %318 = vector.extract_strided_slice %0 {offsets = [0, 0], sizes = [2, 64], strides = [1, 1]} : vector<2x256xf32> to vector<2x64xf32>
    %319 = tpu.concatenate %315, %316, %317, %318 in 1 : vector<2x64xf32>, vector<2x64xf32>, vector<2x64xf32>, vector<2x64xf32> -> vector<2x256xf32>
    %c8_138 = arith.constant 8 : index
    %c0_139 = arith.constant 0 : index
    %c0_140 = arith.constant 0 : index
    %320 = vector.load %arg3[%c8_138, %c0_139, %c0_140] : memref<16x256x256xbf16, #tpu.memory_space<vmem>>, vector<1x256x256xbf16>
    %321 = vector.shape_cast %320 : vector<1x256x256xbf16> to vector<256x256xbf16>
    %322 = arith.truncf %319 : vector<2x256xf32> to vector<2x256xbf16>
    %cst_141 = arith.constant dense<0.000000e+00> : vector<2x256xf32>
    %323 = tpu.matmul %322, %321, %cst_141 {dimension_numbers = #tpu.dot_dimension_numbers<[1], [0], [0], [1], [0, 0, 1, 1], [], []>} : vector<2x256xbf16>, vector<256x256xbf16>, vector<2x256xf32> -> vector<2x256xf32>
    %cst_142 = arith.constant dense<0xFF800000> : vector<2xf32>
    %324 = vector.multi_reduction <maximumf>, %323, %cst_142 [1] : vector<2x256xf32> to vector<2xf32>
    %325 = vector.shape_cast %324 : vector<2xf32> to vector<2x1xf32>
    %cst_143 = arith.constant 5.000000e-01 : f32
    %326 = vector.broadcast %cst_143 : f32 to vector<2x1xf32>
    %327 = arith.mulf %326, %325 : vector<2x1xf32>
    %328 = vector.broadcast %327 : vector<2x1xf32> to vector<2x256xf32>
    %329 = arith.subf %323, %328 : vector<2x256xf32>
    %330 = arith.negf %329 : vector<2x256xf32>
    %331 = math.exp %330 : vector<2x256xf32>
    %cst_144 = arith.constant 1.000000e+00 : f32
    %332 = vector.broadcast %cst_144 : f32 to vector<2x256xf32>
    %333 = arith.addf %332, %331 : vector<2x256xf32>
    %334 = arith.divf %332, %333 : vector<2x256xf32>
    %335 = vector.extract_strided_slice %120 {offsets = [0, 64], sizes = [2, 64], strides = [1, 1]} : vector<2x256xf32> to vector<2x64xf32>
    %336 = vector.extract_strided_slice %137 {offsets = [0, 64], sizes = [2, 64], strides = [1, 1]} : vector<2x256xf32> to vector<2x64xf32>
    %337 = vector.extract_strided_slice %154 {offsets = [0, 64], sizes = [2, 64], strides = [1, 1]} : vector<2x256xf32> to vector<2x64xf32>
    %338 = vector.extract_strided_slice %0 {offsets = [0, 64], sizes = [2, 64], strides = [1, 1]} : vector<2x256xf32> to vector<2x64xf32>
    %339 = tpu.concatenate %335, %336, %337, %338 in 1 : vector<2x64xf32>, vector<2x64xf32>, vector<2x64xf32>, vector<2x64xf32> -> vector<2x256xf32>
    %c9 = arith.constant 9 : index
    %c0_145 = arith.constant 0 : index
    %c0_146 = arith.constant 0 : index
    %340 = vector.load %arg3[%c9, %c0_145, %c0_146] : memref<16x256x256xbf16, #tpu.memory_space<vmem>>, vector<1x256x256xbf16>
    %341 = vector.shape_cast %340 : vector<1x256x256xbf16> to vector<256x256xbf16>
    %342 = arith.truncf %339 : vector<2x256xf32> to vector<2x256xbf16>
    %cst_147 = arith.constant dense<0.000000e+00> : vector<2x256xf32>
    %343 = tpu.matmul %342, %341, %cst_147 {dimension_numbers = #tpu.dot_dimension_numbers<[1], [0], [0], [1], [0, 0, 1, 1], [], []>} : vector<2x256xbf16>, vector<256x256xbf16>, vector<2x256xf32> -> vector<2x256xf32>
    %cst_148 = arith.constant dense<0xFF800000> : vector<2xf32>
    %344 = vector.multi_reduction <maximumf>, %343, %cst_148 [1] : vector<2x256xf32> to vector<2xf32>
    %345 = vector.shape_cast %344 : vector<2xf32> to vector<2x1xf32>
    %cst_149 = arith.constant 5.000000e-01 : f32
    %346 = vector.broadcast %cst_149 : f32 to vector<2x1xf32>
    %347 = arith.mulf %346, %345 : vector<2x1xf32>
    %348 = vector.broadcast %347 : vector<2x1xf32> to vector<2x256xf32>
    %349 = arith.subf %343, %348 : vector<2x256xf32>
    %350 = arith.negf %349 : vector<2x256xf32>
    %351 = math.exp %350 : vector<2x256xf32>
    %cst_150 = arith.constant 1.000000e+00 : f32
    %352 = vector.broadcast %cst_150 : f32 to vector<2x256xf32>
    %353 = arith.addf %352, %351 : vector<2x256xf32>
    %354 = arith.divf %352, %353 : vector<2x256xf32>
    %355 = vector.extract_strided_slice %120 {offsets = [0, 128], sizes = [2, 64], strides = [1, 1]} : vector<2x256xf32> to vector<2x64xf32>
    %356 = vector.extract_strided_slice %137 {offsets = [0, 128], sizes = [2, 64], strides = [1, 1]} : vector<2x256xf32> to vector<2x64xf32>
    %357 = vector.extract_strided_slice %154 {offsets = [0, 128], sizes = [2, 64], strides = [1, 1]} : vector<2x256xf32> to vector<2x64xf32>
    %358 = vector.extract_strided_slice %0 {offsets = [0, 128], sizes = [2, 64], strides = [1, 1]} : vector<2x256xf32> to vector<2x64xf32>
    %359 = tpu.concatenate %355, %356, %357, %358 in 1 : vector<2x64xf32>, vector<2x64xf32>, vector<2x64xf32>, vector<2x64xf32> -> vector<2x256xf32>
    %c10 = arith.constant 10 : index
    %c0_151 = arith.constant 0 : index
    %c0_152 = arith.constant 0 : index
    %360 = vector.load %arg3[%c10, %c0_151, %c0_152] : memref<16x256x256xbf16, #tpu.memory_space<vmem>>, vector<1x256x256xbf16>
    %361 = vector.shape_cast %360 : vector<1x256x256xbf16> to vector<256x256xbf16>
    %362 = arith.truncf %359 : vector<2x256xf32> to vector<2x256xbf16>
    %cst_153 = arith.constant dense<0.000000e+00> : vector<2x256xf32>
    %363 = tpu.matmul %362, %361, %cst_153 {dimension_numbers = #tpu.dot_dimension_numbers<[1], [0], [0], [1], [0, 0, 1, 1], [], []>} : vector<2x256xbf16>, vector<256x256xbf16>, vector<2x256xf32> -> vector<2x256xf32>
    %cst_154 = arith.constant dense<0xFF800000> : vector<2xf32>
    %364 = vector.multi_reduction <maximumf>, %363, %cst_154 [1] : vector<2x256xf32> to vector<2xf32>
    %365 = vector.shape_cast %364 : vector<2xf32> to vector<2x1xf32>
    %cst_155 = arith.constant 5.000000e-01 : f32
    %366 = vector.broadcast %cst_155 : f32 to vector<2x1xf32>
    %367 = arith.mulf %366, %365 : vector<2x1xf32>
    %368 = vector.broadcast %367 : vector<2x1xf32> to vector<2x256xf32>
    %369 = arith.subf %363, %368 : vector<2x256xf32>
    %370 = arith.negf %369 : vector<2x256xf32>
    %371 = math.exp %370 : vector<2x256xf32>
    %cst_156 = arith.constant 1.000000e+00 : f32
    %372 = vector.broadcast %cst_156 : f32 to vector<2x256xf32>
    %373 = arith.addf %372, %371 : vector<2x256xf32>
    %374 = arith.divf %372, %373 : vector<2x256xf32>
    %375 = vector.extract_strided_slice %120 {offsets = [0, 192], sizes = [2, 64], strides = [1, 1]} : vector<2x256xf32> to vector<2x64xf32>
    %376 = vector.extract_strided_slice %137 {offsets = [0, 192], sizes = [2, 64], strides = [1, 1]} : vector<2x256xf32> to vector<2x64xf32>
    %377 = vector.extract_strided_slice %154 {offsets = [0, 192], sizes = [2, 64], strides = [1, 1]} : vector<2x256xf32> to vector<2x64xf32>
    %378 = vector.extract_strided_slice %0 {offsets = [0, 192], sizes = [2, 64], strides = [1, 1]} : vector<2x256xf32> to vector<2x64xf32>
    %379 = tpu.concatenate %375, %376, %377, %378 in 1 : vector<2x64xf32>, vector<2x64xf32>, vector<2x64xf32>, vector<2x64xf32> -> vector<2x256xf32>
    %c11 = arith.constant 11 : index
    %c0_157 = arith.constant 0 : index
    %c0_158 = arith.constant 0 : index
    %380 = vector.load %arg3[%c11, %c0_157, %c0_158] : memref<16x256x256xbf16, #tpu.memory_space<vmem>>, vector<1x256x256xbf16>
    %381 = vector.shape_cast %380 : vector<1x256x256xbf16> to vector<256x256xbf16>
    %382 = arith.truncf %379 : vector<2x256xf32> to vector<2x256xbf16>
    %cst_159 = arith.constant dense<0.000000e+00> : vector<2x256xf32>
    %383 = tpu.matmul %382, %381, %cst_159 {dimension_numbers = #tpu.dot_dimension_numbers<[1], [0], [0], [1], [0, 0, 1, 1], [], []>} : vector<2x256xbf16>, vector<256x256xbf16>, vector<2x256xf32> -> vector<2x256xf32>
    %cst_160 = arith.constant dense<0xFF800000> : vector<2xf32>
    %384 = vector.multi_reduction <maximumf>, %383, %cst_160 [1] : vector<2x256xf32> to vector<2xf32>
    %385 = vector.shape_cast %384 : vector<2xf32> to vector<2x1xf32>
    %cst_161 = arith.constant 5.000000e-01 : f32
    %386 = vector.broadcast %cst_161 : f32 to vector<2x1xf32>
    %387 = arith.mulf %386, %385 : vector<2x1xf32>
    %388 = vector.broadcast %387 : vector<2x1xf32> to vector<2x256xf32>
    %389 = arith.subf %383, %388 : vector<2x256xf32>
    %390 = arith.negf %389 : vector<2x256xf32>
    %391 = math.exp %390 : vector<2x256xf32>
    %cst_162 = arith.constant 1.000000e+00 : f32
    %392 = vector.broadcast %cst_162 : f32 to vector<2x256xf32>
    %393 = arith.addf %392, %391 : vector<2x256xf32>
    %394 = arith.divf %392, %393 : vector<2x256xf32>
    %395 = vector.extract_strided_slice %0 {offsets = [0, 0], sizes = [2, 64], strides = [1, 1]} : vector<2x256xf32> to vector<2x64xf32>
    %396 = vector.extract_strided_slice %0 {offsets = [0, 0], sizes = [2, 64], strides = [1, 1]} : vector<2x256xf32> to vector<2x64xf32>
    %397 = vector.extract_strided_slice %0 {offsets = [0, 0], sizes = [2, 64], strides = [1, 1]} : vector<2x256xf32> to vector<2x64xf32>
    %398 = tpu.concatenate %395, %396, %397, %1 in 1 : vector<2x64xf32>, vector<2x64xf32>, vector<2x64xf32>, vector<2x64xf32> -> vector<2x256xf32>
    %c12 = arith.constant 12 : index
    %c0_163 = arith.constant 0 : index
    %c0_164 = arith.constant 0 : index
    %399 = vector.load %arg3[%c12, %c0_163, %c0_164] : memref<16x256x256xbf16, #tpu.memory_space<vmem>>, vector<1x256x256xbf16>
    %400 = vector.shape_cast %399 : vector<1x256x256xbf16> to vector<256x256xbf16>
    %401 = arith.truncf %398 : vector<2x256xf32> to vector<2x256xbf16>
    %cst_165 = arith.constant dense<0.000000e+00> : vector<2x256xf32>
    %402 = tpu.matmul %401, %400, %cst_165 {dimension_numbers = #tpu.dot_dimension_numbers<[1], [0], [0], [1], [0, 0, 1, 1], [], []>} : vector<2x256xbf16>, vector<256x256xbf16>, vector<2x256xf32> -> vector<2x256xf32>
    %cst_166 = arith.constant dense<0xFF800000> : vector<2xf32>
    %403 = vector.multi_reduction <maximumf>, %402, %cst_166 [1] : vector<2x256xf32> to vector<2xf32>
    %404 = vector.shape_cast %403 : vector<2xf32> to vector<2x1xf32>
    %cst_167 = arith.constant 5.000000e-01 : f32
    %405 = vector.broadcast %cst_167 : f32 to vector<2x1xf32>
    %406 = arith.mulf %405, %404 : vector<2x1xf32>
    %407 = vector.broadcast %406 : vector<2x1xf32> to vector<2x256xf32>
    %408 = arith.subf %402, %407 : vector<2x256xf32>
    %409 = arith.negf %408 : vector<2x256xf32>
    %410 = math.exp %409 : vector<2x256xf32>
    %cst_168 = arith.constant 1.000000e+00 : f32
    %411 = vector.broadcast %cst_168 : f32 to vector<2x256xf32>
    %412 = arith.addf %411, %410 : vector<2x256xf32>
    %413 = arith.divf %411, %412 : vector<2x256xf32>
    %414 = vector.extract_strided_slice %0 {offsets = [0, 64], sizes = [2, 64], strides = [1, 1]} : vector<2x256xf32> to vector<2x64xf32>
    %415 = vector.extract_strided_slice %0 {offsets = [0, 64], sizes = [2, 64], strides = [1, 1]} : vector<2x256xf32> to vector<2x64xf32>
    %416 = vector.extract_strided_slice %0 {offsets = [0, 64], sizes = [2, 64], strides = [1, 1]} : vector<2x256xf32> to vector<2x64xf32>
    %417 = tpu.concatenate %414, %415, %416, %1 in 1 : vector<2x64xf32>, vector<2x64xf32>, vector<2x64xf32>, vector<2x64xf32> -> vector<2x256xf32>
    %c13 = arith.constant 13 : index
    %c0_169 = arith.constant 0 : index
    %c0_170 = arith.constant 0 : index
    %418 = vector.load %arg3[%c13, %c0_169, %c0_170] : memref<16x256x256xbf16, #tpu.memory_space<vmem>>, vector<1x256x256xbf16>
    %419 = vector.shape_cast %418 : vector<1x256x256xbf16> to vector<256x256xbf16>
    %420 = arith.truncf %417 : vector<2x256xf32> to vector<2x256xbf16>
    %cst_171 = arith.constant dense<0.000000e+00> : vector<2x256xf32>
    %421 = tpu.matmul %420, %419, %cst_171 {dimension_numbers = #tpu.dot_dimension_numbers<[1], [0], [0], [1], [0, 0, 1, 1], [], []>} : vector<2x256xbf16>, vector<256x256xbf16>, vector<2x256xf32> -> vector<2x256xf32>
    %cst_172 = arith.constant dense<0xFF800000> : vector<2xf32>
    %422 = vector.multi_reduction <maximumf>, %421, %cst_172 [1] : vector<2x256xf32> to vector<2xf32>
    %423 = vector.shape_cast %422 : vector<2xf32> to vector<2x1xf32>
    %cst_173 = arith.constant 5.000000e-01 : f32
    %424 = vector.broadcast %cst_173 : f32 to vector<2x1xf32>
    %425 = arith.mulf %424, %423 : vector<2x1xf32>
    %426 = vector.broadcast %425 : vector<2x1xf32> to vector<2x256xf32>
    %427 = arith.subf %421, %426 : vector<2x256xf32>
    %428 = arith.negf %427 : vector<2x256xf32>
    %429 = math.exp %428 : vector<2x256xf32>
    %cst_174 = arith.constant 1.000000e+00 : f32
    %430 = vector.broadcast %cst_174 : f32 to vector<2x256xf32>
    %431 = arith.addf %430, %429 : vector<2x256xf32>
    %432 = arith.divf %430, %431 : vector<2x256xf32>
    %433 = vector.extract_strided_slice %0 {offsets = [0, 128], sizes = [2, 64], strides = [1, 1]} : vector<2x256xf32> to vector<2x64xf32>
    %434 = vector.extract_strided_slice %0 {offsets = [0, 128], sizes = [2, 64], strides = [1, 1]} : vector<2x256xf32> to vector<2x64xf32>
    %435 = vector.extract_strided_slice %0 {offsets = [0, 128], sizes = [2, 64], strides = [1, 1]} : vector<2x256xf32> to vector<2x64xf32>
    %436 = tpu.concatenate %433, %434, %435, %1 in 1 : vector<2x64xf32>, vector<2x64xf32>, vector<2x64xf32>, vector<2x64xf32> -> vector<2x256xf32>
    %c14 = arith.constant 14 : index
    %c0_175 = arith.constant 0 : index
    %c0_176 = arith.constant 0 : index
    %437 = vector.load %arg3[%c14, %c0_175, %c0_176] : memref<16x256x256xbf16, #tpu.memory_space<vmem>>, vector<1x256x256xbf16>
    %438 = vector.shape_cast %437 : vector<1x256x256xbf16> to vector<256x256xbf16>
    %439 = arith.truncf %436 : vector<2x256xf32> to vector<2x256xbf16>
    %cst_177 = arith.constant dense<0.000000e+00> : vector<2x256xf32>
    %440 = tpu.matmul %439, %438, %cst_177 {dimension_numbers = #tpu.dot_dimension_numbers<[1], [0], [0], [1], [0, 0, 1, 1], [], []>} : vector<2x256xbf16>, vector<256x256xbf16>, vector<2x256xf32> -> vector<2x256xf32>
    %cst_178 = arith.constant dense<0xFF800000> : vector<2xf32>
    %441 = vector.multi_reduction <maximumf>, %440, %cst_178 [1] : vector<2x256xf32> to vector<2xf32>
    %442 = vector.shape_cast %441 : vector<2xf32> to vector<2x1xf32>
    %cst_179 = arith.constant 5.000000e-01 : f32
    %443 = vector.broadcast %cst_179 : f32 to vector<2x1xf32>
    %444 = arith.mulf %443, %442 : vector<2x1xf32>
    %445 = vector.broadcast %444 : vector<2x1xf32> to vector<2x256xf32>
    %446 = arith.subf %440, %445 : vector<2x256xf32>
    %447 = arith.negf %446 : vector<2x256xf32>
    %448 = math.exp %447 : vector<2x256xf32>
    %cst_180 = arith.constant 1.000000e+00 : f32
    %449 = vector.broadcast %cst_180 : f32 to vector<2x256xf32>
    %450 = arith.addf %449, %448 : vector<2x256xf32>
    %451 = arith.divf %449, %450 : vector<2x256xf32>
    %452 = vector.extract_strided_slice %0 {offsets = [0, 192], sizes = [2, 64], strides = [1, 1]} : vector<2x256xf32> to vector<2x64xf32>
    %453 = vector.extract_strided_slice %0 {offsets = [0, 192], sizes = [2, 64], strides = [1, 1]} : vector<2x256xf32> to vector<2x64xf32>
    %454 = vector.extract_strided_slice %0 {offsets = [0, 192], sizes = [2, 64], strides = [1, 1]} : vector<2x256xf32> to vector<2x64xf32>
    %455 = tpu.concatenate %452, %453, %454, %1 in 1 : vector<2x64xf32>, vector<2x64xf32>, vector<2x64xf32>, vector<2x64xf32> -> vector<2x256xf32>
    %c15 = arith.constant 15 : index
    %c0_181 = arith.constant 0 : index
    %c0_182 = arith.constant 0 : index
    %456 = vector.load %arg3[%c15, %c0_181, %c0_182] : memref<16x256x256xbf16, #tpu.memory_space<vmem>>, vector<1x256x256xbf16>
    %457 = vector.shape_cast %456 : vector<1x256x256xbf16> to vector<256x256xbf16>
    %458 = arith.truncf %455 : vector<2x256xf32> to vector<2x256xbf16>
    %cst_183 = arith.constant dense<0.000000e+00> : vector<2x256xf32>
    %459 = tpu.matmul %458, %457, %cst_183 {dimension_numbers = #tpu.dot_dimension_numbers<[1], [0], [0], [1], [0, 0, 1, 1], [], []>} : vector<2x256xbf16>, vector<256x256xbf16>, vector<2x256xf32> -> vector<2x256xf32>
    %cst_184 = arith.constant dense<0xFF800000> : vector<2xf32>
    %460 = vector.multi_reduction <maximumf>, %459, %cst_184 [1] : vector<2x256xf32> to vector<2xf32>
    %461 = vector.shape_cast %460 : vector<2xf32> to vector<2x1xf32>
    %cst_185 = arith.constant 5.000000e-01 : f32
    %462 = vector.broadcast %cst_185 : f32 to vector<2x1xf32>
    %463 = arith.mulf %462, %461 : vector<2x1xf32>
    %464 = vector.broadcast %463 : vector<2x1xf32> to vector<2x256xf32>
    %465 = arith.subf %459, %464 : vector<2x256xf32>
    %466 = arith.negf %465 : vector<2x256xf32>
    %467 = math.exp %466 : vector<2x256xf32>
    %cst_186 = arith.constant 1.000000e+00 : f32
    %468 = vector.broadcast %cst_186 : f32 to vector<2x256xf32>
    %469 = arith.addf %468, %467 : vector<2x256xf32>
    %470 = arith.divf %468, %469 : vector<2x256xf32>
    %471 = vector.extract_strided_slice %174 {offsets = [0, 0], sizes = [2, 64], strides = [1, 1]} : vector<2x256xf32> to vector<2x64xf32>
    %472 = vector.extract_strided_slice %254 {offsets = [0, 0], sizes = [2, 64], strides = [1, 1]} : vector<2x256xf32> to vector<2x64xf32>
    %473 = vector.extract_strided_slice %334 {offsets = [0, 0], sizes = [2, 64], strides = [1, 1]} : vector<2x256xf32> to vector<2x64xf32>
    %474 = vector.extract_strided_slice %413 {offsets = [0, 0], sizes = [2, 64], strides = [1, 1]} : vector<2x256xf32> to vector<2x64xf32>
    %475 = tpu.concatenate %471, %472, %473, %474 in 1 : vector<2x64xf32>, vector<2x64xf32>, vector<2x64xf32>, vector<2x64xf32> -> vector<2x256xf32>
    %c0_187 = arith.constant 0 : index
    %c0_188 = arith.constant 0 : index
    %c0_189 = arith.constant 0 : index
    %476 = vector.load %arg4[%c0_187, %c0_188, %c0_189] : memref<16x256x64xbf16, #tpu.memory_space<vmem>>, vector<1x256x64xbf16>
    %477 = vector.shape_cast %476 : vector<1x256x64xbf16> to vector<256x64xbf16>
    %478 = arith.truncf %475 : vector<2x256xf32> to vector<2x256xbf16>
    %cst_190 = arith.constant dense<0.000000e+00> : vector<2x64xf32>
    %479 = tpu.matmul %478, %477, %cst_190 {dimension_numbers = #tpu.dot_dimension_numbers<[1], [0], [0], [1], [0, 0, 1, 1], [], []>} : vector<2x256xbf16>, vector<256x64xbf16>, vector<2x64xf32> -> vector<2x64xf32>
    %cst_191 = arith.constant dense<0xFF800000> : vector<2xf32>
    %480 = vector.multi_reduction <maximumf>, %479, %cst_191 [1] : vector<2x64xf32> to vector<2xf32>
    %481 = vector.shape_cast %480 : vector<2xf32> to vector<2x1xf32>
    %cst_192 = arith.constant 5.000000e-01 : f32
    %482 = vector.broadcast %cst_192 : f32 to vector<2x1xf32>
    %483 = arith.mulf %482, %481 : vector<2x1xf32>
    %484 = vector.broadcast %483 : vector<2x1xf32> to vector<2x64xf32>
    %485 = arith.subf %479, %484 : vector<2x64xf32>
    %486 = arith.negf %485 : vector<2x64xf32>
    %487 = math.exp %486 : vector<2x64xf32>
    %cst_193 = arith.constant 1.000000e+00 : f32
    %488 = vector.broadcast %cst_193 : f32 to vector<2x64xf32>
    %489 = arith.addf %488, %487 : vector<2x64xf32>
    %490 = arith.divf %488, %489 : vector<2x64xf32>
    %491 = vector.extract_strided_slice %174 {offsets = [0, 64], sizes = [2, 64], strides = [1, 1]} : vector<2x256xf32> to vector<2x64xf32>
    %492 = vector.extract_strided_slice %254 {offsets = [0, 64], sizes = [2, 64], strides = [1, 1]} : vector<2x256xf32> to vector<2x64xf32>
    %493 = vector.extract_strided_slice %334 {offsets = [0, 64], sizes = [2, 64], strides = [1, 1]} : vector<2x256xf32> to vector<2x64xf32>
    %494 = vector.extract_strided_slice %413 {offsets = [0, 64], sizes = [2, 64], strides = [1, 1]} : vector<2x256xf32> to vector<2x64xf32>
    %495 = tpu.concatenate %491, %492, %493, %494 in 1 : vector<2x64xf32>, vector<2x64xf32>, vector<2x64xf32>, vector<2x64xf32> -> vector<2x256xf32>
    %c1_194 = arith.constant 1 : index
    %c0_195 = arith.constant 0 : index
    %c0_196 = arith.constant 0 : index
    %496 = vector.load %arg4[%c1_194, %c0_195, %c0_196] : memref<16x256x64xbf16, #tpu.memory_space<vmem>>, vector<1x256x64xbf16>
    %497 = vector.shape_cast %496 : vector<1x256x64xbf16> to vector<256x64xbf16>
    %498 = arith.truncf %495 : vector<2x256xf32> to vector<2x256xbf16>
    %cst_197 = arith.constant dense<0.000000e+00> : vector<2x64xf32>
    %499 = tpu.matmul %498, %497, %cst_197 {dimension_numbers = #tpu.dot_dimension_numbers<[1], [0], [0], [1], [0, 0, 1, 1], [], []>} : vector<2x256xbf16>, vector<256x64xbf16>, vector<2x64xf32> -> vector<2x64xf32>
    %cst_198 = arith.constant dense<0xFF800000> : vector<2xf32>
    %500 = vector.multi_reduction <maximumf>, %499, %cst_198 [1] : vector<2x64xf32> to vector<2xf32>
    %501 = vector.shape_cast %500 : vector<2xf32> to vector<2x1xf32>
    %cst_199 = arith.constant 5.000000e-01 : f32
    %502 = vector.broadcast %cst_199 : f32 to vector<2x1xf32>
    %503 = arith.mulf %502, %501 : vector<2x1xf32>
    %504 = vector.broadcast %503 : vector<2x1xf32> to vector<2x64xf32>
    %505 = arith.subf %499, %504 : vector<2x64xf32>
    %506 = arith.negf %505 : vector<2x64xf32>
    %507 = math.exp %506 : vector<2x64xf32>
    %cst_200 = arith.constant 1.000000e+00 : f32
    %508 = vector.broadcast %cst_200 : f32 to vector<2x64xf32>
    %509 = arith.addf %508, %507 : vector<2x64xf32>
    %510 = arith.divf %508, %509 : vector<2x64xf32>
    %511 = vector.extract_strided_slice %174 {offsets = [0, 128], sizes = [2, 64], strides = [1, 1]} : vector<2x256xf32> to vector<2x64xf32>
    %512 = vector.extract_strided_slice %254 {offsets = [0, 128], sizes = [2, 64], strides = [1, 1]} : vector<2x256xf32> to vector<2x64xf32>
    %513 = vector.extract_strided_slice %334 {offsets = [0, 128], sizes = [2, 64], strides = [1, 1]} : vector<2x256xf32> to vector<2x64xf32>
    %514 = vector.extract_strided_slice %413 {offsets = [0, 128], sizes = [2, 64], strides = [1, 1]} : vector<2x256xf32> to vector<2x64xf32>
    %515 = tpu.concatenate %511, %512, %513, %514 in 1 : vector<2x64xf32>, vector<2x64xf32>, vector<2x64xf32>, vector<2x64xf32> -> vector<2x256xf32>
    %c2_201 = arith.constant 2 : index
    %c0_202 = arith.constant 0 : index
    %c0_203 = arith.constant 0 : index
    %516 = vector.load %arg4[%c2_201, %c0_202, %c0_203] : memref<16x256x64xbf16, #tpu.memory_space<vmem>>, vector<1x256x64xbf16>
    %517 = vector.shape_cast %516 : vector<1x256x64xbf16> to vector<256x64xbf16>
    %518 = arith.truncf %515 : vector<2x256xf32> to vector<2x256xbf16>
    %cst_204 = arith.constant dense<0.000000e+00> : vector<2x64xf32>
    %519 = tpu.matmul %518, %517, %cst_204 {dimension_numbers = #tpu.dot_dimension_numbers<[1], [0], [0], [1], [0, 0, 1, 1], [], []>} : vector<2x256xbf16>, vector<256x64xbf16>, vector<2x64xf32> -> vector<2x64xf32>
    %cst_205 = arith.constant dense<0xFF800000> : vector<2xf32>
    %520 = vector.multi_reduction <maximumf>, %519, %cst_205 [1] : vector<2x64xf32> to vector<2xf32>
    %521 = vector.shape_cast %520 : vector<2xf32> to vector<2x1xf32>
    %cst_206 = arith.constant 5.000000e-01 : f32
    %522 = vector.broadcast %cst_206 : f32 to vector<2x1xf32>
    %523 = arith.mulf %522, %521 : vector<2x1xf32>
    %524 = vector.broadcast %523 : vector<2x1xf32> to vector<2x64xf32>
    %525 = arith.subf %519, %524 : vector<2x64xf32>
    %526 = arith.negf %525 : vector<2x64xf32>
    %527 = math.exp %526 : vector<2x64xf32>
    %cst_207 = arith.constant 1.000000e+00 : f32
    %528 = vector.broadcast %cst_207 : f32 to vector<2x64xf32>
    %529 = arith.addf %528, %527 : vector<2x64xf32>
    %530 = arith.divf %528, %529 : vector<2x64xf32>
    %531 = vector.extract_strided_slice %174 {offsets = [0, 192], sizes = [2, 64], strides = [1, 1]} : vector<2x256xf32> to vector<2x64xf32>
    %532 = vector.extract_strided_slice %254 {offsets = [0, 192], sizes = [2, 64], strides = [1, 1]} : vector<2x256xf32> to vector<2x64xf32>
    %533 = vector.extract_strided_slice %334 {offsets = [0, 192], sizes = [2, 64], strides = [1, 1]} : vector<2x256xf32> to vector<2x64xf32>
    %534 = vector.extract_strided_slice %413 {offsets = [0, 192], sizes = [2, 64], strides = [1, 1]} : vector<2x256xf32> to vector<2x64xf32>
    %535 = tpu.concatenate %531, %532, %533, %534 in 1 : vector<2x64xf32>, vector<2x64xf32>, vector<2x64xf32>, vector<2x64xf32> -> vector<2x256xf32>
    %c3_208 = arith.constant 3 : index
    %c0_209 = arith.constant 0 : index
    %c0_210 = arith.constant 0 : index
    %536 = vector.load %arg4[%c3_208, %c0_209, %c0_210] : memref<16x256x64xbf16, #tpu.memory_space<vmem>>, vector<1x256x64xbf16>
    %537 = vector.shape_cast %536 : vector<1x256x64xbf16> to vector<256x64xbf16>
    %538 = arith.truncf %535 : vector<2x256xf32> to vector<2x256xbf16>
    %cst_211 = arith.constant dense<0.000000e+00> : vector<2x64xf32>
    %539 = tpu.matmul %538, %537, %cst_211 {dimension_numbers = #tpu.dot_dimension_numbers<[1], [0], [0], [1], [0, 0, 1, 1], [], []>} : vector<2x256xbf16>, vector<256x64xbf16>, vector<2x64xf32> -> vector<2x64xf32>
    %cst_212 = arith.constant dense<0xFF800000> : vector<2xf32>
    %540 = vector.multi_reduction <maximumf>, %539, %cst_212 [1] : vector<2x64xf32> to vector<2xf32>
    %541 = vector.shape_cast %540 : vector<2xf32> to vector<2x1xf32>
    %cst_213 = arith.constant 5.000000e-01 : f32
    %542 = vector.broadcast %cst_213 : f32 to vector<2x1xf32>
    %543 = arith.mulf %542, %541 : vector<2x1xf32>
    %544 = vector.broadcast %543 : vector<2x1xf32> to vector<2x64xf32>
    %545 = arith.subf %539, %544 : vector<2x64xf32>
    %546 = arith.negf %545 : vector<2x64xf32>
    %547 = math.exp %546 : vector<2x64xf32>
    %cst_214 = arith.constant 1.000000e+00 : f32
    %548 = vector.broadcast %cst_214 : f32 to vector<2x64xf32>
    %549 = arith.addf %548, %547 : vector<2x64xf32>
    %550 = arith.divf %548, %549 : vector<2x64xf32>
    %551 = vector.extract_strided_slice %194 {offsets = [0, 0], sizes = [2, 64], strides = [1, 1]} : vector<2x256xf32> to vector<2x64xf32>
    %552 = vector.extract_strided_slice %274 {offsets = [0, 0], sizes = [2, 64], strides = [1, 1]} : vector<2x256xf32> to vector<2x64xf32>
    %553 = vector.extract_strided_slice %354 {offsets = [0, 0], sizes = [2, 64], strides = [1, 1]} : vector<2x256xf32> to vector<2x64xf32>
    %554 = vector.extract_strided_slice %432 {offsets = [0, 0], sizes = [2, 64], strides = [1, 1]} : vector<2x256xf32> to vector<2x64xf32>
    %555 = tpu.concatenate %551, %552, %553, %554 in 1 : vector<2x64xf32>, vector<2x64xf32>, vector<2x64xf32>, vector<2x64xf32> -> vector<2x256xf32>
    %c4_215 = arith.constant 4 : index
    %c0_216 = arith.constant 0 : index
    %c0_217 = arith.constant 0 : index
    %556 = vector.load %arg4[%c4_215, %c0_216, %c0_217] : memref<16x256x64xbf16, #tpu.memory_space<vmem>>, vector<1x256x64xbf16>
    %557 = vector.shape_cast %556 : vector<1x256x64xbf16> to vector<256x64xbf16>
    %558 = arith.truncf %555 : vector<2x256xf32> to vector<2x256xbf16>
    %cst_218 = arith.constant dense<0.000000e+00> : vector<2x64xf32>
    %559 = tpu.matmul %558, %557, %cst_218 {dimension_numbers = #tpu.dot_dimension_numbers<[1], [0], [0], [1], [0, 0, 1, 1], [], []>} : vector<2x256xbf16>, vector<256x64xbf16>, vector<2x64xf32> -> vector<2x64xf32>
    %cst_219 = arith.constant dense<0xFF800000> : vector<2xf32>
    %560 = vector.multi_reduction <maximumf>, %559, %cst_219 [1] : vector<2x64xf32> to vector<2xf32>
    %561 = vector.shape_cast %560 : vector<2xf32> to vector<2x1xf32>
    %cst_220 = arith.constant 5.000000e-01 : f32
    %562 = vector.broadcast %cst_220 : f32 to vector<2x1xf32>
    %563 = arith.mulf %562, %561 : vector<2x1xf32>
    %564 = vector.broadcast %563 : vector<2x1xf32> to vector<2x64xf32>
    %565 = arith.subf %559, %564 : vector<2x64xf32>
    %566 = arith.negf %565 : vector<2x64xf32>
    %567 = math.exp %566 : vector<2x64xf32>
    %cst_221 = arith.constant 1.000000e+00 : f32
    %568 = vector.broadcast %cst_221 : f32 to vector<2x64xf32>
    %569 = arith.addf %568, %567 : vector<2x64xf32>
    %570 = arith.divf %568, %569 : vector<2x64xf32>
    %571 = vector.extract_strided_slice %194 {offsets = [0, 64], sizes = [2, 64], strides = [1, 1]} : vector<2x256xf32> to vector<2x64xf32>
    %572 = vector.extract_strided_slice %274 {offsets = [0, 64], sizes = [2, 64], strides = [1, 1]} : vector<2x256xf32> to vector<2x64xf32>
    %573 = vector.extract_strided_slice %354 {offsets = [0, 64], sizes = [2, 64], strides = [1, 1]} : vector<2x256xf32> to vector<2x64xf32>
    %574 = vector.extract_strided_slice %432 {offsets = [0, 64], sizes = [2, 64], strides = [1, 1]} : vector<2x256xf32> to vector<2x64xf32>
    %575 = tpu.concatenate %571, %572, %573, %574 in 1 : vector<2x64xf32>, vector<2x64xf32>, vector<2x64xf32>, vector<2x64xf32> -> vector<2x256xf32>
    %c5_222 = arith.constant 5 : index
    %c0_223 = arith.constant 0 : index
    %c0_224 = arith.constant 0 : index
    %576 = vector.load %arg4[%c5_222, %c0_223, %c0_224] : memref<16x256x64xbf16, #tpu.memory_space<vmem>>, vector<1x256x64xbf16>
    %577 = vector.shape_cast %576 : vector<1x256x64xbf16> to vector<256x64xbf16>
    %578 = arith.truncf %575 : vector<2x256xf32> to vector<2x256xbf16>
    %cst_225 = arith.constant dense<0.000000e+00> : vector<2x64xf32>
    %579 = tpu.matmul %578, %577, %cst_225 {dimension_numbers = #tpu.dot_dimension_numbers<[1], [0], [0], [1], [0, 0, 1, 1], [], []>} : vector<2x256xbf16>, vector<256x64xbf16>, vector<2x64xf32> -> vector<2x64xf32>
    %cst_226 = arith.constant dense<0xFF800000> : vector<2xf32>
    %580 = vector.multi_reduction <maximumf>, %579, %cst_226 [1] : vector<2x64xf32> to vector<2xf32>
    %581 = vector.shape_cast %580 : vector<2xf32> to vector<2x1xf32>
    %cst_227 = arith.constant 5.000000e-01 : f32
    %582 = vector.broadcast %cst_227 : f32 to vector<2x1xf32>
    %583 = arith.mulf %582, %581 : vector<2x1xf32>
    %584 = vector.broadcast %583 : vector<2x1xf32> to vector<2x64xf32>
    %585 = arith.subf %579, %584 : vector<2x64xf32>
    %586 = arith.negf %585 : vector<2x64xf32>
    %587 = math.exp %586 : vector<2x64xf32>
    %cst_228 = arith.constant 1.000000e+00 : f32
    %588 = vector.broadcast %cst_228 : f32 to vector<2x64xf32>
    %589 = arith.addf %588, %587 : vector<2x64xf32>
    %590 = arith.divf %588, %589 : vector<2x64xf32>
    %591 = vector.extract_strided_slice %194 {offsets = [0, 128], sizes = [2, 64], strides = [1, 1]} : vector<2x256xf32> to vector<2x64xf32>
    %592 = vector.extract_strided_slice %274 {offsets = [0, 128], sizes = [2, 64], strides = [1, 1]} : vector<2x256xf32> to vector<2x64xf32>
    %593 = vector.extract_strided_slice %354 {offsets = [0, 128], sizes = [2, 64], strides = [1, 1]} : vector<2x256xf32> to vector<2x64xf32>
    %594 = vector.extract_strided_slice %432 {offsets = [0, 128], sizes = [2, 64], strides = [1, 1]} : vector<2x256xf32> to vector<2x64xf32>
    %595 = tpu.concatenate %591, %592, %593, %594 in 1 : vector<2x64xf32>, vector<2x64xf32>, vector<2x64xf32>, vector<2x64xf32> -> vector<2x256xf32>
    %c6_229 = arith.constant 6 : index
    %c0_230 = arith.constant 0 : index
    %c0_231 = arith.constant 0 : index
    %596 = vector.load %arg4[%c6_229, %c0_230, %c0_231] : memref<16x256x64xbf16, #tpu.memory_space<vmem>>, vector<1x256x64xbf16>
    %597 = vector.shape_cast %596 : vector<1x256x64xbf16> to vector<256x64xbf16>
    %598 = arith.truncf %595 : vector<2x256xf32> to vector<2x256xbf16>
    %cst_232 = arith.constant dense<0.000000e+00> : vector<2x64xf32>
    %599 = tpu.matmul %598, %597, %cst_232 {dimension_numbers = #tpu.dot_dimension_numbers<[1], [0], [0], [1], [0, 0, 1, 1], [], []>} : vector<2x256xbf16>, vector<256x64xbf16>, vector<2x64xf32> -> vector<2x64xf32>
    %cst_233 = arith.constant dense<0xFF800000> : vector<2xf32>
    %600 = vector.multi_reduction <maximumf>, %599, %cst_233 [1] : vector<2x64xf32> to vector<2xf32>
    %601 = vector.shape_cast %600 : vector<2xf32> to vector<2x1xf32>
    %cst_234 = arith.constant 5.000000e-01 : f32
    %602 = vector.broadcast %cst_234 : f32 to vector<2x1xf32>
    %603 = arith.mulf %602, %601 : vector<2x1xf32>
    %604 = vector.broadcast %603 : vector<2x1xf32> to vector<2x64xf32>
    %605 = arith.subf %599, %604 : vector<2x64xf32>
    %606 = arith.negf %605 : vector<2x64xf32>
    %607 = math.exp %606 : vector<2x64xf32>
    %cst_235 = arith.constant 1.000000e+00 : f32
    %608 = vector.broadcast %cst_235 : f32 to vector<2x64xf32>
    %609 = arith.addf %608, %607 : vector<2x64xf32>
    %610 = arith.divf %608, %609 : vector<2x64xf32>
    %611 = vector.extract_strided_slice %194 {offsets = [0, 192], sizes = [2, 64], strides = [1, 1]} : vector<2x256xf32> to vector<2x64xf32>
    %612 = vector.extract_strided_slice %274 {offsets = [0, 192], sizes = [2, 64], strides = [1, 1]} : vector<2x256xf32> to vector<2x64xf32>
    %613 = vector.extract_strided_slice %354 {offsets = [0, 192], sizes = [2, 64], strides = [1, 1]} : vector<2x256xf32> to vector<2x64xf32>
    %614 = vector.extract_strided_slice %432 {offsets = [0, 192], sizes = [2, 64], strides = [1, 1]} : vector<2x256xf32> to vector<2x64xf32>
    %615 = tpu.concatenate %611, %612, %613, %614 in 1 : vector<2x64xf32>, vector<2x64xf32>, vector<2x64xf32>, vector<2x64xf32> -> vector<2x256xf32>
    %c7_236 = arith.constant 7 : index
    %c0_237 = arith.constant 0 : index
    %c0_238 = arith.constant 0 : index
    %616 = vector.load %arg4[%c7_236, %c0_237, %c0_238] : memref<16x256x64xbf16, #tpu.memory_space<vmem>>, vector<1x256x64xbf16>
    %617 = vector.shape_cast %616 : vector<1x256x64xbf16> to vector<256x64xbf16>
    %618 = arith.truncf %615 : vector<2x256xf32> to vector<2x256xbf16>
    %cst_239 = arith.constant dense<0.000000e+00> : vector<2x64xf32>
    %619 = tpu.matmul %618, %617, %cst_239 {dimension_numbers = #tpu.dot_dimension_numbers<[1], [0], [0], [1], [0, 0, 1, 1], [], []>} : vector<2x256xbf16>, vector<256x64xbf16>, vector<2x64xf32> -> vector<2x64xf32>
    %cst_240 = arith.constant dense<0xFF800000> : vector<2xf32>
    %620 = vector.multi_reduction <maximumf>, %619, %cst_240 [1] : vector<2x64xf32> to vector<2xf32>
    %621 = vector.shape_cast %620 : vector<2xf32> to vector<2x1xf32>
    %cst_241 = arith.constant 5.000000e-01 : f32
    %622 = vector.broadcast %cst_241 : f32 to vector<2x1xf32>
    %623 = arith.mulf %622, %621 : vector<2x1xf32>
    %624 = vector.broadcast %623 : vector<2x1xf32> to vector<2x64xf32>
    %625 = arith.subf %619, %624 : vector<2x64xf32>
    %626 = arith.negf %625 : vector<2x64xf32>
    %627 = math.exp %626 : vector<2x64xf32>
    %cst_242 = arith.constant 1.000000e+00 : f32
    %628 = vector.broadcast %cst_242 : f32 to vector<2x64xf32>
    %629 = arith.addf %628, %627 : vector<2x64xf32>
    %630 = arith.divf %628, %629 : vector<2x64xf32>
    %631 = vector.extract_strided_slice %214 {offsets = [0, 0], sizes = [2, 64], strides = [1, 1]} : vector<2x256xf32> to vector<2x64xf32>
    %632 = vector.extract_strided_slice %294 {offsets = [0, 0], sizes = [2, 64], strides = [1, 1]} : vector<2x256xf32> to vector<2x64xf32>
    %633 = vector.extract_strided_slice %374 {offsets = [0, 0], sizes = [2, 64], strides = [1, 1]} : vector<2x256xf32> to vector<2x64xf32>
    %634 = vector.extract_strided_slice %451 {offsets = [0, 0], sizes = [2, 64], strides = [1, 1]} : vector<2x256xf32> to vector<2x64xf32>
    %635 = tpu.concatenate %631, %632, %633, %634 in 1 : vector<2x64xf32>, vector<2x64xf32>, vector<2x64xf32>, vector<2x64xf32> -> vector<2x256xf32>
    %c8_243 = arith.constant 8 : index
    %c0_244 = arith.constant 0 : index
    %c0_245 = arith.constant 0 : index
    %636 = vector.load %arg4[%c8_243, %c0_244, %c0_245] : memref<16x256x64xbf16, #tpu.memory_space<vmem>>, vector<1x256x64xbf16>
    %637 = vector.shape_cast %636 : vector<1x256x64xbf16> to vector<256x64xbf16>
    %638 = arith.truncf %635 : vector<2x256xf32> to vector<2x256xbf16>
    %cst_246 = arith.constant dense<0.000000e+00> : vector<2x64xf32>
    %639 = tpu.matmul %638, %637, %cst_246 {dimension_numbers = #tpu.dot_dimension_numbers<[1], [0], [0], [1], [0, 0, 1, 1], [], []>} : vector<2x256xbf16>, vector<256x64xbf16>, vector<2x64xf32> -> vector<2x64xf32>
    %cst_247 = arith.constant dense<0xFF800000> : vector<2xf32>
    %640 = vector.multi_reduction <maximumf>, %639, %cst_247 [1] : vector<2x64xf32> to vector<2xf32>
    %641 = vector.shape_cast %640 : vector<2xf32> to vector<2x1xf32>
    %cst_248 = arith.constant 5.000000e-01 : f32
    %642 = vector.broadcast %cst_248 : f32 to vector<2x1xf32>
    %643 = arith.mulf %642, %641 : vector<2x1xf32>
    %644 = vector.broadcast %643 : vector<2x1xf32> to vector<2x64xf32>
    %645 = arith.subf %639, %644 : vector<2x64xf32>
    %646 = arith.negf %645 : vector<2x64xf32>
    %647 = math.exp %646 : vector<2x64xf32>
    %cst_249 = arith.constant 1.000000e+00 : f32
    %648 = vector.broadcast %cst_249 : f32 to vector<2x64xf32>
    %649 = arith.addf %648, %647 : vector<2x64xf32>
    %650 = arith.divf %648, %649 : vector<2x64xf32>
    %651 = vector.extract_strided_slice %214 {offsets = [0, 64], sizes = [2, 64], strides = [1, 1]} : vector<2x256xf32> to vector<2x64xf32>
    %652 = vector.extract_strided_slice %294 {offsets = [0, 64], sizes = [2, 64], strides = [1, 1]} : vector<2x256xf32> to vector<2x64xf32>
    %653 = vector.extract_strided_slice %374 {offsets = [0, 64], sizes = [2, 64], strides = [1, 1]} : vector<2x256xf32> to vector<2x64xf32>
    %654 = vector.extract_strided_slice %451 {offsets = [0, 64], sizes = [2, 64], strides = [1, 1]} : vector<2x256xf32> to vector<2x64xf32>
    %655 = tpu.concatenate %651, %652, %653, %654 in 1 : vector<2x64xf32>, vector<2x64xf32>, vector<2x64xf32>, vector<2x64xf32> -> vector<2x256xf32>
    %c9_250 = arith.constant 9 : index
    %c0_251 = arith.constant 0 : index
    %c0_252 = arith.constant 0 : index
    %656 = vector.load %arg4[%c9_250, %c0_251, %c0_252] : memref<16x256x64xbf16, #tpu.memory_space<vmem>>, vector<1x256x64xbf16>
    %657 = vector.shape_cast %656 : vector<1x256x64xbf16> to vector<256x64xbf16>
    %658 = arith.truncf %655 : vector<2x256xf32> to vector<2x256xbf16>
    %cst_253 = arith.constant dense<0.000000e+00> : vector<2x64xf32>
    %659 = tpu.matmul %658, %657, %cst_253 {dimension_numbers = #tpu.dot_dimension_numbers<[1], [0], [0], [1], [0, 0, 1, 1], [], []>} : vector<2x256xbf16>, vector<256x64xbf16>, vector<2x64xf32> -> vector<2x64xf32>
    %cst_254 = arith.constant dense<0xFF800000> : vector<2xf32>
    %660 = vector.multi_reduction <maximumf>, %659, %cst_254 [1] : vector<2x64xf32> to vector<2xf32>
    %661 = vector.shape_cast %660 : vector<2xf32> to vector<2x1xf32>
    %cst_255 = arith.constant 5.000000e-01 : f32
    %662 = vector.broadcast %cst_255 : f32 to vector<2x1xf32>
    %663 = arith.mulf %662, %661 : vector<2x1xf32>
    %664 = vector.broadcast %663 : vector<2x1xf32> to vector<2x64xf32>
    %665 = arith.subf %659, %664 : vector<2x64xf32>
    %666 = arith.negf %665 : vector<2x64xf32>
    %667 = math.exp %666 : vector<2x64xf32>
    %cst_256 = arith.constant 1.000000e+00 : f32
    %668 = vector.broadcast %cst_256 : f32 to vector<2x64xf32>
    %669 = arith.addf %668, %667 : vector<2x64xf32>
    %670 = arith.divf %668, %669 : vector<2x64xf32>
    %671 = vector.extract_strided_slice %214 {offsets = [0, 128], sizes = [2, 64], strides = [1, 1]} : vector<2x256xf32> to vector<2x64xf32>
    %672 = vector.extract_strided_slice %294 {offsets = [0, 128], sizes = [2, 64], strides = [1, 1]} : vector<2x256xf32> to vector<2x64xf32>
    %673 = vector.extract_strided_slice %374 {offsets = [0, 128], sizes = [2, 64], strides = [1, 1]} : vector<2x256xf32> to vector<2x64xf32>
    %674 = vector.extract_strided_slice %451 {offsets = [0, 128], sizes = [2, 64], strides = [1, 1]} : vector<2x256xf32> to vector<2x64xf32>
    %675 = tpu.concatenate %671, %672, %673, %674 in 1 : vector<2x64xf32>, vector<2x64xf32>, vector<2x64xf32>, vector<2x64xf32> -> vector<2x256xf32>
    %c10_257 = arith.constant 10 : index
    %c0_258 = arith.constant 0 : index
    %c0_259 = arith.constant 0 : index
    %676 = vector.load %arg4[%c10_257, %c0_258, %c0_259] : memref<16x256x64xbf16, #tpu.memory_space<vmem>>, vector<1x256x64xbf16>
    %677 = vector.shape_cast %676 : vector<1x256x64xbf16> to vector<256x64xbf16>
    %678 = arith.truncf %675 : vector<2x256xf32> to vector<2x256xbf16>
    %cst_260 = arith.constant dense<0.000000e+00> : vector<2x64xf32>
    %679 = tpu.matmul %678, %677, %cst_260 {dimension_numbers = #tpu.dot_dimension_numbers<[1], [0], [0], [1], [0, 0, 1, 1], [], []>} : vector<2x256xbf16>, vector<256x64xbf16>, vector<2x64xf32> -> vector<2x64xf32>
    %cst_261 = arith.constant dense<0xFF800000> : vector<2xf32>
    %680 = vector.multi_reduction <maximumf>, %679, %cst_261 [1] : vector<2x64xf32> to vector<2xf32>
    %681 = vector.shape_cast %680 : vector<2xf32> to vector<2x1xf32>
    %cst_262 = arith.constant 5.000000e-01 : f32
    %682 = vector.broadcast %cst_262 : f32 to vector<2x1xf32>
    %683 = arith.mulf %682, %681 : vector<2x1xf32>
    %684 = vector.broadcast %683 : vector<2x1xf32> to vector<2x64xf32>
    %685 = arith.subf %679, %684 : vector<2x64xf32>
    %686 = arith.negf %685 : vector<2x64xf32>
    %687 = math.exp %686 : vector<2x64xf32>
    %cst_263 = arith.constant 1.000000e+00 : f32
    %688 = vector.broadcast %cst_263 : f32 to vector<2x64xf32>
    %689 = arith.addf %688, %687 : vector<2x64xf32>
    %690 = arith.divf %688, %689 : vector<2x64xf32>
    %691 = vector.extract_strided_slice %214 {offsets = [0, 192], sizes = [2, 64], strides = [1, 1]} : vector<2x256xf32> to vector<2x64xf32>
    %692 = vector.extract_strided_slice %294 {offsets = [0, 192], sizes = [2, 64], strides = [1, 1]} : vector<2x256xf32> to vector<2x64xf32>
    %693 = vector.extract_strided_slice %374 {offsets = [0, 192], sizes = [2, 64], strides = [1, 1]} : vector<2x256xf32> to vector<2x64xf32>
    %694 = vector.extract_strided_slice %451 {offsets = [0, 192], sizes = [2, 64], strides = [1, 1]} : vector<2x256xf32> to vector<2x64xf32>
    %695 = tpu.concatenate %691, %692, %693, %694 in 1 : vector<2x64xf32>, vector<2x64xf32>, vector<2x64xf32>, vector<2x64xf32> -> vector<2x256xf32>
    %c11_264 = arith.constant 11 : index
    %c0_265 = arith.constant 0 : index
    %c0_266 = arith.constant 0 : index
    %696 = vector.load %arg4[%c11_264, %c0_265, %c0_266] : memref<16x256x64xbf16, #tpu.memory_space<vmem>>, vector<1x256x64xbf16>
    %697 = vector.shape_cast %696 : vector<1x256x64xbf16> to vector<256x64xbf16>
    %698 = arith.truncf %695 : vector<2x256xf32> to vector<2x256xbf16>
    %cst_267 = arith.constant dense<0.000000e+00> : vector<2x64xf32>
    %699 = tpu.matmul %698, %697, %cst_267 {dimension_numbers = #tpu.dot_dimension_numbers<[1], [0], [0], [1], [0, 0, 1, 1], [], []>} : vector<2x256xbf16>, vector<256x64xbf16>, vector<2x64xf32> -> vector<2x64xf32>
    %cst_268 = arith.constant dense<0xFF800000> : vector<2xf32>
    %700 = vector.multi_reduction <maximumf>, %699, %cst_268 [1] : vector<2x64xf32> to vector<2xf32>
    %701 = vector.shape_cast %700 : vector<2xf32> to vector<2x1xf32>
    %cst_269 = arith.constant 5.000000e-01 : f32
    %702 = vector.broadcast %cst_269 : f32 to vector<2x1xf32>
    %703 = arith.mulf %702, %701 : vector<2x1xf32>
    %704 = vector.broadcast %703 : vector<2x1xf32> to vector<2x64xf32>
    %705 = arith.subf %699, %704 : vector<2x64xf32>
    %706 = arith.negf %705 : vector<2x64xf32>
    %707 = math.exp %706 : vector<2x64xf32>
    %cst_270 = arith.constant 1.000000e+00 : f32
    %708 = vector.broadcast %cst_270 : f32 to vector<2x64xf32>
    %709 = arith.addf %708, %707 : vector<2x64xf32>
    %710 = arith.divf %708, %709 : vector<2x64xf32>
    %711 = vector.extract_strided_slice %234 {offsets = [0, 0], sizes = [2, 64], strides = [1, 1]} : vector<2x256xf32> to vector<2x64xf32>
    %712 = vector.extract_strided_slice %314 {offsets = [0, 0], sizes = [2, 64], strides = [1, 1]} : vector<2x256xf32> to vector<2x64xf32>
    %713 = vector.extract_strided_slice %394 {offsets = [0, 0], sizes = [2, 64], strides = [1, 1]} : vector<2x256xf32> to vector<2x64xf32>
    %714 = vector.extract_strided_slice %470 {offsets = [0, 0], sizes = [2, 64], strides = [1, 1]} : vector<2x256xf32> to vector<2x64xf32>
    %715 = tpu.concatenate %711, %712, %713, %714 in 1 : vector<2x64xf32>, vector<2x64xf32>, vector<2x64xf32>, vector<2x64xf32> -> vector<2x256xf32>
    %c12_271 = arith.constant 12 : index
    %c0_272 = arith.constant 0 : index
    %c0_273 = arith.constant 0 : index
    %716 = vector.load %arg4[%c12_271, %c0_272, %c0_273] : memref<16x256x64xbf16, #tpu.memory_space<vmem>>, vector<1x256x64xbf16>
    %717 = vector.shape_cast %716 : vector<1x256x64xbf16> to vector<256x64xbf16>
    %718 = arith.truncf %715 : vector<2x256xf32> to vector<2x256xbf16>
    %cst_274 = arith.constant dense<0.000000e+00> : vector<2x64xf32>
    %719 = tpu.matmul %718, %717, %cst_274 {dimension_numbers = #tpu.dot_dimension_numbers<[1], [0], [0], [1], [0, 0, 1, 1], [], []>} : vector<2x256xbf16>, vector<256x64xbf16>, vector<2x64xf32> -> vector<2x64xf32>
    %cst_275 = arith.constant dense<0xFF800000> : vector<2xf32>
    %720 = vector.multi_reduction <maximumf>, %719, %cst_275 [1] : vector<2x64xf32> to vector<2xf32>
    %721 = vector.shape_cast %720 : vector<2xf32> to vector<2x1xf32>
    %cst_276 = arith.constant 5.000000e-01 : f32
    %722 = vector.broadcast %cst_276 : f32 to vector<2x1xf32>
    %723 = arith.mulf %722, %721 : vector<2x1xf32>
    %724 = vector.broadcast %723 : vector<2x1xf32> to vector<2x64xf32>
    %725 = arith.subf %719, %724 : vector<2x64xf32>
    %726 = arith.negf %725 : vector<2x64xf32>
    %727 = math.exp %726 : vector<2x64xf32>
    %cst_277 = arith.constant 1.000000e+00 : f32
    %728 = vector.broadcast %cst_277 : f32 to vector<2x64xf32>
    %729 = arith.addf %728, %727 : vector<2x64xf32>
    %730 = arith.divf %728, %729 : vector<2x64xf32>
    %731 = vector.extract_strided_slice %234 {offsets = [0, 64], sizes = [2, 64], strides = [1, 1]} : vector<2x256xf32> to vector<2x64xf32>
    %732 = vector.extract_strided_slice %314 {offsets = [0, 64], sizes = [2, 64], strides = [1, 1]} : vector<2x256xf32> to vector<2x64xf32>
    %733 = vector.extract_strided_slice %394 {offsets = [0, 64], sizes = [2, 64], strides = [1, 1]} : vector<2x256xf32> to vector<2x64xf32>
    %734 = vector.extract_strided_slice %470 {offsets = [0, 64], sizes = [2, 64], strides = [1, 1]} : vector<2x256xf32> to vector<2x64xf32>
    %735 = tpu.concatenate %731, %732, %733, %734 in 1 : vector<2x64xf32>, vector<2x64xf32>, vector<2x64xf32>, vector<2x64xf32> -> vector<2x256xf32>
    %c13_278 = arith.constant 13 : index
    %c0_279 = arith.constant 0 : index
    %c0_280 = arith.constant 0 : index
    %736 = vector.load %arg4[%c13_278, %c0_279, %c0_280] : memref<16x256x64xbf16, #tpu.memory_space<vmem>>, vector<1x256x64xbf16>
    %737 = vector.shape_cast %736 : vector<1x256x64xbf16> to vector<256x64xbf16>
    %738 = arith.truncf %735 : vector<2x256xf32> to vector<2x256xbf16>
    %cst_281 = arith.constant dense<0.000000e+00> : vector<2x64xf32>
    %739 = tpu.matmul %738, %737, %cst_281 {dimension_numbers = #tpu.dot_dimension_numbers<[1], [0], [0], [1], [0, 0, 1, 1], [], []>} : vector<2x256xbf16>, vector<256x64xbf16>, vector<2x64xf32> -> vector<2x64xf32>
    %cst_282 = arith.constant dense<0xFF800000> : vector<2xf32>
    %740 = vector.multi_reduction <maximumf>, %739, %cst_282 [1] : vector<2x64xf32> to vector<2xf32>
    %741 = vector.shape_cast %740 : vector<2xf32> to vector<2x1xf32>
    %cst_283 = arith.constant 5.000000e-01 : f32
    %742 = vector.broadcast %cst_283 : f32 to vector<2x1xf32>
    %743 = arith.mulf %742, %741 : vector<2x1xf32>
    %744 = vector.broadcast %743 : vector<2x1xf32> to vector<2x64xf32>
    %745 = arith.subf %739, %744 : vector<2x64xf32>
    %746 = arith.negf %745 : vector<2x64xf32>
    %747 = math.exp %746 : vector<2x64xf32>
    %cst_284 = arith.constant 1.000000e+00 : f32
    %748 = vector.broadcast %cst_284 : f32 to vector<2x64xf32>
    %749 = arith.addf %748, %747 : vector<2x64xf32>
    %750 = arith.divf %748, %749 : vector<2x64xf32>
    %751 = vector.extract_strided_slice %234 {offsets = [0, 128], sizes = [2, 64], strides = [1, 1]} : vector<2x256xf32> to vector<2x64xf32>
    %752 = vector.extract_strided_slice %314 {offsets = [0, 128], sizes = [2, 64], strides = [1, 1]} : vector<2x256xf32> to vector<2x64xf32>
    %753 = vector.extract_strided_slice %394 {offsets = [0, 128], sizes = [2, 64], strides = [1, 1]} : vector<2x256xf32> to vector<2x64xf32>
    %754 = vector.extract_strided_slice %470 {offsets = [0, 128], sizes = [2, 64], strides = [1, 1]} : vector<2x256xf32> to vector<2x64xf32>
    %755 = tpu.concatenate %751, %752, %753, %754 in 1 : vector<2x64xf32>, vector<2x64xf32>, vector<2x64xf32>, vector<2x64xf32> -> vector<2x256xf32>
    %c14_285 = arith.constant 14 : index
    %c0_286 = arith.constant 0 : index
    %c0_287 = arith.constant 0 : index
    %756 = vector.load %arg4[%c14_285, %c0_286, %c0_287] : memref<16x256x64xbf16, #tpu.memory_space<vmem>>, vector<1x256x64xbf16>
    %757 = vector.shape_cast %756 : vector<1x256x64xbf16> to vector<256x64xbf16>
    %758 = arith.truncf %755 : vector<2x256xf32> to vector<2x256xbf16>
    %cst_288 = arith.constant dense<0.000000e+00> : vector<2x64xf32>
    %759 = tpu.matmul %758, %757, %cst_288 {dimension_numbers = #tpu.dot_dimension_numbers<[1], [0], [0], [1], [0, 0, 1, 1], [], []>} : vector<2x256xbf16>, vector<256x64xbf16>, vector<2x64xf32> -> vector<2x64xf32>
    %cst_289 = arith.constant dense<0xFF800000> : vector<2xf32>
    %760 = vector.multi_reduction <maximumf>, %759, %cst_289 [1] : vector<2x64xf32> to vector<2xf32>
    %761 = vector.shape_cast %760 : vector<2xf32> to vector<2x1xf32>
    %cst_290 = arith.constant 5.000000e-01 : f32
    %762 = vector.broadcast %cst_290 : f32 to vector<2x1xf32>
    %763 = arith.mulf %762, %761 : vector<2x1xf32>
    %764 = vector.broadcast %763 : vector<2x1xf32> to vector<2x64xf32>
    %765 = arith.subf %759, %764 : vector<2x64xf32>
    %766 = arith.negf %765 : vector<2x64xf32>
    %767 = math.exp %766 : vector<2x64xf32>
    %cst_291 = arith.constant 1.000000e+00 : f32
    %768 = vector.broadcast %cst_291 : f32 to vector<2x64xf32>
    %769 = arith.addf %768, %767 : vector<2x64xf32>
    %770 = arith.divf %768, %769 : vector<2x64xf32>
    %771 = vector.extract_strided_slice %234 {offsets = [0, 192], sizes = [2, 64], strides = [1, 1]} : vector<2x256xf32> to vector<2x64xf32>
    %772 = vector.extract_strided_slice %314 {offsets = [0, 192], sizes = [2, 64], strides = [1, 1]} : vector<2x256xf32> to vector<2x64xf32>
    %773 = vector.extract_strided_slice %394 {offsets = [0, 192], sizes = [2, 64], strides = [1, 1]} : vector<2x256xf32> to vector<2x64xf32>
    %774 = vector.extract_strided_slice %470 {offsets = [0, 192], sizes = [2, 64], strides = [1, 1]} : vector<2x256xf32> to vector<2x64xf32>
    %775 = tpu.concatenate %771, %772, %773, %774 in 1 : vector<2x64xf32>, vector<2x64xf32>, vector<2x64xf32>, vector<2x64xf32> -> vector<2x256xf32>
    %c15_292 = arith.constant 15 : index
    %c0_293 = arith.constant 0 : index
    %c0_294 = arith.constant 0 : index
    %776 = vector.load %arg4[%c15_292, %c0_293, %c0_294] : memref<16x256x64xbf16, #tpu.memory_space<vmem>>, vector<1x256x64xbf16>
    %777 = vector.shape_cast %776 : vector<1x256x64xbf16> to vector<256x64xbf16>
    %778 = arith.truncf %775 : vector<2x256xf32> to vector<2x256xbf16>
    %cst_295 = arith.constant dense<0.000000e+00> : vector<2x64xf32>
    %779 = tpu.matmul %778, %777, %cst_295 {dimension_numbers = #tpu.dot_dimension_numbers<[1], [0], [0], [1], [0, 0, 1, 1], [], []>} : vector<2x256xbf16>, vector<256x64xbf16>, vector<2x64xf32> -> vector<2x64xf32>
    %cst_296 = arith.constant dense<0xFF800000> : vector<2xf32>
    %780 = vector.multi_reduction <maximumf>, %779, %cst_296 [1] : vector<2x64xf32> to vector<2xf32>
    %781 = vector.shape_cast %780 : vector<2xf32> to vector<2x1xf32>
    %cst_297 = arith.constant 5.000000e-01 : f32
    %782 = vector.broadcast %cst_297 : f32 to vector<2x1xf32>
    %783 = arith.mulf %782, %781 : vector<2x1xf32>
    %784 = vector.broadcast %783 : vector<2x1xf32> to vector<2x64xf32>
    %785 = arith.subf %779, %784 : vector<2x64xf32>
    %786 = arith.negf %785 : vector<2x64xf32>
    %787 = math.exp %786 : vector<2x64xf32>
    %cst_298 = arith.constant 1.000000e+00 : f32
    %788 = vector.broadcast %cst_298 : f32 to vector<2x64xf32>
    %789 = arith.addf %788, %787 : vector<2x64xf32>
    %790 = arith.divf %788, %789 : vector<2x64xf32>
    %791 = tpu.concatenate %490, %570, %650, %730 in 1 : vector<2x64xf32>, vector<2x64xf32>, vector<2x64xf32>, vector<2x64xf32> -> vector<2x256xf32>
    %c0_299 = arith.constant 0 : index
    %c0_300 = arith.constant 0 : index
    %c0_301 = arith.constant 0 : index
    %792 = vector.load %arg5[%c0_299, %c0_300, %c0_301] : memref<4x256x64xbf16, #tpu.memory_space<vmem>>, vector<1x256x64xbf16>
    %793 = vector.shape_cast %792 : vector<1x256x64xbf16> to vector<256x64xbf16>
    %794 = arith.truncf %791 : vector<2x256xf32> to vector<2x256xbf16>
    %cst_302 = arith.constant dense<0.000000e+00> : vector<2x64xf32>
    %795 = tpu.matmul %794, %793, %cst_302 {dimension_numbers = #tpu.dot_dimension_numbers<[1], [0], [0], [1], [0, 0, 1, 1], [], []>} : vector<2x256xbf16>, vector<256x64xbf16>, vector<2x64xf32> -> vector<2x64xf32>
    %cst_303 = arith.constant dense<0xFF800000> : vector<2xf32>
    %796 = vector.multi_reduction <maximumf>, %795, %cst_303 [1] : vector<2x64xf32> to vector<2xf32>
    %797 = vector.shape_cast %796 : vector<2xf32> to vector<2x1xf32>
    %cst_304 = arith.constant 5.000000e-01 : f32
    %798 = vector.broadcast %cst_304 : f32 to vector<2x1xf32>
    %799 = arith.mulf %798, %797 : vector<2x1xf32>
    %800 = vector.broadcast %799 : vector<2x1xf32> to vector<2x64xf32>
    %801 = arith.subf %795, %800 : vector<2x64xf32>
    %802 = arith.negf %801 : vector<2x64xf32>
    %803 = math.exp %802 : vector<2x64xf32>
    %cst_305 = arith.constant 1.000000e+00 : f32
    %804 = vector.broadcast %cst_305 : f32 to vector<2x64xf32>
    %805 = arith.addf %804, %803 : vector<2x64xf32>
    %806 = arith.divf %804, %805 : vector<2x64xf32>
    %807 = tpu.concatenate %510, %590, %670, %750 in 1 : vector<2x64xf32>, vector<2x64xf32>, vector<2x64xf32>, vector<2x64xf32> -> vector<2x256xf32>
    %c1_306 = arith.constant 1 : index
    %c0_307 = arith.constant 0 : index
    %c0_308 = arith.constant 0 : index
    %808 = vector.load %arg5[%c1_306, %c0_307, %c0_308] : memref<4x256x64xbf16, #tpu.memory_space<vmem>>, vector<1x256x64xbf16>
    %809 = vector.shape_cast %808 : vector<1x256x64xbf16> to vector<256x64xbf16>
    %810 = arith.truncf %807 : vector<2x256xf32> to vector<2x256xbf16>
    %cst_309 = arith.constant dense<0.000000e+00> : vector<2x64xf32>
    %811 = tpu.matmul %810, %809, %cst_309 {dimension_numbers = #tpu.dot_dimension_numbers<[1], [0], [0], [1], [0, 0, 1, 1], [], []>} : vector<2x256xbf16>, vector<256x64xbf16>, vector<2x64xf32> -> vector<2x64xf32>
    %cst_310 = arith.constant dense<0xFF800000> : vector<2xf32>
    %812 = vector.multi_reduction <maximumf>, %811, %cst_310 [1] : vector<2x64xf32> to vector<2xf32>
    %813 = vector.shape_cast %812 : vector<2xf32> to vector<2x1xf32>
    %cst_311 = arith.constant 5.000000e-01 : f32
    %814 = vector.broadcast %cst_311 : f32 to vector<2x1xf32>
    %815 = arith.mulf %814, %813 : vector<2x1xf32>
    %816 = vector.broadcast %815 : vector<2x1xf32> to vector<2x64xf32>
    %817 = arith.subf %811, %816 : vector<2x64xf32>
    %818 = arith.negf %817 : vector<2x64xf32>
    %819 = math.exp %818 : vector<2x64xf32>
    %cst_312 = arith.constant 1.000000e+00 : f32
    %820 = vector.broadcast %cst_312 : f32 to vector<2x64xf32>
    %821 = arith.addf %820, %819 : vector<2x64xf32>
    %822 = arith.divf %820, %821 : vector<2x64xf32>
    %823 = tpu.concatenate %530, %610, %690, %770 in 1 : vector<2x64xf32>, vector<2x64xf32>, vector<2x64xf32>, vector<2x64xf32> -> vector<2x256xf32>
    %c2_313 = arith.constant 2 : index
    %c0_314 = arith.constant 0 : index
    %c0_315 = arith.constant 0 : index
    %824 = vector.load %arg5[%c2_313, %c0_314, %c0_315] : memref<4x256x64xbf16, #tpu.memory_space<vmem>>, vector<1x256x64xbf16>
    %825 = vector.shape_cast %824 : vector<1x256x64xbf16> to vector<256x64xbf16>
    %826 = arith.truncf %823 : vector<2x256xf32> to vector<2x256xbf16>
    %cst_316 = arith.constant dense<0.000000e+00> : vector<2x64xf32>
    %827 = tpu.matmul %826, %825, %cst_316 {dimension_numbers = #tpu.dot_dimension_numbers<[1], [0], [0], [1], [0, 0, 1, 1], [], []>} : vector<2x256xbf16>, vector<256x64xbf16>, vector<2x64xf32> -> vector<2x64xf32>
    %cst_317 = arith.constant dense<0xFF800000> : vector<2xf32>
    %828 = vector.multi_reduction <maximumf>, %827, %cst_317 [1] : vector<2x64xf32> to vector<2xf32>
    %829 = vector.shape_cast %828 : vector<2xf32> to vector<2x1xf32>
    %cst_318 = arith.constant 5.000000e-01 : f32
    %830 = vector.broadcast %cst_318 : f32 to vector<2x1xf32>
    %831 = arith.mulf %830, %829 : vector<2x1xf32>
    %832 = vector.broadcast %831 : vector<2x1xf32> to vector<2x64xf32>
    %833 = arith.subf %827, %832 : vector<2x64xf32>
    %834 = arith.negf %833 : vector<2x64xf32>
    %835 = math.exp %834 : vector<2x64xf32>
    %cst_319 = arith.constant 1.000000e+00 : f32
    %836 = vector.broadcast %cst_319 : f32 to vector<2x64xf32>
    %837 = arith.addf %836, %835 : vector<2x64xf32>
    %838 = arith.divf %836, %837 : vector<2x64xf32>
    %839 = tpu.concatenate %550, %630, %710, %790 in 1 : vector<2x64xf32>, vector<2x64xf32>, vector<2x64xf32>, vector<2x64xf32> -> vector<2x256xf32>
    %c3_320 = arith.constant 3 : index
    %c0_321 = arith.constant 0 : index
    %c0_322 = arith.constant 0 : index
    %840 = vector.load %arg5[%c3_320, %c0_321, %c0_322] : memref<4x256x64xbf16, #tpu.memory_space<vmem>>, vector<1x256x64xbf16>
    %841 = vector.shape_cast %840 : vector<1x256x64xbf16> to vector<256x64xbf16>
    %842 = arith.truncf %839 : vector<2x256xf32> to vector<2x256xbf16>
    %cst_323 = arith.constant dense<0.000000e+00> : vector<2x64xf32>
    %843 = tpu.matmul %842, %841, %cst_323 {dimension_numbers = #tpu.dot_dimension_numbers<[1], [0], [0], [1], [0, 0, 1, 1], [], []>} : vector<2x256xbf16>, vector<256x64xbf16>, vector<2x64xf32> -> vector<2x64xf32>
    %cst_324 = arith.constant dense<0xFF800000> : vector<2xf32>
    %844 = vector.multi_reduction <maximumf>, %843, %cst_324 [1] : vector<2x64xf32> to vector<2xf32>
    %845 = vector.shape_cast %844 : vector<2xf32> to vector<2x1xf32>
    %cst_325 = arith.constant 5.000000e-01 : f32
    %846 = vector.broadcast %cst_325 : f32 to vector<2x1xf32>
    %847 = arith.mulf %846, %845 : vector<2x1xf32>
    %848 = vector.broadcast %847 : vector<2x1xf32> to vector<2x64xf32>
    %849 = arith.subf %843, %848 : vector<2x64xf32>
    %850 = arith.negf %849 : vector<2x64xf32>
    %851 = math.exp %850 : vector<2x64xf32>
    %cst_326 = arith.constant 1.000000e+00 : f32
    %852 = vector.broadcast %cst_326 : f32 to vector<2x64xf32>
    %853 = arith.addf %852, %851 : vector<2x64xf32>
    %854 = arith.divf %852, %853 : vector<2x64xf32>
    %855 = tpu.concatenate %806, %822, %838, %854 in 1 : vector<2x64xf32>, vector<2x64xf32>, vector<2x64xf32>, vector<2x64xf32> -> vector<2x256xf32>
    %856 = arith.truncf %855 : vector<2x256xf32> to vector<2x256xbf16>
    %c0_327 = arith.constant 0 : index
    %c0_328 = arith.constant 0 : index
    %857 = vector.load %arg6[%c0_327, %c0_328] : memref<256x10xbf16, #tpu.memory_space<vmem>>, vector<256x10xbf16>
    %cst_329 = arith.constant dense<0.000000e+00> : vector<2x10xf32>
    %858 = tpu.matmul %856, %857, %cst_329 {dimension_numbers = #tpu.dot_dimension_numbers<[1], [0], [0], [1], [0, 0, 1, 1], [], []>} : vector<2x256xbf16>, vector<256x10xbf16>, vector<2x10xf32> -> vector<2x10xf32>
    %c0_330 = arith.constant 0 : index
    %c0_331 = arith.constant 0 : index
    %859 = vector.load %arg7[%c0_330, %c0_331] : memref<1x10xf32, #tpu.memory_space<vmem>>, vector<1x10xf32>
    %860 = vector.broadcast %859 : vector<1x10xf32> to vector<2x10xf32>
    %861 = arith.addf %858, %860 : vector<2x10xf32>
    %cst_332 = arith.constant dense<0xFF800000> : vector<2xf32>
    %862 = vector.multi_reduction <maximumf>, %861, %cst_332 [1] : vector<2x10xf32> to vector<2xf32>
    %863 = vector.shape_cast %862 : vector<2xf32> to vector<2x1xf32>
    %864 = vector.broadcast %863 : vector<2x1xf32> to vector<2x10xf32>
    %865 = arith.subf %861, %864 : vector<2x10xf32>
    %866 = math.exp %865 : vector<2x10xf32>
    %cst_333 = arith.constant dense<0.000000e+00> : vector<2xf32>
    %867 = vector.multi_reduction <add>, %866, %cst_333 [1] : vector<2x10xf32> to vector<2xf32>
    %868 = vector.shape_cast %867 : vector<2xf32> to vector<2x1xf32>
    %869 = vector.broadcast %868 : vector<2x1xf32> to vector<2x10xf32>
    %870 = arith.divf %866, %869 : vector<2x10xf32>
    %c0_334 = arith.constant 0 : index
    %c0_335 = arith.constant 0 : index
    %871 = vector.load %arg8[%c0_334, %c0_335] : memref<2x10xf32, #tpu.memory_space<vmem>>, vector<2x10xf32>
    tpu.vector_store %arg8[%c0_334, %c0_335], %870 {strides = array<i32>} : memref<2x10xf32, #tpu.memory_space<vmem>>, vector<2x10xf32>,
    return
  }
  func.func @transform_0(%arg0: i32) -> (i32, i32, i32) {
    %c0_i32 = arith.constant 0 : i32
    %c0_i32_0 = arith.constant 0 : i32
    %c0_i32_1 = arith.constant 0 : i32
    %c0_i32_2 = arith.constant 0 : i32
    return %c0_i32, %c0_i32_0, %c0_i32_1 : i32, i32, i32
  }
  func.func @transform_1(%arg0: i32) -> (i32, i32, i32) {
    %c0_i32 = arith.constant 0 : i32
    %c0_i32_0 = arith.constant 0 : i32
    %c0_i32_1 = arith.constant 0 : i32
    %c0_i32_2 = arith.constant 0 : i32
    return %c0_i32, %c0_i32_0, %c0_i32_1 : i32, i32, i32
  }
  func.func @transform_2(%arg0: i32) -> (i32, i32, i32) {
    %c0_i32 = arith.constant 0 : i32
    %c0_i32_0 = arith.constant 0 : i32
    %c0_i32_1 = arith.constant 0 : i32
    %c0_i32_2 = arith.constant 0 : i32
    return %c0_i32, %c0_i32_0, %c0_i32_1 : i32, i32, i32
  }
  func.func @transform_3(%arg0: i32) -> (i32, i32, i32) {
    %c0_i32 = arith.constant 0 : i32
    %c0_i32_0 = arith.constant 0 : i32
    %c0_i32_1 = arith.constant 0 : i32
    %c0_i32_2 = arith.constant 0 : i32
    return %c0_i32, %c0_i32_0, %c0_i32_1 : i32, i32, i32
  }
  func.func @transform_4(%arg0: i32) -> (i32, i32, i32) {
    %c0_i32 = arith.constant 0 : i32
    %c0_i32_0 = arith.constant 0 : i32
    %c0_i32_1 = arith.constant 0 : i32
    %c0_i32_2 = arith.constant 0 : i32
    return %c0_i32, %c0_i32_0, %c0_i32_1 : i32, i32, i32
  }
  func.func @transform_5(%arg0: i32) -> (i32, i32) {
    %c0_i32 = arith.constant 0 : i32
    %c0_i32_0 = arith.constant 0 : i32
    %c0_i32_1 = arith.constant 0 : i32
    return %c0_i32, %c0_i32_0 : i32, i32
  }
  func.func @transform_6(%arg0: i32) -> (i32, i32) {
    %c0_i32 = arith.constant 0 : i32
    %c0_i32_0 = arith.constant 0 : i32
    %c0_i32_1 = arith.constant 0 : i32
    return %c0_i32, %c0_i32_0 : i32, i32
  }
  func.func @transform_7(%arg0: i32) -> (i32, i32) {
    %c0_i32 = arith.constant 0 : i32
    %c0_i32_0 = arith.constant 0 : i32
    %c0_i32_1 = arith.constant 0 : i32
    return %c0_i32, %c0_i32_0 : i32, i32
  }
}

</mosaic_0001>

<bundles_post_ra>
// kernel: part8_cd_forward.2
= control target key start
LH: loop header
LB: loop body
LE: loop exit
PB: predicated region body
PF: predicated region fallthrough
CT: control target
= control target key end

     0   :  { %8 = vsyncpa [#allocation4], 0  ;;  %s3874_s0 = inlined_call_operand.vmem [shape: f32[96], index: 0, kind: input, shape index: {}]   ;;  %s3875_s1 = inlined_call_operand.hbm [shape: f32[6], index: 1, kind: input, shape index: {}]   ;;  %s3876_s2 = inlined_call_operand.vmem [shape: f32[16,2,14,14], index: 2, kind: input, shape index: {}]   ;;  %s3877_s3 = inlined_call_operand.vmem [shape: f32[6,2,14,14], index: 3, kind: output, shape index: {}]  }
   0x1   :  { %s16_s14 = sshll.u32 %s3874_s0, 4  ;;  %s17_s14 = int_to_ptr.vmem [resolvable:$true] %s16_s14 }
   0x2   :  { %9 = vsyncpa [#allocation3], 0  ;;  %s1659_s15 = scalar_lea.vmem %s17_s14, 16  ;;  %p1664_p1 = scmp.lt.s32.totalorder %s17_s14, %s17_s14 }
   0x3   :  { %p1660_p0 = scmp.ne.s32.totalorder %s17_s14, %s1659_s15  ;;  %p1665_p2 = scmp.lt.s32.totalorder %s1659_s15, %s1659_s15 }
   0x5   :  { %p1666_p3 = por %p1665_p2, %p1664_p1 }
   0x7   :  { %p1667_p4 = pnand %p1666_p3, %p1660_p0 }
   0x9   :  { %1670 = shalt.err (!%p1667_p4)
}
   0xa   :  { %s1685_s16 = smov [#allocation2]   ;;  %s1671_s19 = scalar_lea.hbm %s3875_s1, 16 }
   0xb   :  { %19 = dma.vmem_to_smem %s17_s14, 16, %s1685_s16, [#allocation4]  }
   0xc   :  { %p1672_p5 = scmp.ne.s32.totalorder %s3875_s1, %s1671_s19  ;;  %p1675_p6 = scmp.lt.u32.totalorder %s1671_s19, %s3875_s1 }
   0xe   :  { %p1677_p7 = pnand %p1675_p6, %p1672_p5 }
  0x10   :  { %1680 = shalt.err (!%p1677_p7)
}
  0x11   :  { %s1686_s23 = smov [#allocation5]  }
  0x12   :  { %27 = dma.hbm_to_smem %s3875_s1, 16, %s1686_s23, [#allocation3]  }
  0x13   :  { %1681 = dma.done.wait [#allocation4], 16  }
  0x14   :  { %1682 = vsyncadd [#allocation4], 4294967280 }
  0x15   :  { %1683 = dma.done.wait [#allocation3], 16  }
  0x16   :  { %1684 = vsyncadd [#allocation3], 4294967280 }
  0x17   :  { %36 = sfence }
  0x18   :  { %s116_s26 = sld [smem:[#allocation2]]  ;;  %s1353_s27 = sld [smem:[#allocation2 + $0x1]]  ;;  %v1725_v0 = vld [vmem:[%s3876_s2] sm:$0xff]  ;;  %v1753_v5 = vld [vmem:[%s3876_s2 + $0x8] sm:$0x3f]  ;;  %v1819_v23 = vld [vmem:[%s3876_s2 + $0x10] sm:$0xff] }
  0x19   :  { %s1354_s28 = sld [smem:[#allocation2 + $0x2]]  ;;  %s1355_s29 = sld [smem:[#allocation2 + $0x3]]  ;;  %v1730_v1 = vld [vmem:[%s3876_s2 + $0x20] sm:$0xff]  ;;  %4042 = vst [vmem:[#allocation8_spill] sm:$0xff] %v1753_v5  ;;  %v1766_v8 = vld [vmem:[%s3876_s2 + $0x28] sm:$0x3f] }
  0x1a   :  { %s1356_s1 = sld [smem:[#allocation2 + $0x4]]  ;;  %v1735_v2 = vld [vmem:[%s3876_s2 + $0x40] sm:$0xff]  ;;  %s1357_s11 = sld [smem:[#allocation2 + $0x5]]  ;;  %4043 = vst [vmem:[#allocation9_spill] sm:$0xff] %v1766_v8  ;;  %v1802_v19 = vld [vmem:[%s3876_s2 + $0x48] sm:$0x3f] }
  0x1b   :  { %v1740_v3 = vld [vmem:[%s3876_s2 + $0x60] sm:$0xff]  ;;  %s1742_s12 = sld [smem:[#allocation2 + $0x6]]  ;;  %s1746_s13 = sld [smem:[#allocation2 + $0x7]]  ;;  %4044 = vst [vmem:[#allocation10_spill] sm:$0xff] %v1802_v19  ;;  %4046 = vst [vmem:[#allocation12_spill] sm:$0xff] %v1819_v23  ;;  %vm306_vm0 = vcmask 113664  }
  0x1c   :  { %s1748_s14 = sld [smem:[#allocation2 + $0x8]]  ;;  %s1759_s17 = sld [smem:[#allocation2 + $0x9]]  ;;  %v1779_v11 = vld [vmem:[%s3876_s2 + $0x80] sm:$0xff]  ;;  %v1839_v29 = vld [vmem:[%s3876_s2 + $0x68] sm:$0x3f]  ;;  %vm308_vm1 = vcmask 111616  }
  0x1d   :  { %s1761_s18 = sld [smem:[#allocation2 + $0xa]]  ;;  %s1772_s21 = sld [smem:[#allocation2 + $0xb]]  ;;  %v1807_v20 = vld [vmem:[%s3876_s2 + $0xa0] sm:$0xff]  ;;  %4048 = vst [vmem:[#allocation14_spill] sm:$0xff] %v1839_v29  ;;  %v1885_v44 = vld [vmem:[%s3876_s2 + $0x88] sm:$0x3f] }
  0x1e   :  { %v1744_v4 = vstv %s116_s26  ;;  %v1757_v7 = vstv %s1353_s27  ;;  %s1774_s0 = sld [smem:[#allocation2 + $0xc]]  ;;  %s1785_s24 = sld [smem:[#allocation2 + $0xd]]  ;;  %v1812_v21 = vld [vmem:[%s3876_s2 + $0xc0] sm:$0xff]  ;;  %4053 = vst [vmem:[#allocation19_spill] sm:$0xff] %v1885_v44  ;;  %v1905_v51 = vld [vmem:[%s3876_s2 + $0xa8] sm:$0x3f] }
  0x1f   :  { %v118_v6 = vmul.f32 %v1744_v4, %v1725_v0  ;;  %v128_v9 = vmul.f32 %v1730_v1, %v1757_v7  ;;  %v1770_v10 = vstv %s1354_s28  ;;  %v1783_v13 = vstv %s1355_s29  ;;  %s1787_s25 = sld [smem:[#allocation2 + $0xe]]  ;;  %s1797_s26 = sld [smem:[#allocation2 + $0xf]]  ;;  %4045 = vst [vmem:[#allocation11_spill] sm:$0xff] %v1812_v21  ;;  %v1824_v24 = vld [vmem:[%s3876_s2 + $0xe0] sm:$0xff]  ;;  %4055 = vst [vmem:[#allocation21_spill] sm:$0xff] %v1905_v51 }
  0x20   :  { %v138_v12 = vmul.f32 %v1735_v2, %v1770_v10  ;;  %v119_v14 = vmul.f32 %v1744_v4, %v1753_v5  ;;  %v129_v15 = vmul.f32 %v1766_v8, %v1757_v7  ;;  %v148_v17 = vmul.f32 %v1740_v3, %v1783_v13  ;;  %4047 = vst [vmem:[#allocation13_spill] sm:$0xff] %v1824_v24  ;;  %s1834_s9 = sld [smem:[#allocation5]]  ;;  %v1844_v30 = vld [vmem:[%s3876_s2 + $0x100] sm:$0xff]  ;;  %v1940_v62 = vld [vmem:[%s3876_s2 + $0xc8] sm:$0x3f]  ;;  %s2155_s6 = sld [smem:[#allocation2 + $0x11]] }
  0x21   :  { %v132_v16 = vadd.f32 %v128_v9, %v118_v6  ;;  %v1795_v18 = vstv %s1356_s1  ;;  %v1814_v22 = vstv %s1357_s11  ;;  %v1829_v27 = vstv %s1742_s12  ;;  %4049 = vst [vmem:[#allocation15_spill] sm:$0xff] %v1844_v30  ;;  %v1854_v34 = vld [vmem:[%s3876_s2 + $0x120] sm:$0xff]  ;;  %4059 = vst [vmem:[#allocation25_spill] sm:$0xff] %v1940_v62  ;;  %s2133_s27 = sld [smem:[#allocation2 + $0x10]]  ;;  %s2170_s1 = sld [smem:[#allocation2 + $0x12]] }
  0x22   :  { %v158_v26 = vmul.f32 %v1779_v11, %v1795_v18  ;;  %v1832_v28 = vstv %s1746_s13  ;;  %v1847_v31 = vstv %s1748_s14  ;;  %v133_v32 = vadd.f32 %v129_v15, %v119_v14  ;;  %4050 = vst [vmem:[#allocation16_spill] sm:$0xff] %v1854_v34  ;;  %v1868_v39 = vld [vmem:[%s3876_s2 + $0x140] sm:$0xff]  ;;  %v1945_v63 = vld [vmem:[%s3876_s2 + $0xe8] sm:$0x3f]  ;;  %s2172_s7 = sld [smem:[#allocation2 + $0x13]]  ;;  %s2209_s12 = sld [smem:[#allocation2 + $0x14]] }
  0x23   :  { %v142_v25 = vadd.f32 %v138_v12, %v132_v16  ;;  %v139_v33 = vmul.f32 %v1802_v19, %v1770_v10  ;;  %v168_v36 = vmul.f32 %v1807_v20, %v1814_v22  ;;  %v1859_v37 = vstv %s1759_s17  ;;  %4051 = vst [vmem:[#allocation17_spill] sm:$0xff] %v1868_v39  ;;  %v1873_v40 = vld [vmem:[%s3876_s2 + $0x160] sm:$0xff]  ;;  %4060 = vst [vmem:[#allocation26_spill] sm:$0xff] %v1945_v63  ;;  %v1960_v14 = vld [vmem:[%s3876_s2 + $0x108] sm:$0x3f]  ;;  %s2233_s22 = sld [smem:[#allocation2 + $0x15]] }
  0x24   :  { %v1863_v38 = vmul.f32 %v1744_v4, %v1819_v23  ;;  %4052 = vst [vmem:[#allocation18_spill] sm:$0xff] %v1873_v40  ;;  %v178_v41 = vmul.f32 %v1812_v21, %v1829_v27  ;;  %v188_v42 = vmul.f32 %v1824_v24, %v1832_v28  ;;  %v1880_v43 = vstv %s1761_s18  ;;  %v1892_v46 = vld [vmem:[%s3876_s2 + $0x180] sm:$0xff]  ;;  %4061 = vst [vmem:[#allocation27_spill] sm:$0xff] %v1960_v14  ;;  %s2248_s17 = sld [smem:[#allocation2 + $0x17]]  ;;  %s2279_s28 = sld [smem:[#allocation2 + $0x18]] }
  0x25   :  { %v152_v35 = vadd.f32 %v148_v17, %v142_v25  ;;  %v149_v45 = vmul.f32 %v1839_v29, %v1783_v13  ;;  %4054 = vst [vmem:[#allocation20_spill] sm:$0xff] %v1892_v46  ;;  %v198_v48 = vmul.f32 %v1844_v30, %v1847_v31  ;;  %v1897_v49 = vstv %s1772_s21  ;;  %v1910_v52 = vld [vmem:[%s3876_s2 + $0x1a0] sm:$0xff]  ;;  %v1967_v17 = vld [vmem:[%s3876_s2 + $0x30] sm:$0xff]  ;;  %s2281_s18 = sld [smem:[#allocation2 + $0x19]]  ;;  %s2284_s29 = sld [smem:[#allocation2 + $0x1a]] }
  0x26   :  { %v1900_v50 = vstv %s1774_s0  ;;  %4056 = vst [vmem:[#allocation22_spill] sm:$0xff] %v1910_v52  ;;  %v1915_v53 = vld [vmem:[%s3876_s2 + $0x1c0] sm:$0xff]  ;;  %v208_v54 = vmul.f32 %v1854_v34, %v1859_v37  ;;  %v1920_v55 = vstv %s1785_s24  ;;  %v1923_v56 = vstv %s1787_s25  ;;  %4062 = vst [vmem:[#allocation28_spill] sm:$0xff] %v1967_v17  ;;  %s2299_s5 = sld [smem:[#allocation2 + $0x1b]]  ;;  %s2331_s24 = sld [smem:[#allocation2 + $0x1d]] }
  0x27   :  { %v162_v47 = vadd.f32 %v158_v26, %v152_v35  ;;  %4057 = vst [vmem:[#allocation23_spill] sm:$0xff] %v1915_v53  ;;  %v143_v57 = vadd.f32 %v139_v33, %v133_v32  ;;  %v1928_v58 = vld [vmem:[%s3876_s2 + $0x1e0] sm:$0xff]  ;;  %v1932_v60 = vmul.f32 %v1868_v39, %v1880_v43  ;;  %v1935_v61 = vstv %s1797_s26  ;;  %v1972_v25 = vld [vmem:[%s3876_s2 + $0x50] sm:$0xff]  ;;  %s2354_s11 = sld [smem:[#allocation2 + $0x1e]]  ;;  %s2377_s13 = sld [smem:[#allocation5 + $0x1]] }
  0x28   :  { %4058 = vst [vmem:[#allocation24_spill] sm:$0xff] %v1928_v58  ;;  %v159_v6 = vmul.f32 %v1885_v44, %v1795_v18  ;;  %v1951_v9 = vmul.f32 %v1873_v40, %v1897_v49  ;;  %v1955_v12 = vmul.f32 %v1892_v46, %v1900_v50  ;;  %v169_v16 = vmul.f32 %v1905_v51, %v1814_v22  ;;  %s2476_s20 = sld [smem:[#allocation2 + $0x20]]  ;;  %s2495_s23 = sld [smem:[#allocation2 + $0x24]] }
  0x29   :  { %v172_v59 = vadd.f32 %v168_v36, %v162_v47  ;;  %v153_v15 = vadd.f32 %v149_v45, %v143_v57  ;;  %4063 = vst [vmem:[#allocation29_spill] sm:$0xff] %v1972_v25  ;;  %v1976_v32 = vmul.f32 %v1910_v52, %v1920_v55  ;;  %v1980_v33 = vmul.f32 %v1915_v53, %v1923_v56  ;;  %v1988_v36 = vld [vmem:[%s3876_s2 + $0x128] sm:$0x3f]  ;;  %v2016_v53 = vld [vmem:[%s3876_s2 + $0x70] sm:$0xff]  ;;  %s2529_s30 = sld [smem:[#allocation2 + $0x27]]  ;;  %s2555_s4 = sld [smem:[#allocation2 + $0x28]] }
  0x2a   :  { %v1983_v35 = vstv %s1834_s9  ;;  %4064 = vst [vmem:[#allocation30_spill] sm:$0xff] %v1988_v36  ;;  %v1993_v45 = vld [vmem:[%s3876_s2 + $0x148] sm:$0x3f]  ;;  %v2002_v47 = vmul.f32 %v1928_v58, %v1935_v61  ;;  %v179_v23 = vmul.f32 %v1940_v62, %v1829_v27  ;;  %v189_v51 = vmul.f32 %v1945_v63, %v1832_v28  ;;  %4068 = vst [vmem:[#allocation34_spill] sm:$0xff] %v2016_v53  ;;  %s2246_s9 = sld [smem:[#allocation2 + $0x16]]  ;;  %s1412_s10 = sld [smem:[#allocation2 + $0x2f]] }
  0x2b   :  { %v182_v26 = vadd.f32 %v178_v41, %v172_v59  ;;  %4065 = vst [vmem:[#allocation31_spill] sm:$0xff] %v1993_v45  ;;  %v1998_v41 = vld [vmem:[%s3876_s2 + $0x168] sm:$0x3f]  ;;  %v163_v59 = vadd.f32 %v159_v6, %v153_v15  ;;  %v199_v63 = vmul.f32 %v1960_v14, %v1847_v31  ;;  %v209_v52 = vmul.f32 %v1988_v36, %v1859_v37  ;;  %v2052_v14 = vld [vmem:[%s3876_s2 + $0x90] sm:$0xff]  ;;  %s2600_s25 = sld [smem:[#allocation2 + $0x2e]]  ;;  %s2736_s14 = sld [smem:[#allocation2 + $0x32]] }
  0x2c   :  { %4066 = vst [vmem:[#allocation32_spill] sm:$0xff] %v1998_v41  ;;  %v2007_v57 = vld [vmem:[%s3876_s2 + $0x188] sm:$0x3f]  ;;  %v2043_v29 = vmul.f32 %v1993_v45, %v1880_v43  ;;  %v2047_v46 = vmul.f32 %v1998_v41, %v1897_v49  ;;  %4072 = vst [vmem:[#allocation38_spill] sm:$0xff] %v2052_v14  ;;  %v2066_v41 = vld [vmem:[%s3876_s2 + $0xd0] sm:$0xff]  ;;  %s2738_s19 = sld [smem:[#allocation2 + $0x33]] }
  0x2d   :  { %4067 = vst [vmem:[#allocation33_spill] sm:$0xff] %v2007_v57  ;;  %v192_v44 = vadd.f32 %v188_v42, %v182_v26  ;;  %v2021_v58 = vld [vmem:[%s3876_s2 + $0x1a8] sm:$0x3f]  ;;  %v130_v42 = vmul.f32 %v1967_v17, %v1757_v7  ;;  %v140_v26 = vmul.f32 %v1972_v25, %v1770_v10  ;;  %v173_v62 = vadd.f32 %v169_v16, %v163_v59  ;;  %v2057_v16 = vld [vmem:[%s3876_s2 + $0xb0] sm:$0xff]  ;;  %s2868_s15 = sld [smem:[#allocation2 + $0x3b]]  ;;  %s2870_s16 = sld [smem:[#allocation2 + $0x3c]] }
  0x2e   :  { %4069 = vst [vmem:[#allocation35_spill] sm:$0xff] %v2021_v58  ;;  %v2026_v6 = vld [vmem:[%s3876_s2 + $0x1c8] sm:$0x3f]  ;;  %4073 = vst [vmem:[#allocation39_spill] sm:$0xff] %v2057_v16  ;;  %v2061_v25 = vmul.f32 %v2007_v57, %v1900_v50  ;;  %v2071_v45 = vld [vmem:[%s3876_s2 + $0xf0] sm:$0xff]  ;;  %v2083_v17 = vmul.f32 %v2021_v58, %v1920_v55  ;;  %v160_v58 = vmul.f32 %v2052_v14, %v1795_v18  ;;  %s3205_s8 = sld [smem:[#allocation2 + $0x40]] }
  0x2f   :  { %4070 = vst [vmem:[#allocation36_spill] sm:$0xff] %v2026_v6  ;;  %v2031_v15 = vld [vmem:[%s3876_s2 + $0x1e8] sm:$0x3f]  ;;  %v202_v59 = vadd.f32 %v198_v48, %v192_v44  ;;  %4074 = vst [vmem:[#allocation40_spill] sm:$0xff] %v2066_v41  ;;  %v2076_v36 = vld [vmem:[%s3876_s2 + $0x110] sm:$0xff]  ;;  %v134_v44 = vadd.f32 %v130_v42, %v1863_v38  ;;  %v150_v48 = vmul.f32 %v2016_v53, %v1783_v13  ;;  %s3302_s26 = sld [smem:[#allocation2 + $0x46]] }
  0x30   :  { %4071 = vst [vmem:[#allocation37_spill] sm:$0xff] %v2031_v15  ;;  %4075 = vst [vmem:[#allocation41_spill] sm:$0xff] %v2071_v45  ;;  %v183_v57 = vadd.f32 %v179_v23, %v173_v62  ;;  %v2087_v19 = vmul.f32 %v2026_v6, %v1923_v56  ;;  %v2091_v8 = vmul.f32 %v2031_v15, %v1935_v61  ;;  %v2096_v38 = vld [vmem:[%s3876_s2 + $0x18] sm:$0x3f]  ;;  %v2106_v42 = vld [vmem:[%s3876_s2 + $0x130] sm:$0xff]  ;;  %s3656_s21 = sld [smem:[#allocation2 + $0x5a]] }
  0x31   :  { %4076 = vst [vmem:[#allocation42_spill] sm:$0xff] %v2076_v36  ;;  %v2101_v23 = vld [vmem:[%s3876_s2 + $0x38] sm:$0x3f]  ;;  %v212_v62 = vadd.f32 %v208_v54, %v202_v59  ;;  %4077 = vst [vmem:[#allocation43_spill] sm:$0xff] %v2106_v42  ;;  %v2111_v15 = vld [vmem:[%s3876_s2 + $0x150] sm:$0xff]  ;;  %v144_v6 = vadd.f32 %v140_v26, %v134_v44  ;;  %v170_v53 = vmul.f32 %v2057_v16, %v1814_v22  ;;  %s3676_s0 = sld [smem:[#allocation2 + $0x5b]] }
  0x32   :  { %4078 = vst [vmem:[#allocation44_spill] sm:$0xff] %v2111_v15  ;;  %v2120_v54 = vld [vmem:[%s3876_s2 + $0x58] sm:$0x3f]  ;;  %v193_v59 = vadd.f32 %v189_v51, %v183_v57  ;;  %v180_v5 = vmul.f32 %v2066_v41, %v1829_v27  ;;  %v190_v40 = vmul.f32 %v2071_v45, %v1832_v28  ;;  %v200_v26 = vmul.f32 %v2076_v36, %v1847_v31  ;;  %v2139_v51 = vld [vmem:[%s3876_s2 + $0x170] sm:$0xff] }
  0x33   :  { %4079 = vst [vmem:[#allocation45_spill] sm:$0xff] %v2120_v54  ;;  %v2131_v44 = vld [vmem:[%s3876_s2 + $0x78] sm:$0x3f]  ;;  %v222_v16 = vadd.f32 %v1932_v60, %v212_v62  ;;  %4080 = vst [vmem:[#allocation46_spill] sm:$0xff] %v2139_v51  ;;  %v2144_v57 = vld [vmem:[%s3876_s2 + $0x190] sm:$0xff]  ;;  %v154_v45 = vadd.f32 %v150_v48, %v144_v6  ;;  %v121_v41 = vmul.f32 %v1744_v4, %v2096_v38 }
  0x34   :  { %4081 = vst [vmem:[#allocation47_spill] sm:$0xff] %v2144_v57  ;;  %v2149_v36 = vld [vmem:[%s3876_s2 + $0x1b0] sm:$0xff]  ;;  %v131_v60 = vmul.f32 %v2101_v23, %v1757_v7  ;;  %v203_v62 = vadd.f32 %v199_v63, %v193_v59  ;;  %v210_v14 = vmul.f32 %v2106_v42, %v1859_v37  ;;  %v2161_v39 = vmul.f32 %v2111_v15, %v1880_v43  ;;  %v2166_v6 = vld [vmem:[%s3876_s2 + $0x98] sm:$0x3f] }
  0x35   :  { %4082 = vst [vmem:[#allocation48_spill] sm:$0xff] %v2149_v36  ;;  %v141_v4 = vmul.f32 %v2120_v54, %v1770_v10  ;;  %v232_v7 = vadd.f32 %v1951_v9, %v222_v16  ;;  %v2178_v63 = vld [vmem:[%s3876_s2 + $0x1d0] sm:$0xff]  ;;  %v164_v48 = vadd.f32 %v160_v58, %v154_v45  ;;  %v2183_v59 = vld [vmem:[%s3876_s2 + $0xb8] sm:$0x3f]  ;;  %v151_v9 = vmul.f32 %v2131_v44, %v1783_v13 }
  0x36   :  { %v2188_v10 = vld [vmem:[%s3876_s2 + $0xd8] sm:$0x3f]  ;;  %v135_v15 = vadd.f32 %v131_v60, %v121_v41  ;;  %v213_v16 = vadd.f32 %v209_v52, %v203_v62  ;;  %v2194_v54 = vmul.f32 %v2139_v51, %v1897_v49  ;;  %v2198_v58 = vmul.f32 %v2144_v57, %v1900_v50 }
  0x37   :  { %v2202_v45 = vmul.f32 %v2149_v36, %v1920_v55  ;;  %v2207_v41 = vld [vmem:[%s3876_s2 + $0xf8] sm:$0x3f]  ;;  %v242_v13 = vadd.f32 %v1955_v12, %v232_v7  ;;  %v174_v52 = vadd.f32 %v170_v53, %v164_v48  ;;  %v161_v57 = vmul.f32 %v2166_v6, %v1795_v18 }
  0x38   :  { %v2215_v60 = vld [vmem:[%s3876_s2 + $0x118] sm:$0x3f]  ;;  %v145_v36 = vadd.f32 %v141_v4, %v135_v15  ;;  %v223_v51 = vadd.f32 %v2043_v29, %v213_v16  ;;  %v2227_v53 = vmul.f32 %v2178_v63, %v1923_v56  ;;  %v171_v12 = vmul.f32 %v2183_v59, %v1814_v22 }
  0x39   :  { %v2220_v62 = vld [vmem:[%s3876_s2 + $0x138] sm:$0x3f]  ;;  %v181_v7 = vmul.f32 %v2188_v10, %v1829_v27  ;;  %v252_v15 = vadd.f32 %v1976_v32, %v242_v13  ;;  %v184_v4 = vadd.f32 %v180_v5, %v174_v52  ;;  %v191_v29 = vmul.f32 %v2207_v41, %v1832_v28 }
  0x3a   :  { %v155_v18 = vadd.f32 %v151_v9, %v145_v36  ;;  %v233_v48 = vadd.f32 %v2047_v46, %v223_v51  ;;  %v201_v22 = vmul.f32 %v2215_v60, %v1847_v31  ;;  %v211_v27 = vmul.f32 %v2220_v62, %v1859_v37 }
  0x3b   :  { %v2244_v16 = vstv %s2133_s27  ;;  %v262_v5 = vadd.f32 %v1980_v33, %v252_v15  ;;  %v194_v32 = vadd.f32 %v190_v40, %v184_v4  ;;  %v2255_v31 = vstv %s2155_s6  ;;  %v2267_v33 = vld [vmem:[%s3876_s2 + $0x158] sm:$0x3f]  ;;  %s2562_s6 = sld [smem:[#allocation2 + $0x2a]] }
  0x3c   :  { %v165_v36 = vadd.f32 %v161_v57, %v155_v18  ;;  %v314_v28 = vmul.f32 %v2244_v16, %v1725_v0  ;;  %v243_v46 = vadd.f32 %v2061_v25, %v233_v48  ;;  %v2258_v51 = vstv %s2170_s1  ;;  %v2290_v48 = vld [vmem:[%s3876_s2 + $0x1f0] sm:$0xff]  ;;  %s2586_s1 = sld [smem:[#allocation2 + $0x2b]] }
  0x3d   :  { %v2261_v37 = vstv %s2172_s7  ;;  %v272_v9 = vadd.f32 %v2002_v47, %v262_v5  ;;  %v204_v13 = vadd.f32 %v200_v26, %v194_v32  ;;  %v324_v57 = vmul.f32 %v1730_v1, %v2255_v31  ;;  %s2321_s7 = sld [smem:[#allocation2 + $0x1c]] }
  0x3e   :  { %v175_v40 = vadd.f32 %v171_v12, %v165_v36  ;;  %v253_v25 = vadd.f32 %v2083_v17, %v243_v46  ;;  %v334_v52 = vmul.f32 %v1735_v2, %v2258_v51  ;;  %v344_v15 = vmul.f32 %v1740_v3, %v2261_v37 }
  0x3f   :  { %v2277_v47 = vstv %s2209_s12  ;;  %v278_v26 = vadd.f32 %v1983_v35, %v272_v9  ;;  %v214_v12 = vadd.f32 %v210_v14, %v204_v13  ;;  %v328_v18 = vadd.f32 %v324_v57, %v314_v28  ;;  %v2310_v28 = vld [vmem:[%s3876_s2 + $0x198] sm:$0x3f]  ;;  %s2365_s12 = sld [smem:[#allocation2 + $0x1f]] }
  0x40   :  { %v185_v4 = vadd.f32 %v181_v7, %v175_v40  ;;  %v263_v17 = vadd.f32 %v2087_v19, %v253_v25  ;;  %v221_v5 = vmul.f32 %v2267_v33, %v1880_v43  ;;  %v354_v32 = vmul.f32 %v1779_v11, %v2277_v47  ;;  %v2305_v19 = vld [vmem:[%s3876_s2 + $0x178] sm:$0x3f]  ;;  %4084 = vst [vmem:[#allocation50_spill] sm:$0xff] %v2310_v28 }
  0x41   :  { %v2297_v14 = vstv %s2233_s22  ;;  %v1368_v7 = vmul.f32 -1.442695, %v278_v26  ;;  %v224_v36 = vadd.f32 %v2161_v39, %v214_v12  ;;  %4083 = vst [vmem:[#allocation49_spill] sm:$0xff] %v2305_v19  ;;  %v338_v46 = vadd.f32 %v334_v52, %v328_v18  ;;  %s2483_s22 = sld [smem:[#allocation2 + $0x21]] }
  0x42   :  { %v195_v43 = vadd.f32 %v191_v29, %v185_v4  ;;  %v273_v9 = vadd.f32 %v2091_v8, %v263_v17  ;;  %v364_v13 = vmul.f32 %v1807_v20, %v2297_v14  ;;  %v2316_v40 = vstv %s2246_s9  ;;  %s2485_s9 = sld [smem:[#allocation2 + $0x22]] }
  0x43   :  { %v2319_v39 = vstv %s2248_s17  ;;  %1499 = vpow2.f32 %v1368_v7  ;;  %v234_v57 = vadd.f32 %v2194_v54, %v224_v36  ;;  %v348_v26 = vadd.f32 %v344_v15, %v338_v46  ;;  %v2342_v15 = vld [vmem:[%s3876_s2 + $0x1d8] sm:$0x3f]  ;;  %s2493_s17 = sld [smem:[#allocation2 + $0x23]] }
  0x44   :  { %v205_v25 = vadd.f32 %v201_v22, %v195_v43  ;;  %v279_v29 = vadd.f32 %v1983_v35, %v273_v9  ;;  %v270_v8 = vmul.f32 %v2290_v48, %v1935_v61  ;;  %v231_v52 = vmul.f32 %v2305_v19, %v1897_v49  ;;  %v2337_v22 = vld [vmem:[%s3876_s2 + $0x1b8] sm:$0x3f]  ;;  %4086 = vst [vmem:[#allocation52_spill] sm:$0xff] %v2342_v15 }
  0x45   :  { %v241_v12 = vmul.f32 %v2310_v28, %v1900_v50  ;;  %v244_v54 = vadd.f32 %v2198_v58, %v234_v57  ;;  %4085 = vst [vmem:[#allocation51_spill] sm:$0xff] %v2337_v22  ;;  %v358_v49 = vadd.f32 %v354_v32, %v348_v26  ;;  %v374_v50 = vmul.f32 %v1812_v21, %v2316_v40  ;;  %v4103_v28 = vld [vmem:[#allocation12_spill] sm:$0xff] }
  0x46   :  { %v215_v4 = vadd.f32 %v211_v27, %v205_v25  ;;  %v1369_v18 = vmul.f32 -1.442695, %v279_v29  ;;  %v384_v58 = vmul.f32 %v1824_v24, %v2319_v39  ;;  %v2349_v17 = vstv %s2279_s28  ;;  %v2360_v27 = vld [vmem:[%s3876_s2 + $0x1f8] sm:$0x3f]  ;;  %s3600_s28 = sld [smem:[#allocation2 + $0x55]] }
  0x47   :  { %v2352_v7 = vstv %s2281_s18  ;;  %v254_v36 = vadd.f32 %v2202_v45, %v244_v54  ;;  %4087 = vst [vmem:[#allocation53_spill] sm:$0xff] %v2360_v27  ;;  %v368_v43 = vadd.f32 %v364_v13, %v358_v49  ;;  %v2363_v46 = vstv %s2284_s29  ;;  %v4088_v54 = vld [vmem:[#allocation17_spill] sm:$0xff]  ;;  %s2515_s18 = sld [smem:[#allocation2 + $0x25]]  ;;  %s2519_s29 = sld [smem:[#allocation2 + $0x26]] }
  0x48   :  { %v225_v32 = vadd.f32 %v221_v5, %v215_v4  ;;  %1501 = vpow2.f32 %v1369_v18  ;;  %v251_v9 = vmul.f32 %v2337_v22, %v1920_v55  ;;  %v261_v45 = vmul.f32 %v2342_v15, %v1923_v56 }
  0x49   :  { %v2372_v57 = vstv %s2299_s5  ;;  %v264_v25 = vadd.f32 %v2227_v53, %v254_v36  ;;  %v378_v5 = vadd.f32 %v374_v50, %v368_v43  ;;  %v394_v13 = vmul.f32 %v1844_v30, %v2349_v17  ;;  %v4089_v50 = vld [vmem:[#allocation18_spill] sm:$0xff]  ;;  %v4091_v43 = vld [vmem:[#allocation9_spill] sm:$0xff]  ;;  %s2557_s5 = sld [smem:[#allocation2 + $0x29]] }
  0x4a   :  { %v235_v26 = vadd.f32 %v231_v52, %v225_v32  ;;  %v271_v29 = vmul.f32 %v2360_v27, %v1935_v61  ;;  %v404_v55 = vmul.f32 %v1854_v34, %v2352_v7  ;;  %v414_v56 = vmul.f32 %v4088_v54, %v2363_v46  ;;  %v4090_v32 = vld [vmem:[#allocation8_spill] sm:$0xff]  ;;  %v4092_v54 = vld [vmem:[#allocation10_spill] sm:$0xff] }
  0x4b   :  { %v2386_v4 = vstv %s2321_s7  ;;  %v274_v53 = vadd.f32 %v270_v8, %v264_v25  ;;  %v388_v49 = vadd.f32 %v384_v58, %v378_v5  ;;  %v424_v18 = vmul.f32 %v4089_v50, %v2372_v57  ;;  %v4093_v25 = vld [vmem:[#allocation20_spill] sm:$0xff]  ;;  %s2589_s7 = sld [smem:[#allocation2 + $0x2c]] }
  0x4c   :  { %v245_v52 = vadd.f32 %v241_v12, %v235_v26  ;;  %v2391_v36 = vstv %s2331_s24  ;;  %v315_v61 = vmul.f32 %v2244_v16, %v4090_v32  ;;  %v325_v34 = vmul.f32 %v4091_v43, %v2255_v31  ;;  %v4094_v32 = vld [vmem:[#allocation14_spill] sm:$0xff]  ;;  %s2591_s24 = sld [smem:[#allocation2 + $0x2d]] }
  0x4d   :  { %v335_v30 = vmul.f32 %v4092_v54, %v2258_v51  ;;  %v1500_v27 = vpop.eup %1499  ;;  %v280_v8 = vadd.f32 %v1983_v35, %v274_v53  ;;  %v398_v58 = vadd.f32 %v394_v13, %v388_v49  ;;  %v434_v26 = vmul.f32 %v4093_v25, %v2386_v4 }
  0x4e   :  { %v255_v12 = vadd.f32 %v251_v9, %v245_v52  ;;  %v294_v5 = vadd.f32 1.0, %v1500_v27  ;;  %v2403_v50 = vstv %s2354_s11  ;;  %v329_v15 = vadd.f32 %v325_v34, %v315_v61  ;;  %v4095_v9 = vld [vmem:[#allocation22_spill] sm:$0xff]  ;;  %v4096_v27 = vld [vmem:[#allocation19_spill] sm:$0xff]  ;;  %s2623_s11 = sld [smem:[#allocation5 + $0x2]] }
  0x4f   :  { %v345_v22 = vmul.f32 %v4094_v32, %v2261_v37  ;;  %v1370_v43 = vmul.f32 -1.442695, %v280_v8  ;;  %v408_v21 = vadd.f32 %v404_v55, %v398_v58  ;;  %v2408_v54 = vstv %s2365_s12  ;;  %v4098_v8 = vld [vmem:[#allocation24_spill] sm:$0xff]  ;;  %s2725_s12 = sld [smem:[#allocation2 + $0x30]] }
  0x50   :  { %v265_v24 = vadd.f32 %v261_v45, %v255_v12  ;;  %1503 = vrcp.f32 %v294_v5  ;;  %v444_v13 = vmul.f32 %v4095_v9, %v2391_v36  ;;  %v339_v53 = vadd.f32 %v335_v30, %v329_v15  ;;  %v4097_v45 = vld [vmem:[#allocation23_spill] sm:$0xff]  ;;  %v4099_v5 = vld [vmem:[#allocation21_spill] sm:$0xff] }
  0x51   :  { %v355_v52 = vmul.f32 %v4096_v27, %v2277_v47  ;;  %1505 = vpow2.f32 %v1370_v43  ;;  %v418_v34 = vadd.f32 %v414_v56, %v408_v21  ;;  %v2415_v61 = vstv %s2377_s13  ;;  %v4101_v56 = vld [vmem:[#allocation26_spill] sm:$0xff]  ;;  %s2731_s13 = sld [smem:[#allocation2 + $0x31]] }
  0x52   :  { %v275_v49 = vadd.f32 %v271_v29, %v265_v24  ;;  %v1502_v25 = vpop.eup %1501  ;;  %v454_v55 = vmul.f32 %v4097_v45, %v2403_v50  ;;  %v464_v12 = vmul.f32 %v4098_v8, %v2408_v54  ;;  %v349_v58 = vadd.f32 %v345_v22, %v339_v53  ;;  %v4100_v24 = vld [vmem:[#allocation25_spill] sm:$0xff]  ;;  %v4102_v45 = vld [vmem:[#allocation27_spill] sm:$0xff] }
  0x53   :  { %v365_v9 = vmul.f32 %v4099_v5, %v2297_v14  ;;  %v295_v30 = vadd.f32 1.0, %v1502_v25  ;;  %v428_v27 = vadd.f32 %v424_v18, %v418_v34  ;;  %v375_v21 = vmul.f32 %v4100_v24, %v2316_v40  ;;  %v4105_v34 = vld [vmem:[#allocation30_spill] sm:$0xff]  ;;  %v4107_v24 = vld [vmem:[#allocation29_spill] sm:$0xff] }
  0x54   :  { %v281_v15 = vadd.f32 %v1983_v35, %v275_v49  ;;  %v359_v29 = vadd.f32 %v355_v52, %v349_v58  ;;  %v385_v43 = vmul.f32 %v4101_v56, %v2319_v39  ;;  %v395_v32 = vmul.f32 %v4102_v45, %v2349_v17  ;;  %v4104_v35 = vld [vmem:[#allocation28_spill] sm:$0xff]  ;;  %v4106_v58 = vld [vmem:[#allocation31_spill] sm:$0xff] }
  0x55   :  { %v316_v22 = vmul.f32 %v2244_v16, %v4103_v28  ;;  %1507 = vrcp.f32 %v295_v30  ;;  %v438_v25 = vadd.f32 %v434_v26, %v428_v27  ;;  %v326_v18 = vmul.f32 %v4104_v35, %v2255_v31  ;;  %v4108_v30 = vld [vmem:[#allocation34_spill] sm:$0xff]  ;;  %v4109_v27 = vld [vmem:[#allocation32_spill] sm:$0xff] }
  0x56   :  { %v1371_v53 = vmul.f32 -1.442695, %v281_v15  ;;  %v369_v49 = vadd.f32 %v365_v9, %v359_v29  ;;  %v405_v52 = vmul.f32 %v4105_v34, %v2352_v7  ;;  %v415_v56 = vmul.f32 %v4106_v58, %v2363_v46  ;;  %v4110_v9 = vld [vmem:[#allocation33_spill] sm:$0xff]  ;;  %v4111_v34 = vld [vmem:[#allocation35_spill] sm:$0xff] }
  0x57   :  { %v336_v45 = vmul.f32 %v4107_v24, %v2258_v51  ;;  %v448_v5 = vadd.f32 %v444_v13, %v438_v25  ;;  %v330_v28 = vadd.f32 %v326_v18, %v316_v22  ;;  %v346_v15 = vmul.f32 %v4108_v30, %v2261_v37  ;;  %v4112_v24 = vld [vmem:[#allocation36_spill] sm:$0xff]  ;;  %v4113_v22 = vld [vmem:[#allocation38_spill] sm:$0xff] }
  0x58   :  { %1509 = vpow2.f32 %v1371_v53  ;;  %v379_v26 = vadd.f32 %v375_v21, %v369_v49  ;;  %v425_v35 = vmul.f32 %v4109_v27, %v2372_v57  ;;  %v435_v29 = vmul.f32 %v4110_v9, %v2386_v4  ;;  %v4114_v49 = vld [vmem:[#allocation37_spill] sm:$0xff]  ;;  %v4115_v9 = vld [vmem:[#allocation39_spill] sm:$0xff] }
  0x59   :  { %v2448_v8 = vmul.f32 %v4111_v34, %v2391_v36  ;;  %v458_v58 = vadd.f32 %v454_v55, %v448_v5  ;;  %v2452_v53 = vmul.f32 %v4112_v24, %v2403_v50  ;;  %v340_v13 = vadd.f32 %v336_v45, %v330_v28  ;;  %v4116_v34 = vld [vmem:[#allocation40_spill] sm:$0xff] }
  0x5a   :  { %v356_v25 = vmul.f32 %v4113_v22, %v2277_v47  ;;  %v1504_v21 = vpop.eup %1503  ;;  %v389_v18 = vadd.f32 %v385_v43, %v379_v26  ;;  %v2458_v27 = vmul.f32 %v4114_v49, %v2408_v54  ;;  %v366_v30 = vmul.f32 %v4115_v9, %v2297_v14  ;;  %v4117_v43 = vld [vmem:[#allocation41_spill] sm:$0xff]  ;;  %v4118_v49 = vld [vmem:[#allocation42_spill] sm:$0xff] }
  0x5b   :  { %v376_v55 = vmul.f32 %v4116_v34, %v2316_v40  ;;  %v1506_v5 = vpop.eup %1505  ;;  %307 = vst.msk [vmem:[%s3877_s3] sm:$0xff] %vm306_vm0, %v1504_v21  ;;  %v468_v28 = vadd.f32 %v464_v12, %v458_v58  ;;  %v350_v45 = vadd.f32 %v346_v15, %v340_v13  ;;  %v386_v26 = vmul.f32 %v4117_v43, %v2319_v39  ;;  %v4119_v15 = vld [vmem:[#allocation45_spill] sm:$0xff] }
  0x5c   :  { %v396_v24 = vmul.f32 %v4118_v49, %v2349_v17  ;;  %v296_v22 = vadd.f32 1.0, %v1506_v5  ;;  %v399_v19 = vadd.f32 %v395_v32, %v389_v18  ;;  %v317_v9 = vmul.f32 %v2244_v16, %v2096_v38 }
  0x5d   :  { %v327_v34 = vmul.f32 %v2101_v23, %v2255_v31  ;;  %v474_v21 = vadd.f32 %v2415_v61, %v468_v28  ;;  %v360_v12 = vadd.f32 %v356_v25, %v350_v45  ;;  %v406_v58 = vmul.f32 %v2106_v42, %v2352_v7  ;;  %v4120_v25 = vld [vmem:[#allocation44_spill] sm:$0xff]  ;;  %v4121_v42 = vld [vmem:[#allocation46_spill] sm:$0xff] }
  0x5e   :  { %v337_v13 = vmul.f32 %v4119_v15, %v2258_v51  ;;  %1511 = vrcp.f32 %v296_v22  ;;  %v409_v16 = vadd.f32 %v405_v52, %v399_v19  ;;  %v347_v31 = vmul.f32 %v2131_v44, %v2261_v37  ;;  %v4122_v37 = vld [vmem:[#allocation47_spill] sm:$0xff]  ;;  %v4123_v22 = vld [vmem:[#allocation48_spill] sm:$0xff] }
  0x5f   :  { %v331_v32 = vadd.f32 %v327_v34, %v317_v9  ;;  %v1508_v18 = vpop.eup %1507  ;;  %v1389_v5 = vmul.f32 -1.442695, %v474_v21  ;;  %v370_v28 = vadd.f32 %v366_v30, %v360_v12  ;;  %v416_v45 = vmul.f32 %v4120_v25, %v2363_v46 }
  0x60   :  { %v426_v49 = vmul.f32 %v4121_v42, %v2372_v57  ;;  %309 = vst.msk [vmem:[%s3877_s3 + $0x8] sm:$0x3f] %vm308_vm1, %v1508_v18  ;;  %v419_v51 = vadd.f32 %v415_v56, %v409_v16  ;;  %v2503_v19 = vmul.f32 %v4122_v37, %v2386_v4  ;;  %v357_v52 = vmul.f32 %v2166_v6, %v2277_v47 }
  0x61   :  { %v341_v34 = vadd.f32 %v337_v13, %v331_v32  ;;  %1513 = vpow2.f32 %v1389_v5  ;;  %v380_v9 = vadd.f32 %v376_v55, %v370_v28  ;;  %v2509_v21 = vmul.f32 %v4123_v22, %v2391_v36 }
  0x62   :  { %v1510_v30 = vpop.eup %1509  ;;  %v2513_v12 = vmul.f32 %v2178_v63, %v2403_v50  ;;  %v429_v13 = vadd.f32 %v425_v35, %v419_v51  ;;  %v367_v47 = vmul.f32 %v2183_v59, %v2297_v14  ;;  %v2523_v32 = vmul.f32 %v2290_v48, %v2408_v54 }
  0x63   :  { %v297_v56 = vadd.f32 1.0, %v1510_v30  ;;  %v351_v16 = vadd.f32 %v347_v31, %v341_v34  ;;  %v390_v55 = vadd.f32 %v386_v26, %v380_v9  ;;  %v377_v18 = vmul.f32 %v2188_v10, %v2316_v40 }
  0x64   :  { %v387_v5 = vmul.f32 %v2207_v41, %v2319_v39  ;;  %v439_v35 = vadd.f32 %v435_v29, %v429_v13  ;;  %v397_v26 = vmul.f32 %v2215_v60, %v2349_v17  ;;  %v2534_v28 = vstv %s2476_s20  ;;  %s2891_s20 = sld [smem:[#allocation2 + $0x3f]] }
  0x65   :  { %1515 = vrcp.f32 %v297_v56  ;;  %v361_v14 = vadd.f32 %v357_v52, %v351_v16  ;;  %v400_v31 = vadd.f32 %v396_v24, %v390_v55  ;;  %v2537_v51 = vstv %s2483_s22  ;;  %s3329_s22 = sld [smem:[#allocation2 + $0x47]] }
  0x66   :  { %v2540_v34 = vstv %s2485_s9  ;;  %v449_v40 = vadd.f32 %v2448_v8, %v439_v35  ;;  %v509_v30 = vmul.f32 %v2534_v28, %v1725_v0  ;;  %v519_v29 = vmul.f32 %v1730_v1, %v2537_v51  ;;  %s2752_s9 = sld [smem:[#allocation2 + $0x34]] }
  0x67   :  { %v371_v39 = vadd.f32 %v367_v47, %v361_v14  ;;  %v410_v52 = vadd.f32 %v406_v58, %v400_v31  ;;  %v529_v17 = vmul.f32 %v1735_v2, %v2540_v34  ;;  %v2550_v24 = vstv %s2493_s17  ;;  %s2762_s17 = sld [smem:[#allocation2 + $0x35]] }
  0x68   :  { %v2553_v9 = vstv %s2495_s23  ;;  %v1512_v8 = vpop.eup %1511  ;;  %v459_v0 = vadd.f32 %v2452_v53, %v449_v40  ;;  %v523_v13 = vadd.f32 %v519_v29, %v509_v30  ;;  %v539_v1 = vmul.f32 %v1740_v3, %v2550_v24  ;;  %v4126_v29 = vld [vmem:[#allocation11_spill] sm:$0xff]  ;;  %s2774_s23 = sld [smem:[#allocation2 + $0x36]] }
  0x69   :  { %v381_v56 = vadd.f32 %v377_v18, %v371_v39  ;;  %310 = vst.msk [vmem:[%s3877_s3 + $0x10] sm:$0xff] %vm306_vm0, %v1512_v8  ;;  %v420_v2 = vadd.f32 %v416_v45, %v410_v52  ;;  %v407_v58 = vmul.f32 %v2220_v62, %v2352_v7  ;;  %v549_v53 = vmul.f32 %v1779_v11, %v2553_v9  ;;  %v4125_v39 = vld [vmem:[#allocation50_spill] sm:$0xff] }
  0x6a   :  { %v2573_v16 = vstv %s2515_s18  ;;  %v469_v47 = vadd.f32 %v2458_v27, %v459_v0  ;;  %v533_v3 = vadd.f32 %v529_v17, %v523_v13  ;;  %v2577_v18 = vstv %s2519_s29  ;;  %s2799_s18 = sld [smem:[#allocation2 + $0x37]]  ;;  %s2801_s29 = sld [smem:[#allocation2 + $0x38]] }
  0x6b   :  { %v391_v55 = vadd.f32 %v387_v5, %v381_v56  ;;  %v1514_v35 = vpop.eup %1513  ;;  %v430_v14 = vadd.f32 %v426_v49, %v420_v2  ;;  %v417_v31 = vmul.f32 %v2267_v33, %v2363_v46  ;;  %v559_v45 = vmul.f32 %v1807_v20, %v2573_v16  ;;  %v4124_v49 = vld [vmem:[#allocation49_spill] sm:$0xff] }
  0x6c   :  { %v2584_v7 = vstv %s2529_s30  ;;  %v490_v11 = vadd.f32 1.0, %v1514_v35  ;;  %v475_v40 = vadd.f32 %v2415_v61, %v469_v47  ;;  %v543_v5 = vadd.f32 %v539_v1, %v533_v3  ;;  %s3260_s30 = sld [smem:[#allocation2 + $0x45]] }
  0x6d   :  { %v401_v27 = vadd.f32 %v397_v26, %v391_v55  ;;  %v440_v46 = vadd.f32 %v2503_v19, %v430_v14  ;;  %v427_v20 = vmul.f32 %v4124_v49, %v2372_v57  ;;  %v437_v30 = vmul.f32 %v4125_v39, %v2386_v4  ;;  %v4127_v4 = vld [vmem:[#allocation13_spill] sm:$0xff]  ;;  %v4129_v55 = vld [vmem:[#allocation52_spill] sm:$0xff]  ;;  %v4156_v39 = vld [vmem:[#allocation35_spill] sm:$0xff] }
  0x6e   :  { %v569_v52 = vmul.f32 %v4126_v29, %v2577_v18  ;;  %1517 = vrcp.f32 %v490_v11  ;;  %v1390_v17 = vmul.f32 -1.442695, %v475_v40  ;;  %v553_v0 = vadd.f32 %v549_v53, %v543_v5  ;;  %v4130_v14 = vld [vmem:[#allocation53_spill] sm:$0xff] }
  0x6f   :  { %v1516_v26 = vpop.eup %1515  ;;  %v411_v8 = vadd.f32 %v407_v58, %v401_v27  ;;  %v450_v57 = vadd.f32 %v2509_v21, %v440_v46  ;;  %v579_v19 = vmul.f32 %v4127_v4, %v2584_v7  ;;  %v2610_v56 = vstv %s2555_s4  ;;  %v4128_v21 = vld [vmem:[#allocation51_spill] sm:$0xff]  ;;  %s3640_s4 = sld [smem:[#allocation2 + $0x59]] }
  0x70   :  { %311 = vst.msk [vmem:[%s3877_s3 + $0x18] sm:$0x3f] %vm308_vm1, %v1516_v26  ;;  %v2613_v13 = vstv %s2557_s5  ;;  %1519 = vpow2.f32 %v1390_v17  ;;  %v563_v2 = vadd.f32 %v559_v45, %v553_v0  ;;  %v2616_v58 = vstv %s2562_s6  ;;  %v4131_v45 = vld [vmem:[#allocation15_spill] sm:$0xff]  ;;  %v4134_v17 = vld [vmem:[#allocation8_spill] sm:$0xff]  ;;  %s3403_s5 = sld [smem:[#allocation2 + $0x4b]]  ;;  %s3410_s6 = sld [smem:[#allocation2 + $0x4c]] }
  0x71   :  { %v421_v1 = vadd.f32 %v417_v31, %v411_v8  ;;  %v460_v53 = vadd.f32 %v2513_v12, %v450_v57  ;;  %v447_v47 = vmul.f32 %v4128_v21, %v2391_v36  ;;  %v457_v3 = vmul.f32 %v4129_v55, %v2403_v50  ;;  %v4132_v12 = vld [vmem:[#allocation16_spill] sm:$0xff]  ;;  %v4133_v36 = vld [vmem:[#allocation17_spill] sm:$0xff]  ;;  %v4136_v57 = vld [vmem:[#allocation10_spill] sm:$0xff] }
  0x72   :  { %v467_v11 = vmul.f32 %v4130_v14, %v2408_v54  ;;  %v573_v31 = vadd.f32 %v569_v52, %v563_v2  ;;  %v589_v40 = vmul.f32 %v4131_v45, %v2610_v56  ;;  %v599_v5 = vmul.f32 %v4132_v12, %v2613_v13  ;;  %v4145_v55 = vld [vmem:[#allocation25_spill] sm:$0xff] }
  0x73   :  { %v431_v35 = vadd.f32 %v427_v20, %v421_v1  ;;  %v470_v27 = vadd.f32 %v2523_v32, %v460_v53  ;;  %v609_v46 = vmul.f32 %v4133_v36, %v2616_v58  ;;  %v2635_v50 = vstv %s2586_s1  ;;  %v4135_v32 = vld [vmem:[#allocation9_spill] sm:$0xff]  ;;  %s2830_s1 = sld [smem:[#allocation2 + $0x39]] }
  0x74   :  { %v583_v20 = vadd.f32 %v579_v19, %v573_v31  ;;  %v2638_v26 = vstv %s2589_s7  ;;  %v2641_v54 = vstv %s2591_s24  ;;  %v510_v8 = vmul.f32 %v2534_v28, %v4134_v17  ;;  %s2832_s7 = sld [smem:[#allocation2 + $0x3a]] }
  0x75   :  { %v441_v29 = vadd.f32 %v437_v30, %v431_v35  ;;  %v476_v52 = vadd.f32 %v2415_v61, %v470_v27  ;;  %v520_v0 = vmul.f32 %v4135_v32, %v2537_v51  ;;  %v530_v4 = vmul.f32 %v4136_v57, %v2540_v34  ;;  %v4137_v30 = vld [vmem:[#allocation18_spill] sm:$0xff]  ;;  %v4139_v57 = vld [vmem:[#allocation20_spill] sm:$0xff] }
  0x76   :  { %v593_v2 = vadd.f32 %v589_v40, %v583_v20  ;;  %v619_v19 = vmul.f32 %v4137_v30, %v2635_v50  ;;  %v2653_v53 = vstv %s2600_s25  ;;  %v2655_v31 = vstv %s1412_s10  ;;  %v4138_v27 = vld [vmem:[#allocation14_spill] sm:$0xff]  ;;  %v4143_v30 = vld [vmem:[#allocation24_spill] sm:$0xff]  ;;  %s1485_s25 = sld [smem:[#allocation2 + $0x5d]]  ;;  %s3708_s10 = sld [smem:[#allocation2 + $0x5f]] }
  0x77   :  { %v451_v1 = vadd.f32 %v447_v47, %v441_v29  ;;  %v1391_v35 = vmul.f32 -1.442695, %v476_v52  ;;  %v524_v45 = vadd.f32 %v520_v0, %v510_v8  ;;  %v540_v12 = vmul.f32 %v4138_v27, %v2550_v24  ;;  %v4140_v47 = vld [vmem:[#allocation22_spill] sm:$0xff]  ;;  %v4141_v52 = vld [vmem:[#allocation19_spill] sm:$0xff] }
  0x78   :  { %v1518_v36 = vpop.eup %1517  ;;  %v603_v32 = vadd.f32 %v599_v5, %v593_v2  ;;  %v629_v14 = vmul.f32 %v4139_v57, %v2638_v26  ;;  %v639_v40 = vmul.f32 %v4140_v47, %v2641_v54  ;;  %v2668_v29 = vstv %s2623_s11  ;;  %s3735_s11 = sld [smem:[#allocation5 + $0x5]] }
  0x79   :  { %v461_v17 = vadd.f32 %v457_v3, %v451_v1  ;;  %1393 = vst.msk [vmem:[%s3877_s3 + $0x20] sm:$0xff] %vm306_vm0, %v1518_v36  ;;  %1521 = vpow2.f32 %v1391_v35  ;;  %v534_v20 = vadd.f32 %v530_v4, %v524_v45  ;;  %v550_v8 = vmul.f32 %v4141_v52, %v2553_v9  ;;  %v4142_v1 = vld [vmem:[#allocation23_spill] sm:$0xff]  ;;  %v4144_v36 = vld [vmem:[#allocation21_spill] sm:$0xff] }
  0x7a   :  { %v1520_v3 = vpop.eup %1519  ;;  %v613_v0 = vadd.f32 %v609_v46, %v603_v32  ;;  %v649_v2 = vmul.f32 %v4142_v1, %v2653_v53  ;;  %v659_v27 = vmul.f32 %v4143_v30, %v2655_v31  ;;  %v560_v35 = vmul.f32 %v4144_v36, %v2573_v16 }
  0x7b   :  { %v471_v5 = vadd.f32 %v467_v11, %v461_v17  ;;  %v491_v57 = vadd.f32 1.0, %v1520_v3  ;;  %v544_v47 = vadd.f32 %v540_v12, %v534_v20  ;;  %v570_v4 = vmul.f32 %v4145_v55, %v2577_v18  ;;  %v4146_v11 = vld [vmem:[#allocation26_spill] sm:$0xff]  ;;  %v4147_v17 = vld [vmem:[#allocation12_spill] sm:$0xff]  ;;  %v4149_v20 = vld [vmem:[#allocation29_spill] sm:$0xff] }
  0x7c   :  { %v623_v52 = vadd.f32 %v619_v19, %v613_v0  ;;  %v580_v46 = vmul.f32 %v4146_v11, %v2584_v7  ;;  %v511_v32 = vmul.f32 %v2534_v28, %v4147_v17  ;;  %v4148_v3 = vld [vmem:[#allocation28_spill] sm:$0xff]  ;;  %v531_v30 = vmul.f32 %v4149_v20, %v2540_v34  ;;  %v4150_v55 = vld [vmem:[#allocation27_spill] sm:$0xff]  ;;  %v4151_v19 = vld [vmem:[#allocation30_spill] sm:$0xff] }
  0x7d   :  { %v477_v45 = vadd.f32 %v2415_v61, %v471_v5  ;;  %1523 = vrcp.f32 %v491_v57  ;;  %v554_v1 = vadd.f32 %v550_v8, %v544_v47  ;;  %v521_v12 = vmul.f32 %v4148_v3, %v2537_v51  ;;  %v4152_v11 = vld [vmem:[#allocation31_spill] sm:$0xff]  ;;  %v4153_v8 = vld [vmem:[#allocation34_spill] sm:$0xff]  ;;  %v4154_v20 = vld [vmem:[#allocation32_spill] sm:$0xff] }
  0x7e   :  { %v633_v21 = vadd.f32 %v629_v14, %v623_v52  ;;  %v590_v61 = vmul.f32 %v4150_v55, %v2610_v56  ;;  %v600_v5 = vmul.f32 %v4151_v19, %v2613_v13  ;;  %v610_v17 = vmul.f32 %v4152_v11, %v2616_v58  ;;  %v4155_v14 = vld [vmem:[#allocation33_spill] sm:$0xff]  ;;  %v4158_v11 = vld [vmem:[#allocation36_spill] sm:$0xff] }
  0x7f   :  { %v1392_v36 = vmul.f32 -1.442695, %v477_v45  ;;  %v564_v0 = vadd.f32 %v560_v35, %v554_v1  ;;  %v525_v57 = vadd.f32 %v521_v12, %v511_v32  ;;  %v541_v47 = vmul.f32 %v4153_v8, %v2550_v24  ;;  %v4157_v1 = vld [vmem:[#allocation38_spill] sm:$0xff]  ;;  %v4160_v8 = vld [vmem:[#allocation39_spill] sm:$0xff] }
  0x80   :  { %v643_v3 = vadd.f32 %v639_v40, %v633_v21  ;;  %v620_v45 = vmul.f32 %v4154_v20, %v2635_v50  ;;  %v630_v52 = vmul.f32 %v4155_v14, %v2638_v26  ;;  %v2703_v19 = vmul.f32 %v4156_v39, %v2641_v54  ;;  %v4159_v21 = vld [vmem:[#allocation37_spill] sm:$0xff] }
  0x81   :  { %1525 = vpow2.f32 %v1392_v36  ;;  %v574_v55 = vadd.f32 %v570_v4, %v564_v0  ;;  %v535_v35 = vadd.f32 %v531_v30, %v525_v57  ;;  %v551_v32 = vmul.f32 %v4157_v1, %v2553_v9  ;;  %v4161_v30 = vld [vmem:[#allocation40_spill] sm:$0xff] }
  0x82   :  { %v653_v12 = vadd.f32 %v649_v2, %v643_v3  ;;  %v2709_v36 = vmul.f32 %v4158_v11, %v2653_v53  ;;  %v2713_v40 = vmul.f32 %v4159_v21, %v2655_v31  ;;  %v561_v4 = vmul.f32 %v4160_v8, %v2573_v16 }
  0x83   :  { %v1522_v0 = vpop.eup %1521  ;;  %v584_v20 = vadd.f32 %v580_v46, %v574_v55  ;;  %v545_v39 = vadd.f32 %v541_v47, %v535_v35  ;;  %v571_v57 = vmul.f32 %v4161_v30, %v2577_v18  ;;  %v581_v2 = vmul.f32 %v4117_v43, %v2584_v7  ;;  %v4162_v46 = vld [vmem:[#allocation42_spill] sm:$0xff] }
  0x84   :  { %v492_v3 = vadd.f32 1.0, %v1522_v0  ;;  %v663_v14 = vadd.f32 %v659_v27, %v653_v12  ;;  %v512_v1 = vmul.f32 %v2534_v28, %v2096_v38  ;;  %v522_v11 = vmul.f32 %v2101_v23, %v2537_v51 }
  0x85   :  { %v594_v21 = vadd.f32 %v590_v61, %v584_v20  ;;  %v555_v8 = vadd.f32 %v551_v32, %v545_v39  ;;  %v591_v47 = vmul.f32 %v4162_v46, %v2610_v56  ;;  %v532_v55 = vmul.f32 %v4119_v15, %v2540_v34  ;;  %v4163_v61 = vld [vmem:[#allocation43_spill] sm:$0xff]  ;;  %v2823_v46 = vld [vmem:[%s3876_s2 + $0x60] sm:$0xff] }
  0x86   :  { %1527 = vrcp.f32 %v492_v3  ;;  %v669_v43 = vadd.f32 %v2668_v29, %v663_v14  ;;  %v526_v27 = vadd.f32 %v522_v11, %v512_v1  ;;  %v542_v38 = vmul.f32 %v2131_v44, %v2550_v24  ;;  %v2814_v1 = vld [vmem:[%s3876_s2 + $0x40] sm:$0xff] }
  0x87   :  { %v1524_v23 = vpop.eup %1523  ;;  %v604_v28 = vadd.f32 %v600_v5, %v594_v21  ;;  %v565_v51 = vadd.f32 %v561_v4, %v555_v8  ;;  %v601_v35 = vmul.f32 %v4163_v61, %v2613_v13  ;;  %v611_v15 = vmul.f32 %v4120_v25, %v2616_v58  ;;  %4164 = vst [vmem:[#allocation41_spill] sm:$0xff] %v2814_v1 }
  0x88   :  { %1394 = vst.msk [vmem:[%s3877_s3 + $0x28] sm:$0x3f] %vm308_vm1, %v1524_v23  ;;  %v1414_v34 = vmul.f32 -1.442695, %v669_v43  ;;  %v621_v44 = vmul.f32 %v4121_v42, %v2635_v50  ;;  %v536_v24 = vadd.f32 %v532_v55, %v526_v27  ;;  %v552_v5 = vmul.f32 %v2166_v6, %v2553_v9 }
  0x89   :  { %v614_v32 = vadd.f32 %v610_v17, %v604_v28  ;;  %v575_v12 = vadd.f32 %v571_v57, %v565_v51  ;;  %v2756_v25 = vmul.f32 %v4122_v37, %v2638_v26  ;;  %v2760_v4 = vmul.f32 %v4123_v22, %v2641_v54  ;;  %v2786_v57 = vld [vmem:[%s3876_s2] sm:$0xff] }
  0x8a   :  { %1529 = vpow2.f32 %v1414_v34  ;;  %v2766_v6 = vmul.f32 %v2178_v63, %v2653_v53  ;;  %v546_v9 = vadd.f32 %v542_v38, %v536_v24  ;;  %v562_v17 = vmul.f32 %v2183_v59, %v2573_v16  ;;  %v2849_v51 = vld [vmem:[%s3876_s2 + $0x80] sm:$0xff] }
  0x8b   :  { %v1526_v42 = vpop.eup %1525  ;;  %v624_v0 = vadd.f32 %v620_v45, %v614_v32  ;;  %v585_v20 = vadd.f32 %v581_v2, %v575_v12  ;;  %v2772_v22 = vmul.f32 %v2290_v48, %v2655_v31  ;;  %v572_v63 = vmul.f32 %v2188_v10, %v2577_v18  ;;  %4165 = vst [vmem:[#allocation45_spill] sm:$0xff] %v2849_v51  ;;  %v2879_v12 = vld [vmem:[%s3876_s2 + $0xc0] sm:$0xff] }
  0x8c   :  { %v493_v37 = vadd.f32 1.0, %v1526_v42  ;;  %v556_v39 = vadd.f32 %v552_v5, %v546_v9  ;;  %v582_v30 = vmul.f32 %v2207_v41, %v2584_v7  ;;  %v2781_v59 = vstv %s2725_s12  ;;  %v2864_v5 = vld [vmem:[%s3876_s2 + $0xa0] sm:$0xff]  ;;  %s2874_s12 = sld [smem:[#allocation2 + $0x3d]] }
  0x8d   :  { %v634_v16 = vadd.f32 %v630_v52, %v624_v0  ;;  %v595_v45 = vadd.f32 %v591_v47, %v585_v20  ;;  %v704_v48 = vmul.f32 %v2786_v57, %v2781_v59  ;;  %v2791_v3 = vstv %s2731_s13  ;;  %v2807_v52 = vld [vmem:[%s3876_s2 + $0x20] sm:$0xff]  ;;  %4167 = vst [vmem:[#allocation44_spill] sm:$0xff] %v2864_v5  ;;  %s3223_s13 = sld [smem:[#allocation2 + $0x42]] }
  0x8e   :  { %1531 = vrcp.f32 %v493_v37  ;;  %v566_v2 = vadd.f32 %v562_v17, %v556_v39  ;;  %v2794_v10 = vstv %s2736_s14  ;;  %v2797_v41 = vstv %s2738_s19  ;;  %s2889_s19 = sld [smem:[#allocation2 + $0x3e]] }
  0x8f   :  { %v644_v18 = vadd.f32 %v2703_v19, %v634_v16  ;;  %v605_v7 = vadd.f32 %v601_v35, %v595_v45  ;;  %v714_v14 = vmul.f32 %v2807_v52, %v2791_v3  ;;  %v724_v11 = vmul.f32 %v2814_v1, %v2794_v10 }
  0x90   :  { %v1528_v21 = vpop.eup %1527  ;;  %v576_v19 = vadd.f32 %v572_v63, %v566_v2  ;;  %v592_v8 = vmul.f32 %v2215_v60, %v2610_v56  ;;  %v734_v47 = vmul.f32 %v2823_v46, %v2797_v41  ;;  %v2828_v55 = vstv %s2752_s9  ;;  %v4168_v63 = vld [vmem:[#allocation51_spill] sm:$0xff]  ;;  %s3573_s9 = sld [smem:[#allocation2 + $0x52]] }
  0x91   :  { %1395 = vst.msk [vmem:[%s3877_s3 + $0x30] sm:$0xff] %vm306_vm0, %v1528_v21  ;;  %v654_v60 = vadd.f32 %v2709_v36, %v644_v18  ;;  %v615_v56 = vadd.f32 %v611_v15, %v605_v7  ;;  %v718_v43 = vadd.f32 %v714_v14, %v704_v48  ;;  %v2840_v27 = vstv %s2762_s17  ;;  %s3586_s17 = sld [smem:[#allocation2 + $0x54]] }
  0x92   :  { %v586_v38 = vadd.f32 %v582_v30, %v576_v19  ;;  %v602_v23 = vmul.f32 %v2220_v62, %v2613_v13  ;;  %v612_v28 = vmul.f32 %v2267_v33, %v2616_v58  ;;  %v744_v61 = vmul.f32 %v2849_v51, %v2828_v55  ;;  %v4166_v13 = vld [vmem:[#allocation50_spill] sm:$0xff] }
  0x93   :  { %v664_v36 = vadd.f32 %v2713_v40, %v654_v60  ;;  %v625_v35 = vadd.f32 %v621_v44, %v615_v56  ;;  %v728_v15 = vadd.f32 %v724_v11, %v718_v43  ;;  %v2855_v34 = vstv %s2774_s23  ;;  %v4170_v11 = vld [vmem:[#allocation53_spill] sm:$0xff]  ;;  %v2938_v60 = vld [vmem:[%s3876_s2 + $0x140] sm:$0xff] }
  0x94   :  { %v1530_v24 = vpop.eup %1529  ;;  %v596_v62 = vadd.f32 %v592_v8, %v586_v38  ;;  %v622_v33 = vmul.f32 %v4124_v49, %v2635_v50  ;;  %v632_v58 = vmul.f32 %v4166_v13, %v2638_v26  ;;  %v754_v40 = vmul.f32 %v2864_v5, %v2840_v27  ;;  %4173 = vst [vmem:[#allocation48_spill] sm:$0xff] %v2938_v60 }
  0x95   :  { %v685_v44 = vadd.f32 1.0, %v1530_v24  ;;  %v670_v32 = vadd.f32 %v2668_v29, %v664_v36  ;;  %v635_v49 = vadd.f32 %v2756_v25, %v625_v35  ;;  %v738_v50 = vadd.f32 %v734_v47, %v728_v15  ;;  %v2962_v15 = vld [vmem:[%s3876_s2 + $0x28] sm:$0x3f] }
  0x96   :  { %v606_v26 = vadd.f32 %v602_v23, %v596_v62  ;;  %v764_v42 = vmul.f32 %v2879_v12, %v2855_v34  ;;  %v2884_v9 = vstv %s2799_s18  ;;  %v2887_v17 = vstv %s2801_s29  ;;  %s2925_s18 = sld [smem:[#allocation5 + $0x3]]  ;;  %v2951_v23 = vld [vmem:[%s3876_s2 + $0x8] sm:$0x3f]  ;;  %4175 = vst [vmem:[#allocation11_spill] sm:$0xff] %v2962_v15  ;;  %s3258_s29 = sld [smem:[#allocation2 + $0x44]] }
  0x97   :  { %1533 = vrcp.f32 %v685_v44  ;;  %v1415_v37 = vmul.f32 -1.442695, %v670_v32  ;;  %v645_v0 = vadd.f32 %v2760_v4, %v635_v49  ;;  %v748_v20 = vadd.f32 %v744_v61, %v738_v50  ;;  %v2910_v4 = vld [vmem:[%s3876_s2 + $0xe0] sm:$0xff]  ;;  %4174 = vst [vmem:[#allocation49_spill] sm:$0xff] %v2951_v23  ;;  %v2982_v50 = vld [vmem:[%s3876_s2 + $0x68] sm:$0x3f] }
  0x98   :  { %v1532_v25 = vpop.eup %1531  ;;  %v616_v39 = vadd.f32 %v612_v28, %v606_v26  ;;  %v642_v30 = vmul.f32 %v4168_v63, %v2641_v54  ;;  %v2901_v16 = vstv %s2830_s1  ;;  %v2904_v45 = vstv %s2832_s7  ;;  %v4169_v54 = vld [vmem:[#allocation52_spill] sm:$0xff]  ;;  %4177 = vst [vmem:[#allocation15_spill] sm:$0xff] %v2982_v50  ;;  %s3421_s1 = sld [smem:[#allocation2 + $0x4d]]  ;;  %s3427_s7 = sld [smem:[#allocation2 + $0x4e]] }
  0x99   :  { %1396 = vst.msk [vmem:[%s3877_s3 + $0x38] sm:$0x3f] %vm308_vm1, %v1532_v25  ;;  %1535 = vpow2.f32 %v1415_v37  ;;  %v655_v48 = vadd.f32 %v2766_v6, %v645_v0  ;;  %v758_v2 = vadd.f32 %v754_v40, %v748_v20  ;;  %v774_v18 = vmul.f32 %v2910_v4, %v2884_v9  ;;  %v2921_v6 = vld [vmem:[%s3876_s2 + $0x100] sm:$0xff] }
  0x9a   :  { %v626_v7 = vadd.f32 %v622_v33, %v616_v39  ;;  %v652_v14 = vmul.f32 %v4169_v54, %v2653_v53  ;;  %v662_v21 = vmul.f32 %v4170_v11, %v2655_v31  ;;  %4171 = vst [vmem:[#allocation46_spill] sm:$0xff] %v2921_v6  ;;  %v784_v19 = vmul.f32 %v2921_v6, %v2887_v17  ;;  %v2931_v53 = vld [vmem:[%s3876_s2 + $0x120] sm:$0xff] }
  0x9b   :  { %v665_v8 = vadd.f32 %v2772_v22, %v655_v48  ;;  %v768_v47 = vadd.f32 %v764_v42, %v758_v2  ;;  %4172 = vst [vmem:[#allocation47_spill] sm:$0xff] %v2931_v53  ;;  %v794_v31 = vmul.f32 %v2931_v53, %v2901_v16  ;;  %v804_v56 = vmul.f32 %v2938_v60, %v2904_v45  ;;  %v2989_v25 = vld [vmem:[%s3876_s2 + $0x160] sm:$0xff] }
  0x9c   :  { %v636_v22 = vadd.f32 %v632_v58, %v626_v7  ;;  %v2943_v43 = vstv %s2868_s15  ;;  %v2946_v38 = vstv %s2870_s16  ;;  %v705_v28 = vmul.f32 %v2951_v23, %v2781_v59  ;;  %v2975_v58 = vld [vmem:[%s3876_s2 + $0x48] sm:$0x3f]  ;;  %4178 = vst [vmem:[#allocation16_spill] sm:$0xff] %v2989_v25  ;;  %v2996_v0 = vld [vmem:[%s3876_s2 + $0x180] sm:$0xff] }
  0x9d   :  { %v671_v61 = vadd.f32 %v2668_v29, %v665_v8  ;;  %v778_v36 = vadd.f32 %v774_v18, %v768_v47  ;;  %v2957_v35 = vstv %s2874_s12  ;;  %v715_v24 = vmul.f32 %v2962_v15, %v2791_v3  ;;  %4176 = vst [vmem:[#allocation13_spill] sm:$0xff] %v2975_v58  ;;  %4179 = vst [vmem:[#allocation17_spill] sm:$0xff] %v2996_v0  ;;  %v3003_v39 = vld [vmem:[%s3876_s2 + $0x1a0] sm:$0xff]  ;;  %v3010_v18 = vld [vmem:[%s3876_s2 + $0x88] sm:$0x3f]  ;;  %s3221_s12 = sld [smem:[#allocation2 + $0x41]] }
  0x9e   :  { %v646_v62 = vadd.f32 %v642_v30, %v636_v22  ;;  %v2967_v33 = vstv %s2889_s19  ;;  %v2970_v13 = vstv %s2891_s20  ;;  %v725_v40 = vmul.f32 %v2975_v58, %v2794_v10  ;;  %4180 = vst [vmem:[#allocation8_spill] sm:$0xff] %v3003_v39  ;;  %4181 = vst [vmem:[#allocation9_spill] sm:$0xff] %v3010_v18  ;;  %s3233_s20 = sld [smem:[#allocation2 + $0x43]] }
  0x9f   :  { %v1416_v44 = vmul.f32 -1.442695, %v671_v61  ;;  %v788_v32 = vadd.f32 %v784_v19, %v778_v36  ;;  %v719_v49 = vadd.f32 %v715_v24, %v705_v28  ;;  %v735_v26 = vmul.f32 %v2982_v50, %v2797_v41  ;;  %v3028_v19 = vld [vmem:[%s3876_s2 + $0x1e0] sm:$0xff]  ;;  %v3040_v28 = vld [vmem:[%s3876_s2 + $0xa8] sm:$0x3f] }
  0xa0   :  { %v656_v42 = vadd.f32 %v652_v14, %v646_v62  ;;  %v814_v37 = vmul.f32 %v2989_v25, %v2943_v43  ;;  %v824_v20 = vmul.f32 %v2996_v0, %v2946_v38  ;;  %v834_v63 = vmul.f32 %v3003_v39, %v2957_v35  ;;  %v3021_v14 = vld [vmem:[%s3876_s2 + $0x1c0] sm:$0xff]  ;;  %4183 = vst [vmem:[#allocation18_spill] sm:$0xff] %v3028_v19  ;;  %v3047_v36 = vld [vmem:[%s3876_s2 + $0xc8] sm:$0x3f] }
  0xa1   :  { %v1534_v30 = vpop.eup %1533  ;;  %1537 = vpow2.f32 %v1416_v44  ;;  %v798_v48 = vadd.f32 %v794_v31, %v788_v32  ;;  %v729_v2 = vadd.f32 %v725_v40, %v719_v49  ;;  %v745_v7 = vmul.f32 %v3010_v18, %v2828_v55  ;;  %4182 = vst [vmem:[#allocation10_spill] sm:$0xff] %v3021_v14  ;;  %4184 = vst [vmem:[#allocation14_spill] sm:$0xff] %v3040_v28  ;;  %v3055_v40 = vld [vmem:[%s3876_s2 + $0xe8] sm:$0x3f]  ;;  %v3062_v32 = vld [vmem:[%s3876_s2 + $0x10] sm:$0xff] }
  0xa2   :  { %1418 = vst.msk [vmem:[%s3877_s3 + $0x40] sm:$0xff] %vm306_vm0, %v1534_v30  ;;  %v666_v54 = vadd.f32 %v662_v21, %v656_v42  ;;  %v844_v11 = vmul.f32 %v3021_v14, %v2967_v33  ;;  %v3032_v8 = vmul.f32 %v3028_v19, %v2970_v13  ;;  %v3035_v47 = vstv %s2925_s18  ;;  %4185 = vst [vmem:[#allocation20_spill] sm:$0xff] %v3047_v36  ;;  %s3638_s18 = sld [smem:[#allocation2 + $0x58]] }
  0xa3   :  { %v1536_v21 = vpop.eup %1535  ;;  %v808_v31 = vadd.f32 %v804_v56, %v798_v48  ;;  %v739_v22 = vadd.f32 %v735_v26, %v729_v2  ;;  %v755_v61 = vmul.f32 %v3040_v28, %v2840_v27  ;;  %v765_v24 = vmul.f32 %v3047_v36, %v2855_v34  ;;  %4186 = vst [vmem:[#allocation22_spill] sm:$0xff] %v3055_v40  ;;  %v3076_v48 = vld [vmem:[%s3876_s2 + $0x50] sm:$0xff] }
  0xa4   :  { %v686_v62 = vadd.f32 1.0, %v1536_v21  ;;  %v672_v56 = vadd.f32 %v2668_v29, %v666_v54  ;;  %v775_v44 = vmul.f32 %v3055_v40, %v2884_v9  ;;  %4187 = vst [vmem:[#allocation19_spill] sm:$0xff] %v3062_v32  ;;  %v706_v49 = vmul.f32 %v3062_v32, %v2781_v59  ;;  %v3069_v29 = vld [vmem:[%s3876_s2 + $0x30] sm:$0xff]  ;;  %4189 = vst [vmem:[#allocation24_spill] sm:$0xff] %v3076_v48  ;;  %v3090_v21 = vld [vmem:[%s3876_s2 + $0x128] sm:$0x3f] }
  0xa5   :  { %v818_v26 = vadd.f32 %v814_v37, %v808_v31  ;;  %v749_v42 = vadd.f32 %v745_v7, %v739_v22  ;;  %4188 = vst [vmem:[#allocation23_spill] sm:$0xff] %v3069_v29  ;;  %v716_v30 = vmul.f32 %v3069_v29, %v2791_v3  ;;  %v726_v2 = vmul.f32 %v3076_v48, %v2794_v10  ;;  %v3083_v37 = vld [vmem:[%s3876_s2 + $0x108] sm:$0x3f]  ;;  %v3172_v32 = vld [vmem:[%s3876_s2 + $0xd0] sm:$0xff] }
  0xa6   :  { %1539 = vrcp.f32 %v686_v62  ;;  %v1417_v54 = vmul.f32 -1.442695, %v672_v56  ;;  %4190 = vst [vmem:[#allocation21_spill] sm:$0xff] %v3083_v37  ;;  %v785_v7 = vmul.f32 %v3083_v37, %v2887_v17  ;;  %4191 = vst [vmem:[#allocation25_spill] sm:$0xff] %v3090_v21  ;;  %v795_v31 = vmul.f32 %v3090_v21, %v2901_v16  ;;  %v3097_v56 = vld [vmem:[%s3876_s2 + $0x70] sm:$0xff] }
  0xa7   :  { %v828_v22 = vadd.f32 %v824_v20, %v818_v26  ;;  %v759_v40 = vadd.f32 %v755_v61, %v749_v42  ;;  %v720_v62 = vadd.f32 %v716_v30, %v706_v49  ;;  %4192 = vst [vmem:[#allocation26_spill] sm:$0xff] %v3097_v56  ;;  %v736_v48 = vmul.f32 %v3097_v56, %v2797_v41  ;;  %v3104_v37 = vld [vmem:[%s3876_s2 + $0x148] sm:$0x3f]  ;;  %v3179_v28 = vld [vmem:[%s3876_s2 + $0xf0] sm:$0xff] }
  0xa8   :  { %1541 = vpow2.f32 %v1417_v54  ;;  %4193 = vst [vmem:[#allocation12_spill] sm:$0xff] %v3104_v37  ;;  %v3108_v21 = vmul.f32 %v3104_v37, %v2904_v45  ;;  %v3113_v20 = vld [vmem:[%s3876_s2 + $0x168] sm:$0x3f]  ;;  %v3131_v37 = vld [vmem:[%s3876_s2 + $0x90] sm:$0xff]  ;;  %4201 = vst [vmem:[#allocation33_spill] sm:$0xff] %v3179_v28 }
  0xa9   :  { %4194 = vst [vmem:[#allocation28_spill] sm:$0xff] %v3113_v20  ;;  %v3117_v61 = vmul.f32 %v3113_v20, %v2943_v43  ;;  %v3122_v49 = vld [vmem:[%s3876_s2 + $0x188] sm:$0x3f]  ;;  %v838_v42 = vadd.f32 %v834_v63, %v828_v22  ;;  %v769_v30 = vadd.f32 %v765_v24, %v759_v40  ;;  %v730_v54 = vadd.f32 %v726_v2, %v720_v62  ;;  %v3165_v22 = vld [vmem:[%s3876_s2 + $0xb0] sm:$0xff] }
  0xaa   :  { %4195 = vst [vmem:[#allocation29_spill] sm:$0xff] %v3122_v49  ;;  %v3126_v26 = vmul.f32 %v3122_v49, %v2946_v38  ;;  %4196 = vst [vmem:[#allocation27_spill] sm:$0xff] %v3131_v37  ;;  %v746_v20 = vmul.f32 %v3131_v37, %v2828_v55  ;;  %v3138_v56 = vld [vmem:[%s3876_s2 + $0x1a8] sm:$0x3f]  ;;  %v756_v62 = vmul.f32 %v3165_v22, %v2840_v27 }
  0xab   :  { %4197 = vst [vmem:[#allocation30_spill] sm:$0xff] %v3138_v56  ;;  %v3142_v49 = vmul.f32 %v3138_v56, %v2957_v35  ;;  %v3147_v63 = vld [vmem:[%s3876_s2 + $0x1c8] sm:$0x3f]  ;;  %4200 = vst [vmem:[#allocation32_spill] sm:$0xff] %v3165_v22  ;;  %v1538_v56 = vpop.eup %1537  ;;  %v779_v37 = vadd.f32 %v775_v44, %v769_v30  ;;  %v740_v29 = vadd.f32 %v736_v48, %v730_v54  ;;  %v3193_v48 = vld [vmem:[%s3876_s2 + $0x38] sm:$0x3f] }
  0xac   :  { %4198 = vst [vmem:[#allocation31_spill] sm:$0xff] %v3147_v63  ;;  %v3151_v24 = vmul.f32 %v3147_v63, %v2967_v33  ;;  %v3156_v40 = vld [vmem:[%s3876_s2 + $0x1e8] sm:$0x3f]  ;;  %v848_v63 = vadd.f32 %v844_v11, %v838_v42  ;;  %v687_v36 = vadd.f32 1.0, %v1538_v56  ;;  %v776_v22 = vmul.f32 %v3179_v28, %v2884_v9  ;;  %v3186_v11 = vld [vmem:[%s3876_s2 + $0x18] sm:$0x3f] }
  0xad   :  { %4199 = vst [vmem:[#allocation34_spill] sm:$0xff] %v3156_v40  ;;  %v3160_v2 = vmul.f32 %v3156_v40, %v2970_v13  ;;  %v766_v40 = vmul.f32 %v3172_v32, %v2855_v34  ;;  %4202 = vst [vmem:[#allocation35_spill] sm:$0xff] %v3186_v11  ;;  %v707_v44 = vmul.f32 %v3186_v11, %v2781_v59  ;;  %v3201_v28 = vld [vmem:[%s3876_s2 + $0x58] sm:$0x3f]  ;;  %v3210_v11 = vld [vmem:[%s3876_s2 + $0x110] sm:$0xff] }
  0xae   :  { %v717_v56 = vmul.f32 %v3193_v48, %v2791_v3  ;;  %v858_v42 = vadd.f32 %v3032_v8, %v848_v63  ;;  %v789_v30 = vadd.f32 %v785_v7, %v779_v37  ;;  %v750_v54 = vadd.f32 %v746_v20, %v740_v29  ;;  %4203 = vst [vmem:[#allocation38_spill] sm:$0xff] %v3210_v11  ;;  %v3217_v29 = vld [vmem:[%s3876_s2 + $0x78] sm:$0x3f]  ;;  %v3229_v20 = vld [vmem:[%s3876_s2 + $0x130] sm:$0xff] }
  0xaf   :  { %v727_v59 = vmul.f32 %v3201_v28, %v2794_v10  ;;  %1543 = vrcp.f32 %v687_v36  ;;  %v786_v3 = vmul.f32 %v3210_v11, %v2887_v17  ;;  %4204 = vst [vmem:[#allocation36_spill] sm:$0xff] %v3217_v29  ;;  %v737_v10 = vmul.f32 %v3217_v29, %v2797_v41  ;;  %4205 = vst [vmem:[#allocation37_spill] sm:$0xff] %v3229_v20  ;;  %v3238_v41 = vld [vmem:[%s3876_s2 + $0x150] sm:$0xff] }
  0xb0   :  { %v721_v8 = vadd.f32 %v717_v56, %v707_v44  ;;  %v864_v36 = vadd.f32 %v3035_v47, %v858_v42  ;;  %v799_v37 = vadd.f32 %v795_v31, %v789_v30  ;;  %v760_v7 = vadd.f32 %v756_v62, %v750_v54  ;;  %v1540_v44 = vpop.eup %1539  ;;  %4206 = vst [vmem:[#allocation39_spill] sm:$0xff] %v3238_v41  ;;  %v3245_v62 = vld [vmem:[%s3876_s2 + $0x170] sm:$0xff]  ;;  %v3254_v30 = vld [vmem:[%s3876_s2 + $0x98] sm:$0x3f] }
  0xb1   :  { %v796_v63 = vmul.f32 %v3229_v20, %v2901_v16  ;;  %v806_v31 = vmul.f32 %v3238_v41, %v2904_v45  ;;  %4207 = vst [vmem:[#allocation40_spill] sm:$0xff] %v3245_v62  ;;  %v3249_v56 = vmul.f32 %v3245_v62, %v2943_v43  ;;  %4208 = vst [vmem:[#allocation42_spill] sm:$0xff] %v3254_v30  ;;  %v3270_v41 = vld [vmem:[%s3876_s2 + $0x190] sm:$0xff] }
  0xb2   :  { %v731_v42 = vadd.f32 %v727_v59, %v721_v8  ;;  %v747_v54 = vmul.f32 %v3254_v30, %v2828_v55  ;;  %1419 = vst.msk [vmem:[%s3877_s3 + $0x48] sm:$0x3f] %vm308_vm1, %v1540_v44  ;;  %v1439_v62 = vmul.f32 -1.442695, %v864_v36  ;;  %v809_v59 = vadd.f32 %v3108_v21, %v799_v37  ;;  %4209 = vst [vmem:[#allocation43_spill] sm:$0xff] %v3270_v41  ;;  %v1542_v30 = vpop.eup %1541  ;;  %v3279_v20 = vld [vmem:[%s3876_s2 + $0x1b0] sm:$0xff] }
  0xb3   :  { %v770_v8 = vadd.f32 %v766_v40, %v760_v7  ;;  %v3274_v55 = vmul.f32 %v3270_v41, %v2946_v38  ;;  %4210 = vst [vmem:[#allocation50_spill] sm:$0xff] %v3279_v20  ;;  %v3283_v36 = vmul.f32 %v3279_v20, %v2957_v35  ;;  %v3288_v21 = vld [vmem:[%s3876_s2 + $0x1d0] sm:$0xff]  ;;  %v3297_v7 = vld [vmem:[%s3876_s2 + $0xb8] sm:$0x3f]  ;;  %v688_v20 = vadd.f32 1.0, %v1542_v30 }
  0xb4   :  { %4211 = vst [vmem:[#allocation51_spill] sm:$0xff] %v3288_v21  ;;  %v3292_v40 = vmul.f32 %v3288_v21, %v2967_v33  ;;  %v741_v37 = vadd.f32 %v737_v10, %v731_v42  ;;  %v757_v44 = vmul.f32 %v3297_v7, %v2840_v27  ;;  %1545 = vpow2.f32 %v1439_v62  ;;  %v3307_v10 = vld [vmem:[%s3876_s2 + $0xd8] sm:$0x3f] }
  0xb5   :  { %v819_v41 = vadd.f32 %v3117_v61, %v809_v59  ;;  %v780_v29 = vadd.f32 %v776_v22, %v770_v8  ;;  %v767_v42 = vmul.f32 %v3307_v10, %v2855_v34  ;;  %v3314_v27 = vld [vmem:[%s3876_s2 + $0xf8] sm:$0x3f]  ;;  %1547 = vrcp.f32 %v688_v20 }
  0xb6   :  { %v751_v21 = vadd.f32 %v747_v54, %v741_v37  ;;  %v777_v61 = vmul.f32 %v3314_v27, %v2884_v9  ;;  %v3321_v22 = vld [vmem:[%s3876_s2 + $0x118] sm:$0x3f]  ;;  %v3327_v54 = vstv %s3205_s8  ;;  %v3334_v8 = vstv %s3221_s12  ;;  %s3344_s8 = sld [smem:[#allocation2 + $0x48]]  ;;  %s3355_s12 = sld [smem:[#allocation2 + $0x49]] }
  0xb7   :  { %4212 = vst [vmem:[#allocation52_spill] sm:$0xff] %v3321_v22  ;;  %v787_v62 = vmul.f32 %v3321_v22, %v2887_v17  ;;  %v829_v34 = vadd.f32 %v3126_v26, %v819_v41  ;;  %v790_v30 = vadd.f32 %v786_v3, %v780_v29  ;;  %v899_v59 = vmul.f32 %v2786_v57, %v3327_v54 }
  0xb8   :  { %v761_v9 = vadd.f32 %v757_v44, %v751_v21  ;;  %v3337_v37 = vstv %s3223_s13  ;;  %v909_v26 = vmul.f32 %v2807_v52, %v3334_v8  ;;  %v3347_v21 = vstv %s3233_s20  ;;  %s3364_s20 = sld [smem:[#allocation2 + $0x4a]]  ;;  %s3571_s13 = sld [smem:[#allocation2 + $0x51]] }
  0xb9   :  { %v839_v17 = vadd.f32 %v3142_v49, %v829_v34  ;;  %v800_v20 = vadd.f32 %v796_v63, %v790_v30  ;;  %v919_v3 = vmul.f32 %v2814_v1, %v3337_v37  ;;  %v1544_v29 = vpop.eup %1543  ;;  %v3350_v44 = vstv %s3258_s29  ;;  %v3369_v30 = vld [vmem:[%s3876_s2 + $0x1f0] sm:$0xff]  ;;  %s3610_s29 = sld [smem:[#allocation2 + $0x56]] }
  0xba   :  { %v771_v41 = vadd.f32 %v767_v42, %v761_v9  ;;  %v3353_v22 = vstv %s3260_s30  ;;  %1420 = vst.msk [vmem:[%s3877_s3 + $0x50] sm:$0xff] %vm306_vm0, %v1544_v29  ;;  %v913_v34 = vadd.f32 %v909_v26, %v899_v59  ;;  %v929_v42 = vmul.f32 %v2823_v46, %v3347_v21  ;;  %s3623_s30 = sld [smem:[#allocation2 + $0x57]] }
  0xbb   :  { %v849_v49 = vadd.f32 %v3151_v24, %v839_v17  ;;  %v810_v63 = vadd.f32 %v806_v31, %v800_v20  ;;  %v856_v9 = vmul.f32 %v3369_v30, %v2970_v13  ;;  %v3376_v24 = vld [vmem:[%s3876_s2 + $0x138] sm:$0x3f]  ;;  %v939_v59 = vmul.f32 %v2849_v51, %v3350_v44 }
  0xbc   :  { %v781_v1 = vadd.f32 %v777_v61, %v771_v41  ;;  %v797_v31 = vmul.f32 %v3376_v24, %v2901_v16  ;;  %v923_v26 = vadd.f32 %v919_v3, %v913_v34  ;;  %v3385_v29 = vstv %s3302_s26  ;;  %v3390_v41 = vld [vmem:[%s3876_s2 + $0x158] sm:$0x3f]  ;;  %s3438_s26 = sld [smem:[#allocation2 + $0x4f]] }
  0xbd   :  { %v859_v17 = vadd.f32 %v3160_v2, %v849_v49  ;;  %v820_v20 = vadd.f32 %v3249_v56, %v810_v63  ;;  %v807_v16 = vmul.f32 %v3390_v41, %v2904_v45  ;;  %v3397_v51 = vld [vmem:[%s3876_s2 + $0x178] sm:$0x3f]  ;;  %v949_v56 = vmul.f32 %v2864_v5, %v3353_v22 }
  0xbe   :  { %v791_v61 = vadd.f32 %v787_v62, %v781_v1  ;;  %v817_v2 = vmul.f32 %v3397_v51, %v2943_v43  ;;  %v1546_v1 = vpop.eup %1545  ;;  %v933_v45 = vadd.f32 %v929_v42, %v923_v26  ;;  %v3408_v49 = vstv %s3329_s22  ;;  %v3415_v43 = vld [vmem:[%s3876_s2 + $0x198] sm:$0x3f]  ;;  %s3467_s22 = sld [smem:[#allocation5 + $0x4]] }
  0xbf   :  { %v865_v62 = vadd.f32 %v3035_v47, %v859_v17  ;;  %v830_v3 = vadd.f32 %v3274_v55, %v820_v20  ;;  %v880_v63 = vadd.f32 1.0, %v1546_v1  ;;  %v827_v5 = vmul.f32 %v3415_v43, %v2946_v38  ;;  %v1548_v55 = vpop.eup %1547 }
  0xc0   :  { %v801_v34 = vadd.f32 %v797_v31, %v791_v61  ;;  %v959_v17 = vmul.f32 %v2879_v12, %v3385_v29  ;;  %v943_v26 = vadd.f32 %v939_v59, %v933_v45  ;;  %v3425_v31 = vstv %s3344_s8  ;;  %1421 = vst.msk [vmem:[%s3877_s3 + $0x58] sm:$0x3f] %vm308_vm1, %v1548_v55  ;;  %v3447_v45 = vld [vmem:[%s3876_s2 + $0x1b8] sm:$0x3f] }
  0xc1   :  { %v1440_v42 = vmul.f32 -1.442695, %v865_v62  ;;  %v840_v20 = vadd.f32 %v3283_v36, %v830_v3  ;;  %1549 = vrcp.f32 %v880_v63  ;;  %v969_v61 = vmul.f32 %v2910_v4, %v3408_v49  ;;  %v3454_v63 = vld [vmem:[%s3876_s2 + $0x1d8] sm:$0x3f] }
  0xc2   :  { %v811_v38 = vadd.f32 %v807_v16, %v801_v34  ;;  %v3436_v1 = vstv %s3355_s12  ;;  %v953_v59 = vadd.f32 %v949_v56, %v943_v26  ;;  %v3442_v62 = vstv %s3364_s20  ;;  %4213 = vst [vmem:[#allocation53_spill] sm:$0xff] %v3454_v63  ;;  %s3565_s12 = sld [smem:[#allocation2 + $0x50]]  ;;  %s3584_s20 = sld [smem:[#allocation2 + $0x53]] }
  0xc3   :  { %1551 = vpow2.f32 %v1440_v42  ;;  %v850_v36 = vadd.f32 %v3292_v40, %v840_v20  ;;  %v837_v16 = vmul.f32 %v3447_v45, %v2957_v35  ;;  %v847_v40 = vmul.f32 %v3454_v63, %v2967_v33 }
  0xc4   :  { %v821_v3 = vadd.f32 %v817_v2, %v811_v38  ;;  %v3461_v2 = vld [vmem:[%s3876_s2 + $0x1f8] sm:$0x3f]  ;;  %v963_v55 = vadd.f32 %v959_v17, %v953_v59  ;;  %v979_v35 = vmul.f32 %v2921_v6, %v3425_v31  ;;  %v989_v33 = vmul.f32 %v2931_v53, %v3436_v1 }
  0xc5   :  { %v860_v56 = vadd.f32 %v856_v9, %v850_v36  ;;  %4214 = vst [vmem:[#allocation54_spill] sm:$0xff] %v3461_v2  ;;  %v857_v34 = vmul.f32 %v3461_v2, %v2970_v13  ;;  %v999_v9 = vmul.f32 %v2938_v60, %v3442_v62  ;;  %v3474_v20 = vstv %s3403_s5 }
  0xc6   :  { %v831_v42 = vadd.f32 %v827_v5, %v821_v3  ;;  %v973_v13 = vadd.f32 %v969_v61, %v963_v55  ;;  %v3478_v17 = vstv %s3410_s6  ;;  %v900_v38 = vmul.f32 %v2951_v23, %v3327_v54 }
  0xc7   :  { %v866_v26 = vadd.f32 %v3035_v47, %v860_v56  ;;  %v3483_v59 = vstv %s3421_s1  ;;  %v910_v5 = vmul.f32 %v2962_v15, %v3334_v8  ;;  %v920_v3 = vmul.f32 %v2975_v58, %v3337_v37  ;;  %s3680_s1 = sld [smem:[#allocation2 + $0x5c]] }
  0xc8   :  { %v841_v36 = vadd.f32 %v837_v16, %v831_v42  ;;  %v983_v53 = vadd.f32 %v979_v35, %v973_v13  ;;  %v1009_v56 = vmul.f32 %v2989_v25, %v3474_v20  ;;  %v3492_v61 = vstv %s3427_s7  ;;  %v4217_v25 = vld [vmem:[#allocation19_spill] sm:$0xff] }
  0xc9   :  { %v1441_v60 = vmul.f32 -1.442695, %v866_v26  ;;  %v3495_v2 = vstv %s3438_s26  ;;  %v914_v16 = vadd.f32 %v910_v5, %v900_v38  ;;  %v930_v42 = vmul.f32 %v2982_v50, %v3347_v21  ;;  %s1486_s26 = sld [smem:[#allocation2 + $0x5e]] }
  0xca   :  { %v851_v55 = vadd.f32 %v847_v40, %v841_v36  ;;  %v993_v15 = vadd.f32 %v989_v33, %v983_v53  ;;  %v1019_v58 = vmul.f32 %v2996_v0, %v3478_v17  ;;  %v1029_v35 = vmul.f32 %v3003_v39, %v3483_v59  ;;  %v4216_v39 = vld [vmem:[#allocation20_spill] sm:$0xff] }
  0xcb   :  { %1553 = vpow2.f32 %v1441_v60  ;;  %v1550_v26 = vpop.eup %1549  ;;  %v1039_v40 = vmul.f32 %v3021_v14, %v3492_v61  ;;  %v924_v36 = vadd.f32 %v920_v3, %v914_v16  ;;  %v940_v38 = vmul.f32 %v3010_v18, %v3350_v44 }
  0xcc   :  { %v861_v13 = vadd.f32 %v857_v34, %v851_v55  ;;  %1443 = vst.msk [vmem:[%s3877_s3 + $0x60] sm:$0xff] %vm306_vm0, %v1550_v26  ;;  %v1003_v53 = vadd.f32 %v999_v9, %v993_v15  ;;  %v1049_v60 = vmul.f32 %v3028_v19, %v3495_v2  ;;  %v3514_v33 = vstv %s3467_s22  ;;  %v4215_v34 = vld [vmem:[#allocation14_spill] sm:$0xff]  ;;  %v4218_v15 = vld [vmem:[#allocation23_spill] sm:$0xff]  ;;  %v4219_v19 = vld [vmem:[#allocation24_spill] sm:$0xff] }
  0xcd   :  { %v1552_v5 = vpop.eup %1551  ;;  %v950_v55 = vmul.f32 %v4215_v34, %v3353_v22  ;;  %v934_v16 = vadd.f32 %v930_v42, %v924_v36  ;;  %v960_v18 = vmul.f32 %v4216_v39, %v3385_v29  ;;  %v901_v26 = vmul.f32 %v4217_v25, %v3327_v54 }
  0xce   :  { %v881_v14 = vadd.f32 1.0, %v1552_v5  ;;  %v867_v3 = vadd.f32 %v3035_v47, %v861_v13  ;;  %v1013_v0 = vadd.f32 %v1009_v56, %v1003_v53  ;;  %v911_v9 = vmul.f32 %v4218_v15, %v3334_v8  ;;  %v4220_v5 = vld [vmem:[#allocation22_spill] sm:$0xff]  ;;  %v4221_v13 = vld [vmem:[#allocation21_spill] sm:$0xff] }
  0xcf   :  { %v921_v50 = vmul.f32 %v4219_v19, %v3337_v37  ;;  %v944_v34 = vadd.f32 %v940_v38, %v934_v16  ;;  %v970_v47 = vmul.f32 %v4220_v5, %v3408_v49  ;;  %v980_v36 = vmul.f32 %v4221_v13, %v3425_v31  ;;  %v4222_v53 = vld [vmem:[#allocation26_spill] sm:$0xff]  ;;  %v4223_v15 = vld [vmem:[#allocation25_spill] sm:$0xff]  ;;  %v4225_v16 = vld [vmem:[#allocation28_spill] sm:$0xff] }
  0xd0   :  { %1555 = vrcp.f32 %v881_v14  ;;  %v1442_v23 = vmul.f32 -1.442695, %v867_v3  ;;  %v1023_v42 = vadd.f32 %v1019_v58, %v1013_v0  ;;  %v915_v56 = vadd.f32 %v911_v9, %v901_v26  ;;  %v4224_v14 = vld [vmem:[#allocation12_spill] sm:$0xff]  ;;  %v4226_v0 = vld [vmem:[#allocation27_spill] sm:$0xff]  ;;  %v4227_v9 = vld [vmem:[#allocation29_spill] sm:$0xff] }
  0xd1   :  { %v931_v39 = vmul.f32 %v4222_v53, %v3347_v21  ;;  %v954_v25 = vadd.f32 %v950_v55, %v944_v34  ;;  %v990_v63 = vmul.f32 %v4223_v15, %v3436_v1  ;;  %v1000_v3 = vmul.f32 %v4224_v14, %v3442_v62  ;;  %v4229_v55 = vld [vmem:[#allocation31_spill] sm:$0xff] }
  0xd2   :  { %1557 = vpow2.f32 %v1442_v23  ;;  %v1033_v38 = vadd.f32 %v1029_v35, %v1023_v42  ;;  %v1010_v5 = vmul.f32 %v4225_v16, %v3474_v20  ;;  %v925_v58 = vadd.f32 %v921_v50, %v915_v56  ;;  %v4228_v23 = vld [vmem:[#allocation30_spill] sm:$0xff] }
  0xd3   :  { %v941_v13 = vmul.f32 %v4226_v0, %v3350_v44  ;;  %v964_v26 = vadd.f32 %v960_v18, %v954_v25  ;;  %v1020_v53 = vmul.f32 %v4227_v9, %v3478_v17  ;;  %v3545_v34 = vmul.f32 %v4228_v23, %v3483_v59  ;;  %v4230_v16 = vld [vmem:[#allocation34_spill] sm:$0xff]  ;;  %v4231_v25 = vld [vmem:[#allocation32_spill] sm:$0xff]  ;;  %v4232_v0 = vld [vmem:[#allocation35_spill] sm:$0xff] }
  0xd4   :  { %v3549_v15 = vmul.f32 %v4229_v55, %v3492_v61  ;;  %v1043_v42 = vadd.f32 %v1039_v40, %v1033_v38  ;;  %v3553_v50 = vmul.f32 %v4230_v16, %v3495_v2  ;;  %v935_v56 = vadd.f32 %v931_v39, %v925_v58  ;;  %v4237_v16 = vld [vmem:[#allocation40_spill] sm:$0xff] }
  0xd5   :  { %v1554_v35 = vpop.eup %1553  ;;  %v951_v18 = vmul.f32 %v4231_v25, %v3353_v22  ;;  %v974_v9 = vadd.f32 %v970_v47, %v964_v26  ;;  %v961_v23 = vmul.f32 %v3172_v32, %v3385_v29  ;;  %v902_v19 = vmul.f32 %v4232_v0, %v3327_v54  ;;  %v4233_v47 = vld [vmem:[#allocation33_spill] sm:$0xff] }
  0xd6   :  { %v882_v14 = vadd.f32 1.0, %v1554_v35  ;;  %v1053_v55 = vadd.f32 %v1049_v60, %v1043_v42  ;;  %v945_v6 = vadd.f32 %v941_v13, %v935_v56  ;;  %v912_v40 = vmul.f32 %v3193_v48, %v3334_v8  ;;  %v4236_v42 = vld [vmem:[#allocation39_spill] sm:$0xff] }
  0xd7   :  { %v922_v38 = vmul.f32 %v3201_v28, %v3337_v37  ;;  %v984_v39 = vadd.f32 %v980_v36, %v974_v9  ;;  %v971_v58 = vmul.f32 %v4233_v47, %v3408_v49  ;;  %v981_v26 = vmul.f32 %v3210_v11, %v3425_v31  ;;  %v4234_v37 = vld [vmem:[#allocation36_spill] sm:$0xff]  ;;  %v4235_v36 = vld [vmem:[#allocation37_spill] sm:$0xff] }
  0xd8   :  { %1559 = vrcp.f32 %v882_v14  ;;  %v1059_v54 = vadd.f32 %v3514_v33, %v1053_v55  ;;  %v955_v8 = vadd.f32 %v951_v18, %v945_v6  ;;  %v916_v60 = vadd.f32 %v912_v40, %v902_v19 }
  0xd9   :  { %v932_v13 = vmul.f32 %v4234_v37, %v3347_v21  ;;  %v994_v14 = vadd.f32 %v990_v63, %v984_v39  ;;  %v991_v9 = vmul.f32 %v4235_v36, %v3436_v1  ;;  %v1001_v56 = vmul.f32 %v4236_v42, %v3442_v62  ;;  %v4238_v63 = vld [vmem:[#allocation42_spill] sm:$0xff]  ;;  %v4239_v39 = vld [vmem:[#allocation43_spill] sm:$0xff] }
  0xda   :  { %v1556_v35 = vpop.eup %1555  ;;  %v1011_v11 = vmul.f32 %v4237_v16, %v3474_v20  ;;  %v1464_v6 = vmul.f32 -1.442695, %v1059_v54  ;;  %v965_v19 = vadd.f32 %v961_v23, %v955_v8  ;;  %v926_v21 = vadd.f32 %v922_v38, %v916_v60  ;;  %v4240_v42 = vld [vmem:[#allocation50_spill] sm:$0xff] }
  0xdb   :  { %1444 = vst.msk [vmem:[%s3877_s3 + $0x68] sm:$0x3f] %vm308_vm1, %v1556_v35  ;;  %v942_v55 = vmul.f32 %v4238_v63, %v3350_v44  ;;  %v1004_v40 = vadd.f32 %v1000_v3, %v994_v14  ;;  %v1021_v16 = vmul.f32 %v4239_v39, %v3478_v17  ;;  %v1031_v36 = vmul.f32 %v4240_v42, %v3483_v59  ;;  %v4241_v3 = vld [vmem:[#allocation51_spill] sm:$0xff] }
  0xdc   :  { %v1558_v18 = vpop.eup %1557  ;;  %v952_v37 = vmul.f32 %v3297_v7, %v3353_v22  ;;  %1561 = vpow2.f32 %v1464_v6  ;;  %v975_v38 = vadd.f32 %v971_v58, %v965_v19  ;;  %v936_v44 = vadd.f32 %v932_v13, %v926_v21 }
  0xdd   :  { %v883_v23 = vadd.f32 1.0, %v1558_v18  ;;  %v1014_v54 = vadd.f32 %v1010_v5, %v1004_v40  ;;  %v3604_v8 = vmul.f32 %v4241_v3, %v3492_v61  ;;  %v962_v60 = vmul.f32 %v3307_v10, %v3385_v29 }
  0xde   :  { %v972_v35 = vmul.f32 %v3314_v27, %v3408_v49  ;;  %v985_v22 = vadd.f32 %v981_v26, %v975_v38  ;;  %v946_v14 = vadd.f32 %v942_v55, %v936_v44  ;;  %v3613_v58 = vstv %s3565_s12  ;;  %v4242_v26 = vld [vmem:[#allocation41_spill] sm:$0xff] }
  0xdf   :  { %1563 = vrcp.f32 %v883_v23  ;;  %v1024_v5 = vadd.f32 %v1020_v53, %v1014_v54  ;;  %v1094_v13 = vmul.f32 %v2786_v57, %v3613_v58  ;;  %v3618_v6 = vstv %s3571_s13  ;;  %v4243_v57 = vld [vmem:[#allocation52_spill] sm:$0xff] }
  0xe0   :  { %v3621_v19 = vstv %s3573_s9  ;;  %v995_v29 = vadd.f32 %v991_v9, %v985_v22  ;;  %v956_v49 = vadd.f32 %v952_v37, %v946_v14  ;;  %v1104_v21 = vmul.f32 %v2807_v52, %v3618_v6 }
  0xe1   :  { %v1114_v55 = vmul.f32 %v4242_v26, %v3621_v19  ;;  %v1034_v53 = vadd.f32 %v3545_v34, %v1024_v5  ;;  %v982_v40 = vmul.f32 %v4243_v57, %v3425_v31  ;;  %v3633_v23 = vstv %s3584_s20  ;;  %v4244_v5 = vld [vmem:[#allocation45_spill] sm:$0xff] }
  0xe2   :  { %v1560_v18 = vpop.eup %1559  ;;  %v3636_v38 = vstv %s3586_s17  ;;  %v1005_v52 = vadd.f32 %v1001_v56, %v995_v29  ;;  %v966_v37 = vadd.f32 %v962_v60, %v956_v49  ;;  %v1108_v34 = vadd.f32 %v1104_v21, %v1094_v13 }
  0xe3   :  { %1445 = vst.msk [vmem:[%s3877_s3 + $0x70] sm:$0xff] %vm306_vm0, %v1560_v18  ;;  %v1124_v31 = vmul.f32 %v2823_v46, %v3633_v23  ;;  %v1044_v9 = vadd.f32 %v3549_v15, %v1034_v53  ;;  %v1051_v44 = vmul.f32 %v3369_v30, %v3495_v2  ;;  %v992_v54 = vmul.f32 %v3376_v24, %v3436_v1 }
  0xe4   :  { %v3654_v22 = vstv %s3600_s28  ;;  %v1015_v14 = vadd.f32 %v1011_v11, %v1005_v52  ;;  %v976_v56 = vadd.f32 %v972_v35, %v966_v37  ;;  %v1118_v60 = vadd.f32 %v1114_v55, %v1108_v34  ;;  %v4245_v35 = vld [vmem:[#allocation44_spill] sm:$0xff] }
  0xe5   :  { %v1134_v13 = vmul.f32 %v4244_v5, %v3636_v38  ;;  %v1054_v46 = vadd.f32 %v3553_v50, %v1044_v9  ;;  %v1002_v15 = vmul.f32 %v3390_v41, %v3442_v62  ;;  %v1012_v29 = vmul.f32 %v3397_v51, %v3474_v20 }
  0xe6   :  { %v3666_v1 = vstv %s3610_s29  ;;  %v1562_v49 = vpop.eup %1561  ;;  %v1025_v21 = vadd.f32 %v1021_v16, %v1015_v14  ;;  %v986_v26 = vadd.f32 %v982_v40, %v976_v56  ;;  %v1128_v11 = vadd.f32 %v1124_v31, %v1118_v60 }
  0xe7   :  { %v1144_v55 = vmul.f32 %v4245_v35, %v3654_v22  ;;  %v1075_v18 = vadd.f32 1.0, %v1562_v49  ;;  %v1060_v50 = vadd.f32 %v3514_v33, %v1054_v46  ;;  %v1022_v62 = vmul.f32 %v3415_v43, %v3478_v17  ;;  %v4246_v46 = vld [vmem:[#allocation46_spill] sm:$0xff]  ;;  %v4250_v35 = vld [vmem:[#allocation48_spill] sm:$0xff] }
  0xe8   :  { %v3674_v53 = vstv %s3623_s30  ;;  %v1035_v52 = vadd.f32 %v1031_v36, %v1025_v21  ;;  %v996_v16 = vadd.f32 %v992_v54, %v986_v26  ;;  %v1138_v40 = vadd.f32 %v1134_v13, %v1128_v11  ;;  %v4248_v21 = vld [vmem:[#allocation54_spill] sm:$0xff]  ;;  %v4249_v26 = vld [vmem:[#allocation47_spill] sm:$0xff] }
  0xe9   :  { %v1564_v20 = vpop.eup %1563  ;;  %v1154_v37 = vmul.f32 %v2879_v12, %v3666_v1  ;;  %1565 = vrcp.f32 %v1075_v18  ;;  %v1465_v17 = vmul.f32 -1.442695, %v1060_v50  ;;  %v3687_v34 = vstv %s3638_s18  ;;  %v4251_v50 = vld [vmem:[#allocation49_spill] sm:$0xff] }
  0xea   :  { %1446 = vst.msk [vmem:[%s3877_s3 + $0x78] sm:$0x3f] %vm308_vm1, %v1564_v20  ;;  %v3690_v31 = vstv %s3640_s4  ;;  %v1045_v36 = vadd.f32 %v3604_v8, %v1035_v52  ;;  %v1006_v9 = vadd.f32 %v1002_v15, %v996_v16  ;;  %v1148_v54 = vadd.f32 %v1144_v55, %v1138_v40  ;;  %v4247_v8 = vld [vmem:[#allocation53_spill] sm:$0xff]  ;;  %v4252_v20 = vld [vmem:[#allocation11_spill] sm:$0xff] }
  0xeb   :  { %v1164_v12 = vmul.f32 %v2910_v4, %v3674_v53  ;;  %1567 = vpow2.f32 %v1465_v17  ;;  %v1032_v14 = vmul.f32 %v3447_v45, %v3483_v59  ;;  %v3698_v56 = vstv %s3656_s21  ;;  %v4253_v52 = vld [vmem:[#allocation13_spill] sm:$0xff] }
  0xec   :  { %v1055_v60 = vadd.f32 %v1051_v44, %v1045_v36  ;;  %v1016_v5 = vadd.f32 %v1012_v29, %v1006_v9  ;;  %v1158_v13 = vadd.f32 %v1154_v37, %v1148_v54  ;;  %v1174_v49 = vmul.f32 %v4246_v46, %v3687_v34  ;;  %v4255_v46 = vld [vmem:[#allocation16_spill] sm:$0xff] }
  0xed   :  { %v1042_v15 = vmul.f32 %v4247_v8, %v3492_v61  ;;  %v1052_v4 = vmul.f32 %v4248_v21, %v3495_v2  ;;  %v1184_v11 = vmul.f32 %v4249_v26, %v3690_v31  ;;  %v1194_v55 = vmul.f32 %v4250_v35, %v3698_v56 }
  0xee   :  { %v1061_v59 = vadd.f32 %v3514_v33, %v1055_v60  ;;  %v1026_v44 = vadd.f32 %v1022_v62, %v1016_v5  ;;  %v1168_v29 = vadd.f32 %v1164_v12, %v1158_v13  ;;  %v3714_v18 = vstv %s3676_s0  ;;  %v4254_v12 = vld [vmem:[#allocation15_spill] sm:$0xff] }
  0xef   :  { %v1095_v61 = vmul.f32 %v4251_v50, %v3613_v58  ;;  %v1105_v2 = vmul.f32 %v4252_v20, %v3618_v6  ;;  %v1115_v16 = vmul.f32 %v4253_v52, %v3621_v19  ;;  %v3723_v36 = vstv %s3680_s1  ;;  %v4258_v50 = vld [vmem:[#allocation8_spill] sm:$0xff]  ;;  %v4259_v20 = vld [vmem:[#allocation10_spill] sm:$0xff] }
  0xf0   :  { %v1466_v40 = vmul.f32 -1.442695, %v1061_v59  ;;  %v1036_v37 = vadd.f32 %v1032_v14, %v1026_v44  ;;  %v1178_v17 = vadd.f32 %v1174_v49, %v1168_v29  ;;  %v3725_v62 = vstv %s1485_s25  ;;  %v4256_v14 = vld [vmem:[#allocation17_spill] sm:$0xff] }
  0xf1   :  { %v3727_v9 = vstv %s1486_s26  ;;  %v1109_v54 = vadd.f32 %v1105_v2, %v1095_v61  ;;  %v1125_v60 = vmul.f32 %v4254_v12, %v3633_v23  ;;  %v1204_v26 = vmul.f32 %v4255_v46, %v3714_v18  ;;  %v4257_v29 = vld [vmem:[#allocation9_spill] sm:$0xff] }
  0xf2   :  { %1569 = vpow2.f32 %v1466_v40  ;;  %v1046_v5 = vadd.f32 %v1042_v15, %v1036_v37  ;;  %v1188_v13 = vadd.f32 %v1184_v11, %v1178_v17  ;;  %v1214_v49 = vmul.f32 %v4256_v14, %v3723_v36  ;;  %v4260_v37 = vld [vmem:[#allocation14_spill] sm:$0xff]  ;;  %v4263_v14 = vld [vmem:[#allocation20_spill] sm:$0xff] }
  0xf3   :  { %v1566_v59 = vpop.eup %1565  ;;  %v1119_v44 = vadd.f32 %v1115_v16, %v1109_v54  ;;  %v1135_v35 = vmul.f32 %v4257_v29, %v3636_v38  ;;  %v1224_v61 = vmul.f32 %v4258_v50, %v3725_v62  ;;  %v1234_v2 = vmul.f32 %v4259_v20, %v3727_v9  ;;  %v4261_v54 = vld [vmem:[#allocation19_spill] sm:$0xff]  ;;  %v4265_v50 = vld [vmem:[#allocation26_spill] sm:$0xff] }
  0xf4   :  { %1468 = vst.msk [vmem:[%s3877_s3 + $0x80] sm:$0xff] %vm306_vm0, %v1566_v59  ;;  %v1056_v15 = vadd.f32 %v1052_v4, %v1046_v5  ;;  %v1198_v11 = vadd.f32 %v1194_v55, %v1188_v13  ;;  %v3748_v40 = vstv %s3708_s10  ;;  %v1145_v17 = vmul.f32 %v4260_v37, %v3654_v22  ;;  %v4262_v5 = vld [vmem:[#allocation23_spill] sm:$0xff] }
  0xf5   :  { %v1568_v52 = vpop.eup %1567  ;;  %v1129_v16 = vadd.f32 %v1125_v60, %v1119_v44  ;;  %v1096_v12 = vmul.f32 %v4261_v54, %v3613_v58  ;;  %v1106_v13 = vmul.f32 %v4262_v5, %v3618_v6  ;;  %v1155_v29 = vmul.f32 %v4263_v14, %v3666_v1  ;;  %v4264_v60 = vld [vmem:[#allocation24_spill] sm:$0xff]  ;;  %v4268_v14 = vld [vmem:[#allocation27_spill] sm:$0xff] }
  0xf6   :  { %v1076_v46 = vadd.f32 1.0, %v1568_v52  ;;  %v1062_v4 = vadd.f32 %v3514_v33, %v1056_v15  ;;  %v1208_v55 = vadd.f32 %v1204_v26, %v1198_v11  ;;  %v1116_v44 = vmul.f32 %v4264_v60, %v3621_v19  ;;  %v4266_v33 = vld [vmem:[#allocation18_spill] sm:$0xff] }
  0xf7   :  { %v1139_v59 = vadd.f32 %v1135_v35, %v1129_v16  ;;  %v1126_v20 = vmul.f32 %v4265_v50, %v3633_v23  ;;  %v1110_v54 = vadd.f32 %v1106_v13, %v1096_v12  ;;  %v1244_v26 = vmul.f32 %v4266_v33, %v3748_v40  ;;  %v4267_v11 = vld [vmem:[#allocation22_spill] sm:$0xff] }
  0xf8   :  { %1571 = vrcp.f32 %v1076_v46  ;;  %v1467_v37 = vmul.f32 -1.442695, %v1062_v4  ;;  %v1218_v52 = vadd.f32 %v1214_v49, %v1208_v55  ;;  %v1165_v35 = vmul.f32 %v4267_v11, %v3674_v53  ;;  %v4269_v46 = vld [vmem:[#allocation21_spill] sm:$0xff] }
  0xf9   :  { %v1149_v15 = vadd.f32 %v1145_v17, %v1139_v59  ;;  %v1120_v5 = vadd.f32 %v1116_v44, %v1110_v54  ;;  %v1136_v60 = vmul.f32 %v4268_v14, %v3636_v38  ;;  %v3770_v21 = vstv %s3735_s11  ;;  %v4270_v55 = vld [vmem:[#allocation25_spill] sm:$0xff] }
  0xfa   :  { %1573 = vpow2.f32 %v1467_v37  ;;  %v1228_v16 = vadd.f32 %v1224_v61, %v1218_v52  ;;  %v1175_v49 = vmul.f32 %v4269_v46, %v3687_v34  ;;  %v1185_v17 = vmul.f32 %v4270_v55, %v3690_v31  ;;  %v4271_v37 = vld [vmem:[#allocation12_spill] sm:$0xff] }
  0xfb   :  { %v1159_v50 = vadd.f32 %v1155_v29, %v1149_v15  ;;  %v1130_v13 = vadd.f32 %v1126_v20, %v1120_v5  ;;  %v1146_v59 = vmul.f32 %v4231_v25, %v3654_v22  ;;  %v1195_v52 = vmul.f32 %v4271_v37, %v3698_v56 }
  0xfc   :  { %v1570_v12 = vpop.eup %1569  ;;  %v1238_v4 = vadd.f32 %v1234_v2, %v1228_v16  ;;  %v1156_v29 = vmul.f32 %v3172_v32, %v3666_v1  ;;  %v1097_v2 = vmul.f32 %v4232_v0, %v3613_v58  ;;  %v1107_v15 = vmul.f32 %v3193_v48, %v3618_v6  ;;  %v4273_v0 = vld [vmem:[#allocation28_spill] sm:$0xff]  ;;  %v4274_v48 = vld [vmem:[#allocation38_spill] sm:$0xff] }
  0xfd   :  { %v1077_v61 = vadd.f32 1.0, %v1570_v12  ;;  %v1169_v44 = vadd.f32 %v1165_v35, %v1159_v50  ;;  %v1140_v33 = vadd.f32 %v1136_v60, %v1130_v13  ;;  %v1166_v25 = vmul.f32 %v4233_v47, %v3674_v53  ;;  %v4276_v12 = vld [vmem:[#allocation37_spill] sm:$0xff] }
  0xfe   :  { %v1248_v54 = vadd.f32 %v1244_v26, %v1238_v4  ;;  %v1117_v11 = vmul.f32 %v3201_v28, %v3621_v19  ;;  %v1111_v32 = vadd.f32 %v1107_v15, %v1097_v2  ;;  %v4272_v26 = vld [vmem:[#allocation36_spill] sm:$0xff]  ;;  %v1205_v58 = vmul.f32 %v4273_v0, %v3714_v18  ;;  %v4279_v15 = vld [vmem:[#allocation31_spill] sm:$0xff] }
  0xff   :  { %1575 = vrcp.f32 %v1077_v61  ;;  %v1179_v20 = vadd.f32 %v1175_v49, %v1169_v44  ;;  %v1150_v16 = vadd.f32 %v1146_v59, %v1140_v33  ;;  %v1127_v5 = vmul.f32 %v4272_v26, %v3633_v23  ;;  %v4275_v23 = vld [vmem:[#allocation29_spill] sm:$0xff]  ;;  %v4277_v61 = vld [vmem:[#allocation30_spill] sm:$0xff] }
 0x100   :  { %v1254_v35 = vadd.f32 %v3770_v21, %v1248_v54  ;;  %v1176_v6 = vmul.f32 %v4274_v48, %v3687_v34  ;;  %v1121_v46 = vadd.f32 %v1117_v11, %v1111_v32  ;;  %v1137_v28 = vmul.f32 %v4238_v63, %v3636_v38  ;;  %v4281_v26 = vld [vmem:[#allocation34_spill] sm:$0xff] }
 0x101   :  { %v1189_v14 = vadd.f32 %v1185_v17, %v1179_v20  ;;  %v1160_v47 = vadd.f32 %v1156_v29, %v1150_v16  ;;  %v1215_v49 = vmul.f32 %v4275_v23, %v3723_v36  ;;  %v1186_v4 = vmul.f32 %v4276_v12, %v3690_v31 }
 0x102   :  { %v1572_v60 = vpop.eup %1571  ;;  %v1489_v50 = vmul.f32 -1.442695, %v1254_v35  ;;  %v1131_v13 = vadd.f32 %v1127_v5, %v1121_v46  ;;  %v1147_v59 = vmul.f32 %v3297_v7, %v3654_v22  ;;  %v1225_v44 = vmul.f32 %v4277_v61, %v3725_v62  ;;  %v4280_v7 = vld [vmem:[#allocation40_spill] sm:$0xff] }
 0x103   :  { %1469 = vst.msk [vmem:[%s3877_s3 + $0x88] sm:$0x3f] %vm308_vm1, %v1572_v60  ;;  %v1199_v19 = vadd.f32 %v1195_v52, %v1189_v14  ;;  %v1170_v17 = vadd.f32 %v1166_v25, %v1160_v47  ;;  %v4278_v52 = vld [vmem:[#allocation39_spill] sm:$0xff]  ;;  %v1157_v33 = vmul.f32 %v3307_v10, %v3666_v1  ;;  %v1235_v20 = vmul.f32 %v4279_v15, %v3727_v9 }
 0x104   :  { %v1574_v55 = vpop.eup %1573  ;;  %1577 = vpow2.f32 %v1489_v50  ;;  %v1196_v29 = vmul.f32 %v4278_v52, %v3698_v56  ;;  %v1141_v54 = vadd.f32 %v1137_v28, %v1131_v13  ;;  %v1206_v22 = vmul.f32 %v4280_v7, %v3714_v18 }
 0x105   :  { %v1078_v63 = vadd.f32 1.0, %v1574_v55  ;;  %v1209_v38 = vadd.f32 %v1205_v58, %v1199_v19  ;;  %v1180_v37 = vadd.f32 %v1176_v6, %v1170_v17  ;;  %v1167_v35 = vmul.f32 %v3314_v27, %v3674_v53 }
 0x106   :  { %v1151_v11 = vadd.f32 %v1147_v59, %v1141_v54  ;;  %v1245_v5 = vmul.f32 %v4281_v26, %v3748_v40  ;;  %v1216_v1 = vmul.f32 %v4239_v39, %v3723_v36  ;;  %v1177_v0 = vmul.f32 %v4243_v57, %v3687_v34  ;;  %v4282_v59 = vld [vmem:[#allocation54_spill] sm:$0xff] }
 0x107   :  { %1579 = vrcp.f32 %v1078_v63  ;;  %v1219_v2 = vadd.f32 %v1215_v49, %v1209_v38  ;;  %v1190_v25 = vadd.f32 %v1186_v4, %v1180_v37  ;;  %v1226_v53 = vmul.f32 %v4240_v42, %v3725_v62 }
 0x108   :  { %v1161_v14 = vadd.f32 %v1157_v33, %v1151_v11  ;;  %v1187_v6 = vmul.f32 %v3376_v24, %v3690_v31  ;;  %v1236_v46 = vmul.f32 %v4241_v3, %v3727_v9  ;;  %v1197_v28 = vmul.f32 %v3390_v41, %v3698_v56 }
 0x109   :  { %v1576_v16 = vpop.eup %1575  ;;  %v1229_v32 = vadd.f32 %v1225_v44, %v1219_v2  ;;  %v1200_v10 = vadd.f32 %v1196_v29, %v1190_v25  ;;  %v1246_v42 = vmul.f32 %v3369_v30, %v3748_v40  ;;  %v1207_v24 = vmul.f32 %v3397_v51, %v3714_v18 }
 0x10a   :  { %1470 = vst.msk [vmem:[%s3877_s3 + $0x90] sm:$0xff] %vm306_vm0, %v1576_v16  ;;  %v1171_v48 = vadd.f32 %v1167_v35, %v1161_v14  ;;  %v1217_v56 = vmul.f32 %v3415_v43, %v3723_v36  ;;  %v1227_v4 = vmul.f32 %v3447_v45, %v3725_v62  ;;  %v1237_v55 = vmul.f32 %v4247_v8, %v3727_v9 }
 0x10b   :  { %v1239_v58 = vadd.f32 %v1235_v20, %v1229_v32  ;;  %v1210_v27 = vadd.f32 %v1206_v22, %v1200_v10  ;;  %v1247_v63 = vmul.f32 %v4282_v59, %v3748_v40 }
 0x10c   :  { %v1181_v39 = vadd.f32 %v1177_v0, %v1171_v48 }
 0x10d   :  { %v1249_v60 = vadd.f32 %v1245_v5, %v1239_v58  ;;  %v1220_v47 = vadd.f32 %v1216_v1, %v1210_v27 }
 0x10e   :  { %v1578_v50 = vpop.eup %1577  ;;  %v1191_v23 = vadd.f32 %v1187_v6, %v1181_v39 }
 0x10f   :  { %v1270_v57 = vadd.f32 1.0, %v1578_v50  ;;  %v1255_v34 = vadd.f32 %v3770_v21, %v1249_v60  ;;  %v1230_v19 = vadd.f32 %v1226_v53, %v1220_v47 }
 0x110   :  { %v1201_v3 = vadd.f32 %v1197_v28, %v1191_v23 }
 0x111   :  { %v1580_v31 = vpop.eup %1579  ;;  %1581 = vrcp.f32 %v1270_v57  ;;  %v1490_v49 = vmul.f32 -1.442695, %v1255_v34  ;;  %v1240_v41 = vadd.f32 %v1236_v46, %v1230_v19 }
 0x112   :  { %1471 = vst.msk [vmem:[%s3877_s3 + $0x98] sm:$0x3f] %vm308_vm1, %v1580_v31  ;;  %v1211_v30 = vadd.f32 %v1207_v24, %v1201_v3 }
 0x113   :  { %1583 = vpow2.f32 %v1490_v49  ;;  %v1250_v12 = vadd.f32 %v1246_v42, %v1240_v41 }
 0x114   :  { %v1221_v18 = vadd.f32 %v1217_v56, %v1211_v30 }
 0x115   :  { %v1256_v51 = vadd.f32 %v3770_v21, %v1250_v12 }
 0x116   :  { %v1231_v13 = vadd.f32 %v1227_v4, %v1221_v18 }
 0x117   :  { %v1491_v17 = vmul.f32 -1.442695, %v1256_v51 }
 0x118   :  { %v1241_v38 = vadd.f32 %v1237_v55, %v1231_v13 }
 0x119   :  { %1585 = vpow2.f32 %v1491_v17 }
 0x11a   :  { %v1251_v45 = vadd.f32 %v1247_v63, %v1241_v38 }
 0x11b   :  { %v1582_v43 = vpop.eup %1581 }
 0x11c   :  { %1493 = vst.msk [vmem:[%s3877_s3 + $0xa0] sm:$0xff] %vm306_vm0, %v1582_v43  ;;  %v1257_v61 = vadd.f32 %v3770_v21, %v1251_v45 }
 0x11d   :  { %v1584_v36 = vpop.eup %1583 }
 0x11e   :  { %v1271_v62 = vadd.f32 1.0, %v1584_v36  ;;  %v1492_v8 = vmul.f32 -1.442695, %v1257_v61 }
 0x120   :  { %1587 = vrcp.f32 %v1271_v62 }
 0x121   :  { %1589 = vpow2.f32 %v1492_v8 }
 0x123   :  { %v1586_v9 = vpop.eup %1585 }
 0x124   :  { %v1272_v44 = vadd.f32 1.0, %v1586_v9 }
 0x126   :  { %1591 = vrcp.f32 %v1272_v44 }
 0x12a   :  { %v1588_v40 = vpop.eup %1587 }
 0x12b   :  { %1494 = vst.msk [vmem:[%s3877_s3 + $0xa8] sm:$0x3f] %vm308_vm1, %v1588_v40  ;;  %v1590_v37 = vpop.eup %1589 }
 0x12c   :  { %v1273_v52 = vadd.f32 1.0, %v1590_v37 }
 0x12e   :  { %1593 = vrcp.f32 %v1273_v52 }
 0x130   :  { %v1592_v29 = vpop.eup %1591 }
 0x131   :  { %1495 = vst.msk [vmem:[%s3877_s3 + $0xb0] sm:$0xff] %vm306_vm0, %v1592_v29 }
 0x138   :  { %v1594_v21 = vpop.eup %1593 }
 0x139   :  { %1496 = vst.msk [vmem:[%s3877_s3 + $0xb8] sm:$0x3f] %vm308_vm1, %v1594_v21 }
 0x13a   :  { %1291 = vsyncpa [#allocation3], 1 }
 0x13b   :  { %1292 = vsyncpa [#allocation4], 1 }

// kernel: part8_cd_forward.3
= control target key start
LH: loop header
LB: loop body
LE: loop exit
PB: predicated region body
PF: predicated region fallthrough
CT: control target
= control target key end

     0   :  { %vm275_vm0 = vcmask 1041408   ;;  %s15702_s16 = smov 64   ;;  %vm2452_vm1 = vcmask 523264   ;;  %s20108_s0 = inlined_call_operand.vmem [shape: f32[9,2,256], index: 0, kind: input, shape index: {}]   ;;  %s20109_s1 = inlined_call_operand.vmem [shape: bf16[9,256,256], index: 1, kind: input, shape index: {}]   ;;  %s20110_s2 = inlined_call_operand.vmem [shape: bf16[16,256,256], index: 2, kind: input, shape index: {}]   ;;  %s20111_s3 = inlined_call_operand.vmem [shape: bf16[16,256,64], index: 3, kind: input, shape index: {}]   ;;  %s20112_s4 = inlined_call_operand.vmem [shape: bf16[4,256,64], index: 4, kind: input, shape index: {}]   ;;  %s20113_s5 = inlined_call_operand.vmem [shape: bf16[256,10], index: 5, kind: input, shape index: {}]   ;;  %s20114_s6 = inlined_call_operand.vmem [shape: f32[1,10], index: 6, kind: input, shape index: {}]   ;;  %s20115_s7 = inlined_call_operand.hbm [shape: f32[2,10], index: 7, kind: output, shape index: {}]  }
   0x1   :  { %v13858_v0 = vld [vmem:[%s20109_s1 + $0x4] ss:$8 sps:$4 sm:$0xff]   ;;  %v13862_v2 = vld [vmem:[%s20109_s1] ss:$8 sps:$4 sm:$0xff]   ;;  %v13864_v4 = vld [vmem:[%s20109_s1 + $0x14] ss:$8 sps:$4 sm:$0xff]  }
   0x2   :  { %v13860_v1 = vld [vmem:[%s20109_s1 + $0x104] ss:$8 sps:$4 sm:$0xff]   ;;  %234 = vmatprep.subr.bf16.mxu0 %v13858_v0  ;;  %v13863_v3 = vld [vmem:[%s20109_s1 + $0x100] ss:$8 sps:$4 sm:$0xff]   ;;  %v13866_v5 = vld [vmem:[%s20109_s1 + $0x114] ss:$8 sps:$4 sm:$0xff]  }
   0x3   :  { %504 = vmatprep.subr.bf16.mxu1 %v13860_v1  ;;  %235 = vmatpush1.bf16.msra.mxu0 %v13862_v2  ;;  %v13868_v6 = vld [vmem:[%s20109_s1 + $0x10] ss:$8 sps:$4 sm:$0xff]   ;;  %v13870_v8 = vld [vmem:[%s20109_s1 + $0x24] ss:$8 sps:$4 sm:$0xff]   ;;  %v13874_v10 = vld [vmem:[%s20109_s1 + $0x20] ss:$8 sps:$4 sm:$0xff]  }
   0x4   :  { %505 = vmatpush1.bf16.msra.mxu1 %v13863_v3  ;;  %236 = vmatprep.subr.bf16.mxu0 %v13864_v4  ;;  %v13869_v7 = vld [vmem:[%s20109_s1 + $0x110] ss:$8 sps:$4 sm:$0xff]   ;;  %v13872_v9 = vld [vmem:[%s20109_s1 + $0x124] ss:$8 sps:$4 sm:$0xff]   ;;  %v13875_v11 = vld [vmem:[%s20109_s1 + $0x120] ss:$8 sps:$4 sm:$0xff]  }
   0x5   :  { %506 = vmatprep.subr.bf16.mxu1 %v13866_v5  ;;  %v13876_v12 = vld [vmem:[%s20109_s1 + $0x34] ss:$8 sps:$4 sm:$0xff]   ;;  %v13880_v14 = vld [vmem:[%s20109_s1 + $0x30] ss:$8 sps:$4 sm:$0xff]   ;;  %v13882_v16 = vld [vmem:[%s20109_s1 + $0x44] ss:$8 sps:$4 sm:$0xff]  }
   0x6   :  { %v13878_v13 = vld [vmem:[%s20109_s1 + $0x134] ss:$8 sps:$4 sm:$0xff]   ;;  %v13881_v15 = vld [vmem:[%s20109_s1 + $0x130] ss:$8 sps:$4 sm:$0xff]   ;;  %v13884_v17 = vld [vmem:[%s20109_s1 + $0x144] ss:$8 sps:$4 sm:$0xff]  }
   0x7   :  { %237 = vmatpush1.bf16.msra.mxu0 %v13868_v6  ;;  %v13886_v18 = vld [vmem:[%s20109_s1 + $0x40] ss:$8 sps:$4 sm:$0xff]   ;;  %v13888_v20 = vld [vmem:[%s20109_s1 + $0x54] ss:$8 sps:$4 sm:$0xff]   ;;  %v13892_v22 = vld [vmem:[%s20109_s1 + $0x50] ss:$8 sps:$4 sm:$0xff]  }
   0x8   :  { %507 = vmatpush1.bf16.msra.mxu1 %v13869_v7  ;;  %238 = vmatprep.subr.bf16.mxu0 %v13870_v8  ;;  %v13887_v19 = vld [vmem:[%s20109_s1 + $0x140] ss:$8 sps:$4 sm:$0xff]   ;;  %v13890_v21 = vld [vmem:[%s20109_s1 + $0x154] ss:$8 sps:$4 sm:$0xff]   ;;  %v13893_v23 = vld [vmem:[%s20109_s1 + $0x150] ss:$8 sps:$4 sm:$0xff]  }
   0x9   :  { %508 = vmatprep.subr.bf16.mxu1 %v13872_v9  ;;  %v13894_v24 = vld [vmem:[%s20109_s1 + $0x64] ss:$8 sps:$4 sm:$0xff]   ;;  %v13898_v26 = vld [vmem:[%s20109_s1 + $0x60] ss:$8 sps:$4 sm:$0xff]   ;;  %v13900_v28 = vld [vmem:[%s20109_s1 + $0x74] ss:$8 sps:$4 sm:$0xff]  }
   0xa   :  { %v13896_v25 = vld [vmem:[%s20109_s1 + $0x164] ss:$8 sps:$4 sm:$0xff]   ;;  %v13899_v27 = vld [vmem:[%s20109_s1 + $0x160] ss:$8 sps:$4 sm:$0xff]   ;;  %v13902_v29 = vld [vmem:[%s20109_s1 + $0x174] ss:$8 sps:$4 sm:$0xff]  }
   0xb   :  { %239 = vmatpush1.bf16.msra.mxu0 %v13874_v10  ;;  %v13904_v30 = vld [vmem:[%s20109_s1 + $0x70] ss:$8 sps:$4 sm:$0xff]   ;;  %v13906_v32 = vld [vmem:[%s20109_s1 + $0x84] ss:$8 sps:$4 sm:$0xff]   ;;  %v13910_v34 = vld [vmem:[%s20109_s1 + $0x80] ss:$8 sps:$4 sm:$0xff]  }
   0xc   :  { %509 = vmatpush1.bf16.msra.mxu1 %v13875_v11  ;;  %240 = vmatprep.subr.bf16.mxu0 %v13876_v12  ;;  %v13905_v31 = vld [vmem:[%s20109_s1 + $0x170] ss:$8 sps:$4 sm:$0xff]   ;;  %v13908_v33 = vld [vmem:[%s20109_s1 + $0x184] ss:$8 sps:$4 sm:$0xff]   ;;  %v13911_v35 = vld [vmem:[%s20109_s1 + $0x180] ss:$8 sps:$4 sm:$0xff]  }
   0xd   :  { %510 = vmatprep.subr.bf16.mxu1 %v13878_v13  ;;  %v13912_v36 = vld [vmem:[%s20109_s1 + $0x94] ss:$8 sps:$4 sm:$0xff]   ;;  %v13916_v38 = vld [vmem:[%s20109_s1 + $0x90] ss:$8 sps:$4 sm:$0xff]   ;;  %v13918_v40 = vld [vmem:[%s20109_s1 + $0xa4] ss:$8 sps:$4 sm:$0xff]  }
   0xe   :  { %v13914_v37 = vld [vmem:[%s20109_s1 + $0x194] ss:$8 sps:$4 sm:$0xff]   ;;  %v13917_v39 = vld [vmem:[%s20109_s1 + $0x190] ss:$8 sps:$4 sm:$0xff]   ;;  %v13920_v41 = vld [vmem:[%s20109_s1 + $0x1a4] ss:$8 sps:$4 sm:$0xff]  }
   0xf   :  { %241 = vmatpush1.bf16.msra.mxu0 %v13880_v14  ;;  %v13922_v42 = vld [vmem:[%s20109_s1 + $0xa0] ss:$8 sps:$4 sm:$0xff]   ;;  %v13924_v44 = vld [vmem:[%s20109_s1 + $0xb4] ss:$8 sps:$4 sm:$0xff]   ;;  %v13928_v46 = vld [vmem:[%s20109_s1 + $0xb0] ss:$8 sps:$4 sm:$0xff]  }
  0x10   :  { %511 = vmatpush1.bf16.msra.mxu1 %v13881_v15  ;;  %242 = vmatprep.subr.bf16.mxu0 %v13882_v16  ;;  %v13923_v43 = vld [vmem:[%s20109_s1 + $0x1a0] ss:$8 sps:$4 sm:$0xff]   ;;  %v13926_v45 = vld [vmem:[%s20109_s1 + $0x1b4] ss:$8 sps:$4 sm:$0xff]   ;;  %v13929_v48 = vld [vmem:[%s20109_s1 + $0x1b0] ss:$8 sps:$4 sm:$0xff]  }
  0x11   :  { %512 = vmatprep.subr.bf16.mxu1 %v13884_v17  ;;  %v10686_v47 = vld.sshfl [vmem:[%s20108_s0] sm:$0x33 pattern:$0x76325410]  ;;  %v13930_v51 = vld [vmem:[%s20109_s1 + $0xc4] ss:$8 sps:$4 sm:$0xff]   ;;  %vm16986_vm2 = vmpackc.low %vm2452_vm1, %vm2452_vm1 }
  0x12   :  { %v69_v49 = vcombine.high %v10686_v47, %v10686_v47  ;;  %v10754_v50 = vld.sshfl [vmem:[%s20108_s0 + $0x4] sm:$0x33 pattern:$0x76325410]  ;;  %v13934_v55 = vld [vmem:[%s20109_s1 + $0xc0] ss:$8 sps:$4 sm:$0xff]   ;;  %v72_v8 = vpack.c.bf16 %v10686_v47, %v10686_v47 }
  0x13   :  { %243 = vmatpush1.bf16.msra.mxu0 %v13886_v18  ;;  %v13932_v52 = vld [vmem:[%s20109_s1 + $0x1c4] ss:$8 sps:$4 sm:$0xff]   ;;  %v339_v53 = vcombine.high %v10754_v50, %v10754_v50  ;;  %v13935_v57 = vld [vmem:[%s20109_s1 + $0x1c0] ss:$8 sps:$4 sm:$0xff]   ;;  %v13936_v58 = vld [vmem:[%s20109_s1 + $0xd4] ss:$8 sps:$4 sm:$0xff]   ;;  %v342_v9 = vpack.c.bf16 %v10754_v50, %v10754_v50 }
  0x14   :  { %513 = vmatpush1.bf16.msra.mxu1 %v13887_v19  ;;  %244 = vmatprep.subr.bf16.mxu0 %v13888_v20  ;;  %v73_v54 = vpack.c.bf16 %v69_v49, %v69_v49  ;;  %v13938_v59 = vld [vmem:[%s20109_s1 + $0x1d4] ss:$8 sps:$4 sm:$0xff]   ;;  %v13940_v60 = vld [vmem:[%s20109_s1 + $0xd0] ss:$8 sps:$4 sm:$0xff]   ;;  %v13942_v62 = vld [vmem:[%s20109_s1 + $0xe4] ss:$8 sps:$4 sm:$0xff]  }
  0x15   :  { %514 = vmatprep.subr.bf16.mxu1 %v13890_v21  ;;  %v343_v56 = vpack.c.bf16 %v339_v53, %v339_v53  ;;  %v13941_v61 = vld [vmem:[%s20109_s1 + $0x1d0] ss:$8 sps:$4 sm:$0xff]   ;;  %v13944_v63 = vld [vmem:[%s20109_s1 + $0x1e4] ss:$8 sps:$4 sm:$0xff]   ;;  %v13946_v0 = vld [vmem:[%s20109_s1 + $0xe0] ss:$8 sps:$4 sm:$0xff]  }
  0x16   :  { %266 = vmatprep.mubr.bf16.mxu0 %v73_v54  ;;  %v13947_v1 = vld [vmem:[%s20109_s1 + $0x1e0] ss:$8 sps:$4 sm:$0xff]   ;;  %v13948_v2 = vld [vmem:[%s20109_s1 + $0xf4] ss:$8 sps:$4 sm:$0xff]   ;;  %v13952_v4 = vld [vmem:[%s20109_s1 + $0xf0] ss:$8 sps:$4 sm:$0xff]  }
  0x17   :  { %245 = vmatpush1.bf16.msra.mxu0 %v13892_v22  ;;  %536 = vmatprep.mubr.bf16.mxu1 %v343_v56  ;;  %v13950_v3 = vld [vmem:[%s20109_s1 + $0x1f4] ss:$8 sps:$4 sm:$0xff]   ;;  %v13953_v5 = vld [vmem:[%s20109_s1 + $0x1f0] ss:$8 sps:$4 sm:$0xff]   ;;  %v13956_v6 = vld [vmem:[%s20109_s1 + $0x204] ss:$8 sps:$4 sm:$0xff]  }
  0x18   :  { %515 = vmatpush1.bf16.msra.mxu1 %v13893_v23  ;;  %246 = vmatprep.subr.bf16.mxu0 %v13894_v24  ;;  %v13968_v7 = vld [vmem:[%s20109_s1 + $0x304] ss:$8 sps:$4 sm:$0xff]   ;;  %v13954_v10 = vld [vmem:[%s20109_s1 + $0x200] ss:$8 sps:$4 sm:$0xff]   ;;  %v13959_v11 = vld [vmem:[%s20109_s1 + $0x214] ss:$8 sps:$4 sm:$0xff]  }
  0x19   :  { %516 = vmatprep.subr.bf16.mxu1 %v13896_v25  ;;  %v13966_v12 = vld [vmem:[%s20109_s1 + $0x300] ss:$8 sps:$4 sm:$0xff]   ;;  %v13974_v13 = vld [vmem:[%s20109_s1 + $0x314] ss:$8 sps:$4 sm:$0xff]   ;;  %v13957_v14 = vld [vmem:[%s20109_s1 + $0x210] ss:$8 sps:$4 sm:$0xff]  }
  0x1a   :  { %v13962_v15 = vld [vmem:[%s20109_s1 + $0x224] ss:$8 sps:$4 sm:$0xff]   ;;  %v13972_v16 = vld [vmem:[%s20109_s1 + $0x310] ss:$8 sps:$4 sm:$0xff]   ;;  %v13960_v18 = vld [vmem:[%s20109_s1 + $0x220] ss:$8 sps:$4 sm:$0xff]  }
  0x1b   :  { %247 = vmatpush1.bf16.msra.mxu0 %v13898_v26  ;;  %v13980_v17 = vld [vmem:[%s20109_s1 + $0x324] ss:$8 sps:$4 sm:$0xff]   ;;  %v13965_v19 = vld [vmem:[%s20109_s1 + $0x234] ss:$8 sps:$4 sm:$0xff]   ;;  %v13978_v20 = vld [vmem:[%s20109_s1 + $0x320] ss:$8 sps:$4 sm:$0xff]  }
  0x1c   :  { %517 = vmatpush1.bf16.msra.mxu1 %v13899_v27  ;;  %248 = vmatprep.subr.bf16.mxu0 %v13900_v28  ;;  %v13986_v21 = vld [vmem:[%s20109_s1 + $0x334] ss:$8 sps:$4 sm:$0xff]   ;;  %v13963_v22 = vld [vmem:[%s20109_s1 + $0x230] ss:$8 sps:$4 sm:$0xff]   ;;  %v13971_v23 = vld [vmem:[%s20109_s1 + $0x244] ss:$8 sps:$4 sm:$0xff]  }
  0x1d   :  { %518 = vmatprep.subr.bf16.mxu1 %v13902_v29  ;;  %v13984_v24 = vld [vmem:[%s20109_s1 + $0x330] ss:$8 sps:$4 sm:$0xff]   ;;  %v13992_v25 = vld [vmem:[%s20109_s1 + $0x344] ss:$8 sps:$4 sm:$0xff]   ;;  %v13969_v26 = vld [vmem:[%s20109_s1 + $0x240] ss:$8 sps:$4 sm:$0xff]  }
  0x1e   :  { %v13977_v27 = vld [vmem:[%s20109_s1 + $0x254] ss:$8 sps:$4 sm:$0xff]   ;;  %v13990_v28 = vld [vmem:[%s20109_s1 + $0x340] ss:$8 sps:$4 sm:$0xff]   ;;  %v14020_v53 = vld [vmem:[%s20109_s1 + $0x390] ss:$8 sps:$4 sm:$0xff]  }
  0x1f   :  { %249 = vmatpush1.bf16.msra.mxu0 %v13904_v30  ;;  %v13998_v29 = vld [vmem:[%s20109_s1 + $0x354] ss:$8 sps:$4 sm:$0xff]   ;;  %v16012_v30 = vld.sshfl [vmem:[%s20108_s0 + $0x8] sm:$0x33 pattern:$0x76325410] }
  0x20   :  { %519 = vmatpush1.bf16.msra.mxu1 %v13905_v31  ;;  %250 = vmatprep.subr.bf16.mxu0 %v13906_v32  ;;  %v608_v31 = vcombine.high %v16012_v30, %v16012_v30  ;;  %v13975_v32 = vld [vmem:[%s20109_s1 + $0x250] ss:$8 sps:$4 sm:$0xff]   ;;  %v13993_v47 = vld [vmem:[%s20109_s1 + $0x280] ss:$8 sps:$4 sm:$0xff]   ;;  %v14001_v50 = vld [vmem:[%s20109_s1 + $0x294] ss:$8 sps:$4 sm:$0xff]  }
  0x21   :  { %520 = vmatprep.subr.bf16.mxu1 %v13908_v33  ;;  %v13983_v33 = vld [vmem:[%s20109_s1 + $0x264] ss:$8 sps:$4 sm:$0xff]   ;;  %v14014_v49 = vld [vmem:[%s20109_s1 + $0x380] ss:$8 sps:$4 sm:$0xff]  }
  0x22   :  { %v14007_v54 = vld [vmem:[%s20109_s1 + $0x2a4] ss:$8 sps:$4 sm:$0xff]   ;;  %v14005_v56 = vld [vmem:[%s20109_s1 + $0x2a0] ss:$8 sps:$4 sm:$0xff]  }
  0x23   :  { %251 = vmatpush1.bf16.msra.mxu0 %v13910_v34  ;;  %v13996_v34 = vld [vmem:[%s20109_s1 + $0x350] ss:$8 sps:$4 sm:$0xff]  }
  0x24   :  { %521 = vmatpush1.bf16.msra.mxu1 %v13911_v35  ;;  %252 = vmatprep.subr.bf16.mxu0 %v13912_v36  ;;  %v612_v35 = vpack.c.bf16 %v608_v31, %v608_v31  ;;  %v14004_v36 = vld [vmem:[%s20109_s1 + $0x364] ss:$8 sps:$4 sm:$0xff]   ;;  %v14053_v31 = vld [vmem:[%s20109_s1 + $0x420] ss:$8 sps:$4 sm:$0xff]  }
  0x25   :  { %522 = vmatprep.subr.bf16.mxu1 %v13914_v37  ;;  %v13981_v37 = vld [vmem:[%s20109_s1 + $0x260] ss:$8 sps:$4 sm:$0xff]  }
  0x27   :  { %253 = vmatpush1.bf16.msra.mxu0 %v13916_v38  ;;  %v13989_v38 = vld [vmem:[%s20109_s1 + $0x274] ss:$8 sps:$4 sm:$0xff]  }
  0x28   :  { %523 = vmatpush1.bf16.msra.mxu1 %v13917_v39  ;;  %254 = vmatprep.subr.bf16.mxu0 %v13918_v40  ;;  %v14002_v39 = vld [vmem:[%s20109_s1 + $0x360] ss:$8 sps:$4 sm:$0xff]   ;;  %v14010_v40 = vld [vmem:[%s20109_s1 + $0x374] ss:$8 sps:$4 sm:$0xff]  }
  0x29   :  { %524 = vmatprep.subr.bf16.mxu1 %v13920_v41  ;;  %v13987_v41 = vld [vmem:[%s20109_s1 + $0x270] ss:$8 sps:$4 sm:$0xff]  }
  0x2b   :  { %255 = vmatpush1.bf16.msra.mxu0 %v13922_v42  ;;  %v14008_v42 = vld [vmem:[%s20109_s1 + $0x370] ss:$8 sps:$4 sm:$0xff]  }
  0x2c   :  { %525 = vmatpush1.bf16.msra.mxu1 %v13923_v43  ;;  %256 = vmatprep.subr.bf16.mxu0 %v13924_v44  ;;  %v16049_v43 = vld.sshfl [vmem:[%s20108_s0 + $0xc] sm:$0x33 pattern:$0x76325410] }
  0x2d   :  { %526 = vmatprep.subr.bf16.mxu1 %v13926_v45  ;;  %v13995_v44 = vld [vmem:[%s20109_s1 + $0x284] ss:$8 sps:$4 sm:$0xff]  }
  0x2e   :  { %v14016_v45 = vld [vmem:[%s20109_s1 + $0x384] ss:$8 sps:$4 sm:$0xff]  }
  0x2f   :  { %257 = vmatpush1.bf16.msra.mxu0 %v13928_v46  ;;  %v877_v46 = vcombine.high %v16049_v43, %v16049_v43 }
  0x30   :  { %527 = vmatpush1.bf16.msra.mxu1 %v13929_v48  ;;  %258 = vmatprep.subr.bf16.mxu0 %v13930_v51  ;;  %v14022_v51 = vld [vmem:[%s20109_s1 + $0x394] ss:$8 sps:$4 sm:$0xff]  }
  0x31   :  { %528 = vmatprep.subr.bf16.mxu1 %v13932_v52  ;;  %v881_v48 = vpack.c.bf16 %v877_v46, %v877_v46  ;;  %v13999_v52 = vld [vmem:[%s20109_s1 + $0x290] ss:$8 sps:$4 sm:$0xff]  }
  0x32   :  { %v14092_v46 = vld [vmem:[%s20109_s1 + $0x550] ss:$8 sps:$4 sm:$0xff]  }
  0x33   :  { %259 = vmatpush1.bf16.msra.mxu0 %v13934_v55  ;;  %v14028_v55 = vld [vmem:[%s20109_s1 + $0x3a4] ss:$8 sps:$4 sm:$0xff]  }
  0x34   :  { %529 = vmatpush1.bf16.msra.mxu1 %v13935_v57  ;;  %260 = vmatprep.subr.bf16.mxu0 %v13936_v58  ;;  %v14026_v57 = vld [vmem:[%s20109_s1 + $0x3a0] ss:$8 sps:$4 sm:$0xff]   ;;  %v14013_v58 = vld [vmem:[%s20109_s1 + $0x2b4] ss:$8 sps:$4 sm:$0xff]  }
  0x35   :  { %530 = vmatprep.subr.bf16.mxu1 %v13938_v59  ;;  %v14034_v59 = vld [vmem:[%s20109_s1 + $0x3b4] ss:$8 sps:$4 sm:$0xff]  }
  0x37   :  { %261 = vmatpush1.bf16.msra.mxu0 %v13940_v60  ;;  %v14011_v60 = vld [vmem:[%s20109_s1 + $0x2b0] ss:$8 sps:$4 sm:$0xff]  }
  0x38   :  { %531 = vmatpush1.bf16.msra.mxu1 %v13941_v61  ;;  %262 = vmatprep.subr.bf16.mxu0 %v13942_v62  ;;  %v14032_v61 = vld [vmem:[%s20109_s1 + $0x3b0] ss:$8 sps:$4 sm:$0xff]   ;;  %v14019_v62 = vld [vmem:[%s20109_s1 + $0x2c4] ss:$8 sps:$4 sm:$0xff]  }
  0x39   :  { %532 = vmatprep.subr.bf16.mxu1 %v13944_v63  ;;  %v14040_v63 = vld [vmem:[%s20109_s1 + $0x3c4] ss:$8 sps:$4 sm:$0xff]  }
  0x3b   :  { %263 = vmatpush1.bf16.msra.mxu0 %v13946_v0  ;;  %v14017_v0 = vld [vmem:[%s20109_s1 + $0x2c0] ss:$8 sps:$4 sm:$0xff]  }
  0x3c   :  { %533 = vmatpush1.bf16.msra.mxu1 %v13947_v1  ;;  %264 = vmatprep.subr.bf16.mxu0 %v13948_v2  ;;  %v14038_v1 = vld [vmem:[%s20109_s1 + $0x3c0] ss:$8 sps:$4 sm:$0xff]   ;;  %v14025_v2 = vld [vmem:[%s20109_s1 + $0x2d4] ss:$8 sps:$4 sm:$0xff]  }
  0x3d   :  { %534 = vmatprep.subr.bf16.mxu1 %v13950_v3  ;;  %v14046_v3 = vld [vmem:[%s20109_s1 + $0x3d4] ss:$8 sps:$4 sm:$0xff]  }
  0x3f   :  { %265 = vmatpush1.bf16.msra.mxu0 %v13952_v4  ;;  %v14023_v4 = vld [vmem:[%s20109_s1 + $0x2d0] ss:$8 sps:$4 sm:$0xff]  }
  0x40   :  { %535 = vmatpush1.bf16.msra.mxu1 %v13953_v5  ;;  %773 = vmatprep.subr.bf16.mxu0 %v13956_v6  ;;  %v14044_v5 = vld [vmem:[%s20109_s1 + $0x3d0] ss:$8 sps:$4 sm:$0xff]   ;;  %v14031_v6 = vld [vmem:[%s20109_s1 + $0x2e4] ss:$8 sps:$4 sm:$0xff]  }
  0x41   :  { %1042 = vmatprep.subr.bf16.mxu1 %v13968_v7  ;;  %v14052_v7 = vld [vmem:[%s20109_s1 + $0x3e4] ss:$8 sps:$4 sm:$0xff]  }
  0x42   :  { %267 = vmatmul.mubr.bf16.vlgmr.msra.gmra.mrb[0].mxu0 %v72_v8  ;;  %v14029_v8 = vld [vmem:[%s20109_s1 + $0x2e0] ss:$8 sps:$4 sm:$0xff]  }
  0x43   :  { %537 = vmatmul.mubr.bf16.vlgmr.msra.gmra.mrb[0].mxu1 %v342_v9  ;;  %774 = vmatpush1.bf16.msra.mxu0 %v13954_v10  ;;  %v14050_v9 = vld [vmem:[%s20109_s1 + $0x3e0] ss:$8 sps:$4 sm:$0xff]   ;;  %v14037_v10 = vld [vmem:[%s20109_s1 + $0x2f4] ss:$8 sps:$4 sm:$0xff]  }
  0x44   :  { %1043 = vmatpush1.bf16.msra.mxu1 %v13966_v12  ;;  %775 = vmatprep.subr.bf16.mxu0 %v13959_v11  ;;  %v14058_v11 = vld [vmem:[%s20109_s1 + $0x3f4] ss:$8 sps:$4 sm:$0xff]   ;;  %v14035_v12 = vld [vmem:[%s20109_s1 + $0x2f0] ss:$8 sps:$4 sm:$0xff]  }
  0x45   :  { %1044 = vmatprep.subr.bf16.mxu1 %v13974_v13  ;;  %805 = vmatprep.mubr.bf16.mxu0 %v612_v35  ;;  %v14043_v13 = vld [vmem:[%s20109_s1 + $0x404] ss:$8 sps:$4 sm:$0xff]   ;;  %v14082_v35 = vld [vmem:[%s20109_s1 + $0x534] ss:$8 sps:$4 sm:$0xff]  }
  0x46   :  { %1074 = vmatprep.mubr.bf16.mxu1 %v881_v48  ;;  %v14077_v48 = vld [vmem:[%s20109_s1 + $0x460] ss:$8 sps:$4 sm:$0xff]  }
  0x47   :  { %776 = vmatpush1.bf16.msra.mxu0 %v13957_v14  ;;  %v14056_v14 = vld [vmem:[%s20109_s1 + $0x3f0] ss:$8 sps:$4 sm:$0xff]  }
  0x48   :  { %1045 = vmatpush1.bf16.msra.mxu1 %v13972_v16  ;;  %777 = vmatprep.subr.bf16.mxu0 %v13962_v15  ;;  %v16155_v15 = vld.sshfl [vmem:[%s20108_s0 + $0x10] sm:$0x33 pattern:$0x76325410]  ;;  %v14064_v16 = vld [vmem:[%s20109_s1 + $0x504] ss:$8 sps:$4 sm:$0xff]  }
  0x49   :  { %1046 = vmatprep.subr.bf16.mxu1 %v13980_v17  ;;  %v1146_v17 = vcombine.high %v16155_v15, %v16155_v15 }
  0x4b   :  { %778 = vmatpush1.bf16.msra.mxu0 %v13960_v18  ;;  %v611_v18 = vpack.c.bf16 %v16012_v30, %v16012_v30 }
  0x4c   :  { %1047 = vmatpush1.bf16.msra.mxu1 %v13978_v20  ;;  %779 = vmatprep.subr.bf16.mxu0 %v13965_v19  ;;  %v14041_v19 = vld [vmem:[%s20109_s1 + $0x400] ss:$8 sps:$4 sm:$0xff]   ;;  %v880_v20 = vpack.c.bf16 %v16049_v43, %v16049_v43  ;;  %v14094_v43 = vld [vmem:[%s20109_s1 + $0x554] ss:$8 sps:$4 sm:$0xff]  }
  0x4d   :  { %1048 = vmatprep.subr.bf16.mxu1 %v13986_v21  ;;  %v14049_v21 = vld [vmem:[%s20109_s1 + $0x414] ss:$8 sps:$4 sm:$0xff]  }
  0x4f   :  { %780 = vmatpush1.bf16.msra.mxu0 %v13963_v22  ;;  %v14062_v22 = vld [vmem:[%s20109_s1 + $0x500] ss:$8 sps:$4 sm:$0xff]  }
  0x50   :  { %1049 = vmatpush1.bf16.msra.mxu1 %v13984_v24  ;;  %781 = vmatprep.subr.bf16.mxu0 %v13971_v23  ;;  %v14070_v23 = vld [vmem:[%s20109_s1 + $0x514] ss:$8 sps:$4 sm:$0xff]   ;;  %v1150_v24 = vpack.c.bf16 %v1146_v17, %v1146_v17  ;;  %v14125_v17 = vld [vmem:[%s20109_s1 + $0x4e0] ss:$8 sps:$4 sm:$0xff]  }
  0x51   :  { %1050 = vmatprep.subr.bf16.mxu1 %v13992_v25  ;;  %v14047_v25 = vld [vmem:[%s20109_s1 + $0x410] ss:$8 sps:$4 sm:$0xff]  }
  0x53   :  { %782 = vmatpush1.bf16.msra.mxu0 %v13969_v26  ;;  %v14068_v26 = vld [vmem:[%s20109_s1 + $0x510] ss:$8 sps:$4 sm:$0xff]  }
  0x54   :  { %1051 = vmatpush1.bf16.msra.mxu1 %v13990_v28  ;;  %783 = vmatprep.subr.bf16.mxu0 %v13977_v27  ;;  %v16187_v27 = vld.sshfl [vmem:[%s20108_s0 + $0x14] sm:$0x33 pattern:$0x76325410]  ;;  %v14055_v28 = vld [vmem:[%s20109_s1 + $0x424] ss:$8 sps:$4 sm:$0xff]  }
  0x55   :  { %1052 = vmatprep.subr.bf16.mxu1 %v13998_v29  ;;  %v14076_v29 = vld [vmem:[%s20109_s1 + $0x524] ss:$8 sps:$4 sm:$0xff]   ;;  %v1415_v30 = vcombine.high %v16187_v27, %v16187_v27 }
  0x57   :  { %784 = vmatpush1.bf16.msra.mxu0 %v13975_v32  ;;  %v14061_v32 = vld [vmem:[%s20109_s1 + $0x434] ss:$8 sps:$4 sm:$0xff]  }
  0x58   :  { %1053 = vmatpush1.bf16.msra.mxu1 %v13996_v34  ;;  %785 = vmatprep.subr.bf16.mxu0 %v13983_v33  ;;  %v1419_v33 = vpack.c.bf16 %v1415_v30, %v1415_v30  ;;  %v14074_v34 = vld [vmem:[%s20109_s1 + $0x520] ss:$8 sps:$4 sm:$0xff]   ;;  %v1149_v30 = vpack.c.bf16 %v16155_v15, %v16155_v15  ;;  %v14157_v15 = vld [vmem:[%s20109_s1 + $0x714] ss:$8 sps:$4 sm:$0xff]  }
  0x59   :  { %1054 = vmatprep.subr.bf16.mxu1 %v14004_v36  ;;  %v14059_v36 = vld [vmem:[%s20109_s1 + $0x430] ss:$8 sps:$4 sm:$0xff]  }
  0x5b   :  { %786 = vmatpush1.bf16.msra.mxu0 %v13981_v37  ;;  %v14067_v37 = vld [vmem:[%s20109_s1 + $0x444] ss:$8 sps:$4 sm:$0xff]  }
  0x5c   :  { %1055 = vmatpush1.bf16.msra.mxu1 %v14002_v39  ;;  %787 = vmatprep.subr.bf16.mxu0 %v13989_v38  ;;  %v14080_v38 = vld [vmem:[%s20109_s1 + $0x530] ss:$8 sps:$4 sm:$0xff]   ;;  %v14088_v39 = vld [vmem:[%s20109_s1 + $0x544] ss:$8 sps:$4 sm:$0xff]  }
  0x5d   :  { %1056 = vmatprep.subr.bf16.mxu1 %v14010_v40  ;;  %v14065_v40 = vld [vmem:[%s20109_s1 + $0x440] ss:$8 sps:$4 sm:$0xff]  }
  0x5f   :  { %788 = vmatpush1.bf16.msra.mxu0 %v13987_v41  ;;  %v14073_v41 = vld [vmem:[%s20109_s1 + $0x454] ss:$8 sps:$4 sm:$0xff]  }
  0x60   :  { %1057 = vmatpush1.bf16.msra.mxu1 %v14008_v42  ;;  %789 = vmatprep.subr.bf16.mxu0 %v13995_v44  ;;  %v14086_v42 = vld [vmem:[%s20109_s1 + $0x540] ss:$8 sps:$4 sm:$0xff]   ;;  %v14071_v44 = vld [vmem:[%s20109_s1 + $0x450] ss:$8 sps:$4 sm:$0xff]  }
  0x61   :  { %1058 = vmatprep.subr.bf16.mxu1 %v14016_v45  ;;  %v14079_v45 = vld [vmem:[%s20109_s1 + $0x464] ss:$8 sps:$4 sm:$0xff]  }
  0x63   :  { %790 = vmatpush1.bf16.msra.mxu0 %v13993_v47  ;;  %v14100_v47 = vld [vmem:[%s20109_s1 + $0x564] ss:$8 sps:$4 sm:$0xff]  }
  0x64   :  { %1059 = vmatpush1.bf16.msra.mxu1 %v14014_v49  ;;  %791 = vmatprep.subr.bf16.mxu0 %v14001_v50  ;;  %v14085_v49 = vld [vmem:[%s20109_s1 + $0x474] ss:$8 sps:$4 sm:$0xff]   ;;  %v14098_v50 = vld [vmem:[%s20109_s1 + $0x560] ss:$8 sps:$4 sm:$0xff]  }
  0x65   :  { %1060 = vmatprep.subr.bf16.mxu1 %v14022_v51  ;;  %v14106_v51 = vld [vmem:[%s20109_s1 + $0x574] ss:$8 sps:$4 sm:$0xff]  }
  0x67   :  { %792 = vmatpush1.bf16.msra.mxu0 %v13999_v52  ;;  %v14083_v52 = vld [vmem:[%s20109_s1 + $0x470] ss:$8 sps:$4 sm:$0xff]  }
  0x68   :  { %1061 = vmatpush1.bf16.msra.mxu1 %v14020_v53  ;;  %793 = vmatprep.subr.bf16.mxu0 %v14007_v54  ;;  %v14091_v53 = vld [vmem:[%s20109_s1 + $0x484] ss:$8 sps:$4 sm:$0xff]   ;;  %v14104_v54 = vld [vmem:[%s20109_s1 + $0x570] ss:$8 sps:$4 sm:$0xff]  }
  0x69   :  { %1062 = vmatprep.subr.bf16.mxu1 %v14028_v55  ;;  %v14112_v55 = vld [vmem:[%s20109_s1 + $0x584] ss:$8 sps:$4 sm:$0xff]  }
  0x6b   :  { %794 = vmatpush1.bf16.msra.mxu0 %v14005_v56  ;;  %v14089_v56 = vld [vmem:[%s20109_s1 + $0x480] ss:$8 sps:$4 sm:$0xff]  }
  0x6c   :  { %1063 = vmatpush1.bf16.msra.mxu1 %v14026_v57  ;;  %795 = vmatprep.subr.bf16.mxu0 %v14013_v58  ;;  %v14097_v57 = vld [vmem:[%s20109_s1 + $0x494] ss:$8 sps:$4 sm:$0xff]   ;;  %v14110_v58 = vld [vmem:[%s20109_s1 + $0x580] ss:$8 sps:$4 sm:$0xff]  }
  0x6d   :  { %1064 = vmatprep.subr.bf16.mxu1 %v14034_v59  ;;  %v14118_v59 = vld [vmem:[%s20109_s1 + $0x594] ss:$8 sps:$4 sm:$0xff]  }
  0x6f   :  { %796 = vmatpush1.bf16.msra.mxu0 %v14011_v60  ;;  %v14095_v60 = vld [vmem:[%s20109_s1 + $0x490] ss:$8 sps:$4 sm:$0xff]  }
  0x70   :  { %1065 = vmatpush1.bf16.msra.mxu1 %v14032_v61  ;;  %797 = vmatprep.subr.bf16.mxu0 %v14019_v62  ;;  %v14103_v61 = vld [vmem:[%s20109_s1 + $0x4a4] ss:$8 sps:$4 sm:$0xff]   ;;  %v14116_v62 = vld [vmem:[%s20109_s1 + $0x590] ss:$8 sps:$4 sm:$0xff]  }
  0x71   :  { %1066 = vmatprep.subr.bf16.mxu1 %v14040_v63  ;;  %v14124_v63 = vld [vmem:[%s20109_s1 + $0x5a4] ss:$8 sps:$4 sm:$0xff]  }
  0x73   :  { %798 = vmatpush1.bf16.msra.mxu0 %v14017_v0  ;;  %v14101_v0 = vld [vmem:[%s20109_s1 + $0x4a0] ss:$8 sps:$4 sm:$0xff]  }
  0x74   :  { %1067 = vmatpush1.bf16.msra.mxu1 %v14038_v1  ;;  %799 = vmatprep.subr.bf16.mxu0 %v14025_v2  ;;  %v14109_v1 = vld [vmem:[%s20109_s1 + $0x4b4] ss:$8 sps:$4 sm:$0xff]   ;;  %v14122_v2 = vld [vmem:[%s20109_s1 + $0x5a0] ss:$8 sps:$4 sm:$0xff]  }
  0x75   :  { %1068 = vmatprep.subr.bf16.mxu1 %v14046_v3  ;;  %v14130_v3 = vld [vmem:[%s20109_s1 + $0x5b4] ss:$8 sps:$4 sm:$0xff]  }
  0x77   :  { %800 = vmatpush1.bf16.msra.mxu0 %v14023_v4  ;;  %v14107_v4 = vld [vmem:[%s20109_s1 + $0x4b0] ss:$8 sps:$4 sm:$0xff]  }
  0x78   :  { %1069 = vmatpush1.bf16.msra.mxu1 %v14044_v5  ;;  %801 = vmatprep.subr.bf16.mxu0 %v14031_v6  ;;  %v14128_v5 = vld [vmem:[%s20109_s1 + $0x5b0] ss:$8 sps:$4 sm:$0xff]   ;;  %v14115_v6 = vld [vmem:[%s20109_s1 + $0x4c4] ss:$8 sps:$4 sm:$0xff]  }
  0x79   :  { %1070 = vmatprep.subr.bf16.mxu1 %v14052_v7  ;;  %v14136_v7 = vld [vmem:[%s20109_s1 + $0x5c4] ss:$8 sps:$4 sm:$0xff]  }
  0x7b   :  { %802 = vmatpush1.bf16.msra.mxu0 %v14029_v8  ;;  %v14113_v8 = vld [vmem:[%s20109_s1 + $0x4c0] ss:$8 sps:$4 sm:$0xff]  }
  0x7c   :  { %1071 = vmatpush1.bf16.msra.mxu1 %v14050_v9  ;;  %803 = vmatprep.subr.bf16.mxu0 %v14037_v10  ;;  %v14121_v9 = vld [vmem:[%s20109_s1 + $0x4d4] ss:$8 sps:$4 sm:$0xff]   ;;  %v14134_v10 = vld [vmem:[%s20109_s1 + $0x5c0] ss:$8 sps:$4 sm:$0xff]  }
  0x7d   :  { %1072 = vmatprep.subr.bf16.mxu1 %v14058_v11  ;;  %v14139_v11 = vld [vmem:[%s20109_s1 + $0x5d4] ss:$8 sps:$4 sm:$0xff]  }
  0x7f   :  { %804 = vmatpush1.bf16.msra.mxu0 %v14035_v12  ;;  %v14119_v12 = vld [vmem:[%s20109_s1 + $0x4d0] ss:$8 sps:$4 sm:$0xff]  }
  0x80   :  { %1073 = vmatpush1.bf16.msra.mxu1 %v14056_v14  ;;  %1311 = vmatprep.subr.bf16.mxu0 %v14043_v13  ;;  %v14127_v13 = vld [vmem:[%s20109_s1 + $0x4e4] ss:$8 sps:$4 sm:$0xff]   ;;  %v14137_v14 = vld [vmem:[%s20109_s1 + $0x5d0] ss:$8 sps:$4 sm:$0xff]  }
  0x81   :  { %1580 = vmatprep.subr.bf16.mxu1 %v14064_v16  ;;  %v14142_v16 = vld [vmem:[%s20109_s1 + $0x5e4] ss:$8 sps:$4 sm:$0xff]  }
  0x82   :  { %806 = vmatmul.mubr.bf16.vlgmr.msra.gmra.mrb[4].mxu0 %v611_v18  ;;  %v14133_v18 = vld [vmem:[%s20109_s1 + $0x4f4] ss:$8 sps:$4 sm:$0xff]  }
  0x83   :  { %1075 = vmatmul.mubr.bf16.vlgmr.msra.gmra.mrb[4].mxu1 %v880_v20  ;;  %1312 = vmatpush1.bf16.msra.mxu0 %v14041_v19  ;;  %v14140_v19 = vld [vmem:[%s20109_s1 + $0x5e0] ss:$8 sps:$4 sm:$0xff]   ;;  %v14145_v20 = vld [vmem:[%s20109_s1 + $0x5f4] ss:$8 sps:$4 sm:$0xff]  }
  0x84   :  { %1581 = vmatpush1.bf16.msra.mxu1 %v14062_v22  ;;  %1313 = vmatprep.subr.bf16.mxu0 %v14049_v21  ;;  %v14131_v21 = vld [vmem:[%s20109_s1 + $0x4f0] ss:$8 sps:$4 sm:$0xff]  }
  0x85   :  { %1582 = vmatprep.subr.bf16.mxu1 %v14070_v23  ;;  %1343 = vmatprep.mubr.bf16.mxu0 %v1150_v24  ;;  %v14143_v22 = vld [vmem:[%s20109_s1 + $0x5f0] ss:$8 sps:$4 sm:$0xff]   ;;  %v16367_v24 = vld.sshfl [vmem:[%s20108_s0 + $0x1c] sm:$0x33 pattern:$0x76325410] }
  0x86   :  { %1612 = vmatprep.mubr.bf16.mxu1 %v1419_v33  ;;  %v16362_v23 = vld.sshfl [vmem:[%s20108_s0 + $0x18] sm:$0x33 pattern:$0x76325410]  ;;  %v14149_v33 = vld [vmem:[%s20109_s1 + $0x700] ss:$8 sps:$4 sm:$0xff]  }
  0x87   :  { %1314 = vmatpush1.bf16.msra.mxu0 %v14047_v25  ;;  %v14148_v25 = vld [vmem:[%s20109_s1 + $0x604] ss:$8 sps:$4 sm:$0xff]  }
  0x88   :  { %1583 = vmatpush1.bf16.msra.mxu1 %v14068_v26  ;;  %1315 = vmatprep.subr.bf16.mxu0 %v14055_v28  ;;  %v14151_v26 = vld [vmem:[%s20109_s1 + $0x704] ss:$8 sps:$4 sm:$0xff]   ;;  %v1684_v28 = vcombine.high %v16362_v23, %v16362_v23 }
  0x89   :  { %1584 = vmatprep.subr.bf16.mxu1 %v14076_v29  ;;  %v1953_v29 = vcombine.high %v16367_v24, %v16367_v24 }
  0x8b   :  { %1316 = vmatpush1.bf16.msra.mxu0 %v14053_v31  ;;  %v14146_v31 = vld [vmem:[%s20109_s1 + $0x600] ss:$8 sps:$4 sm:$0xff]  }
  0x8c   :  { %1585 = vmatpush1.bf16.msra.mxu1 %v14074_v34  ;;  %1317 = vmatprep.subr.bf16.mxu0 %v14061_v32  ;;  %v1418_v32 = vpack.c.bf16 %v16187_v27, %v16187_v27  ;;  %v14154_v34 = vld [vmem:[%s20109_s1 + $0x614] ss:$8 sps:$4 sm:$0xff]   ;;  %v14152_v27 = vld [vmem:[%s20109_s1 + $0x610] ss:$8 sps:$4 sm:$0xff]  }
  0x8d   :  { %1586 = vmatprep.subr.bf16.mxu1 %v14082_v35  ;;  %v1688_v35 = vpack.c.bf16 %v1684_v28, %v1684_v28  ;;  %v14230_v28 = vld [vmem:[%s20109_s1 + $0x6e0] ss:$8 sps:$4 sm:$0xff]  }
  0x8f   :  { %1318 = vmatpush1.bf16.msra.mxu0 %v14059_v36  ;;  %v1957_v36 = vpack.c.bf16 %v1953_v29, %v1953_v29  ;;  %v14233_v29 = vld [vmem:[%s20109_s1 + $0x7e0] ss:$8 sps:$4 sm:$0xff]  }
  0x90   :  { %1587 = vmatpush1.bf16.msra.mxu1 %v14080_v38  ;;  %1319 = vmatprep.subr.bf16.mxu0 %v14067_v37  ;;  %v14155_v37 = vld [vmem:[%s20109_s1 + $0x710] ss:$8 sps:$4 sm:$0xff]   ;;  %v14160_v38 = vld [vmem:[%s20109_s1 + $0x624] ss:$8 sps:$4 sm:$0xff]  }
  0x91   :  { %1588 = vmatprep.subr.bf16.mxu1 %v14088_v39  ;;  %v14163_v39 = vld [vmem:[%s20109_s1 + $0x724] ss:$8 sps:$4 sm:$0xff]  }
  0x93   :  { %1320 = vmatpush1.bf16.msra.mxu0 %v14065_v40  ;;  %v14158_v40 = vld [vmem:[%s20109_s1 + $0x620] ss:$8 sps:$4 sm:$0xff]  }
  0x94   :  { %1589 = vmatpush1.bf16.msra.mxu1 %v14086_v42  ;;  %1321 = vmatprep.subr.bf16.mxu0 %v14073_v41  ;;  %v14161_v41 = vld [vmem:[%s20109_s1 + $0x720] ss:$8 sps:$4 sm:$0xff]   ;;  %v14166_v42 = vld [vmem:[%s20109_s1 + $0x634] ss:$8 sps:$4 sm:$0xff]  }
  0x95   :  { %1590 = vmatprep.subr.bf16.mxu1 %v14094_v43  ;;  %v14169_v43 = vld [vmem:[%s20109_s1 + $0x734] ss:$8 sps:$4 sm:$0xff]  }
  0x97   :  { %1322 = vmatpush1.bf16.msra.mxu0 %v14071_v44  ;;  %v14164_v44 = vld [vmem:[%s20109_s1 + $0x630] ss:$8 sps:$4 sm:$0xff]  }
  0x98   :  { %1591 = vmatpush1.bf16.msra.mxu1 %v14092_v46  ;;  %1323 = vmatprep.subr.bf16.mxu0 %v14079_v45  ;;  %v14167_v45 = vld [vmem:[%s20109_s1 + $0x730] ss:$8 sps:$4 sm:$0xff]   ;;  %v14172_v46 = vld [vmem:[%s20109_s1 + $0x644] ss:$8 sps:$4 sm:$0xff]  }
  0x99   :  { %1592 = vmatprep.subr.bf16.mxu1 %v14100_v47  ;;  %v14175_v47 = vld [vmem:[%s20109_s1 + $0x744] ss:$8 sps:$4 sm:$0xff]  }
  0x9b   :  { %1324 = vmatpush1.bf16.msra.mxu0 %v14077_v48  ;;  %v14170_v48 = vld [vmem:[%s20109_s1 + $0x640] ss:$8 sps:$4 sm:$0xff]  }
  0x9c   :  { %1593 = vmatpush1.bf16.msra.mxu1 %v14098_v50  ;;  %1325 = vmatprep.subr.bf16.mxu0 %v14085_v49  ;;  %v14173_v49 = vld [vmem:[%s20109_s1 + $0x740] ss:$8 sps:$4 sm:$0xff]   ;;  %v14178_v50 = vld [vmem:[%s20109_s1 + $0x654] ss:$8 sps:$4 sm:$0xff]  }
  0x9d   :  { %1594 = vmatprep.subr.bf16.mxu1 %v14106_v51  ;;  %v14181_v51 = vld [vmem:[%s20109_s1 + $0x754] ss:$8 sps:$4 sm:$0xff]  }
  0x9f   :  { %1326 = vmatpush1.bf16.msra.mxu0 %v14083_v52  ;;  %v14176_v52 = vld [vmem:[%s20109_s1 + $0x650] ss:$8 sps:$4 sm:$0xff]  }
  0xa0   :  { %1595 = vmatpush1.bf16.msra.mxu1 %v14104_v54  ;;  %1327 = vmatprep.subr.bf16.mxu0 %v14091_v53  ;;  %v14179_v53 = vld [vmem:[%s20109_s1 + $0x750] ss:$8 sps:$4 sm:$0xff]   ;;  %v14184_v54 = vld [vmem:[%s20109_s1 + $0x664] ss:$8 sps:$4 sm:$0xff]  }
  0xa1   :  { %1596 = vmatprep.subr.bf16.mxu1 %v14112_v55  ;;  %v14187_v55 = vld [vmem:[%s20109_s1 + $0x764] ss:$8 sps:$4 sm:$0xff]  }
  0xa3   :  { %1328 = vmatpush1.bf16.msra.mxu0 %v14089_v56  ;;  %v14182_v56 = vld [vmem:[%s20109_s1 + $0x660] ss:$8 sps:$4 sm:$0xff]  }
  0xa4   :  { %1597 = vmatpush1.bf16.msra.mxu1 %v14110_v58  ;;  %1329 = vmatprep.subr.bf16.mxu0 %v14097_v57  ;;  %v14185_v57 = vld [vmem:[%s20109_s1 + $0x760] ss:$8 sps:$4 sm:$0xff]   ;;  %v14190_v58 = vld [vmem:[%s20109_s1 + $0x674] ss:$8 sps:$4 sm:$0xff]  }
  0xa5   :  { %1598 = vmatprep.subr.bf16.mxu1 %v14118_v59  ;;  %v14193_v59 = vld [vmem:[%s20109_s1 + $0x774] ss:$8 sps:$4 sm:$0xff]  }
  0xa7   :  { %1330 = vmatpush1.bf16.msra.mxu0 %v14095_v60  ;;  %v14188_v60 = vld [vmem:[%s20109_s1 + $0x670] ss:$8 sps:$4 sm:$0xff]  }
  0xa8   :  { %1599 = vmatpush1.bf16.msra.mxu1 %v14116_v62  ;;  %1331 = vmatprep.subr.bf16.mxu0 %v14103_v61  ;;  %v14191_v61 = vld [vmem:[%s20109_s1 + $0x770] ss:$8 sps:$4 sm:$0xff]   ;;  %v14196_v62 = vld [vmem:[%s20109_s1 + $0x684] ss:$8 sps:$4 sm:$0xff]  }
  0xa9   :  { %1600 = vmatprep.subr.bf16.mxu1 %v14124_v63  ;;  %v14199_v63 = vld [vmem:[%s20109_s1 + $0x784] ss:$8 sps:$4 sm:$0xff]  }
  0xab   :  { %1332 = vmatpush1.bf16.msra.mxu0 %v14101_v0  ;;  %v14194_v0 = vld [vmem:[%s20109_s1 + $0x680] ss:$8 sps:$4 sm:$0xff]  }
  0xac   :  { %1601 = vmatpush1.bf16.msra.mxu1 %v14122_v2  ;;  %1333 = vmatprep.subr.bf16.mxu0 %v14109_v1  ;;  %v14197_v1 = vld [vmem:[%s20109_s1 + $0x780] ss:$8 sps:$4 sm:$0xff]   ;;  %v14202_v2 = vld [vmem:[%s20109_s1 + $0x694] ss:$8 sps:$4 sm:$0xff]  }
  0xad   :  { %1602 = vmatprep.subr.bf16.mxu1 %v14130_v3  ;;  %v14205_v3 = vld [vmem:[%s20109_s1 + $0x794] ss:$8 sps:$4 sm:$0xff]  }
  0xaf   :  { %1334 = vmatpush1.bf16.msra.mxu0 %v14107_v4  ;;  %v14200_v4 = vld [vmem:[%s20109_s1 + $0x690] ss:$8 sps:$4 sm:$0xff]  }
  0xb0   :  { %1603 = vmatpush1.bf16.msra.mxu1 %v14128_v5  ;;  %1335 = vmatprep.subr.bf16.mxu0 %v14115_v6  ;;  %v14203_v5 = vld [vmem:[%s20109_s1 + $0x790] ss:$8 sps:$4 sm:$0xff]   ;;  %v14208_v6 = vld [vmem:[%s20109_s1 + $0x6a4] ss:$8 sps:$4 sm:$0xff]  }
  0xb1   :  { %1604 = vmatprep.subr.bf16.mxu1 %v14136_v7  ;;  %v14211_v7 = vld [vmem:[%s20109_s1 + $0x7a4] ss:$8 sps:$4 sm:$0xff]  }
  0xb3   :  { %1336 = vmatpush1.bf16.msra.mxu0 %v14113_v8  ;;  %v14206_v8 = vld [vmem:[%s20109_s1 + $0x6a0] ss:$8 sps:$4 sm:$0xff]  }
  0xb4   :  { %1605 = vmatpush1.bf16.msra.mxu1 %v14134_v10  ;;  %1337 = vmatprep.subr.bf16.mxu0 %v14121_v9  ;;  %v14209_v9 = vld [vmem:[%s20109_s1 + $0x7a0] ss:$8 sps:$4 sm:$0xff]   ;;  %v14214_v10 = vld [vmem:[%s20109_s1 + $0x6b4] ss:$8 sps:$4 sm:$0xff]  }
  0xb5   :  { %1606 = vmatprep.subr.bf16.mxu1 %v14139_v11  ;;  %v14217_v11 = vld [vmem:[%s20109_s1 + $0x7b4] ss:$8 sps:$4 sm:$0xff]  }
  0xb7   :  { %1338 = vmatpush1.bf16.msra.mxu0 %v14119_v12  ;;  %v14212_v12 = vld [vmem:[%s20109_s1 + $0x6b0] ss:$8 sps:$4 sm:$0xff]  }
  0xb8   :  { %1607 = vmatpush1.bf16.msra.mxu1 %v14137_v14  ;;  %1339 = vmatprep.subr.bf16.mxu0 %v14127_v13  ;;  %v14215_v13 = vld [vmem:[%s20109_s1 + $0x7b0] ss:$8 sps:$4 sm:$0xff]   ;;  %v14220_v14 = vld [vmem:[%s20109_s1 + $0x6c4] ss:$8 sps:$4 sm:$0xff]  }
  0xb9   :  { %1608 = vmatprep.subr.bf16.mxu1 %v14142_v16  ;;  %v14223_v16 = vld [vmem:[%s20109_s1 + $0x7c4] ss:$8 sps:$4 sm:$0xff]  }
  0xbb   :  { %1340 = vmatpush1.bf16.msra.mxu0 %v14125_v17  ;;  %v14218_v17 = vld [vmem:[%s20109_s1 + $0x6c0] ss:$8 sps:$4 sm:$0xff]  }
  0xbc   :  { %1609 = vmatpush1.bf16.msra.mxu1 %v14140_v19  ;;  %1341 = vmatprep.subr.bf16.mxu0 %v14133_v18  ;;  %v14221_v18 = vld [vmem:[%s20109_s1 + $0x7c0] ss:$8 sps:$4 sm:$0xff]   ;;  %v14226_v19 = vld [vmem:[%s20109_s1 + $0x6d4] ss:$8 sps:$4 sm:$0xff]  }
  0xbd   :  { %1610 = vmatprep.subr.bf16.mxu1 %v14145_v20  ;;  %v14229_v20 = vld [vmem:[%s20109_s1 + $0x7d4] ss:$8 sps:$4 sm:$0xff]  }
  0xbf   :  { %1342 = vmatpush1.bf16.msra.mxu0 %v14131_v21  ;;  %v14224_v21 = vld [vmem:[%s20109_s1 + $0x6d0] ss:$8 sps:$4 sm:$0xff]  }
  0xc0   :  { %1611 = vmatpush1.bf16.msra.mxu1 %v14143_v22  ;;  %1849 = vmatprep.subr.bf16.mxu0 %v14148_v25  ;;  %v14227_v22 = vld [vmem:[%s20109_s1 + $0x7d0] ss:$8 sps:$4 sm:$0xff]   ;;  %v14232_v25 = vld [vmem:[%s20109_s1 + $0x6e4] ss:$8 sps:$4 sm:$0xff]  }
  0xc1   :  { %2118 = vmatprep.subr.bf16.mxu1 %v14151_v26  ;;  %v14235_v26 = vld [vmem:[%s20109_s1 + $0x7e4] ss:$8 sps:$4 sm:$0xff]  }
  0xc2   :  { %1344 = vmatmul.mubr.bf16.vlgmr.msra.gmra.mrb[8].mxu0 %v1149_v30  ;;  %v14238_v30 = vld [vmem:[%s20109_s1 + $0x6f4] ss:$8 sps:$4 sm:$0xff]  }
  0xc3   :  { %1613 = vmatmul.mubr.bf16.vlgmr.msra.gmra.mrb[8].mxu1 %v1418_v32  ;;  %1850 = vmatpush1.bf16.msra.mxu0 %v14146_v31  ;;  %v14241_v31 = vld [vmem:[%s20109_s1 + $0x7f4] ss:$8 sps:$4 sm:$0xff]   ;;  %v16566_v32 = vld.sshfl [vmem:[%s20108_s0 + $0x20] sm:$0x33 pattern:$0x76325410] }
  0xc4   :  { %2119 = vmatpush1.bf16.msra.mxu1 %v14149_v33  ;;  %1851 = vmatprep.subr.bf16.mxu0 %v14154_v34  ;;  %v14236_v33 = vld [vmem:[%s20109_s1 + $0x6f0] ss:$8 sps:$4 sm:$0xff]  }
  0xc5   :  { %2120 = vmatprep.subr.bf16.mxu1 %v14157_v15  ;;  %1881 = vmatprep.mubr.bf16.mxu0 %v1688_v35  ;;  %v14239_v34 = vld [vmem:[%s20109_s1 + $0x7f0] ss:$8 sps:$4 sm:$0xff]   ;;  %v14244_v15 = vld [vmem:[%s20109_s1 + $0x804] ss:$8 sps:$4 sm:$0xff]   ;;  %v14242_v35 = vld [vmem:[%s20109_s1 + $0x800] ss:$8 sps:$4 sm:$0xff]  }
  0xc6   :  { %2150 = vmatprep.mubr.bf16.mxu1 %v1957_v36  ;;  %v1687_v36 = vpack.c.bf16 %v16362_v23, %v16362_v23  ;;  %v14250_v23 = vld [vmem:[%s20109_s1 + $0x824] ss:$8 sps:$4 sm:$0xff]  }
  0xc7   :  { %1852 = vmatpush1.bf16.msra.mxu0 %v14152_v27  ;;  %v2222_v27 = vcombine.high %v16566_v32, %v16566_v32 }
  0xc8   :  { %2121 = vmatpush1.bf16.msra.mxu1 %v14155_v37  ;;  %1853 = vmatprep.subr.bf16.mxu0 %v14160_v38  ;;  %v1956_v37 = vpack.c.bf16 %v16367_v24, %v16367_v24  ;;  %v14247_v38 = vld [vmem:[%s20109_s1 + $0x814] ss:$8 sps:$4 sm:$0xff]   ;;  %v14248_v24 = vld [vmem:[%s20109_s1 + $0x820] ss:$8 sps:$4 sm:$0xff]  }
  0xc9   :  { %2122 = vmatprep.subr.bf16.mxu1 %v14163_v39  ;;  %v2226_v39 = vpack.c.bf16 %v2222_v27, %v2222_v27  ;;  %v14292_v27 = vld [vmem:[%s20110_s2 + $0x4] ss:$8 sps:$4 sm:$0xff]  }
  0xcb   :  { %1854 = vmatpush1.bf16.msra.mxu0 %v14158_v40  ;;  %v14245_v40 = vld [vmem:[%s20109_s1 + $0x810] ss:$8 sps:$4 sm:$0xff]  }
  0xcc   :  { %2123 = vmatpush1.bf16.msra.mxu1 %v14161_v41  ;;  %1855 = vmatprep.subr.bf16.mxu0 %v14166_v42  ;;  %v14253_v41 = vld [vmem:[%s20109_s1 + $0x834] ss:$8 sps:$4 sm:$0xff]   ;;  %v14251_v42 = vld [vmem:[%s20109_s1 + $0x830] ss:$8 sps:$4 sm:$0xff]  }
  0xcd   :  { %2124 = vmatprep.subr.bf16.mxu1 %v14169_v43  ;;  %v14256_v43 = vld [vmem:[%s20109_s1 + $0x844] ss:$8 sps:$4 sm:$0xff]  }
  0xcf   :  { %1856 = vmatpush1.bf16.msra.mxu0 %v14164_v44  ;;  %v14254_v44 = vld [vmem:[%s20109_s1 + $0x840] ss:$8 sps:$4 sm:$0xff]  }
  0xd0   :  { %2125 = vmatpush1.bf16.msra.mxu1 %v14167_v45  ;;  %1857 = vmatprep.subr.bf16.mxu0 %v14172_v46  ;;  %v14259_v45 = vld [vmem:[%s20109_s1 + $0x854] ss:$8 sps:$4 sm:$0xff]   ;;  %v14257_v46 = vld [vmem:[%s20109_s1 + $0x850] ss:$8 sps:$4 sm:$0xff]  }
  0xd1   :  { %2126 = vmatprep.subr.bf16.mxu1 %v14175_v47  ;;  %v14262_v47 = vld [vmem:[%s20109_s1 + $0x864] ss:$8 sps:$4 sm:$0xff]  }
  0xd3   :  { %1858 = vmatpush1.bf16.msra.mxu0 %v14170_v48 }
  0xd4   :  { %2127 = vmatpush1.bf16.msra.mxu1 %v14173_v49  ;;  %1859 = vmatprep.subr.bf16.mxu0 %v14178_v50  ;;  %v14260_v50 = vld [vmem:[%s20109_s1 + $0x860] ss:$8 sps:$4 sm:$0xff]  }
  0xd5   :  { %2128 = vmatprep.subr.bf16.mxu1 %v14181_v51 }
  0xd7   :  { %1860 = vmatpush1.bf16.msra.mxu0 %v14176_v52 }
  0xd8   :  { %2129 = vmatpush1.bf16.msra.mxu1 %v14179_v53  ;;  %1861 = vmatprep.subr.bf16.mxu0 %v14184_v54 }
  0xd9   :  { %2130 = vmatprep.subr.bf16.mxu1 %v14187_v55  ;;  %v14265_v55 = vld [vmem:[%s20109_s1 + $0x874] ss:$8 sps:$4 sm:$0xff]  }
  0xdb   :  { %1862 = vmatpush1.bf16.msra.mxu0 %v14182_v56 }
  0xdc   :  { %2131 = vmatpush1.bf16.msra.mxu1 %v14185_v57  ;;  %1863 = vmatprep.subr.bf16.mxu0 %v14190_v58 }
  0xdd   :  { %2132 = vmatprep.subr.bf16.mxu1 %v14193_v59 }
  0xdf   :  { %1864 = vmatpush1.bf16.msra.mxu0 %v14188_v60 }
  0xe0   :  { %2133 = vmatpush1.bf16.msra.mxu1 %v14191_v61  ;;  %1865 = vmatprep.subr.bf16.mxu0 %v14196_v62 }
  0xe1   :  { %2134 = vmatprep.subr.bf16.mxu1 %v14199_v63 }
  0xe3   :  { %1866 = vmatpush1.bf16.msra.mxu0 %v14194_v0  ;;  %v14263_v0 = vld [vmem:[%s20109_s1 + $0x870] ss:$8 sps:$4 sm:$0xff]  }
  0xe4   :  { %2135 = vmatpush1.bf16.msra.mxu1 %v14197_v1  ;;  %1867 = vmatprep.subr.bf16.mxu0 %v14202_v2  ;;  %v14268_v1 = vld [vmem:[%s20109_s1 + $0x884] ss:$8 sps:$4 sm:$0xff]   ;;  %v14266_v2 = vld [vmem:[%s20109_s1 + $0x880] ss:$8 sps:$4 sm:$0xff]  }
  0xe5   :  { %2136 = vmatprep.subr.bf16.mxu1 %v14205_v3  ;;  %v14271_v3 = vld [vmem:[%s20109_s1 + $0x894] ss:$8 sps:$4 sm:$0xff]  }
  0xe7   :  { %1868 = vmatpush1.bf16.msra.mxu0 %v14200_v4  ;;  %v14269_v4 = vld [vmem:[%s20109_s1 + $0x890] ss:$8 sps:$4 sm:$0xff]  }
  0xe8   :  { %2137 = vmatpush1.bf16.msra.mxu1 %v14203_v5  ;;  %1869 = vmatprep.subr.bf16.mxu0 %v14208_v6  ;;  %v14274_v5 = vld [vmem:[%s20109_s1 + $0x8a4] ss:$8 sps:$4 sm:$0xff]   ;;  %v14272_v6 = vld [vmem:[%s20109_s1 + $0x8a0] ss:$8 sps:$4 sm:$0xff]  }
  0xe9   :  { %2138 = vmatprep.subr.bf16.mxu1 %v14211_v7  ;;  %v14277_v7 = vld [vmem:[%s20109_s1 + $0x8b4] ss:$8 sps:$4 sm:$0xff]  }
  0xeb   :  { %1870 = vmatpush1.bf16.msra.mxu0 %v14206_v8  ;;  %v14275_v8 = vld [vmem:[%s20109_s1 + $0x8b0] ss:$8 sps:$4 sm:$0xff]  }
  0xec   :  { %2139 = vmatpush1.bf16.msra.mxu1 %v14209_v9  ;;  %1871 = vmatprep.subr.bf16.mxu0 %v14214_v10  ;;  %v14280_v9 = vld [vmem:[%s20109_s1 + $0x8c4] ss:$8 sps:$4 sm:$0xff]   ;;  %v14278_v10 = vld [vmem:[%s20109_s1 + $0x8c0] ss:$8 sps:$4 sm:$0xff]  }
  0xed   :  { %2140 = vmatprep.subr.bf16.mxu1 %v14217_v11  ;;  %v14283_v11 = vld [vmem:[%s20109_s1 + $0x8d4] ss:$8 sps:$4 sm:$0xff]  }
  0xef   :  { %1872 = vmatpush1.bf16.msra.mxu0 %v14212_v12  ;;  %v14281_v12 = vld [vmem:[%s20109_s1 + $0x8d0] ss:$8 sps:$4 sm:$0xff]  }
  0xf0   :  { %2141 = vmatpush1.bf16.msra.mxu1 %v14215_v13  ;;  %1873 = vmatprep.subr.bf16.mxu0 %v14220_v14  ;;  %v14286_v13 = vld [vmem:[%s20109_s1 + $0x8e4] ss:$8 sps:$4 sm:$0xff]   ;;  %v14284_v14 = vld [vmem:[%s20109_s1 + $0x8e0] ss:$8 sps:$4 sm:$0xff]  }
  0xf1   :  { %2142 = vmatprep.subr.bf16.mxu1 %v14223_v16  ;;  %v14289_v16 = vld [vmem:[%s20109_s1 + $0x8f4] ss:$8 sps:$4 sm:$0xff]  }
  0xf3   :  { %1874 = vmatpush1.bf16.msra.mxu0 %v14218_v17  ;;  %v14287_v17 = vld [vmem:[%s20109_s1 + $0x8f0] ss:$8 sps:$4 sm:$0xff]  }
  0xf4   :  { %2143 = vmatpush1.bf16.msra.mxu1 %v14221_v18  ;;  %1875 = vmatprep.subr.bf16.mxu0 %v14226_v19  ;;  %v2225_v18 = vpack.c.bf16 %v16566_v32, %v16566_v32 }
  0xf5   :  { %2144 = vmatprep.subr.bf16.mxu1 %v14229_v20 }
  0xf7   :  { %1876 = vmatpush1.bf16.msra.mxu0 %v14224_v21 }
  0xf8   :  { %2145 = vmatpush1.bf16.msra.mxu1 %v14227_v22  ;;  %1877 = vmatprep.subr.bf16.mxu0 %v14232_v25 }
  0xf9   :  { %2146 = vmatprep.subr.bf16.mxu1 %v14235_v26 }
  0xfb   :  { %1878 = vmatpush1.bf16.msra.mxu0 %v14230_v28 }
  0xfc   :  { %2147 = vmatpush1.bf16.msra.mxu1 %v14233_v29  ;;  %1879 = vmatprep.subr.bf16.mxu0 %v14238_v30 }
  0xfd   :  { %2148 = vmatprep.subr.bf16.mxu1 %v14241_v31 }
  0xff   :  { %1880 = vmatpush1.bf16.msra.mxu0 %v14236_v33 }
 0x100   :  { %2149 = vmatpush1.bf16.msra.mxu1 %v14239_v34  ;;  %2387 = vmatprep.subr.bf16.mxu0 %v14244_v15 }
 0x101   :  { %2649 = vmatprep.subr.bf16.mxu1 %v14292_v27 }
 0x102   :  { %1882 = vmatmul.mubr.bf16.vlgmr.msra.gmra.mrb[12].mxu0 %v1687_v36  ;;  %v14295_v36 = vld [vmem:[%s20110_s2 + $0x14] ss:$8 sps:$4 sm:$0xff]  }
 0x103   :  { %2151 = vmatmul.mubr.bf16.vlgmr.msra.gmra.mrb[12].mxu1 %v1956_v37  ;;  %2388 = vmatpush1.bf16.msra.mxu0 %v14242_v35  ;;  %v14290_v35 = vld [vmem:[%s20110_s2] ss:$8 sps:$4 sm:$0xff]   ;;  %v14293_v37 = vld [vmem:[%s20110_s2 + $0x10] ss:$8 sps:$4 sm:$0xff]  }
 0x104   :  { %2419 = vmatprep.mubr.bf16.mxu0 %v2226_v39  ;;  %2389 = vmatprep.subr.bf16.mxu0 %v14247_v38  ;;  %v14298_v38 = vld [vmem:[%s20110_s2 + $0x24] ss:$8 sps:$4 sm:$0xff]   ;;  %v14296_v39 = vld [vmem:[%s20110_s2 + $0x20] ss:$8 sps:$4 sm:$0xff]  }
 0x105   :  { %2650 = vmatpush1.bf16.msra.mxu1 %v14290_v35 }
 0x106   :  { %2651 = vmatprep.subr.bf16.mxu1 %v14295_v36 }
 0x107   :  { %2390 = vmatpush1.bf16.msra.mxu0 %v14245_v40  ;;  %v14301_v40 = vld [vmem:[%s20110_s2 + $0x34] ss:$8 sps:$4 sm:$0xff]  }
 0x108   :  { %2391 = vmatprep.subr.bf16.mxu0 %v14250_v23  ;;  %v14299_v23 = vld [vmem:[%s20110_s2 + $0x30] ss:$8 sps:$4 sm:$0xff]  }
 0x109   :  { %2652 = vmatpush1.bf16.msra.mxu1 %v14293_v37 }
 0x10a   :  { %2653 = vmatprep.subr.bf16.mxu1 %v14298_v38  ;;  %v14340_v38 = vld [vmem:[%s20110_s2 + $0x204] ss:$8 sps:$4 sm:$0xff]  }
 0x10b   :  { %2392 = vmatpush1.bf16.msra.mxu0 %v14248_v24  ;;  %v14304_v24 = vld [vmem:[%s20110_s2 + $0x44] ss:$8 sps:$4 sm:$0xff]  }
 0x10c   :  { %2393 = vmatprep.subr.bf16.mxu0 %v14253_v41  ;;  %v14302_v41 = vld [vmem:[%s20110_s2 + $0x40] ss:$8 sps:$4 sm:$0xff]  }
 0x10d   :  { %2654 = vmatpush1.bf16.msra.mxu1 %v14296_v39  ;;  %v14344_v39 = vld [vmem:[%s20110_s2 + $0x100] ss:$8 sps:$4 sm:$0xff]  }
 0x10e   :  { %2655 = vmatprep.subr.bf16.mxu1 %v14301_v40  ;;  %v14346_v40 = vld [vmem:[%s20110_s2 + $0x104] ss:$8 sps:$4 sm:$0xff]  }
 0x10f   :  { %2394 = vmatpush1.bf16.msra.mxu0 %v14251_v42  ;;  %v14307_v42 = vld [vmem:[%s20110_s2 + $0x54] ss:$8 sps:$4 sm:$0xff]  }
 0x110   :  { %2395 = vmatprep.subr.bf16.mxu0 %v14256_v43  ;;  %v14305_v43 = vld [vmem:[%s20110_s2 + $0x50] ss:$8 sps:$4 sm:$0xff]  }
 0x111   :  { %2656 = vmatpush1.bf16.msra.mxu1 %v14299_v23  ;;  %v14350_v23 = vld [vmem:[%s20110_s2 + $0x110] ss:$8 sps:$4 sm:$0xff]  }
 0x112   :  { %2657 = vmatprep.subr.bf16.mxu1 %v14304_v24  ;;  %v14352_v24 = vld [vmem:[%s20110_s2 + $0x114] ss:$8 sps:$4 sm:$0xff]  }
 0x113   :  { %2396 = vmatpush1.bf16.msra.mxu0 %v14254_v44  ;;  %v14310_v44 = vld [vmem:[%s20110_s2 + $0x64] ss:$8 sps:$4 sm:$0xff]  }
 0x114   :  { %2397 = vmatprep.subr.bf16.mxu0 %v14259_v45  ;;  %v14308_v45 = vld [vmem:[%s20110_s2 + $0x60] ss:$8 sps:$4 sm:$0xff]  }
 0x115   :  { %v16619_v48 = vpop.f32.mrb[0].mxu0  ;;  %2658 = vmatpush1.bf16.msra.mxu1 %v14302_v41 }
 0x116   :  { %v16621_v49 = vpop.f32.mrb[0].mxu1  ;;  %v276_v51 = vsel %vm275_vm0, %v16619_v48, -inf  ;;  %v16628_v52 = vpop.f32.mrb[1].mxu0  ;;  %2659 = vmatprep.subr.bf16.mxu1 %v14307_v42 }
 0x117   :  { %v16630_v53 = vpop.f32.mrb[1].mxu1  ;;  %v545_v54 = vsel %vm275_vm0, %v16621_v49, -inf  ;;  %v277_v56 = vsel %vm275_vm0, %v16628_v52, -inf  ;;  %v272_v57 = vpop.f32.mrb[2].mxu0  ;;  %2398 = vmatpush1.bf16.msra.mxu0 %v14257_v46  ;;  %v14313_v46 = vld [vmem:[%s20110_s2 + $0x74] ss:$8 sps:$4 sm:$0xff]  }
 0x118   :  { %v542_v58 = vpop.f32.mrb[2].mxu1  ;;  %v546_v59 = vsel %vm275_vm0, %v16630_v53, -inf  ;;  %v273_v60 = vpop.f32.mrb[3].mxu0  ;;  %v278_v63 = vmax.f32 %v276_v51, %v277_v56  ;;  %2399 = vmatprep.subr.bf16.mxu0 %v14262_v47  ;;  %v14311_v47 = vld [vmem:[%s20110_s2 + $0x70] ss:$8 sps:$4 sm:$0xff]  }
 0x119   :  { %v543_v61 = vpop.f32.mrb[3].mxu1  ;;  %v547_v62 = vmax.f32 %v545_v54, %v546_v59  ;;  %2660 = vmatpush1.bf16.msra.mxu1 %v14305_v43  ;;  %v14356_v43 = vld [vmem:[%s20110_s2 + $0x120] ss:$8 sps:$4 sm:$0xff]  }
 0x11a   :  { %2661 = vmatprep.subr.bf16.mxu1 %v14310_v44  ;;  %v14358_v44 = vld [vmem:[%s20110_s2 + $0x124] ss:$8 sps:$4 sm:$0xff]  }
 0x11b   :  { %548 = vmax.xlane.f32.xlu0 %v547_v62  ;;  %2400 = vmatpush1.bf16.msra.mxu0 %v14260_v50  ;;  %v14316_v50 = vld [vmem:[%s20110_s2 + $0x84] ss:$8 sps:$4 sm:$0xff]  }
 0x11c   :  { %2401 = vmatprep.subr.bf16.mxu0 %v14265_v55 }
 0x11d   :  { %2662 = vmatpush1.bf16.msra.mxu1 %v14308_v45  ;;  %v14362_v45 = vld [vmem:[%s20110_s2 + $0x130] ss:$8 sps:$4 sm:$0xff]  }
 0x11e   :  { %2663 = vmatprep.subr.bf16.mxu1 %v14313_v46  ;;  %v14364_v46 = vld [vmem:[%s20110_s2 + $0x134] ss:$8 sps:$4 sm:$0xff]  }
 0x11f   :  { %279 = vmax.xlane.f32.xlu0 %v278_v63  ;;  %2402 = vmatpush1.bf16.msra.mxu0 %v14263_v0 }
 0x120   :  { %2403 = vmatprep.subr.bf16.mxu0 %v14268_v1 }
 0x121   :  { %2664 = vmatpush1.bf16.msra.mxu1 %v14311_v47  ;;  %v14368_v47 = vld [vmem:[%s20110_s2 + $0x140] ss:$8 sps:$4 sm:$0xff]  }
 0x122   :  { %2665 = vmatprep.subr.bf16.mxu1 %v14316_v50  ;;  %v14370_v50 = vld [vmem:[%s20110_s2 + $0x144] ss:$8 sps:$4 sm:$0xff]  }
 0x123   :  { %2404 = vmatpush1.bf16.msra.mxu0 %v14266_v2 }
 0x124   :  { %2405 = vmatprep.subr.bf16.mxu0 %v14271_v3  ;;  %v14314_v3 = vld [vmem:[%s20110_s2 + $0x80] ss:$8 sps:$4 sm:$0xff]  }
 0x125   :  { %2666 = vmatpush1.bf16.msra.mxu1 %v14314_v3 }
 0x127   :  { %2406 = vmatpush1.bf16.msra.mxu0 %v14269_v4  ;;  %v14319_v4 = vld [vmem:[%s20110_s2 + $0x94] ss:$8 sps:$4 sm:$0xff]  }
 0x128   :  { %2407 = vmatprep.subr.bf16.mxu0 %v14274_v5  ;;  %v14317_v5 = vld [vmem:[%s20110_s2 + $0x90] ss:$8 sps:$4 sm:$0xff]   ;;  %2667 = vmatprep.subr.bf16.mxu1 %v14319_v4  ;;  %v14380_v4 = vld [vmem:[%s20110_s2 + $0x160] ss:$8 sps:$4 sm:$0xff]  }
 0x129   :  { %2668 = vmatpush1.bf16.msra.mxu1 %v14317_v5 }
 0x12b   :  { %2408 = vmatpush1.bf16.msra.mxu0 %v14272_v6  ;;  %v14322_v6 = vld [vmem:[%s20110_s2 + $0xa4] ss:$8 sps:$4 sm:$0xff]  }
 0x12c   :  { %2409 = vmatprep.subr.bf16.mxu0 %v14277_v7  ;;  %v14320_v7 = vld [vmem:[%s20110_s2 + $0xa0] ss:$8 sps:$4 sm:$0xff]   ;;  %2669 = vmatprep.subr.bf16.mxu1 %v14322_v6 }
 0x12d   :  { %2670 = vmatpush1.bf16.msra.mxu1 %v14320_v7 }
 0x12f   :  { %2410 = vmatpush1.bf16.msra.mxu0 %v14275_v8  ;;  %v14325_v8 = vld [vmem:[%s20110_s2 + $0xb4] ss:$8 sps:$4 sm:$0xff]  }
 0x130   :  { %2411 = vmatprep.subr.bf16.mxu0 %v14280_v9  ;;  %v14323_v9 = vld [vmem:[%s20110_s2 + $0xb0] ss:$8 sps:$4 sm:$0xff]   ;;  %2671 = vmatprep.subr.bf16.mxu1 %v14325_v8 }
 0x131   :  { %2672 = vmatpush1.bf16.msra.mxu1 %v14323_v9  ;;  %v14382_v9 = vld [vmem:[%s20110_s2 + $0x164] ss:$8 sps:$4 sm:$0xff]  }
 0x133   :  { %2412 = vmatpush1.bf16.msra.mxu0 %v14278_v10 }
 0x134   :  { %2413 = vmatprep.subr.bf16.mxu0 %v14283_v11 }
 0x137   :  { %2414 = vmatpush1.bf16.msra.mxu0 %v14281_v12 }
 0x138   :  { %2415 = vmatprep.subr.bf16.mxu0 %v14286_v13 }
 0x13b   :  { %2416 = vmatpush1.bf16.msra.mxu0 %v14284_v14  ;;  %v14328_v14 = vld [vmem:[%s20110_s2 + $0xc4] ss:$8 sps:$4 sm:$0xff]  }
 0x13c   :  { %2417 = vmatprep.subr.bf16.mxu0 %v14289_v16  ;;  %2673 = vmatprep.subr.bf16.mxu1 %v14328_v14  ;;  %v14386_v14 = vld [vmem:[%s20110_s2 + $0x170] ss:$8 sps:$4 sm:$0xff]  }
 0x13f   :  { %2418 = vmatpush1.bf16.msra.mxu0 %v14287_v17  ;;  %v14326_v17 = vld [vmem:[%s20110_s2 + $0xc0] ss:$8 sps:$4 sm:$0xff]  }
 0x140   :  { %2674 = vmatpush1.bf16.msra.mxu1 %v14326_v17  ;;  %2915 = vmatprep.subr.bf16.mxu0 %v14346_v40 }
 0x142   :  { %2420 = vmatmul.mubr.bf16.vlgmr.msra.gmra.mrb[16].mxu0 %v2225_v18 }
 0x143   :  { %2916 = vmatpush1.bf16.msra.mxu0 %v14344_v39 }
 0x144   :  { %2917 = vmatprep.subr.bf16.mxu0 %v14352_v24 }
 0x147   :  { %2918 = vmatpush1.bf16.msra.mxu0 %v14350_v23  ;;  %v14430_v23 = vld [vmem:[%s20110_s2 + $0x1e4] ss:$8 sps:$4 sm:$0xff]  }
 0x148   :  { %2919 = vmatprep.subr.bf16.mxu0 %v14358_v44  ;;  %v14436_v44 = vld [vmem:[%s20110_s2 + $0x1f4] ss:$8 sps:$4 sm:$0xff]  }
 0x14b   :  { %2920 = vmatpush1.bf16.msra.mxu0 %v14356_v43  ;;  %v14428_v43 = vld [vmem:[%s20110_s2 + $0x1e0] ss:$8 sps:$4 sm:$0xff]  }
 0x14c   :  { %2921 = vmatprep.subr.bf16.mxu0 %v14364_v46 }
 0x14f   :  { %2922 = vmatpush1.bf16.msra.mxu0 %v14362_v45  ;;  %v14434_v45 = vld [vmem:[%s20110_s2 + $0x1f0] ss:$8 sps:$4 sm:$0xff]  }
 0x150   :  { %2923 = vmatprep.subr.bf16.mxu0 %v14370_v50 }
 0x153   :  { %2924 = vmatpush1.bf16.msra.mxu0 %v14368_v47 }
 0x155   :  { %v16694_v19 = vpop.f32.mrb[4].mxu0 }
 0x156   :  { %v16696_v20 = vpop.f32.mrb[4].mxu1  ;;  %v16698_v21 = vpop.f32.mrb[5].mxu0  ;;  %v814_v22 = vsel %vm275_vm0, %v16694_v19, -inf }
 0x157   :  { %v16704_v25 = vsel %vm275_vm0, %v16696_v20, -inf  ;;  %v16706_v26 = vpop.f32.mrb[5].mxu1  ;;  %v811_v28 = vpop.f32.mrb[6].mxu0  ;;  %v815_v29 = vsel %vm275_vm0, %v16698_v21, -inf }
 0x158   :  { %v16712_v30 = vsel %vm275_vm0, %v16706_v26, -inf  ;;  %v1080_v31 = vpop.f32.mrb[6].mxu1  ;;  %v812_v32 = vpop.f32.mrb[7].mxu0  ;;  %v816_v33 = vmax.f32 %v814_v22, %v815_v29  ;;  %v14329_v29 = vld [vmem:[%s20110_s2 + $0xd0] ss:$8 sps:$4 sm:$0xff]  }
 0x159   :  { %v1081_v34 = vpop.f32.mrb[7].mxu1  ;;  %v1085_v15 = vmax.f32 %v16704_v25, %v16712_v30  ;;  %v14334_v31 = vld [vmem:[%s20110_s2 + $0xe4] ss:$8 sps:$4 sm:$0xff]   ;;  %v14332_v32 = vld [vmem:[%s20110_s2 + $0xe0] ss:$8 sps:$4 sm:$0xff]  }
 0x15a   :  { %817 = vmax.xlane.f32.xlu1 %v816_v33  ;;  %v14337_v33 = vld [vmem:[%s20110_s2 + $0xf4] ss:$8 sps:$4 sm:$0xff]   ;;  %v14335_v34 = vld [vmem:[%s20110_s2 + $0xf0] ss:$8 sps:$4 sm:$0xff]  }
 0x195   :  { %v16767_v51 = vpop.f32.mrb[8].mxu0 }
 0x196   :  { %v16769_v54 = vpop.f32.mrb[8].mxu1  ;;  %v1352_v55 = vsel %vm275_vm0, %v16767_v51, -inf  ;;  %v16773_v56 = vpop.f32.mrb[9].mxu0 }
 0x197   :  { %v16777_v57 = vsel %vm275_vm0, %v16769_v54, -inf  ;;  %v16779_v58 = vpop.f32.mrb[9].mxu1  ;;  %v1353_v59 = vsel %vm275_vm0, %v16773_v56, -inf  ;;  %v1349_v60 = vpop.f32.mrb[10].mxu0 }
 0x198   :  { %v16785_v61 = vsel %vm275_vm0, %v16779_v58, -inf  ;;  %v1618_v62 = vpop.f32.mrb[10].mxu1  ;;  %v1350_v63 = vpop.f32.mrb[11].mxu0  ;;  %v1354_v0 = vmax.f32 %v1352_v55, %v1353_v59  ;;  %v14374_v55 = vld [vmem:[%s20110_s2 + $0x150] ss:$8 sps:$4 sm:$0xff]  }
 0x199   :  { %v1619_v1 = vpop.f32.mrb[11].mxu1  ;;  %v1623_v2 = vmax.f32 %v16777_v57, %v16785_v61  ;;  %v14376_v59 = vld [vmem:[%s20110_s2 + $0x154] ss:$8 sps:$4 sm:$0xff]   ;;  %v14410_v57 = vld [vmem:[%s20110_s2 + $0x1b0] ss:$8 sps:$4 sm:$0xff]  }
 0x19a   :  { %1355 = vmax.xlane.f32.xlu0 %v1354_v0  ;;  %2925 = vmatprep.subr.bf16.mxu0 %v14376_v59  ;;  %v14412_v61 = vld [vmem:[%s20110_s2 + $0x1b4] ss:$8 sps:$4 sm:$0xff]  }
 0x19b   :  { %2926 = vmatpush1.bf16.msra.mxu0 %v14374_v55 }
 0x19c   :  { %2927 = vmatprep.subr.bf16.mxu0 %v14382_v9 }
 0x19f   :  { %2928 = vmatpush1.bf16.msra.mxu0 %v14380_v4 }
 0x1a8   :  { %v549_v10 = vpop.xlane.xlu0 %548 }
 0x1a9   :  { %v550_v11 = vmul.f32 0.5, %v549_v10 }
 0x1ab   :  { %v551_v12 = vsub.f32 %v16621_v49, %v550_v11  ;;  %v552_v13 = vsub.f32 %v16630_v53, %v550_v11  ;;  %v14331_v53 = vld [vmem:[%s20110_s2 + $0xd4] ss:$8 sps:$4 sm:$0xff]  }
 0x1ac   :  { %v280_v16 = vpop.xlane.xlu0 %279  ;;  %2675 = vmatprep.subr.bf16.mxu1 %v14331_v53 }
 0x1ad   :  { %v10787_v18 = vmul.f32 -1.442695, %v551_v12  ;;  %v10788_v22 = vmul.f32 -1.442695, %v552_v13  ;;  %v16818_v28 = vmul.f32 0.5, %v280_v16  ;;  %2676 = vmatpush1.bf16.msra.mxu1 %v14329_v29 }
 0x1ae   :  { %2677 = vmatprep.subr.bf16.mxu1 %v14334_v31  ;;  %v14388_v16 = vld [vmem:[%s20110_s2 + $0x174] ss:$8 sps:$4 sm:$0xff]  }
 0x1af   :  { %15394 = vpow2.f32 %v10787_v18  ;;  %v283_v49 = vsub.f32 %v16628_v52, %v16818_v28  ;;  %2929 = vmatprep.subr.bf16.mxu0 %v14388_v16  ;;  %v282_v17 = vsub.f32 %v16619_v48, %v16818_v28  ;;  %v14392_v18 = vld [vmem:[%s20110_s2 + $0x180] ss:$8 sps:$4 sm:$0xff]   ;;  %v14398_v48 = vld [vmem:[%s20110_s2 + $0x190] ss:$8 sps:$4 sm:$0xff]   ;;  %v14400_v31 = vld [vmem:[%s20110_s2 + $0x194] ss:$8 sps:$4 sm:$0xff]  }
 0x1b0   :  { %15396 = vpow2.f32 %v10788_v22  ;;  %2930 = vmatpush1.bf16.msra.mxu0 %v14386_v14  ;;  %v14394_v22 = vld [vmem:[%s20110_s2 + $0x184] ss:$8 sps:$4 sm:$0xff]   ;;  %v14404_v52 = vld [vmem:[%s20110_s2 + $0x1a0] ss:$8 sps:$4 sm:$0xff]  }
 0x1b1   :  { %2678 = vmatpush1.bf16.msra.mxu1 %v14332_v32  ;;  %2931 = vmatprep.subr.bf16.mxu0 %v14394_v22  ;;  %v10719_v53 = vmul.f32 -1.442695, %v282_v17  ;;  %v10720_v29 = vmul.f32 -1.442695, %v283_v49  ;;  %v14406_v28 = vld [vmem:[%s20110_s2 + $0x1a4] ss:$8 sps:$4 sm:$0xff]  }
 0x1b2   :  { %2679 = vmatprep.subr.bf16.mxu1 %v14337_v33 }
 0x1b4   :  { %2932 = vmatpush1.bf16.msra.mxu0 %v14392_v18 }
 0x1b5   :  { %2680 = vmatpush1.bf16.msra.mxu1 %v14335_v34  ;;  %2933 = vmatprep.subr.bf16.mxu0 %v14400_v31 }
 0x1b6   :  { %3177 = vmatprep.subr.bf16.mxu1 %v14340_v38 }
 0x1b8   :  { %2934 = vmatpush1.bf16.msra.mxu0 %v14398_v48 }
 0x1b9   :  { %v15395_v27 = vpop.eup %15394  ;;  %2935 = vmatprep.subr.bf16.mxu0 %v14406_v28 }
 0x1ba   :  { %v15397_v35 = vpop.eup %15396  ;;  %v559_v36 = vadd.f32 1.0, %v15395_v27 }
 0x1bb   :  { %v560_v37 = vadd.f32 1.0, %v15397_v35 }
 0x1bc   :  { %15398 = vrcp.f32 %v559_v36  ;;  %2936 = vmatpush1.bf16.msra.mxu0 %v14404_v52  ;;  %v14424_v36 = vld [vmem:[%s20110_s2 + $0x1d4] ss:$8 sps:$4 sm:$0xff]   ;;  %v14338_v52 = vld [vmem:[%s20110_s2 + $0x200] ss:$8 sps:$4 sm:$0xff]  }
 0x1bd   :  { %15400 = vrcp.f32 %v560_v37  ;;  %2937 = vmatprep.subr.bf16.mxu0 %v14412_v61  ;;  %v14422_v37 = vld [vmem:[%s20110_s2 + $0x1d0] ss:$8 sps:$4 sm:$0xff]   ;;  %v14349_v61 = vld [vmem:[%s20110_s2 + $0x224] ss:$8 sps:$4 sm:$0xff]  }
 0x1be   :  { %15402 = vpow2.f32 %v10719_v53 }
 0x1bf   :  { %15404 = vpow2.f32 %v10720_v29 }
 0x1c0   :  { %2938 = vmatpush1.bf16.msra.mxu0 %v14410_v57  ;;  %v14341_v57 = vld [vmem:[%s20110_s2 + $0x210] ss:$8 sps:$4 sm:$0xff]  }
 0x1c6   :  { %v16855_v41 = vpop.eup %15398 }
 0x1c7   :  { %v16857_v42 = vpop.eup %15400  ;;  %2449 = vrot.lane.b32.xlu1 %v16855_v41, %s15702_s16 }
 0x1c8   :  { %2977 = vrot.lane.b32.xlu0 %v16857_v42, %s15702_s16  ;;  %v15403_v25 = vpop.eup %15402 }
 0x1c9   :  { %v15405_v30 = vpop.eup %15404 }
 0x1ca   :  { %v291_v35 = vadd.f32 1.0, %v15405_v30  ;;  %v14361_v30 = vld [vmem:[%s20110_s2 + $0x244] ss:$8 sps:$4 sm:$0xff]  }
 0x1d5   :  { %v16889_v62 = vpop.f32.mrb[12].mxu0 }
 0x1d6   :  { %v16887_v60 = vpop.f32.mrb[12].mxu1  ;;  %v16897_v1 = vsel %vm275_vm0, %v16889_v62, -inf  ;;  %v16899_v3 = vpop.f32.mrb[13].mxu0 }
 0x1d7   :  { %v2159_v63 = vsel %vm275_vm0, %v16887_v60, -inf  ;;  %v16893_v0 = vpop.f32.mrb[13].mxu1  ;;  %v16908_v7 = vsel %vm275_vm0, %v16899_v3, -inf  ;;  %v1887_v8 = vpop.f32.mrb[14].mxu0 }
 0x1d8   :  { %v2160_v5 = vsel %vm275_vm0, %v16893_v0, -inf  ;;  %v2156_v6 = vpop.f32.mrb[14].mxu1  ;;  %v1888_v12 = vpop.f32.mrb[15].mxu0  ;;  %v1892_v13 = vmax.f32 %v16897_v1, %v16908_v7  ;;  %v14425_v1 = vld [vmem:[%s20110_s2 + $0x2f0] ss:$8 sps:$4 sm:$0xff]  }
 0x1d9   :  { %v2161_v10 = vmax.f32 %v2159_v63, %v2160_v5  ;;  %v2157_v11 = vpop.f32.mrb[15].mxu1 }
 0x1e7   :  { %1624 = vmax.xlane.f32.xlu0 %v1623_v2  ;;  %v818_v49 = vpop.xlane.xlu1 %817 }
 0x1e8   :  { %v819_v32 = vmul.f32 0.5, %v818_v49 }
 0x1ea   :  { %v820_v33 = vsub.f32 %v16694_v19, %v819_v32  ;;  %v821_v34 = vsub.f32 %v16698_v21, %v819_v32  ;;  %v14416_v19 = vld [vmem:[%s20110_s2 + $0x1c0] ss:$8 sps:$4 sm:$0xff]   ;;  %v14418_v21 = vld [vmem:[%s20110_s2 + $0x1c4] ss:$8 sps:$4 sm:$0xff]  }
 0x1eb   :  { %2162 = vmax.xlane.f32.xlu0 %v2161_v10  ;;  %1086 = vmax.xlane.f32.xlu1 %v1085_v15  ;;  %v290_v15 = vadd.f32 1.0, %v15403_v25  ;;  %v14493_v25 = vld [vmem:[%s20110_s2 + $0x304] ss:$8 sps:$4 sm:$0xff]  }
 0x1ec   :  { %v10855_v2 = vmul.f32 -1.442695, %v820_v33  ;;  %v10856_v27 = vmul.f32 -1.442695, %v821_v34  ;;  %2939 = vmatprep.subr.bf16.mxu0 %v14418_v21  ;;  %v14353_v21 = vld [vmem:[%s20110_s2 + $0x230] ss:$8 sps:$4 sm:$0xff]  }
 0x1ed   :  { %2940 = vmatpush1.bf16.msra.mxu0 %v14416_v19 }
 0x1ee   :  { %15406 = vpow2.f32 %v10855_v2  ;;  %2941 = vmatprep.subr.bf16.mxu0 %v14424_v36  ;;  %v14347_v2 = vld [vmem:[%s20110_s2 + $0x220] ss:$8 sps:$4 sm:$0xff]   ;;  %v14367_v36 = vld [vmem:[%s20110_s2 + $0x254] ss:$8 sps:$4 sm:$0xff]  }
 0x1ef   :  { %15408 = vpow2.f32 %v10856_v27  ;;  %v14355_v27 = vld [vmem:[%s20110_s2 + $0x234] ss:$8 sps:$4 sm:$0xff]  }
 0x1f0   :  { %15410 = vrcp.f32 %v290_v15 }
 0x1f1   :  { %2942 = vmatpush1.bf16.msra.mxu0 %v14422_v37  ;;  %15412 = vrcp.f32 %v291_v35  ;;  %v14359_v35 = vld [vmem:[%s20110_s2 + $0x240] ss:$8 sps:$4 sm:$0xff]   ;;  %v14365_v37 = vld [vmem:[%s20110_s2 + $0x250] ss:$8 sps:$4 sm:$0xff]  }
 0x1f2   :  { %2943 = vmatprep.subr.bf16.mxu0 %v14430_v23  ;;  %v14377_v23 = vld [vmem:[%s20110_s2 + $0x270] ss:$8 sps:$4 sm:$0xff]  }
 0x1f5   :  { %2944 = vmatpush1.bf16.msra.mxu0 %v14428_v43  ;;  %v14383_v43 = vld [vmem:[%s20110_s2 + $0x280] ss:$8 sps:$4 sm:$0xff]  }
 0x1f6   :  { %2945 = vmatprep.subr.bf16.mxu0 %v14436_v44  ;;  %v14391_v44 = vld [vmem:[%s20110_s2 + $0x294] ss:$8 sps:$4 sm:$0xff]  }
 0x1f8   :  { %v15407_v38 = vpop.eup %15406 }
 0x1f9   :  { %v15409_v39 = vpop.eup %15408  ;;  %v828_v40 = vadd.f32 1.0, %v15407_v38  ;;  %2946 = vmatpush1.bf16.msra.mxu0 %v14434_v45  ;;  %v14373_v38 = vld [vmem:[%s20110_s2 + $0x264] ss:$8 sps:$4 sm:$0xff]   ;;  %v14389_v45 = vld [vmem:[%s20110_s2 + $0x290] ss:$8 sps:$4 sm:$0xff]  }
 0x1fa   :  { %v829_v24 = vadd.f32 1.0, %v15409_v39  ;;  %v15411_v46 = vpop.eup %15410  ;;  %3443 = vmatprep.subr.bf16.mxu0 %v14493_v25  ;;  %v14371_v39 = vld [vmem:[%s20110_s2 + $0x260] ss:$8 sps:$4 sm:$0xff]  }
 0x1fb   :  { %15414 = vrcp.f32 %v828_v40  ;;  %v16982_v47 = vpop.eup %15412  ;;  %v14379_v40 = vld [vmem:[%s20110_s2 + $0x274] ss:$8 sps:$4 sm:$0xff]  }
 0x1fc   :  { %15416 = vrcp.f32 %v829_v24  ;;  %v14385_v24 = vld [vmem:[%s20110_s2 + $0x284] ss:$8 sps:$4 sm:$0xff]  }
 0x205   :  { %v15415_v50 = vpop.eup %15414 }
 0x206   :  { %v16990_v59 = vpop.eup %15416  ;;  %v11298_v63 = vpack.c.bf16 %v15415_v50, %v15415_v50  ;;  %v13723_v4 = vpack.i.bf16 %v15415_v50, %v15411_v46  ;;  %v14395_v50 = vld [vmem:[%s20110_s2 + $0x2a0] ss:$8 sps:$4 sm:$0xff]  }
 0x207   :  { %v13728_v5 = vpack.i.bf16 %v16990_v59, %v16982_v47  ;;  %v11436_v34 = vpack.c.bf16 %v16990_v59, %v16990_v59  ;;  %v14497_v59 = vld [vmem:[%s20110_s2 + $0x310] ss:$8 sps:$4 sm:$0xff]  }
 0x208   :  { %11299 = vmatprep.mubr.msk.bf16.mxu1 %vm16986_vm2, %v11298_v63  ;;  %13724 = vrot.lane.b32.xlu0 %v13723_v4, %s15702_s16  ;;  %v14403_v63 = vld [vmem:[%s20110_s2 + $0x2b4] ss:$8 sps:$4 sm:$0xff]   ;;  %v14401_v4 = vld [vmem:[%s20110_s2 + $0x2b0] ss:$8 sps:$4 sm:$0xff]  }
 0x215   :  { %v16997_v6 = vpop.f32.mrb[16].mxu0 }
 0x216   :  { %v2428_v8 = vsel %vm275_vm0, %v16997_v6, -inf  ;;  %v17001_v9 = vpop.f32.mrb[17].mxu0 }
 0x217   :  { %v2429_v10 = vsel %vm275_vm0, %v17001_v9, -inf  ;;  %v2425_v11 = vpop.f32.mrb[18].mxu0 }
 0x218   :  { %v2430_v12 = vmax.f32 %v2428_v8, %v2429_v10  ;;  %v2426_v14 = vpop.f32.mrb[19].mxu0  ;;  %v14409_v8 = vld [vmem:[%s20110_s2 + $0x2c4] ss:$8 sps:$4 sm:$0xff]   ;;  %v14407_v10 = vld [vmem:[%s20110_s2 + $0x2c0] ss:$8 sps:$4 sm:$0xff]  }
 0x219   :  { %v14415_v11 = vld [vmem:[%s20110_s2 + $0x2d4] ss:$8 sps:$4 sm:$0xff]   ;;  %v14421_v14 = vld [vmem:[%s20110_s2 + $0x2e4] ss:$8 sps:$4 sm:$0xff]  }
 0x227   :  { %v1356_v16 = vpop.xlane.xlu0 %1355  ;;  %2431 = vmax.xlane.f32.xlu0 %v2430_v12  ;;  %v14413_v12 = vld [vmem:[%s20110_s2 + $0x2d0] ss:$8 sps:$4 sm:$0xff]  }
 0x228   :  { %v1357_v17 = vmul.f32 0.5, %v1356_v16 }
 0x22a   :  { %v1358_v18 = vsub.f32 %v16767_v51, %v1357_v17  ;;  %v1359_v22 = vsub.f32 %v16773_v56, %v1357_v17  ;;  %v14343_v51 = vld [vmem:[%s20110_s2 + $0x214] ss:$8 sps:$4 sm:$0xff]   ;;  %v14419_v17 = vld [vmem:[%s20110_s2 + $0x2e0] ss:$8 sps:$4 sm:$0xff]  }
 0x22c   :  { %v10991_v53 = vmul.f32 -1.442695, %v1358_v18  ;;  %v10992_v29 = vmul.f32 -1.442695, %v1359_v22  ;;  %v14427_v18 = vld [vmem:[%s20110_s2 + $0x2f4] ss:$8 sps:$4 sm:$0xff]  }
 0x22e   :  { %15418 = vpow2.f32 %v10991_v53 }
 0x22f   :  { %15420 = vpow2.f32 %v10992_v29 }
 0x238   :  { %v15419_v48 = vpop.eup %15418 }
 0x239   :  { %v2450_v31 = vpop.permute.xlu1 %2449  ;;  %v15421_v28 = vpop.eup %15420  ;;  %v1366_v49 = vadd.f32 1.0, %v15419_v48  ;;  %v14433_v48 = vld [vmem:[%s20110_s2 + $0x404] ss:$8 sps:$4 sm:$0xff]  }
 0x23a   :  { %v2453_v32 = vsel %vm2452_vm1, %v15411_v46, %v2450_v31  ;;  %v1367_v33 = vadd.f32 1.0, %v15421_v28  ;;  %v14397_v46 = vld [vmem:[%s20110_s2 + $0x2a4] ss:$8 sps:$4 sm:$0xff]   ;;  %v2978_v16 = vpop.permute.xlu0 %2977  ;;  %v14431_v28 = vld [vmem:[%s20110_s2 + $0x400] ss:$8 sps:$4 sm:$0xff]  }
 0x23b   :  { %v2487_v56 = vpack.c.bf16 %v2453_v32, %v2453_v32  ;;  %15422 = vrcp.f32 %v1366_v49  ;;  %v2980_v7 = vsel %vm2452_vm1, %v16982_v47, %v2978_v16  ;;  %v14445_v47 = vld [vmem:[%s20110_s2 + $0x434] ss:$8 sps:$4 sm:$0xff]  }
 0x23c   :  { %15424 = vrcp.f32 %v1367_v33 }
 0x23d   :  { %2682 = vmatmul.mubr.bf16.vlgmr.msra.gmra.mrb[16].mxu1 %v2487_v56 }
 0x23e   :  { %3178 = vmatpush1.bf16.msra.mxu1 %v14338_v52  ;;  %11437 = vmatprep.mubr.msk.bf16.mxu1 %vm16986_vm2, %v11436_v34 }
 0x23f   :  { %3179 = vmatprep.subr.bf16.mxu1 %v14343_v51 }
 0x242   :  { %3180 = vmatpush1.bf16.msra.mxu1 %v14341_v57 }
 0x243   :  { %3181 = vmatprep.subr.bf16.mxu1 %v14349_v61 }
 0x245   :  { %v17030_v19 = vpop.eup %15422 }
 0x246   :  { %3182 = vmatpush1.bf16.msra.mxu1 %v14347_v2  ;;  %3505 = vrot.lane.b32.xlu1 %v17030_v19, %s15702_s16  ;;  %v17043_v15 = vpop.eup %15424 }
 0x247   :  { %3183 = vmatprep.subr.bf16.mxu1 %v14355_v27 }
 0x24a   :  { %3184 = vmatpush1.bf16.msra.mxu1 %v14353_v21  ;;  %4033 = vrot.lane.b32.xlu1 %v17043_v15, %s15702_s16 }
 0x24b   :  { %3185 = vmatprep.subr.bf16.mxu1 %v14361_v30 }
 0x24e   :  { %3186 = vmatpush1.bf16.msra.mxu1 %v14359_v35 }
 0x24f   :  { %3187 = vmatprep.subr.bf16.mxu1 %v14367_v36 }
 0x252   :  { %3188 = vmatpush1.bf16.msra.mxu1 %v14365_v37 }
 0x253   :  { %3189 = vmatprep.subr.bf16.mxu1 %v14373_v38 }
 0x256   :  { %3190 = vmatpush1.bf16.msra.mxu1 %v14371_v39  ;;  %v14499_v39 = vld [vmem:[%s20110_s2 + $0x314] ss:$8 sps:$4 sm:$0xff]  }
 0x257   :  { %3191 = vmatprep.subr.bf16.mxu1 %v14379_v40  ;;  %v14505_v40 = vld [vmem:[%s20110_s2 + $0x324] ss:$8 sps:$4 sm:$0xff]  }
 0x25a   :  { %3192 = vmatpush1.bf16.msra.mxu1 %v14377_v23 }
 0x25b   :  { %3193 = vmatprep.subr.bf16.mxu1 %v14385_v24 }
 0x25e   :  { %3194 = vmatpush1.bf16.msra.mxu1 %v14383_v43  ;;  %v14443_v43 = vld [vmem:[%s20110_s2 + $0x430] ss:$8 sps:$4 sm:$0xff]  }
 0x25f   :  { %3195 = vmatprep.subr.bf16.mxu1 %v14391_v44  ;;  %v14448_v44 = vld [vmem:[%s20110_s2 + $0x444] ss:$8 sps:$4 sm:$0xff]  }
 0x262   :  { %3196 = vmatpush1.bf16.msra.mxu1 %v14389_v45  ;;  %v14503_v45 = vld [vmem:[%s20110_s2 + $0x320] ss:$8 sps:$4 sm:$0xff]  }
 0x263   :  { %3197 = vmatprep.subr.bf16.mxu1 %v14397_v46  ;;  %v14511_v46 = vld [vmem:[%s20110_s2 + $0x334] ss:$8 sps:$4 sm:$0xff]  }
 0x266   :  { %3198 = vmatpush1.bf16.msra.mxu1 %v14395_v50 }
 0x267   :  { %3199 = vmatprep.subr.bf16.mxu1 %v14403_v63 }
 0x26a   :  { %3200 = vmatpush1.bf16.msra.mxu1 %v14401_v4 }
 0x26b   :  { %3201 = vmatprep.subr.bf16.mxu1 %v14409_v8 }
 0x26e   :  { %3202 = vmatpush1.bf16.msra.mxu1 %v14407_v10  ;;  %1893 = vmax.xlane.f32.xlu1 %v1892_v13  ;;  %v14446_v10 = vld [vmem:[%s20110_s2 + $0x440] ss:$8 sps:$4 sm:$0xff]  }
 0x26f   :  { %3203 = vmatprep.subr.bf16.mxu1 %v14415_v11 }
 0x272   :  { %3204 = vmatpush1.bf16.msra.mxu1 %v14413_v12  ;;  %v14451_v12 = vld [vmem:[%s20110_s2 + $0x454] ss:$8 sps:$4 sm:$0xff]  }
 0x273   :  { %3205 = vmatprep.subr.bf16.mxu1 %v14421_v14  ;;  %v14509_v14 = vld [vmem:[%s20110_s2 + $0x330] ss:$8 sps:$4 sm:$0xff]  }
 0x274   :  { %v1625_v22 = vpop.xlane.xlu0 %1624 }
 0x275   :  { %v1626_v53 = vmul.f32 0.5, %v1625_v22 }
 0x276   :  { %3206 = vmatpush1.bf16.msra.mxu1 %v14419_v17 }
 0x277   :  { %v1627_v13 = vsub.f32 %v16769_v54, %v1626_v53  ;;  %v1628_v29 = vsub.f32 %v16779_v58, %v1626_v53  ;;  %3207 = vmatprep.subr.bf16.mxu1 %v14427_v18  ;;  %v14439_v54 = vld [vmem:[%s20110_s2 + $0x414] ss:$8 sps:$4 sm:$0xff]   ;;  %v3015_v58 = vpack.c.bf16 %v2980_v7, %v2980_v7  ;;  %v14449_v18 = vld [vmem:[%s20110_s2 + $0x450] ss:$8 sps:$4 sm:$0xff]   ;;  %v14517_v53 = vld [vmem:[%s20110_s2 + $0x344] ss:$8 sps:$4 sm:$0xff]  }
 0x278   :  { %v2163_v31 = vpop.xlane.xlu0 %2162  ;;  %v1087_v52 = vpop.xlane.xlu1 %1086  ;;  %v14515_v7 = vld [vmem:[%s20110_s2 + $0x340] ss:$8 sps:$4 sm:$0xff]  }
 0x279   :  { %v11059_v49 = vmul.f32 -1.442695, %v1627_v13  ;;  %v11060_v32 = vmul.f32 -1.442695, %v1628_v29  ;;  %v2164_v51 = vmul.f32 0.5, %v2163_v31  ;;  %v1088_v33 = vmul.f32 0.5, %v1087_v52 }
 0x27a   :  { %3208 = vmatpush1.bf16.msra.mxu1 %v14425_v1  ;;  %v14454_v1 = vld [vmem:[%s20110_s2 + $0x464] ss:$8 sps:$4 sm:$0xff]   ;;  %v14523_v29 = vld [vmem:[%s20110_s2 + $0x354] ss:$8 sps:$4 sm:$0xff]   ;;  %v14452_v31 = vld [vmem:[%s20110_s2 + $0x460] ss:$8 sps:$4 sm:$0xff]  }
 0x27b   :  { %15426 = vpow2.f32 %v11059_v49  ;;  %v2165_v56 = vsub.f32 %v16887_v60, %v2164_v51  ;;  %v2166_v34 = vsub.f32 %v16893_v0, %v2164_v51  ;;  %v1089_v57 = vsub.f32 %v16696_v20, %v1088_v33  ;;  %3705 = vmatprep.subr.bf16.mxu1 %v14433_v48  ;;  %v14437_v60 = vld [vmem:[%s20110_s2 + $0x410] ss:$8 sps:$4 sm:$0xff]   ;;  %v14442_v20 = vld [vmem:[%s20110_s2 + $0x424] ss:$8 sps:$4 sm:$0xff]   ;;  %v14457_v52 = vld [vmem:[%s20110_s2 + $0x474] ss:$8 sps:$4 sm:$0xff]  }
 0x27c   :  { %15428 = vpow2.f32 %v11060_v32  ;;  %v1090_v61 = vsub.f32 %v16706_v26, %v1088_v33  ;;  %v13725_v2 = vpop.permute.xlu0 %13724  ;;  %v14491_v26 = vld [vmem:[%s20110_s2 + $0x300] ss:$8 sps:$4 sm:$0xff]   ;;  %v14521_v49 = vld [vmem:[%s20110_s2 + $0x350] ss:$8 sps:$4 sm:$0xff]   ;;  %v14529_v32 = vld [vmem:[%s20110_s2 + $0x364] ss:$8 sps:$4 sm:$0xff]  }
 0x27d   :  { %v11195_v27 = vmul.f32 -1.442695, %v2165_v56  ;;  %v11196_v21 = vmul.f32 -1.442695, %v2166_v34  ;;  %v10923_v25 = vmul.f32 -1.442695, %v1089_v57  ;;  %v13727_v30 = vunpack.i.h.bf16 %v13725_v2  ;;  %3210 = vmatmul.mubr.bf16.vlgmr.msra.gmra.mrb[20].mxu1 %v3015_v58 }
 0x27e   :  { %v10924_v35 = vmul.f32 -1.442695, %v1090_v61  ;;  %v13726_v36 = vunpack.i.l.bf16 %v13725_v2  ;;  %3706 = vmatpush1.bf16.msra.mxu1 %v14431_v28  ;;  %v14455_v33 = vld [vmem:[%s20110_s2 + $0x470] ss:$8 sps:$4 sm:$0xff]   ;;  %v14527_v56 = vld [vmem:[%s20110_s2 + $0x360] ss:$8 sps:$4 sm:$0xff]  }
 0x27f   :  { %15430 = vpow2.f32 %v11195_v27  ;;  %v11367_v0 = vpack.c.bf16 %v13727_v30, %v13727_v30  ;;  %3707 = vmatprep.subr.bf16.mxu1 %v14439_v54  ;;  %13729 = vrot.lane.b32.xlu1 %v13728_v5, %s15702_s16  ;;  %v14460_v54 = vld [vmem:[%s20110_s2 + $0x484] ss:$8 sps:$4 sm:$0xff]   ;;  %v14535_v2 = vld [vmem:[%s20110_s2 + $0x374] ss:$8 sps:$4 sm:$0xff]   ;;  %v14458_v27 = vld [vmem:[%s20110_s2 + $0x480] ss:$8 sps:$4 sm:$0xff]  }
 0x280   :  { %15432 = vpow2.f32 %v11196_v21  ;;  %v2718_v37 = vsel %vm2452_vm1, %v13726_v36, %v16855_v41  ;;  %v14440_v41 = vld [vmem:[%s20110_s2 + $0x420] ss:$8 sps:$4 sm:$0xff]   ;;  %v14463_v21 = vld [vmem:[%s20110_s2 + $0x494] ss:$8 sps:$4 sm:$0xff]   ;;  %v14533_v30 = vld [vmem:[%s20110_s2 + $0x370] ss:$8 sps:$4 sm:$0xff]  }
 0x281   :  { %15434 = vpow2.f32 %v10923_v25  ;;  %v2753_v38 = vpack.c.bf16 %v2718_v37, %v2718_v37  ;;  %11368 = vmatprep.mubr.msk.bf16.mxu0 %vm16986_vm2, %v11367_v0  ;;  %v14466_v0 = vld [vmem:[%s20110_s2 + $0x4a4] ss:$8 sps:$4 sm:$0xff]   ;;  %v14547_v37 = vld [vmem:[%s20110_s2 + $0x394] ss:$8 sps:$4 sm:$0xff]  }
 0x282   :  { %15436 = vpow2.f32 %v10924_v35  ;;  %3708 = vmatpush1.bf16.msra.mxu1 %v14437_v60  ;;  %v14541_v35 = vld [vmem:[%s20110_s2 + $0x384] ss:$8 sps:$4 sm:$0xff]   ;;  %v14461_v60 = vld [vmem:[%s20110_s2 + $0x490] ss:$8 sps:$4 sm:$0xff]  }
 0x283   :  { %2948 = vmatmul.mubr.bf16.vlgmr.msra.gmra.mrb[20].mxu0 %v2753_v38  ;;  %3709 = vmatprep.subr.bf16.mxu1 %v14442_v20  ;;  %v14539_v20 = vld [vmem:[%s20110_s2 + $0x380] ss:$8 sps:$4 sm:$0xff]   ;;  %v14469_v38 = vld [vmem:[%s20110_s2 + $0x4b4] ss:$8 sps:$4 sm:$0xff]  }
 0x284   :  { %3444 = vmatpush1.bf16.msra.mxu0 %v14491_v26  ;;  %v14464_v26 = vld [vmem:[%s20110_s2 + $0x4a0] ss:$8 sps:$4 sm:$0xff]  }
 0x285   :  { %v15427_v5 = vpop.eup %15426  ;;  %3445 = vmatprep.subr.bf16.mxu0 %v14499_v39  ;;  %v14545_v39 = vld [vmem:[%s20110_s2 + $0x390] ss:$8 sps:$4 sm:$0xff]  }
 0x286   :  { %v15429_v23 = vpop.eup %15428  ;;  %v1635_v24 = vadd.f32 1.0, %v15427_v5  ;;  %3710 = vmatpush1.bf16.msra.mxu1 %v14440_v41  ;;  %v14467_v41 = vld [vmem:[%s20110_s2 + $0x4b0] ss:$8 sps:$4 sm:$0xff]   ;;  %v14551_v5 = vld [vmem:[%s20110_s2 + $0x3a0] ss:$8 sps:$4 sm:$0xff]  }
 0x287   :  { %3711 = vmatprep.subr.bf16.mxu1 %v14445_v47  ;;  %v1636_v63 = vadd.f32 1.0, %v15429_v23  ;;  %v14553_v47 = vld [vmem:[%s20110_s2 + $0x3a4] ss:$8 sps:$4 sm:$0xff]   ;;  %v14559_v23 = vld [vmem:[%s20110_s2 + $0x3b4] ss:$8 sps:$4 sm:$0xff]  }
 0x288   :  { %15438 = vrcp.f32 %v1635_v24  ;;  %3446 = vmatpush1.bf16.msra.mxu0 %v14497_v59  ;;  %v14472_v59 = vld [vmem:[%s20110_s2 + $0x4c4] ss:$8 sps:$4 sm:$0xff]   ;;  %v14475_v24 = vld [vmem:[%s20110_s2 + $0x4d4] ss:$8 sps:$4 sm:$0xff]  }
 0x289   :  { %v15431_v50 = vpop.eup %15430  ;;  %3447 = vmatprep.subr.bf16.mxu0 %v14505_v40  ;;  %v14470_v40 = vld [vmem:[%s20110_s2 + $0x4c0] ss:$8 sps:$4 sm:$0xff]  }
 0x28a   :  { %v15433_v4 = vpop.eup %15432  ;;  %v2173_v8 = vadd.f32 1.0, %v15431_v50  ;;  %3712 = vmatpush1.bf16.msra.mxu1 %v14443_v43  ;;  %v14557_v43 = vld [vmem:[%s20110_s2 + $0x3b0] ss:$8 sps:$4 sm:$0xff]   ;;  %v14563_v50 = vld [vmem:[%s20110_s2 + $0x3c0] ss:$8 sps:$4 sm:$0xff]  }
 0x28b   :  { %v15435_v11 = vpop.eup %15434  ;;  %3713 = vmatprep.subr.bf16.mxu1 %v14448_v44  ;;  %v2174_v13 = vadd.f32 1.0, %v15433_v4  ;;  %v14473_v44 = vld [vmem:[%s20110_s2 + $0x4d0] ss:$8 sps:$4 sm:$0xff]   ;;  %v14571_v4 = vld [vmem:[%s20110_s2 + $0x3d4] ss:$8 sps:$4 sm:$0xff]  }
 0x28c   :  { %v15437_v16 = vpop.eup %15436  ;;  %15440 = vrcp.f32 %v2173_v8  ;;  %v1097_v17 = vadd.f32 1.0, %v15435_v11  ;;  %3448 = vmatpush1.bf16.msra.mxu0 %v14503_v45  ;;  %v14565_v45 = vld [vmem:[%s20110_s2 + $0x3c4] ss:$8 sps:$4 sm:$0xff]   ;;  %v14481_v8 = vld [vmem:[%s20110_s2 + $0x4f4] ss:$8 sps:$4 sm:$0xff]  }
 0x28d   :  { %15442 = vrcp.f32 %v1636_v63  ;;  %v1098_v22 = vadd.f32 1.0, %v15437_v16  ;;  %3449 = vmatprep.subr.bf16.mxu0 %v14511_v46  ;;  %v14478_v46 = vld [vmem:[%s20110_s2 + $0x4e4] ss:$8 sps:$4 sm:$0xff]   ;;  %v14476_v63 = vld [vmem:[%s20110_s2 + $0x4e0] ss:$8 sps:$4 sm:$0xff]  }
 0x28e   :  { %15444 = vrcp.f32 %v1097_v17  ;;  %3714 = vmatpush1.bf16.msra.mxu1 %v14446_v10  ;;  %v14569_v10 = vld [vmem:[%s20110_s2 + $0x3d0] ss:$8 sps:$4 sm:$0xff]  }
 0x28f   :  { %15446 = vrcp.f32 %v1098_v22  ;;  %3715 = vmatprep.subr.bf16.mxu1 %v14451_v12 }
 0x290   :  { %3450 = vmatpush1.bf16.msra.mxu0 %v14509_v14  ;;  %15448 = vrcp.f32 %v2174_v13 }
 0x291   :  { %3451 = vmatprep.subr.bf16.mxu0 %v14517_v53 }
 0x292   :  { %v15439_v48 = vpop.eup %15438  ;;  %3716 = vmatpush1.bf16.msra.mxu1 %v14449_v18 }
 0x293   :  { %3717 = vmatprep.subr.bf16.mxu1 %v14454_v1  ;;  %v11574_v28 = vpack.c.bf16 %v15439_v48, %v15439_v48 }
 0x294   :  { %3452 = vmatpush1.bf16.msra.mxu0 %v14515_v7 }
 0x295   :  { %11575 = vmatprep.mubr.msk.bf16.mxu1 %vm16986_vm2, %v11574_v28  ;;  %3453 = vmatprep.subr.bf16.mxu0 %v14523_v29 }
 0x296   :  { %v17218_v51 = vpop.eup %15440  ;;  %3718 = vmatpush1.bf16.msra.mxu1 %v14452_v31 }
 0x297   :  { %v17226_v58 = vpop.eup %15442  ;;  %4561 = vrot.lane.b32.xlu0 %v17218_v51, %s15702_s16  ;;  %3719 = vmatprep.subr.bf16.mxu1 %v14457_v52 }
 0x298   :  { %v17233_v34 = vpop.eup %15444  ;;  %3454 = vmatpush1.bf16.msra.mxu0 %v14521_v49 }
 0x299   :  { %v17235_v57 = vpop.eup %15446  ;;  %v13733_v61 = vpack.i.bf16 %v15439_v48, %v17233_v34  ;;  %3455 = vmatprep.subr.bf16.mxu0 %v14529_v32 }
 0x29a   :  { %3720 = vmatpush1.bf16.msra.mxu1 %v14455_v33  ;;  %v13738_v25 = vpack.i.bf16 %v17226_v58, %v17235_v57  ;;  %v17256_v36 = vpop.eup %15448 }
 0x29b   :  { %13734 = vrot.lane.b32.xlu1 %v13733_v61, %s15702_s16  ;;  %3721 = vmatprep.subr.bf16.mxu1 %v14460_v54 }
 0x29c   :  { %3456 = vmatpush1.bf16.msra.mxu0 %v14527_v56 }
 0x29d   :  { %3457 = vmatprep.subr.bf16.mxu0 %v14535_v2 }
 0x29e   :  { %3722 = vmatpush1.bf16.msra.mxu1 %v14458_v27 }
 0x29f   :  { %5089 = vrot.lane.b32.xlu1 %v17256_v36, %s15702_s16  ;;  %3723 = vmatprep.subr.bf16.mxu1 %v14463_v21 }
 0x2a0   :  { %3458 = vmatpush1.bf16.msra.mxu0 %v14533_v30 }
 0x2a1   :  { %3459 = vmatprep.subr.bf16.mxu0 %v14541_v35 }
 0x2a2   :  { %3724 = vmatpush1.bf16.msra.mxu1 %v14461_v60 }
 0x2a3   :  { %13739 = vrot.lane.b32.xlu1 %v13738_v25, %s15702_s16  ;;  %3725 = vmatprep.subr.bf16.mxu1 %v14466_v0 }
 0x2a4   :  { %3460 = vmatpush1.bf16.msra.mxu0 %v14539_v20 }
 0x2a5   :  { %3461 = vmatprep.subr.bf16.mxu0 %v14547_v37 }
 0x2a6   :  { %3726 = vmatpush1.bf16.msra.mxu1 %v14464_v26 }
 0x2a7   :  { %3727 = vmatprep.subr.bf16.mxu1 %v14469_v38 }
 0x2a8   :  { %3462 = vmatpush1.bf16.msra.mxu0 %v14545_v39 }
 0x2a9   :  { %3463 = vmatprep.subr.bf16.mxu0 %v14553_v47 }
 0x2aa   :  { %3728 = vmatpush1.bf16.msra.mxu1 %v14467_v41 }
 0x2ab   :  { %3729 = vmatprep.subr.bf16.mxu1 %v14472_v59 }
 0x2ac   :  { %3464 = vmatpush1.bf16.msra.mxu0 %v14551_v5 }
 0x2ad   :  { %3465 = vmatprep.subr.bf16.mxu0 %v14559_v23 }
 0x2ae   :  { %3730 = vmatpush1.bf16.msra.mxu1 %v14470_v40 }
 0x2af   :  { %3731 = vmatprep.subr.bf16.mxu1 %v14475_v24 }
 0x2b0   :  { %3466 = vmatpush1.bf16.msra.mxu0 %v14557_v43 }
 0x2b1   :  { %3467 = vmatprep.subr.bf16.mxu0 %v14565_v45 }
 0x2b2   :  { %3732 = vmatpush1.bf16.msra.mxu1 %v14473_v44 }
 0x2b3   :  { %3733 = vmatprep.subr.bf16.mxu1 %v14478_v46 }
 0x2b4   :  { %3468 = vmatpush1.bf16.msra.mxu0 %v14563_v50 }
 0x2b5   :  { %12 = vsyncpa [#allocation3], 0  ;;  %3469 = vmatprep.subr.bf16.mxu0 %v14571_v4  ;;  %v14577_v11 = vld [vmem:[%s20110_s2 + $0x3e4] ss:$8 sps:$4 sm:$0xff]   ;;  %v14479_v12 = vld [vmem:[%s20110_s2 + $0x4f0] ss:$8 sps:$4 sm:$0xff]   ;;  %v11712_v13 = vpack.c.bf16 %v17226_v58, %v17226_v58 }
 0x2b6   :  { %3734 = vmatpush1.bf16.msra.mxu1 %v14476_v63  ;;  %v14484_v14 = vld [vmem:[%s20110_s2 + $0x604] ss:$8 sps:$4 sm:$0xff]   ;;  %v14575_v16 = vld [vmem:[%s20110_s2 + $0x3e0] ss:$8 sps:$4 sm:$0xff]   ;;  %v14583_v18 = vld [vmem:[%s20110_s2 + $0x3f4] ss:$8 sps:$4 sm:$0xff]  }
 0x2b7   :  { %3735 = vmatprep.subr.bf16.mxu1 %v14481_v8  ;;  %v14482_v53 = vld [vmem:[%s20110_s2 + $0x600] ss:$8 sps:$4 sm:$0xff]   ;;  %v14487_v7 = vld [vmem:[%s20110_s2 + $0x614] ss:$8 sps:$4 sm:$0xff]   ;;  %v14581_v29 = vld [vmem:[%s20110_s2 + $0x3f0] ss:$8 sps:$4 sm:$0xff]  }
 0x2b8   :  { %3470 = vmatpush1.bf16.msra.mxu0 %v14569_v10  ;;  %v3506_v17 = vpop.permute.xlu1 %3505  ;;  %v14589_v48 = vld [vmem:[%s20110_s2 + $0x504] ss:$8 sps:$4 sm:$0xff]   ;;  %v14485_v31 = vld [vmem:[%s20110_s2 + $0x610] ss:$8 sps:$4 sm:$0xff]   ;;  %v14488_v28 = vld [vmem:[%s20110_s2 + $0x620] ss:$8 sps:$4 sm:$0xff]  }
 0x2b9   :  { %3471 = vmatprep.subr.bf16.mxu0 %v14577_v11  ;;  %v3508_v22 = vsel %vm2452_vm1, %v17233_v34, %v3506_v17  ;;  %v14490_v52 = vld [vmem:[%s20110_s2 + $0x624] ss:$8 sps:$4 sm:$0xff]   ;;  %v14496_v49 = vld [vmem:[%s20110_s2 + $0x634] ss:$8 sps:$4 sm:$0xff]   ;;  %v14494_v32 = vld [vmem:[%s20110_s2 + $0x630] ss:$8 sps:$4 sm:$0xff]   ;;  %v2432_v34 = vpop.xlane.xlu0 %2431 }
 0x2ba   :  { %3736 = vmatpush1.bf16.msra.mxu1 %v14479_v12  ;;  %v3543_v1 = vpack.c.bf16 %v3508_v22, %v3508_v22  ;;  %v14502_v33 = vld [vmem:[%s20110_s2 + $0x644] ss:$8 sps:$4 sm:$0xff]   ;;  %v14500_v54 = vld [vmem:[%s20110_s2 + $0x640] ss:$8 sps:$4 sm:$0xff]   ;;  %v14508_v58 = vld [vmem:[%s20110_s2 + $0x654] ss:$8 sps:$4 sm:$0xff]  }
 0x2bb   :  { %4233 = vmatprep.subr.bf16.mxu1 %v14484_v14  ;;  %v14506_v56 = vld [vmem:[%s20110_s2 + $0x650] ss:$8 sps:$4 sm:$0xff]   ;;  %v14514_v61 = vld [vmem:[%s20110_s2 + $0x664] ss:$8 sps:$4 sm:$0xff]   ;;  %v2433_v2 = vmul.f32 0.5, %v2432_v34  ;;  %vm6813_vm3 = vcmask 517120  }
 0x2bc   :  { %3472 = vmatpush1.bf16.msra.mxu0 %v14575_v16  ;;  %v14512_v27 = vld [vmem:[%s20110_s2 + $0x660] ss:$8 sps:$4 sm:$0xff]   ;;  %v14520_v21 = vld [vmem:[%s20110_s2 + $0x674] ss:$8 sps:$4 sm:$0xff]   ;;  %v14518_v30 = vld [vmem:[%s20110_s2 + $0x670] ss:$8 sps:$4 sm:$0xff]   ;;  %v4034_v45 = vpop.permute.xlu1 %4033 }
 0x2bd   :  { %3738 = vmatmul.mubr.bf16.vlgmr.msra.gmra.mrb[24].mxu1 %v3543_v1  ;;  %3473 = vmatprep.subr.bf16.mxu0 %v14583_v18  ;;  %v2434_v25 = vsub.f32 %v16997_v6, %v2433_v2  ;;  %v14526_v35 = vld [vmem:[%s20110_s2 + $0x684] ss:$8 sps:$4 sm:$0xff]   ;;  %v14524_v0 = vld [vmem:[%s20110_s2 + $0x680] ss:$8 sps:$4 sm:$0xff]   ;;  %v14532_v6 = vld [vmem:[%s20110_s2 + $0x694] ss:$8 sps:$4 sm:$0xff]   ;;  %v2435_v46 = vsub.f32 %v17001_v9, %v2433_v2  ;;  %v4036_v4 = vsel %vm2452_vm1, %v17235_v57, %v4034_v45 }
 0x2be   :  { %4234 = vmatpush1.bf16.msra.mxu1 %v14482_v53  ;;  %11713 = vmatprep.mubr.msk.bf16.mxu1 %vm16986_vm2, %v11712_v13  ;;  %v14530_v20 = vld [vmem:[%s20110_s2 + $0x690] ss:$8 sps:$4 sm:$0xff]   ;;  %v14538_v26 = vld [vmem:[%s20110_s2 + $0x6a4] ss:$8 sps:$4 sm:$0xff]   ;;  %v14536_v37 = vld [vmem:[%s20110_s2 + $0x6a0] ss:$8 sps:$4 sm:$0xff]   ;;  %v4071_v11 = vpack.c.bf16 %v4036_v4, %v4036_v4 }
 0x2bf   :  { %4235 = vmatprep.subr.bf16.mxu1 %v14487_v7  ;;  %v11263_v60 = vmul.f32 -1.442695, %v2434_v25  ;;  %v14544_v38 = vld [vmem:[%s20110_s2 + $0x6b4] ss:$8 sps:$4 sm:$0xff]   ;;  %v14542_v39 = vld [vmem:[%s20110_s2 + $0x6b0] ss:$8 sps:$4 sm:$0xff]  }
 0x2c0   :  { %3474 = vmatpush1.bf16.msra.mxu0 %v14581_v29  ;;  %v14550_v41 = vld [vmem:[%s20110_s2 + $0x6c4] ss:$8 sps:$4 sm:$0xff]   ;;  %v14548_v59 = vld [vmem:[%s20110_s2 + $0x6c0] ss:$8 sps:$4 sm:$0xff]   ;;  %v14556_v40 = vld [vmem:[%s20110_s2 + $0x6d4] ss:$8 sps:$4 sm:$0xff]  }
 0x2c1   :  { %3971 = vmatprep.subr.bf16.mxu0 %v14589_v48  ;;  %15450 = vpow2.f32 %v11263_v60  ;;  %v14554_v23 = vld [vmem:[%s20110_s2 + $0x6d0] ss:$8 sps:$4 sm:$0xff]   ;;  %v14562_v24 = vld [vmem:[%s20110_s2 + $0x6e4] ss:$8 sps:$4 sm:$0xff]   ;;  %v14560_v43 = vld [vmem:[%s20110_s2 + $0x6e0] ss:$8 sps:$4 sm:$0xff]  }
 0x2c2   :  { %4236 = vmatpush1.bf16.msra.mxu1 %v14485_v31  ;;  %v14568_v44 = vld [vmem:[%s20110_s2 + $0x6f4] ss:$8 sps:$4 sm:$0xff]   ;;  %v14566_v50 = vld [vmem:[%s20110_s2 + $0x6f0] ss:$8 sps:$4 sm:$0xff]   ;;  %v14574_v63 = vld [vmem:[%s20110_s2 + $0x804] ss:$8 sps:$4 sm:$0xff]  }
 0x2c3   :  { %4237 = vmatprep.subr.bf16.mxu1 %v14490_v52  ;;  %v11264_v10 = vmul.f32 -1.442695, %v2435_v46  ;;  %v14572_v9 = vld [vmem:[%s20110_s2 + $0x800] ss:$8 sps:$4 sm:$0xff]   ;;  %v14580_v12 = vld [vmem:[%s20110_s2 + $0x814] ss:$8 sps:$4 sm:$0xff]  }
 0x2c4   :  { %v14578_v17 = vld [vmem:[%s20110_s2 + $0x810] ss:$8 sps:$4 sm:$0xff]   ;;  %v14586_v53 = vld [vmem:[%s20110_s2 + $0x824] ss:$8 sps:$4 sm:$0xff]   ;;  %v14584_v31 = vld [vmem:[%s20110_s2 + $0x820] ss:$8 sps:$4 sm:$0xff]  }
 0x2c5   :  { %v14596_v34 = vld [vmem:[%s20110_s2 + $0x840] ss:$8 sps:$4 sm:$0xff]   ;;  %v14619_v46 = vld [vmem:[%s20110_s2 + $0x554] ss:$8 sps:$4 sm:$0xff]   ;;  %v14622_v4 = vld [vmem:[%s20110_s2 + $0x884] ss:$8 sps:$4 sm:$0xff]  }
 0x2c6   :  { %4238 = vmatpush1.bf16.msra.mxu1 %v14488_v28  ;;  %v14592_v28 = vld [vmem:[%s20110_s2 + $0x834] ss:$8 sps:$4 sm:$0xff]   ;;  %v14599_v2 = vld [vmem:[%s20110_s2 + $0x520] ss:$8 sps:$4 sm:$0xff]   ;;  %vm10659_vm4 = vcmask 74752   ;;  %s15704_s18 = smov [#allocation2]  }
 0x2c7   :  { %4239 = vmatprep.subr.bf16.mxu1 %v14496_v49  ;;  %v14877_v55 = vld [vmem:[%s20110_s2 + $0xb34] ss:$8 sps:$4 sm:$0xff]  }
 0x2ca   :  { %4240 = vmatpush1.bf16.msra.mxu1 %v14494_v32  ;;  %v14595_v32 = vld [vmem:[%s20110_s2 + $0x514] ss:$8 sps:$4 sm:$0xff]  }
 0x2cb   :  { %4241 = vmatprep.subr.bf16.mxu1 %v14502_v33  ;;  %v15451_v47 = vpop.eup %15450  ;;  %v14593_v33 = vld [vmem:[%s20110_s2 + $0x510] ss:$8 sps:$4 sm:$0xff]  }
 0x2cc   :  { %v2442_v5 = vadd.f32 1.0, %v15451_v47 }
 0x2ce   :  { %4242 = vmatpush1.bf16.msra.mxu1 %v14500_v54  ;;  %15452 = vrcp.f32 %v2442_v5  ;;  %v14598_v54 = vld [vmem:[%s20110_s2 + $0x844] ss:$8 sps:$4 sm:$0xff]  }
 0x2cf   :  { %4243 = vmatprep.subr.bf16.mxu1 %v14508_v58  ;;  %15454 = vpow2.f32 %v11264_v10  ;;  %v14625_v10 = vld [vmem:[%s20110_s2 + $0x564] ss:$8 sps:$4 sm:$0xff]  }
 0x2d2   :  { %4244 = vmatpush1.bf16.msra.mxu1 %v14506_v56  ;;  %v14601_v56 = vld [vmem:[%s20110_s2 + $0x524] ss:$8 sps:$4 sm:$0xff]  }
 0x2d3   :  { %4245 = vmatprep.subr.bf16.mxu1 %v14514_v61 }
 0x2d6   :  { %4246 = vmatpush1.bf16.msra.mxu1 %v14512_v27  ;;  %v14604_v27 = vld [vmem:[%s20110_s2 + $0x854] ss:$8 sps:$4 sm:$0xff]  }
 0x2d7   :  { %4247 = vmatprep.subr.bf16.mxu1 %v14520_v21  ;;  %v14607_v21 = vld [vmem:[%s20110_s2 + $0x534] ss:$8 sps:$4 sm:$0xff]  }
 0x2d8   :  { %v17457_v8 = vpop.eup %15452 }
 0x2d9   :  { %v11850_v16 = vpack.c.bf16 %v17457_v8, %v17457_v8  ;;  %v15455_v58 = vpop.eup %15454 }
 0x2da   :  { %4248 = vmatpush1.bf16.msra.mxu1 %v14518_v30  ;;  %v2443_v61 = vadd.f32 1.0, %v15455_v58  ;;  %v14653_v58 = vld [vmem:[%s20110_s2 + $0x5b0] ss:$8 sps:$4 sm:$0xff]  }
 0x2db   :  { %4249 = vmatprep.subr.bf16.mxu1 %v14526_v35 }
 0x2de   :  { %4250 = vmatpush1.bf16.msra.mxu1 %v14524_v0 }
 0x2df   :  { %4251 = vmatprep.subr.bf16.mxu1 %v14532_v6  ;;  %v14602_v6 = vld [vmem:[%s20110_s2 + $0x850] ss:$8 sps:$4 sm:$0xff]  }
 0x2e2   :  { %4252 = vmatpush1.bf16.msra.mxu1 %v14530_v20 }
 0x2e3   :  { %4253 = vmatprep.subr.bf16.mxu1 %v14538_v26  ;;  %v14605_v26 = vld [vmem:[%s20110_s2 + $0x530] ss:$8 sps:$4 sm:$0xff]  }
 0x2e6   :  { %4254 = vmatpush1.bf16.msra.mxu1 %v14536_v37  ;;  %v14610_v37 = vld [vmem:[%s20110_s2 + $0x864] ss:$8 sps:$4 sm:$0xff]  }
 0x2e7   :  { %4255 = vmatprep.subr.bf16.mxu1 %v14544_v38 }
 0x2ea   :  { %4256 = vmatpush1.bf16.msra.mxu1 %v14542_v39 }
 0x2eb   :  { %4257 = vmatprep.subr.bf16.mxu1 %v14550_v41  ;;  %v14613_v41 = vld [vmem:[%s20110_s2 + $0x544] ss:$8 sps:$4 sm:$0xff]  }
 0x2ee   :  { %4258 = vmatpush1.bf16.msra.mxu1 %v14548_v59 }
 0x2ef   :  { %4259 = vmatprep.subr.bf16.mxu1 %v14556_v40 }
 0x2f2   :  { %4260 = vmatpush1.bf16.msra.mxu1 %v14554_v23  ;;  %v14608_v23 = vld [vmem:[%s20110_s2 + $0x860] ss:$8 sps:$4 sm:$0xff]  }
 0x2f3   :  { %4261 = vmatprep.subr.bf16.mxu1 %v14562_v24 }
 0x2f6   :  { %4262 = vmatpush1.bf16.msra.mxu1 %v14560_v43  ;;  %v14611_v43 = vld [vmem:[%s20110_s2 + $0x540] ss:$8 sps:$4 sm:$0xff]  }
 0x2f7   :  { %4263 = vmatprep.subr.bf16.mxu1 %v14568_v44  ;;  %v14616_v44 = vld [vmem:[%s20110_s2 + $0x874] ss:$8 sps:$4 sm:$0xff]  }
 0x2fa   :  { %4264 = vmatpush1.bf16.msra.mxu1 %v14566_v50  ;;  %v14614_v50 = vld [vmem:[%s20110_s2 + $0x870] ss:$8 sps:$4 sm:$0xff]  }
 0x2fb   :  { %4761 = vmatprep.subr.bf16.mxu1 %v14574_v63  ;;  %v1894_v14 = vpop.xlane.xlu1 %1893  ;;  %v14617_v63 = vld [vmem:[%s20110_s2 + $0x550] ss:$8 sps:$4 sm:$0xff]  }
 0x2fc   :  { %v1895_v57 = vmul.f32 0.5, %v1894_v14 }
 0x2fd   :  { %4266 = vmatmul.mubr.bf16.vlgmr.msra.gmra.mrb[28].mxu1 %v4071_v11 }
 0x2fe   :  { %4762 = vmatpush1.bf16.msra.mxu1 %v14572_v9  ;;  %11851 = vmatprep.mubr.msk.bf16.mxu1 %vm16986_vm2, %v11850_v16  ;;  %v1896_v18 = vsub.f32 %v16889_v62, %v1895_v57  ;;  %v1897_v22 = vsub.f32 %v16899_v3, %v1895_v57  ;;  %v14587_v3 = vld [vmem:[%s20110_s2 + $0x500] ss:$8 sps:$4 sm:$0xff]  }
 0x2ff   :  { %4763 = vmatprep.subr.bf16.mxu1 %v14580_v12  ;;  %v13730_v1 = vpop.permute.xlu1 %13729  ;;  %v14620_v12 = vld [vmem:[%s20110_s2 + $0x880] ss:$8 sps:$4 sm:$0xff]  }
 0x300   :  { %v11127_v7 = vmul.f32 -1.442695, %v1896_v18  ;;  %v11128_v13 = vmul.f32 -1.442695, %v1897_v22  ;;  %v13732_v29 = vunpack.i.h.bf16 %v13730_v1  ;;  %v13731_v48 = vunpack.i.l.bf16 %v13730_v1  ;;  %v14623_v16 = vld [vmem:[%s20110_s2 + $0x560] ss:$8 sps:$4 sm:$0xff]  }
 0x301   :  { %v14631_v22 = vld [vmem:[%s20110_s2 + $0x574] ss:$8 sps:$4 sm:$0xff]   ;;  %v14634_v1 = vld [vmem:[%s20110_s2 + $0x8a4] ss:$8 sps:$4 sm:$0xff]  }
 0x302   :  { %4764 = vmatpush1.bf16.msra.mxu1 %v14578_v17  ;;  %15456 = vpow2.f32 %v11127_v7  ;;  %v11505_v52 = vpack.c.bf16 %v13732_v29, %v13732_v29  ;;  %v3246_v62 = vsel %vm2452_vm1, %v13731_v48, %v16857_v42  ;;  %v14590_v42 = vld [vmem:[%s20110_s2 + $0x830] ss:$8 sps:$4 sm:$0xff]   ;;  %v14628_v17 = vld [vmem:[%s20110_s2 + $0x894] ss:$8 sps:$4 sm:$0xff]   ;;  %v14637_v7 = vld [vmem:[%s20110_s2 + $0x584] ss:$8 sps:$4 sm:$0xff]  }
 0x303   :  { %4765 = vmatprep.subr.bf16.mxu1 %v14586_v53  ;;  %15458 = vpow2.f32 %v11128_v13  ;;  %v3281_v49 = vpack.c.bf16 %v3246_v62, %v3246_v62  ;;  %v14629_v53 = vld [vmem:[%s20110_s2 + $0x570] ss:$8 sps:$4 sm:$0xff]   ;;  %v14632_v13 = vld [vmem:[%s20110_s2 + $0x8a0] ss:$8 sps:$4 sm:$0xff]   ;;  %v14640_v48 = vld [vmem:[%s20110_s2 + $0x8b4] ss:$8 sps:$4 sm:$0xff]  }
 0x304   :  { %11506 = vmatprep.mubr.msk.bf16.mxu0 %vm16986_vm2, %v11505_v52  ;;  %15460 = vrcp.f32 %v2443_v61  ;;  %v14635_v29 = vld [vmem:[%s20110_s2 + $0x580] ss:$8 sps:$4 sm:$0xff]   ;;  %v14638_v52 = vld [vmem:[%s20110_s2 + $0x8b0] ss:$8 sps:$4 sm:$0xff]  }
 0x305   :  { %3476 = vmatmul.mubr.bf16.vlgmr.msra.gmra.mrb[24].mxu0 %v3281_v49  ;;  %v14641_v62 = vld [vmem:[%s20110_s2 + $0x590] ss:$8 sps:$4 sm:$0xff]   ;;  %v14644_v49 = vld [vmem:[%s20110_s2 + $0x8c0] ss:$8 sps:$4 sm:$0xff]  }
 0x306   :  { %4766 = vmatpush1.bf16.msra.mxu1 %v14584_v31  ;;  %3972 = vmatpush1.bf16.msra.mxu0 %v14587_v3  ;;  %v14643_v31 = vld [vmem:[%s20110_s2 + $0x594] ss:$8 sps:$4 sm:$0xff]   ;;  %v14646_v3 = vld [vmem:[%s20110_s2 + $0x8c4] ss:$8 sps:$4 sm:$0xff]   ;;  %v14656_v61 = vld [vmem:[%s20110_s2 + $0x8e0] ss:$8 sps:$4 sm:$0xff]  }
 0x307   :  { %4767 = vmatprep.subr.bf16.mxu1 %v14592_v28  ;;  %3973 = vmatprep.subr.bf16.mxu0 %v14595_v32  ;;  %v14649_v28 = vld [vmem:[%s20110_s2 + $0x5a4] ss:$8 sps:$4 sm:$0xff]   ;;  %v14647_v32 = vld [vmem:[%s20110_s2 + $0x5a0] ss:$8 sps:$4 sm:$0xff]  }
 0x30a   :  { %4768 = vmatpush1.bf16.msra.mxu1 %v14590_v42  ;;  %3974 = vmatpush1.bf16.msra.mxu0 %v14593_v33  ;;  %v14652_v42 = vld [vmem:[%s20110_s2 + $0x8d4] ss:$8 sps:$4 sm:$0xff]  }
 0x30b   :  { %4769 = vmatprep.subr.bf16.mxu1 %v14598_v54  ;;  %3975 = vmatprep.subr.bf16.mxu0 %v14601_v56  ;;  %v14655_v33 = vld [vmem:[%s20110_s2 + $0x5b4] ss:$8 sps:$4 sm:$0xff]   ;;  %v14650_v54 = vld [vmem:[%s20110_s2 + $0x8d0] ss:$8 sps:$4 sm:$0xff]   ;;  %v14658_v56 = vld [vmem:[%s20110_s2 + $0x8e4] ss:$8 sps:$4 sm:$0xff]  }
 0x30c   :  { %v15457_v25 = vpop.eup %15456 }
 0x30d   :  { %v17517_v30 = vpop.permute.xlu1 %13734  ;;  %v15459_v35 = vpop.eup %15458  ;;  %v1904_v60 = vadd.f32 1.0, %v15457_v25  ;;  %v14662_v25 = vld [vmem:[%s20110_s2 + $0x8f0] ss:$8 sps:$4 sm:$0xff]  }
 0x30e   :  { %v13737_v0 = vunpack.i.h.bf16 %v17517_v30  ;;  %4770 = vmatpush1.bf16.msra.mxu1 %v14596_v34  ;;  %v1905_v20 = vadd.f32 1.0, %v15459_v35  ;;  %3976 = vmatpush1.bf16.msra.mxu0 %v14599_v2  ;;  %v17572_v9 = vpop.eup %15460  ;;  %v14661_v34 = vld [vmem:[%s20110_s2 + $0x5c4] ss:$8 sps:$4 sm:$0xff]   ;;  %v14659_v2 = vld [vmem:[%s20110_s2 + $0x5c0] ss:$8 sps:$4 sm:$0xff]   ;;  %v4562_v35 = vpop.permute.xlu0 %4561 }
 0x30f   :  { %4771 = vmatprep.subr.bf16.mxu1 %v14604_v27  ;;  %15462 = vrcp.f32 %v1904_v60  ;;  %3977 = vmatprep.subr.bf16.mxu0 %v14607_v21  ;;  %v14664_v27 = vld [vmem:[%s20110_s2 + $0x8f4] ss:$8 sps:$4 sm:$0xff]   ;;  %v14665_v60 = vld [vmem:[%s20110_s2 + $0x5d0] ss:$8 sps:$4 sm:$0xff]  }
 0x310   :  { %v11643_v38 = vpack.c.bf16 %v13737_v0, %v13737_v0  ;;  %v17529_v39 = vpop.f32.mrb[16].mxu1  ;;  %15464 = vrcp.f32 %v1905_v20  ;;  %v14667_v21 = vld [vmem:[%s20110_s2 + $0x5d4] ss:$8 sps:$4 sm:$0xff]   ;;  %v14670_v0 = vld [vmem:[%s20110_s2 + $0xa04] ss:$8 sps:$4 sm:$0xff]  }
 0x311   :  { %v17536_v47 = vsel %vm275_vm0, %v17529_v39, -inf  ;;  %v17538_v59 = vpop.f32.mrb[17].mxu1  ;;  %v17679_v20 = vpop.permute.xlu1 %5089 }
 0x312   :  { %11644 = vmatprep.mubr.msk.bf16.mxu0 %vm16986_vm2, %v11643_v38  ;;  %v17544_v5 = vsel %vm275_vm0, %v17538_v59, -inf  ;;  %4772 = vmatpush1.bf16.msra.mxu1 %v14602_v6  ;;  %v2687_v40 = vpop.f32.mrb[18].mxu1 }
 0x313   :  { %3978 = vmatpush1.bf16.msra.mxu0 %v14605_v26  ;;  %v2688_v24 = vpop.f32.mrb[19].mxu1  ;;  %4773 = vmatprep.subr.bf16.mxu1 %v14610_v37  ;;  %v2692_v45 = vmax.f32 %v17536_v47, %v17544_v5  ;;  %v14673_v26 = vld [vmem:[%s20110_s2 + $0x5e4] ss:$8 sps:$4 sm:$0xff]   ;;  %v14668_v37 = vld [vmem:[%s20110_s2 + $0xa00] ss:$8 sps:$4 sm:$0xff]  }
 0x314   :  { %3979 = vmatprep.subr.bf16.mxu0 %v14613_v41  ;;  %v14671_v41 = vld [vmem:[%s20110_s2 + $0x5e0] ss:$8 sps:$4 sm:$0xff]   ;;  %v14676_v40 = vld [vmem:[%s20110_s2 + $0xa14] ss:$8 sps:$4 sm:$0xff]  }
 0x315   :  { %v14679_v24 = vld [vmem:[%s20110_s2 + $0x5f4] ss:$8 sps:$4 sm:$0xff]  }
 0x316   :  { %4774 = vmatpush1.bf16.msra.mxu1 %v14608_v23  ;;  %v11988_v23 = vpack.c.bf16 %v17572_v9, %v17572_v9  ;;  %v14937_v47 = vld [vmem:[%s20110_s2 + $0xd74] ss:$8 sps:$4 sm:$0xff]  }
 0x317   :  { %3980 = vmatpush1.bf16.msra.mxu0 %v14611_v43  ;;  %4775 = vmatprep.subr.bf16.mxu1 %v14616_v44  ;;  %v13736_v43 = vunpack.i.l.bf16 %v17517_v30  ;;  %v17699_v44 = vpop.permute.xlu1 %13739  ;;  %v14682_v30 = vld [vmem:[%s20110_s2 + $0xa24] ss:$8 sps:$4 sm:$0xff]  }
 0x318   :  { %3981 = vmatprep.subr.bf16.mxu0 %v14619_v46  ;;  %v14674_v46 = vld [vmem:[%s20110_s2 + $0xa10] ss:$8 sps:$4 sm:$0xff]  }
 0x319   :  { %v17574_v11 = vpop.eup %15462 }
 0x31a   :  { %4776 = vmatpush1.bf16.msra.mxu1 %v14614_v50  ;;  %v17579_v14 = vpop.eup %15464  ;;  %v13743_v57 = vpack.i.bf16 %v17457_v8, %v17574_v11  ;;  %v14626_v8 = vld [vmem:[%s20110_s2 + $0x890] ss:$8 sps:$4 sm:$0xff]   ;;  %v4564_v6 = vsel %vm2452_vm1, %v17574_v11, %v4562_v35  ;;  %v14683_v11 = vld [vmem:[%s20110_s2 + $0x700] ss:$8 sps:$4 sm:$0xff]   ;;  %v14718_v35 = vld [vmem:[%s20110_s2 + $0xa84] ss:$8 sps:$4 sm:$0xff]  }
 0x31b   :  { %3982 = vmatpush1.bf16.msra.mxu0 %v14617_v63  ;;  %4777 = vmatprep.subr.bf16.mxu1 %v14622_v4  ;;  %v13748_v18 = vpack.i.bf16 %v17572_v9, %v17579_v14  ;;  %v4599_v38 = vpack.c.bf16 %v4564_v6, %v4564_v6  ;;  %v14677_v50 = vld [vmem:[%s20110_s2 + $0x5f0] ss:$8 sps:$4 sm:$0xff]   ;;  %v14685_v63 = vld [vmem:[%s20110_s2 + $0x704] ss:$8 sps:$4 sm:$0xff]   ;;  %v3774_v4 = vsel %vm2452_vm1, %v13736_v43, %v17030_v19  ;;  %v14680_v9 = vld [vmem:[%s20110_s2 + $0xa20] ss:$8 sps:$4 sm:$0xff]  }
 0x31c   :  { %3983 = vmatprep.subr.bf16.mxu0 %v14625_v10  ;;  %13744 = vrot.lane.b32.xlu1 %v13743_v57, %s15702_s16  ;;  %v13742_v10 = vunpack.i.h.bf16 %v17699_v44  ;;  %v14691_v19 = vld [vmem:[%s20110_s2 + $0x714] ss:$8 sps:$4 sm:$0xff]   ;;  %v14721_v6 = vld [vmem:[%s20110_s2 + $0x764] ss:$8 sps:$4 sm:$0xff]   ;;  %v14725_v43 = vld [vmem:[%s20110_s2 + $0x770] ss:$8 sps:$4 sm:$0xff]  }
 0x31d   :  { %13749 = vrot.lane.b32.xlu0 %v13748_v18, %s15702_s16  ;;  %v14689_v18 = vld [vmem:[%s20110_s2 + $0x710] ss:$8 sps:$4 sm:$0xff]  }
 0x31e   :  { %4778 = vmatpush1.bf16.msra.mxu1 %v14620_v12  ;;  %v3809_v12 = vpack.c.bf16 %v3774_v4, %v3774_v4  ;;  %v11781_v57 = vpack.c.bf16 %v13742_v10, %v13742_v10  ;;  %v14736_v4 = vld [vmem:[%s20110_s2 + $0xab4] ss:$8 sps:$4 sm:$0xff]  }
 0x31f   :  { %3984 = vmatpush1.bf16.msra.mxu0 %v14623_v16  ;;  %4779 = vmatprep.subr.bf16.mxu1 %v14628_v17  ;;  %v14688_v16 = vld [vmem:[%s20110_s2 + $0xa34] ss:$8 sps:$4 sm:$0xff]   ;;  %v14686_v17 = vld [vmem:[%s20110_s2 + $0xa30] ss:$8 sps:$4 sm:$0xff]  }
 0x320   :  { %3985 = vmatprep.subr.bf16.mxu0 %v14631_v22  ;;  %v14694_v22 = vld [vmem:[%s20110_s2 + $0xa44] ss:$8 sps:$4 sm:$0xff]   ;;  %v14739_v10 = vld [vmem:[%s20110_s2 + $0x794] ss:$8 sps:$4 sm:$0xff]  }
 0x322   :  { %4780 = vmatpush1.bf16.msra.mxu1 %v14626_v8  ;;  %v14697_v8 = vld [vmem:[%s20110_s2 + $0x724] ss:$8 sps:$4 sm:$0xff]  }
 0x323   :  { %3986 = vmatpush1.bf16.msra.mxu0 %v14629_v53  ;;  %4781 = vmatprep.subr.bf16.mxu1 %v14634_v1  ;;  %v14692_v53 = vld [vmem:[%s20110_s2 + $0xa40] ss:$8 sps:$4 sm:$0xff]  }
 0x324   :  { %3987 = vmatprep.subr.bf16.mxu0 %v14637_v7  ;;  %v14695_v1 = vld [vmem:[%s20110_s2 + $0x720] ss:$8 sps:$4 sm:$0xff]   ;;  %v14700_v7 = vld [vmem:[%s20110_s2 + $0xa54] ss:$8 sps:$4 sm:$0xff]  }
 0x326   :  { %4782 = vmatpush1.bf16.msra.mxu1 %v14632_v13  ;;  %v14703_v13 = vld [vmem:[%s20110_s2 + $0x734] ss:$8 sps:$4 sm:$0xff]  }
 0x327   :  { %3988 = vmatpush1.bf16.msra.mxu0 %v14635_v29  ;;  %4783 = vmatprep.subr.bf16.mxu1 %v14640_v48  ;;  %v14698_v29 = vld [vmem:[%s20110_s2 + $0xa50] ss:$8 sps:$4 sm:$0xff]  }
 0x328   :  { %3989 = vmatprep.subr.bf16.mxu0 %v14643_v31  ;;  %v14701_v48 = vld [vmem:[%s20110_s2 + $0x730] ss:$8 sps:$4 sm:$0xff]   ;;  %v14706_v31 = vld [vmem:[%s20110_s2 + $0xa64] ss:$8 sps:$4 sm:$0xff]  }
 0x32a   :  { %4784 = vmatpush1.bf16.msra.mxu1 %v14638_v52 }
 0x32b   :  { %3990 = vmatpush1.bf16.msra.mxu0 %v14641_v62  ;;  %4785 = vmatprep.subr.bf16.mxu1 %v14646_v3  ;;  %v14709_v62 = vld [vmem:[%s20110_s2 + $0x744] ss:$8 sps:$4 sm:$0xff]  }
 0x32c   :  { %3991 = vmatprep.subr.bf16.mxu0 %v14649_v28 }
 0x32e   :  { %4786 = vmatpush1.bf16.msra.mxu1 %v14644_v49 }
 0x32f   :  { %3992 = vmatpush1.bf16.msra.mxu0 %v14647_v32  ;;  %4787 = vmatprep.subr.bf16.mxu1 %v14652_v42  ;;  %v14704_v42 = vld [vmem:[%s20110_s2 + $0xa60] ss:$8 sps:$4 sm:$0xff]  }
 0x330   :  { %3993 = vmatprep.subr.bf16.mxu0 %v14655_v33 }
 0x332   :  { %4788 = vmatpush1.bf16.msra.mxu1 %v14650_v54  ;;  %v14707_v54 = vld [vmem:[%s20110_s2 + $0x740] ss:$8 sps:$4 sm:$0xff]  }
 0x333   :  { %3994 = vmatpush1.bf16.msra.mxu0 %v14653_v58  ;;  %4789 = vmatprep.subr.bf16.mxu1 %v14658_v56  ;;  %v14712_v58 = vld [vmem:[%s20110_s2 + $0xa74] ss:$8 sps:$4 sm:$0xff]  }
 0x334   :  { %3995 = vmatprep.subr.bf16.mxu0 %v14661_v34  ;;  %v14715_v34 = vld [vmem:[%s20110_s2 + $0x754] ss:$8 sps:$4 sm:$0xff]  }
 0x336   :  { %4790 = vmatpush1.bf16.msra.mxu1 %v14656_v61 }
 0x337   :  { %3996 = vmatpush1.bf16.msra.mxu0 %v14659_v2  ;;  %4791 = vmatprep.subr.bf16.mxu1 %v14664_v27  ;;  %v14710_v2 = vld [vmem:[%s20110_s2 + $0xa70] ss:$8 sps:$4 sm:$0xff]  }
 0x338   :  { %3997 = vmatprep.subr.bf16.mxu0 %v14667_v21 }
 0x33a   :  { %4792 = vmatpush1.bf16.msra.mxu1 %v14662_v25  ;;  %v14713_v25 = vld [vmem:[%s20110_s2 + $0x750] ss:$8 sps:$4 sm:$0xff]  }
 0x33b   :  { %3998 = vmatpush1.bf16.msra.mxu0 %v14665_v60  ;;  %5289 = vmatprep.subr.bf16.mxu1 %v14670_v0 }
 0x33c   :  { %3999 = vmatprep.subr.bf16.mxu0 %v14673_v26 }
 0x33d   :  { %4794 = vmatmul.mubr.bf16.vlgmr.msra.gmra.mrb[32].mxu1 %v4599_v38  ;;  %v14716_v38 = vld [vmem:[%s20110_s2 + $0xa80] ss:$8 sps:$4 sm:$0xff]  }
 0x33e   :  { %5290 = vmatpush1.bf16.msra.mxu1 %v14668_v37  ;;  %11989 = vmatprep.mubr.msk.bf16.mxu1 %vm16986_vm2, %v11988_v23  ;;  %v14727_v23 = vld [vmem:[%s20110_s2 + $0x774] ss:$8 sps:$4 sm:$0xff]  }
 0x33f   :  { %4000 = vmatpush1.bf16.msra.mxu0 %v14671_v41  ;;  %5291 = vmatprep.subr.bf16.mxu1 %v14676_v40  ;;  %v14719_v41 = vld [vmem:[%s20110_s2 + $0x760] ss:$8 sps:$4 sm:$0xff]   ;;  %v14724_v40 = vld [vmem:[%s20110_s2 + $0xa94] ss:$8 sps:$4 sm:$0xff]  }
 0x340   :  { %4001 = vmatprep.subr.bf16.mxu0 %v14679_v24  ;;  %v14722_v24 = vld [vmem:[%s20110_s2 + $0xa90] ss:$8 sps:$4 sm:$0xff]  }
 0x342   :  { %5292 = vmatpush1.bf16.msra.mxu1 %v14674_v46  ;;  %v14730_v46 = vld [vmem:[%s20110_s2 + $0xaa4] ss:$8 sps:$4 sm:$0xff]  }
 0x343   :  { %4002 = vmatpush1.bf16.msra.mxu0 %v14677_v50  ;;  %5293 = vmatprep.subr.bf16.mxu1 %v14682_v30  ;;  %v14733_v50 = vld [vmem:[%s20110_s2 + $0x784] ss:$8 sps:$4 sm:$0xff]   ;;  %v14728_v30 = vld [vmem:[%s20110_s2 + $0xaa0] ss:$8 sps:$4 sm:$0xff]  }
 0x344   :  { %4499 = vmatprep.subr.bf16.mxu0 %v14685_v63  ;;  %v14731_v63 = vld [vmem:[%s20110_s2 + $0x780] ss:$8 sps:$4 sm:$0xff]  }
 0x346   :  { %4004 = vmatmul.mubr.bf16.vlgmr.msra.gmra.mrb[28].mxu0 %v3809_v12  ;;  %5294 = vmatpush1.bf16.msra.mxu1 %v14680_v9  ;;  %v14734_v9 = vld [vmem:[%s20110_s2 + $0xab0] ss:$8 sps:$4 sm:$0xff]   ;;  %v14742_v12 = vld [vmem:[%s20110_s2 + $0xac4] ss:$8 sps:$4 sm:$0xff]  }
 0x347   :  { %4500 = vmatpush1.bf16.msra.mxu0 %v14683_v11  ;;  %11782 = vmatprep.mubr.msk.bf16.mxu0 %vm16986_vm2, %v11781_v57  ;;  %v14737_v11 = vld [vmem:[%s20110_s2 + $0x790] ss:$8 sps:$4 sm:$0xff]   ;;  %v14743_v57 = vld [vmem:[%s20110_s2 + $0x7a0] ss:$8 sps:$4 sm:$0xff]  }
 0x348   :  { %5295 = vmatprep.subr.bf16.mxu1 %v14688_v16  ;;  %4501 = vmatprep.subr.bf16.mxu0 %v14691_v19  ;;  %v14745_v16 = vld [vmem:[%s20110_s2 + $0x7a4] ss:$8 sps:$4 sm:$0xff]   ;;  %v14740_v19 = vld [vmem:[%s20110_s2 + $0xac0] ss:$8 sps:$4 sm:$0xff]  }
 0x34a   :  { %5296 = vmatpush1.bf16.msra.mxu1 %v14686_v17  ;;  %v14748_v17 = vld [vmem:[%s20110_s2 + $0xad4] ss:$8 sps:$4 sm:$0xff]  }
 0x34b   :  { %4502 = vmatpush1.bf16.msra.mxu0 %v14689_v18  ;;  %5297 = vmatprep.subr.bf16.mxu1 %v14694_v22  ;;  %v14751_v18 = vld [vmem:[%s20110_s2 + $0x7b4] ss:$8 sps:$4 sm:$0xff]   ;;  %v14746_v22 = vld [vmem:[%s20110_s2 + $0xad0] ss:$8 sps:$4 sm:$0xff]  }
 0x34c   :  { %4503 = vmatprep.subr.bf16.mxu0 %v14697_v8  ;;  %v14749_v8 = vld [vmem:[%s20110_s2 + $0x7b0] ss:$8 sps:$4 sm:$0xff]  }
 0x34e   :  { %5298 = vmatpush1.bf16.msra.mxu1 %v14692_v53  ;;  %v14754_v53 = vld [vmem:[%s20110_s2 + $0xae4] ss:$8 sps:$4 sm:$0xff]  }
 0x34f   :  { %4504 = vmatpush1.bf16.msra.mxu0 %v14695_v1  ;;  %5299 = vmatprep.subr.bf16.mxu1 %v14700_v7  ;;  %v14757_v1 = vld [vmem:[%s20110_s2 + $0x7c4] ss:$8 sps:$4 sm:$0xff]   ;;  %v14752_v7 = vld [vmem:[%s20110_s2 + $0xae0] ss:$8 sps:$4 sm:$0xff]  }
 0x350   :  { %v17765_v52 = vpop.f32.mrb[20].mxu1  ;;  %4505 = vmatprep.subr.bf16.mxu0 %v14703_v13  ;;  %v14755_v13 = vld [vmem:[%s20110_s2 + $0x7c0] ss:$8 sps:$4 sm:$0xff]  }
 0x351   :  { %v17772_v3 = vsel %vm275_vm0, %v17765_v52, -inf  ;;  %v17774_v28 = vpop.f32.mrb[21].mxu1 }
 0x352   :  { %v17778_v49 = vsel %vm275_vm0, %v17774_v28, -inf  ;;  %v3215_v32 = vpop.f32.mrb[22].mxu1  ;;  %5300 = vmatpush1.bf16.msra.mxu1 %v14698_v29  ;;  %v14760_v29 = vld [vmem:[%s20110_s2 + $0xaf4] ss:$8 sps:$4 sm:$0xff]  }
 0x353   :  { %v3216_v33 = vpop.f32.mrb[23].mxu1  ;;  %4506 = vmatpush1.bf16.msra.mxu0 %v14701_v48  ;;  %5301 = vmatprep.subr.bf16.mxu1 %v14706_v31  ;;  %v3220_v56 = vmax.f32 %v17772_v3, %v17778_v49  ;;  %v14763_v48 = vld [vmem:[%s20110_s2 + $0x7d4] ss:$8 sps:$4 sm:$0xff]   ;;  %v14758_v31 = vld [vmem:[%s20110_s2 + $0xaf0] ss:$8 sps:$4 sm:$0xff]  }
 0x354   :  { %4507 = vmatprep.subr.bf16.mxu0 %v14709_v62  ;;  %v14761_v62 = vld [vmem:[%s20110_s2 + $0x7d0] ss:$8 sps:$4 sm:$0xff]   ;;  %v14766_v32 = vld [vmem:[%s20110_s2 + $0xc04] ss:$8 sps:$4 sm:$0xff]  }
 0x355   :  { %v14769_v33 = vld [vmem:[%s20110_s2 + $0x7e4] ss:$8 sps:$4 sm:$0xff]  }
 0x356   :  { %v17794_v61 = vpop.f32.mrb[20].mxu0  ;;  %5302 = vmatpush1.bf16.msra.mxu1 %v14704_v42  ;;  %v5092_v42 = vsel %vm2452_vm1, %v17579_v14, %v17679_v20  ;;  %v14772_v14 = vld [vmem:[%s20110_s2 + $0xc14] ss:$8 sps:$4 sm:$0xff]  }
 0x357   :  { %v17801_v27 = vsel %vm275_vm0, %v17794_v61, -inf  ;;  %v17803_v21 = vpop.f32.mrb[21].mxu0  ;;  %4508 = vmatpush1.bf16.msra.mxu0 %v14707_v54  ;;  %5303 = vmatprep.subr.bf16.mxu1 %v14712_v58  ;;  %v14764_v54 = vld [vmem:[%s20110_s2 + $0xc00] ss:$8 sps:$4 sm:$0xff]   ;;  %v5127_v58 = vpack.c.bf16 %v5092_v42, %v5092_v42  ;;  %v14775_v20 = vld [vmem:[%s20110_s2 + $0x7f4] ss:$8 sps:$4 sm:$0xff]  }
 0x358   :  { %v17813_v60 = vsel %vm275_vm0, %v17803_v21, -inf  ;;  %v2953_v0 = vpop.f32.mrb[22].mxu0  ;;  %4509 = vmatprep.subr.bf16.mxu0 %v14715_v34  ;;  %v14767_v34 = vld [vmem:[%s20110_s2 + $0x7e0] ss:$8 sps:$4 sm:$0xff]   ;;  %v14809_v42 = vld [vmem:[%s20110_s2 + $0x950] ss:$8 sps:$4 sm:$0xff]  }
 0x359   :  { %v2954_v26 = vpop.f32.mrb[23].mxu0  ;;  %v2958_v37 = vmax.f32 %v17801_v27, %v17813_v60  ;;  %v14773_v0 = vld [vmem:[%s20110_s2 + $0x7f0] ss:$8 sps:$4 sm:$0xff]   ;;  %v14940_v27 = vld [vmem:[%s20110_s2 + $0xd84] ss:$8 sps:$4 sm:$0xff]  }
 0x35a   :  { %5304 = vmatpush1.bf16.msra.mxu1 %v14710_v2  ;;  %v13741_v2 = vunpack.i.l.bf16 %v17699_v44  ;;  %v14781_v44 = vld [vmem:[%s20110_s2 + $0x904] ss:$8 sps:$4 sm:$0xff]   ;;  %v14938_v60 = vld [vmem:[%s20110_s2 + $0xd80] ss:$8 sps:$4 sm:$0xff]  }
 0x35b   :  { %4510 = vmatpush1.bf16.msra.mxu0 %v14713_v25  ;;  %5305 = vmatprep.subr.bf16.mxu1 %v14718_v35  ;;  %v14770_v25 = vld [vmem:[%s20110_s2 + $0xc10] ss:$8 sps:$4 sm:$0xff]   ;;  %v15703_v35 = vmov 0.0|0.0  }
 0x35c   :  { %4511 = vmatprep.subr.bf16.mxu0 %v14721_v6  ;;  %v14778_v6 = vld [vmem:[%s20110_s2 + $0xc24] ss:$8 sps:$4 sm:$0xff]   ;;  %v4302_v26 = vsel %vm2452_vm1, %v13741_v2, %v17043_v15  ;;  %v14787_v15 = vld [vmem:[%s20110_s2 + $0x914] ss:$8 sps:$4 sm:$0xff]   ;;  %v14818_v2 = vld [vmem:[%s20110_s2 + $0xc90] ss:$8 sps:$4 sm:$0xff]  }
 0x35e   :  { %5306 = vmatpush1.bf16.msra.mxu1 %v14716_v38  ;;  %v14776_v38 = vld [vmem:[%s20110_s2 + $0xc20] ss:$8 sps:$4 sm:$0xff]  }
 0x35f   :  { %4512 = vmatpush1.bf16.msra.mxu0 %v14719_v41  ;;  %5307 = vmatprep.subr.bf16.mxu1 %v14724_v40  ;;  %v14779_v41 = vld [vmem:[%s20110_s2 + $0x900] ss:$8 sps:$4 sm:$0xff]   ;;  %v14784_v40 = vld [vmem:[%s20110_s2 + $0xc34] ss:$8 sps:$4 sm:$0xff]  }
 0x360   :  { %4513 = vmatprep.subr.bf16.mxu0 %v14727_v23  ;;  %v4337_v23 = vpack.c.bf16 %v4302_v26, %v4302_v26  ;;  %v14827_v26 = vld [vmem:[%s20110_s2 + $0x980] ss:$8 sps:$4 sm:$0xff]  }
 0x362   :  { %5308 = vmatpush1.bf16.msra.mxu1 %v14722_v24  ;;  %v14782_v24 = vld [vmem:[%s20110_s2 + $0xc30] ss:$8 sps:$4 sm:$0xff]  }
 0x363   :  { %4514 = vmatpush1.bf16.msra.mxu0 %v14725_v43  ;;  %5309 = vmatprep.subr.bf16.mxu1 %v14730_v46  ;;  %v14785_v43 = vld [vmem:[%s20110_s2 + $0x910] ss:$8 sps:$4 sm:$0xff]   ;;  %v14790_v46 = vld [vmem:[%s20110_s2 + $0xc44] ss:$8 sps:$4 sm:$0xff]  }
 0x364   :  { %4515 = vmatprep.subr.bf16.mxu0 %v14733_v50  ;;  %v14793_v50 = vld [vmem:[%s20110_s2 + $0x924] ss:$8 sps:$4 sm:$0xff]  }
 0x366   :  { %5310 = vmatpush1.bf16.msra.mxu1 %v14728_v30  ;;  %v14788_v30 = vld [vmem:[%s20110_s2 + $0xc40] ss:$8 sps:$4 sm:$0xff]  }
 0x367   :  { %4516 = vmatpush1.bf16.msra.mxu0 %v14731_v63  ;;  %5311 = vmatprep.subr.bf16.mxu1 %v14736_v4  ;;  %v14791_v63 = vld [vmem:[%s20110_s2 + $0x920] ss:$8 sps:$4 sm:$0xff]   ;;  %v14796_v4 = vld [vmem:[%s20110_s2 + $0xc54] ss:$8 sps:$4 sm:$0xff]  }
 0x368   :  { %4517 = vmatprep.subr.bf16.mxu0 %v14739_v10  ;;  %v14799_v10 = vld [vmem:[%s20110_s2 + $0x934] ss:$8 sps:$4 sm:$0xff]  }
 0x36a   :  { %5312 = vmatpush1.bf16.msra.mxu1 %v14734_v9  ;;  %v14794_v9 = vld [vmem:[%s20110_s2 + $0xc50] ss:$8 sps:$4 sm:$0xff]  }
 0x36b   :  { %4518 = vmatpush1.bf16.msra.mxu0 %v14737_v11  ;;  %5313 = vmatprep.subr.bf16.mxu1 %v14742_v12  ;;  %v14797_v12 = vld [vmem:[%s20110_s2 + $0x930] ss:$8 sps:$4 sm:$0xff]  }
 0x36c   :  { %4519 = vmatprep.subr.bf16.mxu0 %v14745_v16  ;;  %v14802_v16 = vld [vmem:[%s20110_s2 + $0xc64] ss:$8 sps:$4 sm:$0xff]  }
 0x36e   :  { %5314 = vmatpush1.bf16.msra.mxu1 %v14740_v19 }
 0x36f   :  { %4520 = vmatpush1.bf16.msra.mxu0 %v14743_v57  ;;  %5315 = vmatprep.subr.bf16.mxu1 %v14748_v17  ;;  %v14805_v17 = vld [vmem:[%s20110_s2 + $0x944] ss:$8 sps:$4 sm:$0xff]  }
 0x370   :  { %4521 = vmatprep.subr.bf16.mxu0 %v14751_v18 }
 0x372   :  { %5316 = vmatpush1.bf16.msra.mxu1 %v14746_v22 }
 0x373   :  { %4522 = vmatpush1.bf16.msra.mxu0 %v14749_v8  ;;  %5317 = vmatprep.subr.bf16.mxu1 %v14754_v53 }
 0x374   :  { %4523 = vmatprep.subr.bf16.mxu0 %v14757_v1 }
 0x376   :  { %5318 = vmatpush1.bf16.msra.mxu1 %v14752_v7  ;;  %v14800_v7 = vld [vmem:[%s20110_s2 + $0xc60] ss:$8 sps:$4 sm:$0xff]  }
 0x377   :  { %4524 = vmatpush1.bf16.msra.mxu0 %v14755_v13  ;;  %5319 = vmatprep.subr.bf16.mxu1 %v14760_v29  ;;  %v14803_v29 = vld [vmem:[%s20110_s2 + $0x940] ss:$8 sps:$4 sm:$0xff]  }
 0x378   :  { %4525 = vmatprep.subr.bf16.mxu0 %v14763_v48  ;;  %v14808_v48 = vld [vmem:[%s20110_s2 + $0xc74] ss:$8 sps:$4 sm:$0xff]  }
 0x37a   :  { %5320 = vmatpush1.bf16.msra.mxu1 %v14758_v31 }
 0x37b   :  { %4526 = vmatpush1.bf16.msra.mxu0 %v14761_v62  ;;  %5810 = vmatprep.subr.bf16.mxu1 %v14766_v32  ;;  %v14811_v62 = vld [vmem:[%s20110_s2 + $0x954] ss:$8 sps:$4 sm:$0xff]   ;;  %v14806_v32 = vld [vmem:[%s20110_s2 + $0xc70] ss:$8 sps:$4 sm:$0xff]  }
 0x37c   :  { %4527 = vmatprep.subr.bf16.mxu0 %v14769_v33  ;;  %v14814_v33 = vld [vmem:[%s20110_s2 + $0xc84] ss:$8 sps:$4 sm:$0xff]  }
 0x37d   :  { %5322 = vmatmul.mubr.bf16.vlgmr.msra.gmra.mrb[36].mxu1 %v5127_v58  ;;  %v14812_v58 = vld [vmem:[%s20110_s2 + $0xc80] ss:$8 sps:$4 sm:$0xff]  }
 0x37e   :  { %5811 = vmatpush1.bf16.msra.mxu1 %v14764_v54  ;;  %5842 = vmatprep.mubr.bf16.mxu1 %v15703_v35  ;;  %v14817_v54 = vld [vmem:[%s20110_s2 + $0x964] ss:$8 sps:$4 sm:$0xff]  }
 0x37f   :  { %4528 = vmatpush1.bf16.msra.mxu0 %v14767_v34  ;;  %5812 = vmatprep.subr.bf16.mxu1 %v14772_v14  ;;  %v14815_v34 = vld [vmem:[%s20110_s2 + $0x960] ss:$8 sps:$4 sm:$0xff]   ;;  %v14820_v14 = vld [vmem:[%s20110_s2 + $0xc94] ss:$8 sps:$4 sm:$0xff]  }
 0x380   :  { %4529 = vmatprep.subr.bf16.mxu0 %v14775_v20  ;;  %v14823_v20 = vld [vmem:[%s20110_s2 + $0x974] ss:$8 sps:$4 sm:$0xff]  }
 0x382   :  { %5813 = vmatpush1.bf16.msra.mxu1 %v14770_v25  ;;  %v14821_v25 = vld [vmem:[%s20110_s2 + $0x970] ss:$8 sps:$4 sm:$0xff]  }
 0x383   :  { %4530 = vmatpush1.bf16.msra.mxu0 %v14773_v0  ;;  %5814 = vmatprep.subr.bf16.mxu1 %v14778_v6  ;;  %v14826_v0 = vld [vmem:[%s20110_s2 + $0xca4] ss:$8 sps:$4 sm:$0xff]  }
 0x384   :  { %5027 = vmatprep.subr.bf16.mxu0 %v14781_v44  ;;  %v14829_v6 = vld [vmem:[%s20110_s2 + $0x984] ss:$8 sps:$4 sm:$0xff]   ;;  %v14824_v44 = vld [vmem:[%s20110_s2 + $0xca0] ss:$8 sps:$4 sm:$0xff]  }
 0x386   :  { %4532 = vmatmul.mubr.bf16.vlgmr.msra.gmra.mrb[32].mxu0 %v4337_v23  ;;  %5815 = vmatpush1.bf16.msra.mxu1 %v14776_v38  ;;  %v14832_v38 = vld [vmem:[%s20110_s2 + $0xcb4] ss:$8 sps:$4 sm:$0xff]   ;;  %v14833_v23 = vld [vmem:[%s20110_s2 + $0x990] ss:$8 sps:$4 sm:$0xff]  }
 0x387   :  { %5028 = vmatpush1.bf16.msra.mxu0 %v14779_v41  ;;  %5816 = vmatprep.subr.bf16.mxu1 %v14784_v40  ;;  %v14835_v41 = vld [vmem:[%s20110_s2 + $0x994] ss:$8 sps:$4 sm:$0xff]   ;;  %v14830_v40 = vld [vmem:[%s20110_s2 + $0xcb0] ss:$8 sps:$4 sm:$0xff]  }
 0x388   :  { %5029 = vmatprep.subr.bf16.mxu0 %v14787_v15  ;;  %v14838_v15 = vld [vmem:[%s20110_s2 + $0xcc4] ss:$8 sps:$4 sm:$0xff]  }
 0x38a   :  { %5817 = vmatpush1.bf16.msra.mxu1 %v14782_v24  ;;  %v14841_v24 = vld [vmem:[%s20110_s2 + $0x9a4] ss:$8 sps:$4 sm:$0xff]  }
 0x38b   :  { %5030 = vmatpush1.bf16.msra.mxu0 %v14785_v43  ;;  %5818 = vmatprep.subr.bf16.mxu1 %v14790_v46  ;;  %v14836_v43 = vld [vmem:[%s20110_s2 + $0xcc0] ss:$8 sps:$4 sm:$0xff]  }
 0x38c   :  { %5031 = vmatprep.subr.bf16.mxu0 %v14793_v50  ;;  %v14839_v46 = vld [vmem:[%s20110_s2 + $0x9a0] ss:$8 sps:$4 sm:$0xff]   ;;  %v14844_v50 = vld [vmem:[%s20110_s2 + $0xcd4] ss:$8 sps:$4 sm:$0xff]  }
 0x38e   :  { %5819 = vmatpush1.bf16.msra.mxu1 %v14788_v30  ;;  %v17986_v11 = vpop.permute.xlu1 %13744  ;;  %v14847_v30 = vld [vmem:[%s20110_s2 + $0x9b4] ss:$8 sps:$4 sm:$0xff]  }
 0x38f   :  { %5032 = vmatpush1.bf16.msra.mxu0 %v14791_v63  ;;  %5820 = vmatprep.subr.bf16.mxu1 %v14796_v4  ;;  %v13747_v19 = vunpack.i.h.bf16 %v17986_v11  ;;  %v14842_v63 = vld [vmem:[%s20110_s2 + $0xcd0] ss:$8 sps:$4 sm:$0xff]  }
 0x390   :  { %v17995_v57 = vpop.f32.mrb[24].mxu1  ;;  %5033 = vmatprep.subr.bf16.mxu0 %v14799_v10  ;;  %v14845_v4 = vld [vmem:[%s20110_s2 + $0x9b0] ss:$8 sps:$4 sm:$0xff]   ;;  %v14850_v10 = vld [vmem:[%s20110_s2 + $0xce4] ss:$8 sps:$4 sm:$0xff]  }
 0x391   :  { %v3746_v18 = vsel %vm275_vm0, %v17995_v57, -inf  ;;  %v18002_v22 = vpop.f32.mrb[25].mxu1  ;;  %v11919_v8 = vpack.c.bf16 %v13747_v19, %v13747_v19  ;;  %v14856_v19 = vld [vmem:[%s20110_s2 + $0xcf4] ss:$8 sps:$4 sm:$0xff]  }
 0x392   :  { %v3747_v53 = vsel %vm275_vm0, %v18002_v22, -inf  ;;  %5821 = vmatpush1.bf16.msra.mxu1 %v14794_v9  ;;  %v3743_v1 = vpop.f32.mrb[26].mxu1  ;;  %v14853_v9 = vld [vmem:[%s20110_s2 + $0x9c4] ss:$8 sps:$4 sm:$0xff]  }
 0x393   :  { %5034 = vmatpush1.bf16.msra.mxu0 %v14797_v12  ;;  %v3744_v13 = vpop.f32.mrb[27].mxu1  ;;  %5822 = vmatprep.subr.bf16.mxu1 %v14802_v16  ;;  %v3748_v31 = vmax.f32 %v3746_v18, %v3747_v53  ;;  %v14848_v12 = vld [vmem:[%s20110_s2 + $0xce0] ss:$8 sps:$4 sm:$0xff]   ;;  %v14854_v18 = vld [vmem:[%s20110_s2 + $0xcf0] ss:$8 sps:$4 sm:$0xff]  }
 0x394   :  { %11920 = vmatprep.mubr.msk.bf16.mxu0 %vm16986_vm2, %v11919_v8  ;;  %5035 = vmatprep.subr.bf16.mxu0 %v14805_v17  ;;  %v14851_v16 = vld [vmem:[%s20110_s2 + $0x9c0] ss:$8 sps:$4 sm:$0xff]   ;;  %v14859_v17 = vld [vmem:[%s20110_s2 + $0x9d4] ss:$8 sps:$4 sm:$0xff]   ;;  %v14857_v8 = vld [vmem:[%s20110_s2 + $0x9d0] ss:$8 sps:$4 sm:$0xff]   ;;  %v13746_v13 = vunpack.i.l.bf16 %v17986_v11 }
 0x395   :  { %3749 = vmax.xlane.f32.xlu0 %v3748_v31  ;;  %v14862_v53 = vld [vmem:[%s20110_s2 + $0x9e4] ss:$8 sps:$4 sm:$0xff]   ;;  %v14860_v1 = vld [vmem:[%s20110_s2 + $0x9e0] ss:$8 sps:$4 sm:$0xff]  }
 0x396   :  { %5823 = vmatpush1.bf16.msra.mxu1 %v14800_v7  ;;  %v14865_v7 = vld [vmem:[%s20110_s2 + $0x9f4] ss:$8 sps:$4 sm:$0xff]   ;;  %v14868_v31 = vld [vmem:[%s20110_s2 + $0xb04] ss:$8 sps:$4 sm:$0xff]  }
 0x397   :  { %5036 = vmatpush1.bf16.msra.mxu0 %v14803_v29  ;;  %5824 = vmatprep.subr.bf16.mxu1 %v14808_v48  ;;  %v18133_v29 = vpop.permute.xlu0 %13749  ;;  %v14863_v48 = vld [vmem:[%s20110_s2 + $0x9f0] ss:$8 sps:$4 sm:$0xff]  }
 0x398   :  { %5037 = vmatprep.subr.bf16.mxu0 %v14811_v62  ;;  %v4830_v62 = vsel %vm2452_vm1, %v13746_v13, %v17218_v51  ;;  %v13752_v11 = vunpack.i.h.bf16 %v18133_v29  ;;  %v14869_v51 = vld [vmem:[%s20110_s2 + $0xb10] ss:$8 sps:$4 sm:$0xff]   ;;  %v14898_v13 = vld [vmem:[%s20110_s2 + $0xba4] ss:$8 sps:$4 sm:$0xff]  }
 0x39a   :  { %5825 = vmatpush1.bf16.msra.mxu1 %v14806_v32  ;;  %v14866_v32 = vld [vmem:[%s20110_s2 + $0xb00] ss:$8 sps:$4 sm:$0xff]  }
 0x39b   :  { %5038 = vmatpush1.bf16.msra.mxu0 %v14809_v42  ;;  %5826 = vmatprep.subr.bf16.mxu1 %v14814_v33  ;;  %v4865_v42 = vpack.c.bf16 %v4830_v62, %v4830_v62  ;;  %v14871_v33 = vld [vmem:[%s20110_s2 + $0xb14] ss:$8 sps:$4 sm:$0xff]   ;;  %v14899_v62 = vld [vmem:[%s20110_s2 + $0xbb0] ss:$8 sps:$4 sm:$0xff]  }
 0x39c   :  { %5039 = vmatprep.subr.bf16.mxu0 %v14817_v54  ;;  %v12057_v54 = vpack.c.bf16 %v13752_v11, %v13752_v11  ;;  %v14904_v11 = vld [vmem:[%s20110_s2 + $0xbc4] ss:$8 sps:$4 sm:$0xff]  }
 0x39e   :  { %5827 = vmatpush1.bf16.msra.mxu1 %v14812_v58  ;;  %v14874_v58 = vld [vmem:[%s20110_s2 + $0xb24] ss:$8 sps:$4 sm:$0xff]  }
 0x39f   :  { %5040 = vmatpush1.bf16.msra.mxu0 %v14815_v34  ;;  %5828 = vmatprep.subr.bf16.mxu1 %v14820_v14  ;;  %v14872_v34 = vld [vmem:[%s20110_s2 + $0xb20] ss:$8 sps:$4 sm:$0xff]   ;;  %v14875_v14 = vld [vmem:[%s20110_s2 + $0xb30] ss:$8 sps:$4 sm:$0xff]  }
 0x3a0   :  { %5041 = vmatprep.subr.bf16.mxu0 %v14823_v20 }
 0x3a2   :  { %5829 = vmatpush1.bf16.msra.mxu1 %v14818_v2  ;;  %v14880_v2 = vld [vmem:[%s20110_s2 + $0xb44] ss:$8 sps:$4 sm:$0xff]  }
 0x3a3   :  { %5042 = vmatpush1.bf16.msra.mxu0 %v14821_v25  ;;  %5830 = vmatprep.subr.bf16.mxu1 %v14826_v0 }
 0x3a4   :  { %5043 = vmatprep.subr.bf16.mxu0 %v14829_v6 }
 0x3a6   :  { %5831 = vmatpush1.bf16.msra.mxu1 %v14824_v44 }
 0x3a7   :  { %5044 = vmatpush1.bf16.msra.mxu0 %v14827_v26  ;;  %5832 = vmatprep.subr.bf16.mxu1 %v14832_v38  ;;  %v14878_v38 = vld [vmem:[%s20110_s2 + $0xb40] ss:$8 sps:$4 sm:$0xff]  }
 0x3a8   :  { %5045 = vmatprep.subr.bf16.mxu0 %v14835_v41 }
 0x3aa   :  { %5833 = vmatpush1.bf16.msra.mxu1 %v14830_v40  ;;  %v14883_v40 = vld [vmem:[%s20110_s2 + $0xb54] ss:$8 sps:$4 sm:$0xff]  }
 0x3ab   :  { %5046 = vmatpush1.bf16.msra.mxu0 %v14833_v23  ;;  %5834 = vmatprep.subr.bf16.mxu1 %v14838_v15  ;;  %v14881_v23 = vld [vmem:[%s20110_s2 + $0xb50] ss:$8 sps:$4 sm:$0xff]   ;;  %v14886_v15 = vld [vmem:[%s20110_s2 + $0xb64] ss:$8 sps:$4 sm:$0xff]  }
 0x3ac   :  { %5047 = vmatprep.subr.bf16.mxu0 %v14841_v24 }
 0x3ae   :  { %5835 = vmatpush1.bf16.msra.mxu1 %v14836_v43 }
 0x3af   :  { %5048 = vmatpush1.bf16.msra.mxu0 %v14839_v46  ;;  %5836 = vmatprep.subr.bf16.mxu1 %v14844_v50 }
 0x3b0   :  { %5049 = vmatprep.subr.bf16.mxu0 %v14847_v30 }
 0x3b2   :  { %5837 = vmatpush1.bf16.msra.mxu1 %v14842_v63  ;;  %v14884_v63 = vld [vmem:[%s20110_s2 + $0xb60] ss:$8 sps:$4 sm:$0xff]  }
 0x3b3   :  { %5050 = vmatpush1.bf16.msra.mxu0 %v14845_v4  ;;  %5838 = vmatprep.subr.bf16.mxu1 %v14850_v10  ;;  %v14889_v10 = vld [vmem:[%s20110_s2 + $0xb74] ss:$8 sps:$4 sm:$0xff]  }
 0x3b4   :  { %5051 = vmatprep.subr.bf16.mxu0 %v14853_v9 }
 0x3b6   :  { %5839 = vmatpush1.bf16.msra.mxu1 %v14848_v12  ;;  %v14887_v12 = vld [vmem:[%s20110_s2 + $0xb70] ss:$8 sps:$4 sm:$0xff]  }
 0x3b7   :  { %5052 = vmatpush1.bf16.msra.mxu0 %v14851_v16  ;;  %5840 = vmatprep.subr.bf16.mxu1 %v14856_v19  ;;  %v14892_v16 = vld [vmem:[%s20110_s2 + $0xb84] ss:$8 sps:$4 sm:$0xff]   ;;  %v14890_v19 = vld [vmem:[%s20110_s2 + $0xb80] ss:$8 sps:$4 sm:$0xff]  }
 0x3b8   :  { %5053 = vmatprep.subr.bf16.mxu0 %v14859_v17  ;;  %v14895_v17 = vld [vmem:[%s20110_s2 + $0xb94] ss:$8 sps:$4 sm:$0xff]  }
 0x3ba   :  { %5841 = vmatpush1.bf16.msra.mxu1 %v14854_v18  ;;  %v14962_v18 = vld [vmem:[%s20110_s2 + $0xe00] ss:$8 sps:$4 sm:$0xff]  }
 0x3bb   :  { %5054 = vmatpush1.bf16.msra.mxu0 %v14857_v8  ;;  %v14964_v8 = vld [vmem:[%s20110_s2 + $0xe04] ss:$8 sps:$4 sm:$0xff]  }
 0x3bc   :  { %5055 = vmatprep.subr.bf16.mxu0 %v14862_v53  ;;  %v14967_v53 = vld [vmem:[%s20110_s2 + $0xe14] ss:$8 sps:$4 sm:$0xff]   ;;  %6318 = vmatprep.subr.bf16.mxu1 %v14964_v8 }
 0x3bd   :  { %5843 = vmatmul.mubr.bf16.vlgmr.msra.gmra.mrb[40].mxu1 %v15703_v35 }
 0x3be   :  { %6350 = vmatprep.mubr.bf16.mxu1 %v15703_v35  ;;  %6319 = vmatpush1.bf16.msra.mxu1 %v14962_v18  ;;  %v14926_v18 = vld [vmem:[%s20110_s2 + $0xd40] ss:$8 sps:$4 sm:$0xff]  }
 0x3bf   :  { %5056 = vmatpush1.bf16.msra.mxu0 %v14860_v1  ;;  %v14893_v1 = vld [vmem:[%s20110_s2 + $0xb90] ss:$8 sps:$4 sm:$0xff]   ;;  %6320 = vmatprep.subr.bf16.mxu1 %v14967_v53 }
 0x3c0   :  { %5057 = vmatprep.subr.bf16.mxu0 %v14865_v7  ;;  %v14965_v7 = vld [vmem:[%s20110_s2 + $0xe10] ss:$8 sps:$4 sm:$0xff]  }
 0x3c2   :  { %6321 = vmatpush1.bf16.msra.mxu1 %v14965_v7  ;;  %v14973_v7 = vld [vmem:[%s20110_s2 + $0xe34] ss:$8 sps:$4 sm:$0xff]  }
 0x3c3   :  { %5058 = vmatpush1.bf16.msra.mxu0 %v14863_v48  ;;  %v14896_v48 = vld [vmem:[%s20110_s2 + $0xba0] ss:$8 sps:$4 sm:$0xff]  }
 0x3c4   :  { %5555 = vmatprep.subr.bf16.mxu0 %v14868_v31  ;;  %v14901_v31 = vld [vmem:[%s20110_s2 + $0xbb4] ss:$8 sps:$4 sm:$0xff]  }
 0x3c6   :  { %5060 = vmatmul.mubr.bf16.vlgmr.msra.gmra.mrb[36].mxu0 %v4865_v42  ;;  %v14907_v42 = vld [vmem:[%s20110_s2 + $0xbd4] ss:$8 sps:$4 sm:$0xff]  }
 0x3c7   :  { %5556 = vmatpush1.bf16.msra.mxu0 %v14866_v32  ;;  %12058 = vmatprep.mubr.msk.bf16.mxu0 %vm16986_vm2, %v12057_v54  ;;  %v14902_v32 = vld [vmem:[%s20110_s2 + $0xbc0] ss:$8 sps:$4 sm:$0xff]   ;;  %v14910_v54 = vld [vmem:[%s20110_s2 + $0xbe4] ss:$8 sps:$4 sm:$0xff]  }
 0x3c8   :  { %5557 = vmatprep.subr.bf16.mxu0 %v14871_v33  ;;  %v14905_v33 = vld [vmem:[%s20110_s2 + $0xbd0] ss:$8 sps:$4 sm:$0xff]  }
 0x3cb   :  { %5558 = vmatpush1.bf16.msra.mxu0 %v14869_v51  ;;  %v14908_v51 = vld [vmem:[%s20110_s2 + $0xbe0] ss:$8 sps:$4 sm:$0xff]  }
 0x3cc   :  { %5559 = vmatprep.subr.bf16.mxu0 %v14874_v58  ;;  %v14913_v58 = vld [vmem:[%s20110_s2 + $0xbf4] ss:$8 sps:$4 sm:$0xff]  }
 0x3cf   :  { %5560 = vmatpush1.bf16.msra.mxu0 %v14872_v34  ;;  %v13751_v34 = vunpack.i.l.bf16 %v18133_v29  ;;  %v14919_v29 = vld [vmem:[%s20110_s2 + $0xd14] ss:$8 sps:$4 sm:$0xff]  }
 0x3d0   :  { %v18168_v20 = vpop.f32.mrb[28].mxu1  ;;  %5561 = vmatprep.subr.bf16.mxu0 %v14877_v55  ;;  %v14911_v55 = vld [vmem:[%s20110_s2 + $0xbf0] ss:$8 sps:$4 sm:$0xff]  }
 0x3d1   :  { %v18175_v25 = vsel %vm275_vm0, %v18168_v20, -inf  ;;  %v18177_v0 = vpop.f32.mrb[29].mxu1 }
 0x3d2   :  { %v18181_v6 = vsel %vm275_vm0, %v18177_v0, -inf  ;;  %v4271_v44 = vpop.f32.mrb[30].mxu1 }
 0x3d3   :  { %v4272_v26 = vpop.f32.mrb[31].mxu1  ;;  %5562 = vmatpush1.bf16.msra.mxu0 %v14875_v14  ;;  %v4276_v41 = vmax.f32 %v18175_v25, %v18181_v6  ;;  %v14916_v14 = vld [vmem:[%s20110_s2 + $0xd04] ss:$8 sps:$4 sm:$0xff]   ;;  %v14914_v44 = vld [vmem:[%s20110_s2 + $0xd00] ss:$8 sps:$4 sm:$0xff]  }
 0x3d4   :  { %5563 = vmatprep.subr.bf16.mxu0 %v14880_v2  ;;  %v5358_v2 = vsel %vm2452_vm1, %v13751_v34, %v17256_v36  ;;  %v14922_v36 = vld [vmem:[%s20110_s2 + $0xd24] ss:$8 sps:$4 sm:$0xff]   ;;  %v14979_v34 = vld [vmem:[%s20110_s2 + $0xe54] ss:$8 sps:$4 sm:$0xff]  }
 0x3d5   :  { %v5393_v26 = vpack.c.bf16 %v5358_v2, %v5358_v2  ;;  %v14935_v2 = vld [vmem:[%s20110_s2 + $0xd70] ss:$8 sps:$4 sm:$0xff]   ;;  %v15111_v6 = vld [vmem:[%s20111_s3 + $0x168] sm:$0xff]  }
 0x3d7   :  { %5564 = vmatpush1.bf16.msra.mxu0 %v14878_v38  ;;  %v14917_v38 = vld [vmem:[%s20110_s2 + $0xd10] ss:$8 sps:$4 sm:$0xff]  }
 0x3d8   :  { %5565 = vmatprep.subr.bf16.mxu0 %v14883_v40  ;;  %v18197_v24 = vpop.f32.mrb[24].mxu0  ;;  %v14920_v40 = vld [vmem:[%s20110_s2 + $0xd20] ss:$8 sps:$4 sm:$0xff]  }
 0x3d9   :  { %v18201_v43 = vsel %vm275_vm0, %v18197_v24, -inf  ;;  %v18203_v46 = vpop.f32.mrb[25].mxu0 }
 0x3da   :  { %v18207_v50 = vsel %vm275_vm0, %v18203_v46, -inf  ;;  %v3481_v30 = vpop.f32.mrb[26].mxu0 }
 0x3db   :  { %5566 = vmatpush1.bf16.msra.mxu0 %v14881_v23  ;;  %v3482_v4 = vpop.f32.mrb[27].mxu0  ;;  %v14925_v23 = vld [vmem:[%s20110_s2 + $0xd34] ss:$8 sps:$4 sm:$0xff]  }
 0x3dc   :  { %5567 = vmatprep.subr.bf16.mxu0 %v14886_v15  ;;  %v14923_v15 = vld [vmem:[%s20110_s2 + $0xd30] ss:$8 sps:$4 sm:$0xff]   ;;  %v14970_v4 = vld [vmem:[%s20110_s2 + $0xe24] ss:$8 sps:$4 sm:$0xff]  }
 0x3dd   :  { %6322 = vmatprep.subr.bf16.mxu1 %v14970_v4  ;;  %v14991_v4 = vld [vmem:[%s20110_s2 + $0xe94] ss:$8 sps:$4 sm:$0xff]  }
 0x3df   :  { %5568 = vmatpush1.bf16.msra.mxu0 %v14884_v63  ;;  %v14928_v63 = vld [vmem:[%s20110_s2 + $0xd44] ss:$8 sps:$4 sm:$0xff]  }
 0x3e0   :  { %5569 = vmatprep.subr.bf16.mxu0 %v14889_v10 }
 0x3e3   :  { %5570 = vmatpush1.bf16.msra.mxu0 %v14887_v12 }
 0x3e4   :  { %5571 = vmatprep.subr.bf16.mxu0 %v14892_v16  ;;  %v14968_v16 = vld [vmem:[%s20110_s2 + $0xe20] ss:$8 sps:$4 sm:$0xff]  }
 0x3e5   :  { %6323 = vmatpush1.bf16.msra.mxu1 %v14968_v16  ;;  %v14947_v16 = vld [vmem:[%s20110_s2 + $0xdb0] ss:$8 sps:$4 sm:$0xff]  }
 0x3e6   :  { %6324 = vmatprep.subr.bf16.mxu1 %v14973_v7  ;;  %v14995_v7 = vld [vmem:[%s20110_s2 + $0xeb0] ss:$8 sps:$4 sm:$0xff]  }
 0x3e7   :  { %5572 = vmatpush1.bf16.msra.mxu0 %v14890_v19 }
 0x3e8   :  { %5573 = vmatprep.subr.bf16.mxu0 %v14895_v17 }
 0x3eb   :  { %5574 = vmatpush1.bf16.msra.mxu0 %v14893_v1  ;;  %v14971_v1 = vld [vmem:[%s20110_s2 + $0xe30] ss:$8 sps:$4 sm:$0xff]  }
 0x3ec   :  { %5575 = vmatprep.subr.bf16.mxu0 %v14898_v13  ;;  %v14931_v13 = vld [vmem:[%s20110_s2 + $0xd54] ss:$8 sps:$4 sm:$0xff]   ;;  %6325 = vmatpush1.bf16.msra.mxu1 %v14971_v1 }
 0x3ed   :  { %v14997_v1 = vld [vmem:[%s20110_s2 + $0xeb4] ss:$8 sps:$4 sm:$0xff]  }
 0x3ef   :  { %5576 = vmatpush1.bf16.msra.mxu0 %v14896_v48  ;;  %v14976_v48 = vld [vmem:[%s20110_s2 + $0xe44] ss:$8 sps:$4 sm:$0xff]  }
 0x3f0   :  { %5577 = vmatprep.subr.bf16.mxu0 %v14901_v31  ;;  %v14929_v31 = vld [vmem:[%s20110_s2 + $0xd50] ss:$8 sps:$4 sm:$0xff]   ;;  %6326 = vmatprep.subr.bf16.mxu1 %v14976_v48  ;;  %v14958_v48 = vld [vmem:[%s20110_s2 + $0xde4] ss:$8 sps:$4 sm:$0xff]  }
 0x3f3   :  { %5578 = vmatpush1.bf16.msra.mxu0 %v14899_v62  ;;  %v14974_v62 = vld [vmem:[%s20110_s2 + $0xe40] ss:$8 sps:$4 sm:$0xff]  }
 0x3f4   :  { %5579 = vmatprep.subr.bf16.mxu0 %v14904_v11  ;;  %v14934_v11 = vld [vmem:[%s20110_s2 + $0xd64] ss:$8 sps:$4 sm:$0xff]   ;;  %6327 = vmatpush1.bf16.msra.mxu1 %v14974_v62  ;;  %v14998_v62 = vld [vmem:[%s20110_s2 + $0xec0] ss:$8 sps:$4 sm:$0xff]  }
 0x3f5   :  { %6328 = vmatprep.subr.bf16.mxu1 %v14979_v34  ;;  %v15006_v34 = vld [vmem:[%s20110_s2 + $0xee4] ss:$8 sps:$4 sm:$0xff]  }
 0x3f7   :  { %5580 = vmatpush1.bf16.msra.mxu0 %v14902_v32 }
 0x3f8   :  { %5581 = vmatprep.subr.bf16.mxu0 %v14907_v42 }
 0x3fb   :  { %5582 = vmatpush1.bf16.msra.mxu0 %v14905_v33 }
 0x3fc   :  { %5583 = vmatprep.subr.bf16.mxu0 %v14910_v54 }
 0x3ff   :  { %5584 = vmatpush1.bf16.msra.mxu0 %v14908_v51 }
 0x400   :  { %5585 = vmatprep.subr.bf16.mxu0 %v14913_v58  ;;  %v14932_v58 = vld [vmem:[%s20110_s2 + $0xd60] ss:$8 sps:$4 sm:$0xff]  }
 0x403   :  { %5586 = vmatpush1.bf16.msra.mxu0 %v14911_v55 }
 0x404   :  { %6064 = vmatprep.subr.bf16.mxu0 %v14916_v14  ;;  %v14982_v14 = vld [vmem:[%s20110_s2 + $0xe64] ss:$8 sps:$4 sm:$0xff]  }
 0x406   :  { %5588 = vmatmul.mubr.bf16.vlgmr.msra.gmra.mrb[40].mxu0 %v5393_v26  ;;  %v14985_v26 = vld [vmem:[%s20110_s2 + $0xe74] ss:$8 sps:$4 sm:$0xff]  }
 0x407   :  { %6065 = vmatpush1.bf16.msra.mxu0 %v14914_v44  ;;  %6096 = vmatprep.mubr.bf16.mxu0 %v15703_v35  ;;  %v14980_v44 = vld [vmem:[%s20110_s2 + $0xe60] ss:$8 sps:$4 sm:$0xff]  }
 0x408   :  { %6066 = vmatprep.subr.bf16.mxu0 %v14919_v29  ;;  %v14983_v29 = vld [vmem:[%s20110_s2 + $0xe70] ss:$8 sps:$4 sm:$0xff]  }
 0x40b   :  { %6067 = vmatpush1.bf16.msra.mxu0 %v14917_v38  ;;  %v14941_v38 = vld [vmem:[%s20110_s2 + $0xd90] ss:$8 sps:$4 sm:$0xff]  }
 0x40c   :  { %6068 = vmatprep.subr.bf16.mxu0 %v14922_v36  ;;  %v14946_v36 = vld [vmem:[%s20110_s2 + $0xda4] ss:$8 sps:$4 sm:$0xff]  }
 0x40f   :  { %6069 = vmatpush1.bf16.msra.mxu0 %v14920_v40  ;;  %v14988_v40 = vld [vmem:[%s20110_s2 + $0xe84] ss:$8 sps:$4 sm:$0xff]  }
 0x410   :  { %v18308_v30 = vpop.f32.mrb[32].mxu1  ;;  %6070 = vmatprep.subr.bf16.mxu0 %v14925_v23  ;;  %v14986_v23 = vld [vmem:[%s20110_s2 + $0xe80] ss:$8 sps:$4 sm:$0xff]  }
 0x411   :  { %v4802_v10 = vsel %vm275_vm0, %v18308_v30, -inf  ;;  %v18318_v12 = vpop.f32.mrb[33].mxu1 }
 0x412   :  { %v4803_v19 = vsel %vm275_vm0, %v18318_v12, -inf  ;;  %v4799_v17 = vpop.f32.mrb[34].mxu1 }
 0x413   :  { %v4800_v8 = vpop.f32.mrb[35].mxu1  ;;  %v4804_v53 = vmax.f32 %v4802_v10, %v4803_v19  ;;  %6071 = vmatpush1.bf16.msra.mxu0 %v14923_v15  ;;  %v14944_v15 = vld [vmem:[%s20110_s2 + $0xda0] ss:$8 sps:$4 sm:$0xff]   ;;  %v14989_v10 = vld [vmem:[%s20110_s2 + $0xe90] ss:$8 sps:$4 sm:$0xff]  }
 0x414   :  { %6072 = vmatprep.subr.bf16.mxu0 %v14928_v63  ;;  %v14949_v63 = vld [vmem:[%s20110_s2 + $0xdb4] ss:$8 sps:$4 sm:$0xff]   ;;  %v14952_v19 = vld [vmem:[%s20110_s2 + $0xdc4] ss:$8 sps:$4 sm:$0xff]   ;;  %v14950_v8 = vld [vmem:[%s20110_s2 + $0xdc0] ss:$8 sps:$4 sm:$0xff]  }
 0x415   :  { %4805 = vmax.xlane.f32.xlu0 %v4804_v53  ;;  %v14994_v17 = vld [vmem:[%s20110_s2 + $0xea4] ss:$8 sps:$4 sm:$0xff]   ;;  %v14955_v53 = vld [vmem:[%s20110_s2 + $0xdd4] ss:$8 sps:$4 sm:$0xff]  }
 0x417   :  { %6073 = vmatpush1.bf16.msra.mxu0 %v14926_v18  ;;  %v14992_v18 = vld [vmem:[%s20110_s2 + $0xea0] ss:$8 sps:$4 sm:$0xff]  }
 0x418   :  { %6074 = vmatprep.subr.bf16.mxu0 %v14931_v13  ;;  %v14953_v13 = vld [vmem:[%s20110_s2 + $0xdd0] ss:$8 sps:$4 sm:$0xff]  }
 0x419   :  { %2693 = vmax.xlane.f32.xlu0 %v2692_v45  ;;  %v18352_v32 = vpop.f32.mrb[28].mxu0  ;;  %v14977_v45 = vld [vmem:[%s20110_s2 + $0xe50] ss:$8 sps:$4 sm:$0xff]  }
 0x41a   :  { %v18356_v42 = vsel %vm275_vm0, %v18352_v32, -inf  ;;  %v18358_v33 = vpop.f32.mrb[29].mxu0  ;;  %6329 = vmatpush1.bf16.msra.mxu1 %v14977_v45  ;;  %v15004_v45 = vld [vmem:[%s20110_s2 + $0xee0] ss:$8 sps:$4 sm:$0xff]  }
 0x41b   :  { %v18362_v54 = vsel %vm275_vm0, %v18358_v33, -inf  ;;  %v4009_v51 = vpop.f32.mrb[30].mxu0  ;;  %6075 = vmatpush1.bf16.msra.mxu0 %v14929_v31  ;;  %6330 = vmatprep.subr.bf16.mxu1 %v14982_v14  ;;  %v15000_v31 = vld [vmem:[%s20110_s2 + $0xec4] ss:$8 sps:$4 sm:$0xff]   ;;  %v15009_v14 = vld [vmem:[%s20110_s2 + $0xef4] ss:$8 sps:$4 sm:$0xff]  }
 0x41c   :  { %v4010_v5 = vpop.f32.mrb[31].mxu0  ;;  %6076 = vmatprep.subr.bf16.mxu0 %v14934_v11  ;;  %v4014_v55 = vmax.f32 %v18356_v42, %v18362_v54  ;;  %v14956_v11 = vld [vmem:[%s20110_s2 + $0xde0] ss:$8 sps:$4 sm:$0xff]   ;;  %v14961_v51 = vld [vmem:[%s20110_s2 + $0xdf4] ss:$8 sps:$4 sm:$0xff]  }
 0x41d   :  { %2959 = vmax.xlane.f32.xlu0 %v2958_v37  ;;  %v14943_v37 = vld [vmem:[%s20110_s2 + $0xd94] ss:$8 sps:$4 sm:$0xff]   ;;  %v14959_v5 = vld [vmem:[%s20110_s2 + $0xdf0] ss:$8 sps:$4 sm:$0xff]   ;;  %v15061_v42 = vld [vmem:[%s20111_s3 + $0x8] sm:$0xff]  }
 0x41e   :  { %6331 = vmatpush1.bf16.msra.mxu1 %v14980_v44 }
 0x41f   :  { %6077 = vmatpush1.bf16.msra.mxu0 %v14932_v58  ;;  %6332 = vmatprep.subr.bf16.mxu1 %v14985_v26  ;;  %v15003_v58 = vld [vmem:[%s20110_s2 + $0xed4] ss:$8 sps:$4 sm:$0xff]  }
 0x420   :  { %6078 = vmatprep.subr.bf16.mxu0 %v14937_v47  ;;  %v15001_v47 = vld [vmem:[%s20110_s2 + $0xed0] ss:$8 sps:$4 sm:$0xff]  }
 0x422   :  { %6333 = vmatpush1.bf16.msra.mxu1 %v14983_v29 }
 0x423   :  { %6079 = vmatpush1.bf16.msra.mxu0 %v14935_v2  ;;  %6334 = vmatprep.subr.bf16.mxu1 %v14988_v40  ;;  %v15007_v2 = vld [vmem:[%s20110_s2 + $0xef0] ss:$8 sps:$4 sm:$0xff]  }
 0x424   :  { %6080 = vmatprep.subr.bf16.mxu0 %v14940_v27 }
 0x426   :  { %6335 = vmatpush1.bf16.msra.mxu1 %v14986_v23 }
 0x427   :  { %6081 = vmatpush1.bf16.msra.mxu0 %v14938_v60  ;;  %6336 = vmatprep.subr.bf16.mxu1 %v14991_v4 }
 0x428   :  { %6082 = vmatprep.subr.bf16.mxu0 %v14943_v37 }
 0x42a   :  { %6337 = vmatpush1.bf16.msra.mxu1 %v14989_v10 }
 0x42b   :  { %6083 = vmatpush1.bf16.msra.mxu0 %v14941_v38  ;;  %6338 = vmatprep.subr.bf16.mxu1 %v14994_v17 }
 0x42c   :  { %6084 = vmatprep.subr.bf16.mxu0 %v14946_v36 }
 0x42e   :  { %6339 = vmatpush1.bf16.msra.mxu1 %v14992_v18 }
 0x42f   :  { %6085 = vmatpush1.bf16.msra.mxu0 %v14944_v15  ;;  %6340 = vmatprep.subr.bf16.mxu1 %v14997_v1 }
 0x430   :  { %6086 = vmatprep.subr.bf16.mxu0 %v14949_v63 }
 0x432   :  { %6341 = vmatpush1.bf16.msra.mxu1 %v14995_v7 }
 0x433   :  { %6087 = vmatpush1.bf16.msra.mxu0 %v14947_v16  ;;  %6342 = vmatprep.subr.bf16.mxu1 %v15000_v31  ;;  %v15010_v16 = vld [vmem:[%s20110_s2 + $0xf00] ss:$8 sps:$4 sm:$0xff]  }
 0x434   :  { %6088 = vmatprep.subr.bf16.mxu0 %v14952_v19  ;;  %v15012_v19 = vld [vmem:[%s20110_s2 + $0xf04] ss:$8 sps:$4 sm:$0xff]  }
 0x436   :  { %6343 = vmatpush1.bf16.msra.mxu1 %v14998_v62 }
 0x437   :  { %6089 = vmatpush1.bf16.msra.mxu0 %v14950_v8  ;;  %6344 = vmatprep.subr.bf16.mxu1 %v15003_v58 }
 0x438   :  { %6090 = vmatprep.subr.bf16.mxu0 %v14955_v53 }
 0x43a   :  { %6345 = vmatpush1.bf16.msra.mxu1 %v15001_v47 }
 0x43b   :  { %6091 = vmatpush1.bf16.msra.mxu0 %v14953_v13  ;;  %6346 = vmatprep.subr.bf16.mxu1 %v15006_v34  ;;  %v15015_v34 = vld [vmem:[%s20110_s2 + $0xf14] ss:$8 sps:$4 sm:$0xff]  }
 0x43c   :  { %6092 = vmatprep.subr.bf16.mxu0 %v14958_v48 }
 0x43e   :  { %6347 = vmatpush1.bf16.msra.mxu1 %v15004_v45 }
 0x43f   :  { %6093 = vmatpush1.bf16.msra.mxu0 %v14956_v11  ;;  %6348 = vmatprep.subr.bf16.mxu1 %v15009_v14 }
 0x440   :  { %6094 = vmatprep.subr.bf16.mxu0 %v14961_v51 }
 0x442   :  { %6349 = vmatpush1.bf16.msra.mxu1 %v15007_v2  ;;  %v15013_v2 = vld [vmem:[%s20110_s2 + $0xf10] ss:$8 sps:$4 sm:$0xff]  }
 0x443   :  { %6095 = vmatpush1.bf16.msra.mxu0 %v14959_v5  ;;  %v18545_v5 = vpop.xlane.xlu0 %3749 }
 0x444   :  { %6572 = vmatprep.subr.bf16.mxu0 %v15012_v19  ;;  %v18694_v3 = vmul.f32 0.5, %v18545_v5 }
 0x445   :  { %6351 = vmatmul.mubr.bf16.vlgmr.msra.gmra.mrb[44].mxu1 %v15703_v35 }
 0x446   :  { %6097 = vmatmul.mubr.bf16.vlgmr.msra.gmra.mrb[44].mxu0 %v15703_v35 }
 0x447   :  { %6604 = vmatprep.mubr.bf16.mxu0 %v15703_v35  ;;  %6573 = vmatpush1.bf16.msra.mxu0 %v15010_v16 }
 0x448   :  { %6574 = vmatprep.subr.bf16.mxu0 %v15015_v34  ;;  %v15025_v34 = vld [vmem:[%s20110_s2 + $0xf50] ss:$8 sps:$4 sm:$0xff]  }
 0x44b   :  { %6575 = vmatpush1.bf16.msra.mxu0 %v15013_v2 }
 0x450   :  { %v18495_v44 = vpop.f32.mrb[36].mxu1 }
 0x451   :  { %v18499_v27 = vsel %vm275_vm0, %v18495_v44, -inf  ;;  %v18501_v60 = vpop.f32.mrb[37].mxu1 }
 0x452   :  { %v18505_v37 = vsel %vm275_vm0, %v18501_v60, -inf  ;;  %v5327_v26 = vpop.f32.mrb[38].mxu1 }
 0x453   :  { %v5328_v29 = vpop.f32.mrb[39].mxu1  ;;  %v5332_v38 = vmax.f32 %v18499_v27, %v18505_v37 }
 0x459   :  { %v18509_v36 = vpop.f32.mrb[32].mxu0 }
 0x45a   :  { %v18513_v40 = vsel %vm275_vm0, %v18509_v36, -inf  ;;  %v18515_v23 = vpop.f32.mrb[33].mxu0 }
 0x45b   :  { %v18519_v15 = vsel %vm275_vm0, %v18515_v23, -inf  ;;  %v4537_v63 = vpop.f32.mrb[34].mxu0 }
 0x45c   :  { %v4538_v4 = vpop.f32.mrb[35].mxu0 }
 0x45d   :  { %v15018_v4 = vld [vmem:[%s20110_s2 + $0xf24] ss:$8 sps:$4 sm:$0xff]  }
 0x45e   :  { %6576 = vmatprep.subr.bf16.mxu0 %v15018_v4  ;;  %v15028_v4 = vld [vmem:[%s20110_s2 + $0xf60] ss:$8 sps:$4 sm:$0xff]  }
 0x490   :  { %v18529_v17 = vpop.f32.mrb[40].mxu1 }
 0x491   :  { %v5851_v18 = vsel %vm275_vm0, %v18529_v17, -inf  ;;  %v18533_v8 = vpop.f32.mrb[41].mxu1 }
 0x492   :  { %v5852_v53 = vsel %vm275_vm0, %v18533_v8, -inf  ;;  %v5848_v1 = vpop.f32.mrb[42].mxu1 }
 0x493   :  { %v5849_v7 = vpop.f32.mrb[43].mxu1  ;;  %v5853_v13 = vmax.f32 %v5851_v18, %v5852_v53  ;;  %v15016_v18 = vld [vmem:[%s20110_s2 + $0xf20] ss:$8 sps:$4 sm:$0xff]  }
 0x494   :  { %6577 = vmatpush1.bf16.msra.mxu0 %v15016_v18  ;;  %v15021_v7 = vld [vmem:[%s20110_s2 + $0xf34] ss:$8 sps:$4 sm:$0xff]  }
 0x495   :  { %5854 = vmax.xlane.f32.xlu1 %v5853_v13  ;;  %6578 = vmatprep.subr.bf16.mxu0 %v15021_v7  ;;  %v15033_v18 = vld [vmem:[%s20110_s2 + $0xf74] ss:$8 sps:$4 sm:$0xff]   ;;  %v15034_v7 = vld [vmem:[%s20110_s2 + $0xf80] ss:$8 sps:$4 sm:$0xff]  }
 0x499   :  { %v18537_v48 = vpop.f32.mrb[36].mxu0 }
 0x49a   :  { %v5068_v31 = vsel %vm275_vm0, %v18537_v48, -inf  ;;  %v18541_v62 = vpop.f32.mrb[37].mxu0 }
 0x49b   :  { %v5069_v11 = vsel %vm275_vm0, %v18541_v62, -inf  ;;  %v5065_v51 = vpop.f32.mrb[38].mxu0 }
 0x49c   :  { %v5066_v58 = vpop.f32.mrb[39].mxu0  ;;  %v5070_v47 = vmax.f32 %v5068_v31, %v5069_v11  ;;  %v15019_v11 = vld [vmem:[%s20110_s2 + $0xf30] ss:$8 sps:$4 sm:$0xff]   ;;  %v15024_v51 = vld [vmem:[%s20110_s2 + $0xf44] ss:$8 sps:$4 sm:$0xff]  }
 0x49d   :  { %6579 = vmatpush1.bf16.msra.mxu0 %v15019_v11  ;;  %v15022_v58 = vld [vmem:[%s20110_s2 + $0xf40] ss:$8 sps:$4 sm:$0xff]   ;;  %v15037_v11 = vld [vmem:[%s20110_s2 + $0xf90] ss:$8 sps:$4 sm:$0xff]  }
 0x49e   :  { %5071 = vmax.xlane.f32.xlu1 %v5070_v47  ;;  %6580 = vmatprep.subr.bf16.mxu0 %v15024_v51  ;;  %v15027_v47 = vld [vmem:[%s20110_s2 + $0xf54] ss:$8 sps:$4 sm:$0xff]  }
 0x4a1   :  { %6581 = vmatpush1.bf16.msra.mxu0 %v15022_v58  ;;  %v15042_v58 = vld [vmem:[%s20110_s2 + $0xfa4] ss:$8 sps:$4 sm:$0xff]  }
 0x4a2   :  { %v4806_v45 = vpop.xlane.xlu0 %4805  ;;  %6582 = vmatprep.subr.bf16.mxu0 %v15027_v47 }
 0x4a3   :  { %v18550_v14 = vmul.f32 0.5, %v4806_v45 }
 0x4a5   :  { %v4808_v26 = vsub.f32 %v18308_v30, %v18550_v14  ;;  %v4809_v29 = vsub.f32 %v18318_v12, %v18550_v14  ;;  %6583 = vmatpush1.bf16.msra.mxu0 %v15025_v34  ;;  %v15040_v34 = vld [vmem:[%s20110_s2 + $0xfa0] ss:$8 sps:$4 sm:$0xff]   ;;  %v15101_v14 = vld [vmem:[%s20111_s3 + $0x110] sm:$0xff]  }
 0x4a6   :  { %v2694_v63 = vpop.xlane.xlu0 %2693  ;;  %v15095_v12 = vld [vmem:[%s20111_s3 + $0x148] sm:$0xff]  }
 0x4a7   :  { %v11852_v16 = vmul.f32 -1.442695, %v4808_v26  ;;  %v18562_v19 = vmul.f32 0.5, %v2694_v63  ;;  %v15030_v26 = vld [vmem:[%s20110_s2 + $0xf64] ss:$8 sps:$4 sm:$0xff]  }
 0x4a8   :  { %6584 = vmatprep.subr.bf16.mxu0 %v15030_v26  ;;  %v15043_v26 = vld [vmem:[%s20110_s2 + $0xfb0] ss:$8 sps:$4 sm:$0xff]  }
 0x4a9   :  { %15466 = vpow2.f32 %v11852_v16  ;;  %v2696_v30 = vsub.f32 %v17529_v39, %v18562_v19  ;;  %v2697_v53 = vsub.f32 %v17538_v59, %v18562_v19  ;;  %6585 = vmatpush1.bf16.msra.mxu0 %v15028_v4  ;;  %v15046_v4 = vld [vmem:[%s20110_s2 + $0xfc0] ss:$8 sps:$4 sm:$0xff]   ;;  %v15103_v19 = vld [vmem:[%s20111_s3 + $0x158] sm:$0xff]  }
 0x4aa   :  { %v2960_v1 = vpop.xlane.xlu0 %2959  ;;  %6586 = vmatprep.subr.bf16.mxu0 %v15033_v18  ;;  %v15049_v18 = vld [vmem:[%s20110_s2 + $0xfd0] ss:$8 sps:$4 sm:$0xff]   ;;  %v15093_v59 = vld [vmem:[%s20111_s3 + $0x100] sm:$0xff]  }
 0x4ab   :  { %v11300_v13 = vmul.f32 -1.442695, %v2696_v30  ;;  %v18574_v31 = vmul.f32 0.5, %v2960_v1  ;;  %v15031_v30 = vld [vmem:[%s20110_s2 + $0xf70] ss:$8 sps:$4 sm:$0xff]  }
 0x4ac   :  { %v15036_v1 = vld [vmem:[%s20110_s2 + $0xf84] ss:$8 sps:$4 sm:$0xff]  }
 0x4ad   :  { %15468 = vpow2.f32 %v11300_v13  ;;  %6587 = vmatpush1.bf16.msra.mxu0 %v15031_v30  ;;  %v15039_v13 = vld [vmem:[%s20110_s2 + $0xf94] ss:$8 sps:$4 sm:$0xff]   ;;  %v15054_v30 = vld [vmem:[%s20110_s2 + $0xfe4] ss:$8 sps:$4 sm:$0xff]   ;;  %v2962_v9 = vsub.f32 %v17794_v61, %v18574_v31 }
 0x4ae   :  { %6588 = vmatprep.subr.bf16.mxu0 %v15036_v1  ;;  %v15052_v1 = vld [vmem:[%s20110_s2 + $0xfe0] ss:$8 sps:$4 sm:$0xff]  }
 0x4b1   :  { %6589 = vmatpush1.bf16.msra.mxu0 %v15034_v7  ;;  %v15057_v7 = vld [vmem:[%s20110_s2 + $0xff4] ss:$8 sps:$4 sm:$0xff]  }
 0x4b2   :  { %6590 = vmatprep.subr.bf16.mxu0 %v15039_v13 }
 0x4b3   :  { %v15467_v45 = vpop.eup %15466 }
 0x4b4   :  { %v4816_v2 = vadd.f32 1.0, %v15467_v45 }
 0x4b5   :  { %6591 = vmatpush1.bf16.msra.mxu0 %v15037_v11 }
 0x4b6   :  { %15470 = vrcp.f32 %v4816_v2  ;;  %6592 = vmatprep.subr.bf16.mxu0 %v15042_v58  ;;  %v15045_v2 = vld [vmem:[%s20110_s2 + $0xfb4] ss:$8 sps:$4 sm:$0xff]  }
 0x4b7   :  { %v15469_v63 = vpop.eup %15468 }
 0x4b8   :  { %v2704_v16 = vadd.f32 1.0, %v15469_v63  ;;  %v15048_v63 = vld [vmem:[%s20110_s2 + $0xfc4] ss:$8 sps:$4 sm:$0xff]  }
 0x4b9   :  { %6593 = vmatpush1.bf16.msra.mxu0 %v15040_v34 }
 0x4ba   :  { %15472 = vrcp.f32 %v2704_v16  ;;  %6594 = vmatprep.subr.bf16.mxu0 %v15045_v2  ;;  %v15051_v16 = vld [vmem:[%s20110_s2 + $0xfd4] ss:$8 sps:$4 sm:$0xff]  }
 0x4bd   :  { %6595 = vmatpush1.bf16.msra.mxu0 %v15043_v26 }
 0x4be   :  { %6596 = vmatprep.subr.bf16.mxu0 %v15048_v63  ;;  %v11369_v63 = vmul.f32 -1.442695, %v2962_v9 }
 0x4c0   :  { %v18617_v51 = vpop.eup %15470 }
 0x4c1   :  { %6597 = vmatpush1.bf16.msra.mxu0 %v15046_v4  ;;  %v15058_v4 = vld [vmem:[%s20111_s3 + $0x40] sm:$0xff]  }
 0x4c2   :  { %6598 = vmatprep.subr.bf16.mxu0 %v15051_v16  ;;  %v15059_v16 = vld [vmem:[%s20111_s3] sm:$0xff]   ;;  %13258 = vmatprep.subr.bf16.mxu1 %v15058_v4 }
 0x4c3   :  { %13259 = vmatpush3.bf16.msra.mxu1 %v15059_v16 }
 0x4c4   :  { %v18622_v47 = vpop.eup %15472 }
 0x4c5   :  { %v13758_v45 = vpack.i.bf16 %v18622_v47, %v18617_v51  ;;  %6599 = vmatpush1.bf16.msra.mxu0 %v15049_v18 }
 0x4c6   :  { %6600 = vmatprep.subr.bf16.mxu0 %v15054_v30  ;;  %v3752_v30 = vsub.f32 %v17995_v57, %v18694_v3 }
 0x4c7   :  { %13759 = vrot.lane.b32.xlu0 %v13758_v45, %s15702_s16  ;;  %v15055_v45 = vld [vmem:[%s20110_s2 + $0xff0] ss:$8 sps:$4 sm:$0xff]  }
 0x4c8   :  { %v11576_v16 = vmul.f32 -1.442695, %v3752_v30  ;;  %v15064_v30 = vld [vmem:[%s20111_s3 + $0x58] sm:$0xff]  }
 0x4c9   :  { %6601 = vmatpush1.bf16.msra.mxu0 %v15052_v1 }
 0x4ca   :  { %6602 = vmatprep.subr.bf16.mxu0 %v15057_v7  ;;  %15474 = vpow2.f32 %v11576_v16  ;;  %v15066_v16 = vld [vmem:[%s20111_s3 + $0x60] sm:$0xff]  }
 0x4cd   :  { %6603 = vmatpush1.bf16.msra.mxu0 %v15055_v45 }
 0x4d0   :  { %6605 = vmatmul.mubr.bf16.vlgmr.msra.gmra.mrb[48].mxu0 %v15703_v35  ;;  %v15060_v35 = vld [vmem:[%s20111_s3 + $0x48] sm:$0xff]  }
 0x4d1   :  { %13260 = vmatprep.subr.bf16.mxu1 %v15060_v35  ;;  %v15062_v35 = vld [vmem:[%s20111_s3 + $0x50] sm:$0xff]  }
 0x4d2   :  { %13261 = vmatpush3.bf16.msra.mxu1 %v15061_v42  ;;  %v15063_v42 = vld [vmem:[%s20111_s3 + $0x10] sm:$0xff]  }
 0x4d3   :  { %13262 = vmatprep.subr.bf16.mxu1 %v15062_v35 }
 0x4d6   :  { %13263 = vmatpush3.bf16.msra.mxu1 %v15063_v42  ;;  %v15067_v42 = vld [vmem:[%s20111_s3 + $0x20] sm:$0xff]  }
 0x4d7   :  { %13264 = vmatprep.subr.bf16.mxu1 %v15064_v30 }
 0x4d9   :  { %v18657_v13 = vpop.f32.mrb[40].mxu0 }
 0x4da   :  { %v18661_v11 = vsel %vm275_vm0, %v18657_v13, -inf  ;;  %v18663_v58 = vpop.f32.mrb[41].mxu0 }
 0x4db   :  { %v18670_v34 = vsel %vm275_vm0, %v18663_v58, -inf  ;;  %v5593_v2 = vpop.f32.mrb[42].mxu0 }
 0x4dc   :  { %v5594_v26 = vpop.f32.mrb[43].mxu0 }
 0x4e6   :  { %4015 = vmax.xlane.f32.xlu0 %v4014_v55 }
 0x4ea   :  { %3221 = vmax.xlane.f32.xlu0 %v3220_v56 }
 0x518   :  { %v18712_v7 = vpop.f32.mrb[44].mxu1 }
 0x519   :  { %v18696_v49 = vpop.f32.mrb[44].mxu0  ;;  %v18716_v45 = vsel %vm275_vm0, %v18712_v7, -inf  ;;  %v18718_v2 = vpop.f32.mrb[45].mxu1 }
 0x51a   :  { %v18700_v56 = vsel %vm275_vm0, %v18696_v49, -inf  ;;  %v18702_v54 = vpop.f32.mrb[45].mxu0  ;;  %v18722_v26 = vsel %vm275_vm0, %v18718_v2, -inf  ;;  %v6356_v4 = vpop.f32.mrb[46].mxu1 }
 0x51b   :  { %v18706_v55 = vsel %vm275_vm0, %v18702_v54, -inf  ;;  %v6102_v18 = vpop.f32.mrb[46].mxu0  ;;  %v15065_v4 = vld [vmem:[%s20111_s3 + $0x18] sm:$0xff]  }
 0x51c   :  { %v6103_v1 = vpop.f32.mrb[47].mxu0  ;;  %v6107_v5 = vmax.f32 %v18700_v56, %v18706_v55  ;;  %v6357_v18 = vpop.f32.mrb[47].mxu1  ;;  %13265 = vmatpush3.bf16.msra.mxu1 %v15065_v4  ;;  %v15070_v4 = vld [vmem:[%s20111_s3 + $0x70] sm:$0xff]   ;;  %v15109_v55 = vld [vmem:[%s20111_s3 + $0x120] sm:$0xff]  }
 0x51d   :  { %13266 = vmatprep.subr.bf16.mxu1 %v15066_v16  ;;  %v15071_v16 = vld [vmem:[%s20111_s3 + $0x30] sm:$0xff]  }
 0x520   :  { %13267 = vmatpush3.bf16.msra.mxu1 %v15067_v42 }
 0x522   :  { %v5855_v1 = vpop.xlane.xlu1 %5854 }
 0x523   :  { %v18732_v10 = vmul.f32 0.5, %v5855_v1  ;;  %v15068_v1 = vld [vmem:[%s20111_s3 + $0x68] sm:$0xff]  }
 0x524   :  { %13268 = vmatprep.subr.bf16.mxu1 %v15068_v1 }
 0x525   :  { %v5857_v18 = vsub.f32 %v18529_v17, %v18732_v10  ;;  %v15069_v17 = vld [vmem:[%s20111_s3 + $0x28] sm:$0xff]  }
 0x526   :  { %13269 = vmatpush3.bf16.msra.mxu1 %v15069_v17  ;;  %v15073_v17 = vld [vmem:[%s20111_s3 + $0x38] sm:$0xff]  }
 0x527   :  { %v12125_v35 = vmul.f32 -1.442695, %v5857_v18  ;;  %v15475_v18 = vpop.eup %15474  ;;  %13270 = vmatprep.subr.bf16.mxu1 %v15070_v4  ;;  %v15074_v4 = vld [vmem:[%s20111_s3 + $0xc0] sm:$0xff]  }
 0x528   :  { %v3760_v1 = vadd.f32 1.0, %v15475_v18 }
 0x529   :  { %15476 = vpow2.f32 %v12125_v35 }
 0x52a   :  { %15478 = vpow2.f32 %v11369_v63  ;;  %13271 = vmatpush3.bf16.msra.mxu1 %v15071_v16 }
 0x52b   :  { %v5072_v61 = vpop.xlane.xlu1 %5071 }
 0x52c   :  { %v18756_v30 = vmul.f32 0.5, %v5072_v61 }
 0x52e   :  { %v5074_v9 = vsub.f32 %v18537_v48, %v18756_v30  ;;  %v5075_v35 = vsub.f32 %v18541_v62, %v18756_v30  ;;  %v15072_v48 = vld [vmem:[%s20111_s3 + $0x78] sm:$0xff]   ;;  %v20121_v62 = vmax.f32 %v18201_v43, %v18207_v50 }
 0x52f   :  { %13272 = vmatprep.subr.bf16.mxu1 %v15072_v48  ;;  %v5858_v48 = vsub.f32 %v18533_v8, %v18732_v10  ;;  %v15099_v8 = vld [vmem:[%s20111_s3 + $0x150] sm:$0xff]  }
 0x530   :  { %v11921_v42 = vmul.f32 -1.442695, %v5074_v9  ;;  %13273 = vmatpush3.bf16.msra.mxu1 %v15073_v17  ;;  %v11853_v17 = vmul.f32 -1.442695, %v4809_v29 }
 0x531   :  { %13280 = vmatprep.subr.bf16.mxu1 %v15074_v4  ;;  %v3753_v4 = vsub.f32 %v18002_v22, %v18694_v3  ;;  %v15097_v22 = vld [vmem:[%s20111_s3 + $0x108] sm:$0xff]  }
 0x532   :  { %15480 = vpow2.f32 %v11921_v42 }
 0x533   :  { %v15477_v61 = vpop.eup %15476  ;;  %15482 = vrcp.f32 %v3760_v1  ;;  %v11577_v10 = vmul.f32 -1.442695, %v3753_v4  ;;  %v15115_v4 = vld [vmem:[%s20111_s3 + $0x170] sm:$0xff]  }
 0x534   :  { %v5865_v57 = vadd.f32 1.0, %v15477_v61  ;;  %v15479_v63 = vpop.eup %15478 }
 0x535   :  { %v2970_v39 = vadd.f32 1.0, %v15479_v63 }
 0x536   :  { %15484 = vrcp.f32 %v5865_v57 }
 0x537   :  { %15486 = vrcp.f32 %v2970_v39  ;;  %v11301_v39 = vmul.f32 -1.442695, %v2697_v53 }
 0x53c   :  { %v15481_v18 = vpop.eup %15480 }
 0x53d   :  { %v5082_v9 = vadd.f32 1.0, %v15481_v18  ;;  %v18777_v57 = vpop.eup %15482  ;;  %v15091_v18 = vld [vmem:[%s20111_s3 + $0x140] sm:$0xff]  }
 0x53e   :  { %13302 = vmatprep.subr.bf16.mxu0 %v15091_v18  ;;  %v15117_v18 = vld [vmem:[%s20111_s3 + $0x130] sm:$0xff]  }
 0x53f   :  { %15488 = vrcp.f32 %v5082_v9  ;;  %v12126_v9 = vmul.f32 -1.442695, %v5858_v48  ;;  %13303 = vmatpush3.bf16.msra.mxu0 %v15093_v59 }
 0x540   :  { %v18779_v16 = vpop.eup %15484  ;;  %15490 = vpow2.f32 %v11301_v39  ;;  %13304 = vmatprep.subr.bf16.mxu0 %v15095_v12  ;;  %v15119_v12 = vld [vmem:[%s20111_s3 + $0x178] sm:$0xff]  }
 0x541   :  { %v13753_v42 = vpack.i.bf16 %v18777_v57, %v18779_v16  ;;  %v18784_v1 = vpop.eup %15486  ;;  %15492 = vpow2.f32 %v11853_v17 }
 0x542   :  { %15494 = vpow2.f32 %v12126_v9 }
 0x543   :  { %13754 = vrot.lane.b32.xlu1 %v13753_v42, %s15702_s16  ;;  %15496 = vpow2.f32 %v11577_v10  ;;  %13305 = vmatpush3.bf16.msra.mxu0 %v15097_v22  ;;  %v15105_v42 = vld [vmem:[%s20111_s3 + $0x118] sm:$0xff]   ;;  %v11922_v22 = vmul.f32 -1.442695, %v5075_v35 }
 0x544   :  { %13306 = vmatprep.subr.bf16.mxu0 %v15099_v8  ;;  %v15121_v10 = vld [vmem:[%s20111_s3 + $0x138] sm:$0xff]   ;;  %v20118_v8 = vsub.f32 %v17803_v21, %v18574_v31  ;;  %v13760_v21 = vpop.permute.xlu0 %13759 }
 0x547   :  { %13307 = vmatpush3.bf16.msra.mxu0 %v15101_v14  ;;  %v11370_v14 = vmul.f32 -1.442695, %v20118_v8  ;;  %v15082_v8 = vld [vmem:[%s20111_s3 + $0xe0] sm:$0xff]  }
 0x548   :  { %13308 = vmatprep.subr.bf16.mxu0 %v15103_v19 }
 0x549   :  { %v18786_v61 = vpop.eup %15488 }
 0x54a   :  { %v13768_v63 = vpack.i.bf16 %v18784_v1, %v18786_v61  ;;  %v15491_v29 = vpop.eup %15490 }
 0x54b   :  { %v15493_v53 = vpop.eup %15492  ;;  %v2705_v3 = vadd.f32 1.0, %v15491_v29  ;;  %13309 = vmatpush3.bf16.msra.mxu0 %v15105_v42  ;;  %v20119_v29 = vmax.f32 %v18716_v45, %v18722_v26  ;;  %v13761_v45 = vunpack.i.l.bf16 %v13760_v21 }
 0x54c   :  { %13769 = vrot.lane.b32.xlu0 %v13768_v63, %s15702_s16  ;;  %v15107_v63 = vld [vmem:[%s20111_s3 + $0x160] sm:$0xff]   ;;  %v15495_v39 = vpop.eup %15494  ;;  %v4817_v48 = vadd.f32 1.0, %v15493_v53  ;;  %v20120_v53 = vmax.f32 %v18661_v11, %v18670_v34 }
 0x54d   :  { %v15497_v56 = vpop.eup %15496  ;;  %15498 = vrcp.f32 %v2705_v3  ;;  %13310 = vmatprep.subr.bf16.mxu0 %v15107_v63  ;;  %v6834_v50 = vsel %vm2452_vm1, %v13761_v45, %v18779_v16  ;;  %v15075_v16 = vld [vmem:[%s20111_s3 + $0x80] sm:$0xff]  }
 0x54e   :  { %15500 = vrcp.f32 %v4817_v48  ;;  %v3761_v17 = vadd.f32 1.0, %v15497_v56  ;;  %v15090_v45 = vld [vmem:[%s20111_s3 + $0x1c0] sm:$0xff]  }
 0x54f   :  { %13311 = vmatpush3.bf16.msra.mxu0 %v15109_v55 }
 0x550   :  { %13312 = vmatprep.subr.bf16.mxu0 %v15111_v6 }
 0x557   :  { %v18840_v25 = vpop.eup %15498 }
 0x558   :  { %v18848_v27 = vpop.eup %15500 }
 0x559   :  { %v13763_v37 = vpack.i.bf16 %v18840_v25, %v18848_v27 }
 0x567   :  { %6108 = vmax.xlane.f32.xlu1 %v6107_v5  ;;  %v5866_v5 = vadd.f32 1.0, %v15495_v39 }
 0x569   :  { %15502 = vrcp.f32 %v5866_v5 }
 0x56a   :  { %15504 = vrcp.f32 %v3761_v17 }
 0x56b   :  { %4277 = vmax.xlane.f32.xlu0 %v4276_v41  ;;  %5333 = vmax.xlane.f32.xlu1 %v5332_v38  ;;  %v15113_v41 = vld [vmem:[%s20111_s3 + $0x128] sm:$0xff]   ;;  %15506 = vpow2.f32 %v11922_v22  ;;  %v15081_v22 = vld [vmem:[%s20111_s3 + $0x98] sm:$0xff]  }
 0x56c   :  { %13313 = vmatpush3.bf16.msra.mxu0 %v15113_v41  ;;  %15508 = vpow2.f32 %v11370_v14  ;;  %v15083_v14 = vld [vmem:[%s20111_s3 + $0xa0] sm:$0xff]  }
 0x56d   :  { %13314 = vmatprep.subr.bf16.mxu0 %v15115_v4  ;;  %v6869_v4 = vpack.c.bf16 %v6834_v50, %v6834_v50  ;;  %v15100_v50 = vld [vmem:[%s20111_s3 + $0x190] sm:$0xff]  }
 0x570   :  { %13315 = vmatpush3.bf16.msra.mxu0 %v15117_v18  ;;  %v15077_v18 = vld [vmem:[%s20111_s3 + $0x88] sm:$0xff]  }
 0x571   :  { %13316 = vmatprep.subr.bf16.mxu0 %v15119_v12  ;;  %v15079_v12 = vld [vmem:[%s20111_s3 + $0x90] sm:$0xff]  }
 0x573   :  { %v18852_v38 = vpop.eup %15502 }
 0x574   :  { %v18861_v9 = vpop.eup %15504  ;;  %13317 = vmatpush3.bf16.msra.mxu0 %v15121_v10  ;;  %v15080_v10 = vld [vmem:[%s20111_s3 + $0xd8] sm:$0xff]  }
 0x575   :  { %v13773_v59 = vpack.i.bf16 %v18861_v9, %v18852_v38  ;;  %v15507_v19 = vpop.eup %15506 }
 0x576   :  { %v15509_v3 = vpop.eup %15508  ;;  %v5083_v42 = vadd.f32 1.0, %v15507_v19  ;;  %v15085_v19 = vld [vmem:[%s20111_s3 + $0xa8] sm:$0xff]  }
 0x577   :  { %v2971_v63 = vadd.f32 1.0, %v15509_v3  ;;  %v15087_v3 = vld [vmem:[%s20111_s3 + $0xb0] sm:$0xff]  }
 0x578   :  { %15510 = vrcp.f32 %v5083_v42  ;;  %v15088_v42 = vld [vmem:[%s20111_s3 + $0xf8] sm:$0xff]  }
 0x579   :  { %15512 = vrcp.f32 %v2971_v63  ;;  %v13762_v63 = vunpack.i.h.bf16 %v13760_v21  ;;  %v15094_v21 = vld [vmem:[%s20111_s3 + $0x1c8] sm:$0xff]  }
 0x57c   :  { %13764 = vrot.lane.b32.xlu1 %v13763_v37, %s15702_s16 }
 0x581   :  { %13774 = vrot.lane.b32.xlu0 %v13773_v59, %s15702_s16  ;;  %v15078_v59 = vld [vmem:[%s20111_s3 + $0xd0] sm:$0xff]  }
 0x582   :  { %v18887_v31 = vpop.eup %15510 }
 0x583   :  { %v18893_v11 = vpop.eup %15512 }
 0x584   :  { %v13778_v43 = vpack.i.bf16 %v18893_v11, %v18887_v31 }
 0x5a0   :  { %6362 = vmax.xlane.f32.xlu1 %v20119_v29  ;;  %v15084_v29 = vld [vmem:[%s20111_s3 + $0xe8] sm:$0xff]  }
 0x5a3   :  { %v18889_v30 = vpop.f32.mrb[48].mxu0 }
 0x5a4   :  { %5599 = vmax.xlane.f32.xlu1 %v20120_v53  ;;  %v18891_v35 = vpop.f32.mrb[49].mxu0  ;;  %v18905_v17 = vsel %vm275_vm0, %v18889_v30, -inf  ;;  %v15086_v53 = vld [vmem:[%s20111_s3 + $0xf0] sm:$0xff]  }
 0x5a5   :  { %v6610_v48 = vpop.f32.mrb[50].mxu0  ;;  %v18909_v6 = vsel %vm275_vm0, %v18891_v35, -inf }
 0x5a6   :  { %v6611_v56 = vpop.f32.mrb[51].mxu0  ;;  %v15154_v48 = vld [vmem:[%s20111_s3 + $0x240] sm:$0xff]  }
 0x5a7   :  { %13346 = vmatprep.subr.bf16.mxu0 %v15154_v48  ;;  %v15102_v56 = vld [vmem:[%s20111_s3 + $0x1d8] sm:$0xff]  }
 0x5a8   :  { %3487 = vmax.xlane.f32.xlu1 %v20121_v62  ;;  %v15089_v62 = vld [vmem:[%s20111_s3 + $0xb8] sm:$0xff]  }
 0x5b5   :  { %v13755_v26 = vpop.permute.xlu1 %13754 }
 0x5b6   :  { %v13757_v34 = vunpack.i.h.bf16 %v13755_v26  ;;  %v13756_v39 = vunpack.i.l.bf16 %v13755_v26  ;;  %v6833_v26 = vsel %vm2452_vm1, %v13762_v63, %v18777_v57  ;;  %v15096_v57 = vld [vmem:[%s20111_s3 + $0x188] sm:$0xff]  }
 0x5b8   :  { %v6641_v55 = vsel %vm2452_vm1, %v18622_v47, %v13757_v34  ;;  %v6642_v5 = vsel %vm2452_vm1, %v18617_v51, %v13756_v39  ;;  %v6615_v47 = vmax.f32 %v18905_v17, %v18909_v6  ;;  %v15076_v51 = vld [vmem:[%s20111_s3 + $0xc8] sm:$0xff]   ;;  %v15092_v34 = vld [vmem:[%s20111_s3 + $0x180] sm:$0xff]   ;;  %v6868_v39 = vpack.c.bf16 %v6833_v26, %v6833_v26 }
 0x5b9   :  { %v6675_v41 = vpack.c.bf16 %v6641_v55, %v6641_v55  ;;  %13779 = vrot.lane.b32.xlu1 %v13778_v43, %s15702_s16  ;;  %v6676_v37 = vpack.c.bf16 %v6642_v5, %v6642_v5  ;;  %v15098_v43 = vld [vmem:[%s20111_s3 + $0x1d0] sm:$0xff]   ;;  %v4016_v55 = vpop.xlane.xlu0 %4015  ;;  %v15104_v5 = vld [vmem:[%s20111_s3 + $0x198] sm:$0xff]  }
 0x5bb   :  { %6805 = vmatprep.mubr.bf16.mxu1 %v6676_v37  ;;  %v4017_v37 = vmul.f32 0.5, %v4016_v55 }
 0x5bc   :  { %6806 = vmatmul.mubr.bf16.vlgmr.msra.gmra.mrb[48].mxu1 %v6675_v41  ;;  %v15106_v41 = vld [vmem:[%s20111_s3 + $0x1e0] sm:$0xff]  }
 0x5bd   :  { %13281 = vmatpush3.bf16.msra.mxu1 %v15075_v16  ;;  %6998 = vmatprep.mubr.bf16.mxu1 %v6869_v4  ;;  %v15108_v16 = vld [vmem:[%s20111_s3 + $0x1a0] sm:$0xff]   ;;  %v3222_v4 = vpop.xlane.xlu0 %3221 }
 0x5be   :  { %13282 = vmatprep.subr.bf16.mxu1 %v15076_v51  ;;  %v15110_v51 = vld [vmem:[%s20111_s3 + $0x1e8] sm:$0xff]  }
 0x5c1   :  { %13283 = vmatpush3.bf16.msra.mxu1 %v15077_v18  ;;  %v4018_v18 = vsub.f32 %v18352_v32, %v4017_v37  ;;  %v15116_v32 = vld [vmem:[%s20111_s3 + $0x1b0] sm:$0xff]  }
 0x5c2   :  { %13284 = vmatprep.subr.bf16.mxu1 %v15078_v59  ;;  %v15112_v59 = vld [vmem:[%s20111_s3 + $0x1a8] sm:$0xff]  }
 0x5c5   :  { %13285 = vmatpush3.bf16.msra.mxu1 %v15079_v12  ;;  %v4019_v12 = vsub.f32 %v18358_v33, %v4017_v37  ;;  %v15118_v33 = vld [vmem:[%s20111_s3 + $0x1f8] sm:$0xff]  }
 0x5c6   :  { %13286 = vmatprep.subr.bf16.mxu1 %v15080_v10  ;;  %v19002_v10 = vmul.f32 0.5, %v3222_v4 }
 0x5c9   :  { %13287 = vmatpush3.bf16.msra.mxu1 %v15081_v22  ;;  %v15114_v22 = vld [vmem:[%s20111_s3 + $0x1f0] sm:$0xff]  }
 0x5ca   :  { %13288 = vmatprep.subr.bf16.mxu1 %v15082_v8  ;;  %v11645_v8 = vmul.f32 -1.442695, %v4018_v18 }
 0x5cc   :  { %15514 = vpow2.f32 %v11645_v8 }
 0x5cd   :  { %13289 = vmatpush3.bf16.msra.mxu1 %v15083_v14  ;;  %v11646_v14 = vmul.f32 -1.442695, %v4019_v12 }
 0x5ce   :  { %13290 = vmatprep.subr.bf16.mxu1 %v15084_v29  ;;  %v3224_v29 = vsub.f32 %v17765_v52, %v19002_v10  ;;  %v15122_v52 = vld [vmem:[%s20111_s3 + $0x2c0] sm:$0xff]  }
 0x5cf   :  { %15516 = vpow2.f32 %v11646_v14 }
 0x5d0   :  { %v11438_v63 = vmul.f32 -1.442695, %v3224_v29 }
 0x5d1   :  { %13291 = vmatpush3.bf16.msra.mxu1 %v15085_v19  ;;  %v19015_v19 = vpop.permute.xlu0 %13769 }
 0x5d2   :  { %13292 = vmatprep.subr.bf16.mxu1 %v15086_v53  ;;  %15518 = vpow2.f32 %v11438_v63  ;;  %v15160_v63 = vld [vmem:[%s20111_s3 + $0x250] sm:$0xff]  }
 0x5d5   :  { %13293 = vmatpush3.bf16.msra.mxu1 %v15087_v3 }
 0x5d6   :  { %13294 = vmatprep.subr.bf16.mxu1 %v15088_v42  ;;  %v15120_v42 = vld [vmem:[%s20111_s3 + $0x1b8] sm:$0xff]  }
 0x5d9   :  { %13295 = vmatpush3.bf16.msra.mxu1 %v15089_v62 }
 0x5da   :  { %13324 = vmatprep.subr.bf16.mxu1 %v15090_v45 }
 0x5dc   :  { %6999 = vmatmul.mubr.bf16.vlgmr.msra.gmra.mrb[52].mxu1 %v6868_v39 }
 0x5dd   :  { %13325 = vmatpush3.bf16.msra.mxu1 %v15092_v34 }
 0x5de   :  { %13326 = vmatprep.subr.bf16.mxu1 %v15094_v21 }
 0x5e1   :  { %13327 = vmatpush3.bf16.msra.mxu1 %v15096_v57 }
 0x5e2   :  { %13328 = vmatprep.subr.bf16.mxu1 %v15098_v43 }
 0x5e5   :  { %13329 = vmatpush3.bf16.msra.mxu1 %v15100_v50 }
 0x5e6   :  { %13330 = vmatprep.subr.bf16.mxu1 %v15102_v56 }
 0x5e9   :  { %13331 = vmatpush3.bf16.msra.mxu1 %v15104_v5 }
 0x5ea   :  { %13332 = vmatprep.subr.bf16.mxu1 %v15106_v41  ;;  %v15515_v41 = vpop.eup %15514 }
 0x5eb   :  { %v4026_v8 = vadd.f32 1.0, %v15515_v41 }
 0x5ed   :  { %13333 = vmatpush3.bf16.msra.mxu1 %v15108_v16  ;;  %v15517_v16 = vpop.eup %15516 }
 0x5ee   :  { %13334 = vmatprep.subr.bf16.mxu1 %v15110_v51  ;;  %v15519_v14 = vpop.eup %15518 }
 0x5f1   :  { %13335 = vmatpush3.bf16.msra.mxu1 %v15112_v59 }
 0x5f2   :  { %13336 = vmatprep.subr.bf16.mxu1 %v15114_v22  ;;  %v15155_v22 = vld [vmem:[%s20111_s3 + $0x200] sm:$0xff]  }
 0x5f4   :  { %v6109_v53 = vpop.xlane.xlu1 %6108 }
 0x5f5   :  { %v6110_v3 = vmul.f32 0.5, %v6109_v53  ;;  %13337 = vmatpush3.bf16.msra.mxu1 %v15116_v32  ;;  %v15123_v32 = vld [vmem:[%s20111_s3 + $0x280] sm:$0xff]  }
 0x5f6   :  { %13338 = vmatprep.subr.bf16.mxu1 %v15118_v33  ;;  %v15158_v33 = vld [vmem:[%s20111_s3 + $0x208] sm:$0xff]  }
 0x5f7   :  { %v6111_v62 = vsub.f32 %v18696_v49, %v6110_v3  ;;  %v6112_v45 = vsub.f32 %v18702_v54, %v6110_v3 }
 0x5f8   :  { %v19025_v26 = vpop.xlane.xlu0 %4277  ;;  %v5334_v34 = vpop.xlane.xlu1 %5333 }
 0x5f9   :  { %v12191_v39 = vmul.f32 -1.442695, %v6111_v62  ;;  %v12192_v21 = vmul.f32 -1.442695, %v6112_v45  ;;  %v19027_v48 = vmul.f32 0.5, %v5334_v34  ;;  %13339 = vmatpush3.bf16.msra.mxu1 %v15120_v42  ;;  %v15125_v42 = vld [vmem:[%s20111_s3 + $0x288] sm:$0xff]  }
 0x5fa   :  { %13368 = vmatprep.subr.bf16.mxu1 %v15122_v52  ;;  %v15126_v62 = vld [vmem:[%s20111_s3 + $0x2d0] sm:$0xff]   ;;  %v3232_v45 = vadd.f32 1.0, %v15519_v14 }
 0x5fb   :  { %15520 = vpow2.f32 %v12191_v39  ;;  %v5336_v57 = vsub.f32 %v18495_v44, %v19027_v48  ;;  %v15162_v34 = vld [vmem:[%s20111_s3 + $0x210] sm:$0xff]  }
 0x5fc   :  { %15522 = vpow2.f32 %v12192_v21  ;;  %v13775_v43 = vpop.permute.xlu0 %13774  ;;  %v13765_v50 = vpop.permute.xlu1 %13764  ;;  %v15127_v39 = vld [vmem:[%s20111_s3 + $0x290] sm:$0xff]   ;;  %v15164_v21 = vld [vmem:[%s20111_s3 + $0x258] sm:$0xff]  }
 0x5fd   :  { %v11990_v49 = vmul.f32 -1.442695, %v5336_v57  ;;  %v13777_v56 = vunpack.i.h.bf16 %v13775_v43  ;;  %v13776_v54 = vunpack.i.l.bf16 %v13775_v43  ;;  %v13767_v55 = vunpack.i.h.bf16 %v13765_v50  ;;  %v15128_v43 = vld [vmem:[%s20111_s3 + $0x2d8] sm:$0xff]   ;;  %v15134_v14 = vld [vmem:[%s20111_s3 + $0x2f0] sm:$0xff]  }
 0x5fe   :  { %v13766_v5 = vunpack.i.l.bf16 %v13765_v50 }
 0x5ff   :  { %v7025_v37 = vsel %vm2452_vm1, %v18840_v25, %v13777_v56  ;;  %v7217_v4 = vsel %vm2452_vm1, %v13767_v55, %v18861_v9  ;;  %v7026_v44 = vsel %vm2452_vm1, %v18848_v27, %v13776_v54  ;;  %15524 = vpow2.f32 %v11990_v49  ;;  %v15156_v27 = vld [vmem:[%s20111_s3 + $0x248] sm:$0xff]   ;;  %v15166_v49 = vld [vmem:[%s20111_s3 + $0x218] sm:$0xff]   ;;  %v15168_v54 = vld [vmem:[%s20111_s3 + $0x260] sm:$0xff]  }
 0x600   :  { %v7060_v51 = vpack.c.bf16 %v7025_v37, %v7025_v37  ;;  %v7252_v18 = vpack.c.bf16 %v7217_v4, %v7217_v4  ;;  %v7061_v59 = vpack.c.bf16 %v7026_v44, %v7026_v44  ;;  %v7218_v12 = vsel %vm2452_vm1, %v13766_v5, %v18852_v38  ;;  %v15124_v38 = vld [vmem:[%s20111_s3 + $0x2c8] sm:$0xff]   ;;  %v15129_v56 = vld [vmem:[%s20111_s3 + $0x298] sm:$0xff]   ;;  %v15130_v55 = vld [vmem:[%s20111_s3 + $0x2e0] sm:$0xff]  }
 0x601   :  { %v7253_v25 = vpack.c.bf16 %v7218_v12, %v7218_v12  ;;  %v4027_v9 = vadd.f32 1.0, %v15517_v16  ;;  %15526 = vrcp.f32 %v4026_v8  ;;  %v13771_v37 = vunpack.i.l.bf16 %v19015_v19  ;;  %v15170_v16 = vld [vmem:[%s20111_s3 + $0x220] sm:$0xff]  }
 0x602   :  { %7190 = vmatprep.mubr.bf16.mxu0 %v7061_v59  ;;  %v15131_v4 = vld [vmem:[%s20111_s3 + $0x2a0] sm:$0xff]   ;;  %v15132_v59 = vld [vmem:[%s20111_s3 + $0x2e8] sm:$0xff]  }
 0x603   :  { %7382 = vmatprep.mubr.bf16.mxu1 %v7253_v25  ;;  %7191 = vmatmul.mubr.bf16.vlgmr.msra.gmra.mrb[52].mxu0 %v7060_v51  ;;  %15528 = vrcp.f32 %v4027_v9  ;;  %v15176_v9 = vld [vmem:[%s20111_s3 + $0x270] sm:$0xff]  }
 0x604   :  { %7383 = vmatmul.mubr.bf16.vlgmr.msra.gmra.mrb[56].mxu1 %v7252_v18  ;;  %13347 = vmatpush3.bf16.msra.mxu0 %v15155_v22  ;;  %v15172_v22 = vld [vmem:[%s20111_s3 + $0x268] sm:$0xff]  }
 0x605   :  { %v15521_v29 = vpop.eup %15520  ;;  %13369 = vmatpush3.bf16.msra.mxu1 %v15123_v32  ;;  %13348 = vmatprep.subr.bf16.mxu0 %v15156_v27  ;;  %v15174_v32 = vld [vmem:[%s20111_s3 + $0x228] sm:$0xff]  }
 0x606   :  { %v15523_v53 = vpop.eup %15522  ;;  %v6119_v3 = vadd.f32 1.0, %v15521_v29  ;;  %13370 = vmatprep.subr.bf16.mxu1 %v15124_v38  ;;  %v15133_v27 = vld [vmem:[%s20111_s3 + $0x2a8] sm:$0xff]  }
 0x607   :  { %v6120_v52 = vadd.f32 1.0, %v15523_v53  ;;  %v15178_v53 = vld [vmem:[%s20111_s3 + $0x230] sm:$0xff]  }
 0x608   :  { %15530 = vrcp.f32 %v6119_v3  ;;  %13349 = vmatpush3.bf16.msra.mxu0 %v15158_v33  ;;  %v15135_v3 = vld [vmem:[%s20111_s3 + $0x2b0] sm:$0xff]  }
 0x609   :  { %15532 = vrcp.f32 %v6120_v52  ;;  %13371 = vmatpush3.bf16.msra.mxu1 %v15125_v42  ;;  %13350 = vmatprep.subr.bf16.mxu0 %v15160_v63  ;;  %v15525_v57 = vpop.eup %15524  ;;  %v15180_v42 = vld [vmem:[%s20111_s3 + $0x278] sm:$0xff]   ;;  %v13772_v52 = vunpack.i.h.bf16 %v19015_v19 }
 0x60a   :  { %13372 = vmatprep.subr.bf16.mxu1 %v15126_v62  ;;  %v5344_v50 = vadd.f32 1.0, %v15525_v57  ;;  %15534 = vrcp.f32 %v3232_v45  ;;  %v15136_v63 = vld [vmem:[%s20111_s3 + $0x2f8] sm:$0xff]   ;;  %v15139_v57 = vld [vmem:[%s20111_s3 + $0x380] sm:$0xff]  }
 0x60b   :  { %v15527_v5 = vpop.eup %15526  ;;  %v15182_v62 = vld [vmem:[%s20111_s3 + $0x238] sm:$0xff]  }
 0x60c   :  { %13351 = vmatpush3.bf16.msra.mxu0 %v15162_v34  ;;  %15536 = vrcp.f32 %v5344_v50  ;;  %v15137_v45 = vld [vmem:[%s20111_s3 + $0x2b8] sm:$0xff]   ;;  %v15138_v34 = vld [vmem:[%s20111_s3 + $0x3c0] sm:$0xff]   ;;  %v7601_v19 = vsel %vm2452_vm1, %v13772_v52, %v15527_v5  ;;  %v4279_v50 = vmul.f32 0.5, %v19025_v26  ;;  %v15142_v26 = vld [vmem:[%s20111_s3 + $0x3d0] sm:$0xff]  }
 0x60d   :  { %13373 = vmatpush3.bf16.msra.mxu1 %v15127_v39  ;;  %13352 = vmatprep.subr.bf16.mxu0 %v15164_v21  ;;  %v19087_v41 = vpop.eup %15528  ;;  %v3225_v39 = vsub.f32 %v17774_v28, %v19002_v10  ;;  %v5337_v21 = vsub.f32 %v18501_v60, %v19027_v48  ;;  %v15141_v60 = vld [vmem:[%s20111_s3 + $0x388] sm:$0xff]  }
 0x60e   :  { %13374 = vmatprep.subr.bf16.mxu1 %v15128_v43  ;;  %v7636_v43 = vpack.c.bf16 %v7601_v19, %v7601_v19  ;;  %v4280_v48 = vsub.f32 %v18168_v20, %v4279_v50  ;;  %v15144_v20 = vld [vmem:[%s20111_s3 + $0x3d8] sm:$0xff]  }
 0x60f   :  { %v11439_v28 = vmul.f32 -1.442695, %v3225_v39  ;;  %v11991_v10 = vmul.f32 -1.442695, %v5337_v21 }
 0x610   :  { %13353 = vmatpush3.bf16.msra.mxu0 %v15166_v49  ;;  %v15140_v49 = vld [vmem:[%s20111_s3 + $0x3c8] sm:$0xff]  }
 0x611   :  { %13375 = vmatpush3.bf16.msra.mxu1 %v15129_v56  ;;  %13354 = vmatprep.subr.bf16.mxu0 %v15168_v54  ;;  %15538 = vpow2.f32 %v11439_v28  ;;  %v15143_v56 = vld [vmem:[%s20111_s3 + $0x390] sm:$0xff]   ;;  %v4281_v54 = vsub.f32 %v18177_v0, %v4279_v50  ;;  %v15146_v0 = vld [vmem:[%s20111_s3 + $0x3e0] sm:$0xff]   ;;  %v15153_v28 = vld [vmem:[%s20111_s3 + $0x3b8] sm:$0xff]  }
 0x612   :  { %v15531_v51 = vpop.eup %15530  ;;  %13376 = vmatprep.subr.bf16.mxu1 %v15130_v55  ;;  %15540 = vpow2.f32 %v11991_v10  ;;  %v11714_v55 = vmul.f32 -1.442695, %v4280_v48  ;;  %v15157_v48 = vld [vmem:[%s20111_s3 + $0x4c0] sm:$0xff]  }
 0x613   :  { %v19096_v44 = vpop.eup %15532  ;;  %v13788_v18 = vpack.i.bf16 %v15527_v5, %v15531_v51  ;;  %v7602_v12 = vsel %vm2452_vm1, %v13771_v37, %v15531_v51  ;;  %v11715_v51 = vmul.f32 -1.442695, %v4281_v54 }
 0x614   :  { %v7637_v8 = vpack.c.bf16 %v7602_v12, %v7602_v12  ;;  %v13793_v25 = vpack.i.bf16 %v19087_v41, %v19096_v44  ;;  %13355 = vmatpush3.bf16.msra.mxu0 %v15170_v16  ;;  %v19117_v38 = vpop.eup %15534  ;;  %v15145_v16 = vld [vmem:[%s20111_s3 + $0x398] sm:$0xff]   ;;  %15542 = vpow2.f32 %v11714_v55 }
 0x615   :  { %13789 = vrot.lane.b32.xlu1 %v13788_v18, %s15702_s16  ;;  %13377 = vmatpush3.bf16.msra.mxu1 %v15131_v4  ;;  %15544 = vpow2.f32 %v11715_v51 }
 0x616   :  { %7766 = vmatprep.mubr.bf16.mxu1 %v7637_v8  ;;  %13378 = vmatprep.subr.bf16.mxu1 %v15132_v59  ;;  %v19122_v29 = vpop.eup %15536  ;;  %v15186_v59 = vld [vmem:[%s20111_s3 + $0x340] sm:$0xff]  }
 0x617   :  { %13356 = vmatprep.subr.bf16.mxu0 %v15172_v22  ;;  %v13783_v33 = vpack.i.bf16 %v19117_v38, %v19122_v29 }
 0x618   :  { %13357 = vmatpush3.bf16.msra.mxu0 %v15174_v32 }
 0x619   :  { %13379 = vmatpush3.bf16.msra.mxu1 %v15133_v27  ;;  %13358 = vmatprep.subr.bf16.mxu0 %v15176_v9  ;;  %v15147_v9 = vld [vmem:[%s20111_s3 + $0x3a0] sm:$0xff]  }
 0x61a   :  { %13784 = vrot.lane.b32.xlu0 %v13783_v33, %s15702_s16  ;;  %13380 = vmatprep.subr.bf16.mxu1 %v15134_v14 }
 0x61b   :  { %v15539_v22 = vpop.eup %15538 }
 0x61c   :  { %13359 = vmatpush3.bf16.msra.mxu0 %v15178_v53  ;;  %v15541_v14 = vpop.eup %15540  ;;  %v3233_v53 = vadd.f32 1.0, %v15539_v22 }
 0x61d   :  { %13381 = vmatpush3.bf16.msra.mxu1 %v15135_v3  ;;  %13360 = vmatprep.subr.bf16.mxu0 %v15180_v42  ;;  %v5345_v42 = vadd.f32 1.0, %v15541_v14 }
 0x61e   :  { %13382 = vmatprep.subr.bf16.mxu1 %v15136_v63  ;;  %v15543_v39 = vpop.eup %15542 }
 0x61f   :  { %v4288_v17 = vadd.f32 1.0, %v15543_v39 }
 0x620   :  { %13361 = vmatpush3.bf16.msra.mxu0 %v15182_v62  ;;  %v15149_v62 = vld [vmem:[%s20111_s3 + $0x3a8] sm:$0xff]  }
 0x621   :  { %13383 = vmatpush3.bf16.msra.mxu1 %v15137_v45  ;;  %13390 = vmatprep.subr.bf16.mxu0 %v15186_v59  ;;  %v15163_v59 = vld [vmem:[%s20111_s3 + $0x488] sm:$0xff]  }
 0x622   :  { %13412 = vmatprep.subr.bf16.mxu1 %v15138_v34  ;;  %v15150_v34 = vld [vmem:[%s20111_s3 + $0x3f0] sm:$0xff]  }
 0x624   :  { %7767 = vmatmul.mubr.bf16.vlgmr.msra.gmra.mrb[60].mxu1 %v7636_v43  ;;  %v20122_v43 = vmax.f32 %v18513_v40, %v18519_v15 }
 0x625   :  { %13413 = vmatpush3.bf16.msra.mxu1 %v15139_v57 }
 0x626   :  { %13414 = vmatprep.subr.bf16.mxu1 %v15140_v49  ;;  %v15545_v49 = vpop.eup %15544 }
 0x627   :  { %v4289_v54 = vadd.f32 1.0, %v15545_v49 }
 0x629   :  { %13415 = vmatpush3.bf16.msra.mxu1 %v15141_v60 }
 0x62a   :  { %13416 = vmatprep.subr.bf16.mxu1 %v15142_v26 }
 0x62d   :  { %v6363_v5 = vpop.xlane.xlu1 %6362  ;;  %13417 = vmatpush3.bf16.msra.mxu1 %v15143_v56 }
 0x62e   :  { %v6364_v37 = vmul.f32 0.5, %v6363_v5  ;;  %13418 = vmatprep.subr.bf16.mxu1 %v15144_v20  ;;  %v15159_v20 = vld [vmem:[%s20111_s3 + $0x480] sm:$0xff]  }
 0x630   :  { %v6365_v4 = vsub.f32 %v18712_v7, %v6364_v37  ;;  %v6366_v18 = vsub.f32 %v18718_v2, %v6364_v37  ;;  %v15148_v7 = vld [vmem:[%s20111_s3 + $0x3e8] sm:$0xff]  }
 0x631   :  { %v5600_v12 = vpop.xlane.xlu1 %5599  ;;  %13419 = vmatpush3.bf16.msra.mxu1 %v15145_v16  ;;  %v15161_v16 = vld [vmem:[%s20111_s3 + $0x4c8] sm:$0xff]  }
 0x632   :  { %v12257_v8 = vmul.f32 -1.442695, %v6365_v4  ;;  %v12258_v32 = vmul.f32 -1.442695, %v6366_v18  ;;  %v5601_v27 = vmul.f32 0.5, %v5600_v12  ;;  %13420 = vmatprep.subr.bf16.mxu1 %v15146_v0 }
 0x634   :  { %15546 = vpow2.f32 %v12257_v8  ;;  %v5602_v2 = vsub.f32 %v18657_v13, %v5601_v27  ;;  %v5603_v33 = vsub.f32 %v18663_v58, %v5601_v27  ;;  %v15165_v8 = vld [vmem:[%s20111_s3 + $0x4d0] sm:$0xff]  }
 0x635   :  { %15548 = vpow2.f32 %v12258_v32  ;;  %v3488_v3 = vpop.xlane.xlu1 %3487  ;;  %13421 = vmatpush3.bf16.msra.mxu1 %v15147_v9 }
 0x636   :  { %v12059_v63 = vmul.f32 -1.442695, %v5602_v2  ;;  %v3489_v52 = vmul.f32 0.5, %v3488_v3  ;;  %v12060_v45 = vmul.f32 -1.442695, %v5603_v33  ;;  %13422 = vmatprep.subr.bf16.mxu1 %v15148_v7  ;;  %v15167_v7 = vld [vmem:[%s20111_s3 + $0x490] sm:$0xff]  }
 0x637   :  { %v15169_v33 = vld [vmem:[%s20111_s3 + $0x4d8] sm:$0xff]  }
 0x638   :  { %15550 = vpow2.f32 %v12059_v63  ;;  %v3490_v13 = vsub.f32 %v18197_v24, %v3489_v52  ;;  %v3491_v58 = vsub.f32 %v18203_v46, %v3489_v52  ;;  %v15151_v24 = vld [vmem:[%s20111_s3 + $0x3b0] sm:$0xff]   ;;  %v15152_v46 = vld [vmem:[%s20111_s3 + $0x3f8] sm:$0xff]   ;;  %v15173_v52 = vld [vmem:[%s20111_s3 + $0x4e0] sm:$0xff]  }
 0x639   :  { %15552 = vrcp.f32 %v3233_v53  ;;  %v13780_v19 = vpop.permute.xlu1 %13779  ;;  %6616 = vmax.xlane.f32.xlu1 %v6615_v47  ;;  %13423 = vmatpush3.bf16.msra.mxu1 %v15149_v62 }
 0x63a   :  { %15554 = vrcp.f32 %v5345_v42  ;;  %v11507_v21 = vmul.f32 -1.442695, %v3490_v13  ;;  %v11508_v57 = vmul.f32 -1.442695, %v3491_v58  ;;  %4543 = vmax.xlane.f32.xlu0 %v20122_v43  ;;  %v13781_v50 = vunpack.i.l.bf16 %v13780_v19  ;;  %13424 = vmatprep.subr.bf16.mxu1 %v15150_v34  ;;  %v15171_v42 = vld [vmem:[%s20111_s3 + $0x498] sm:$0xff]   ;;  %v15175_v34 = vld [vmem:[%s20111_s3 + $0x4a0] sm:$0xff]  }
 0x63b   :  { %15556 = vpow2.f32 %v12060_v45  ;;  %v13782_v6 = vunpack.i.h.bf16 %v13780_v19  ;;  %v15179_v58 = vld [vmem:[%s20111_s3 + $0x4a8] sm:$0xff]   ;;  %v15181_v19 = vld [vmem:[%s20111_s3 + $0x4f0] sm:$0xff]   ;;  %v15184_v43 = vld [vmem:[%s20111_s3 + $0x4f8] sm:$0xff]  }
 0x63c   :  { %15558 = vpow2.f32 %v11507_v21  ;;  %v7986_v47 = vsel %vm2452_vm1, %v13781_v50, %v19096_v44  ;;  %v15185_v50 = vld [vmem:[%s20111_s3 + $0x4b8] sm:$0xff]  }
 0x63d   :  { %15560 = vpow2.f32 %v11508_v57  ;;  %v8021_v40 = vpack.c.bf16 %v7986_v47, %v7986_v47  ;;  %13425 = vmatpush3.bf16.msra.mxu1 %v15151_v24  ;;  %v7985_v56 = vsel %vm2452_vm1, %v13782_v6, %v19087_v41  ;;  %v15177_v41 = vld [vmem:[%s20111_s3 + $0x4e8] sm:$0xff]   ;;  %v15183_v57 = vld [vmem:[%s20111_s3 + $0x4b0] sm:$0xff]   ;;  %v15188_v24 = vld [vmem:[%s20111_s3 + $0x5c0] sm:$0xff]  }
 0x63e   :  { %v15547_v15 = vpop.eup %15546  ;;  %13426 = vmatprep.subr.bf16.mxu1 %v15152_v46  ;;  %15562 = vrcp.f32 %v4288_v17  ;;  %v8020_v37 = vpack.c.bf16 %v7985_v56, %v7985_v56 }
 0x63f   :  { %v15549_v10 = vpop.eup %15548  ;;  %v6373_v60 = vadd.f32 1.0, %v15547_v15  ;;  %8150 = vmatprep.mubr.bf16.mxu1 %v8021_v40 }
 0x640   :  { %v6374_v26 = vadd.f32 1.0, %v15549_v10  ;;  %v15190_v10 = vld [vmem:[%s20111_s3 + $0x348] sm:$0xff]  }
 0x641   :  { %15564 = vrcp.f32 %v6373_v60  ;;  %13427 = vmatpush3.bf16.msra.mxu1 %v15153_v28  ;;  %v15187_v28 = vld [vmem:[%s20111_s3 + $0x300] sm:$0xff]  }
 0x642   :  { %v15551_v55 = vpop.eup %15550  ;;  %15566 = vrcp.f32 %v6374_v26  ;;  %13456 = vmatprep.subr.bf16.mxu1 %v15157_v48 }
 0x643   :  { %v19227_v5 = vpop.eup %15552  ;;  %v5610_v0 = vadd.f32 1.0, %v15551_v55  ;;  %15568 = vrcp.f32 %v4289_v54 }
 0x644   :  { %v19232_v51 = vpop.eup %15554  ;;  %8151 = vmatmul.mubr.bf16.vlgmr.msra.gmra.mrb[64].mxu1 %v8020_v37 }
 0x645   :  { %v15557_v4 = vpop.eup %15556  ;;  %13457 = vmatpush3.bf16.msra.mxu1 %v15159_v20  ;;  %15570 = vrcp.f32 %v5610_v0  ;;  %v13798_v27 = vpack.i.bf16 %v19227_v5, %v19232_v51  ;;  %v15194_v20 = vld [vmem:[%s20111_s3 + $0x350] sm:$0xff]  }
 0x646   :  { %v15559_v18 = vpop.eup %15558  ;;  %13458 = vmatprep.subr.bf16.mxu1 %v15161_v16  ;;  %v5611_v9 = vadd.f32 1.0, %v15557_v4 }
 0x647   :  { %v15561_v12 = vpop.eup %15560  ;;  %v3498_v22 = vadd.f32 1.0, %v15559_v18  ;;  %v15189_v18 = vld [vmem:[%s20111_s3 + $0x580] sm:$0xff]  }
 0x648   :  { %v3499_v32 = vadd.f32 1.0, %v15561_v12  ;;  %v19242_v14 = vpop.eup %15562  ;;  %v15192_v12 = vld [vmem:[%s20111_s3 + $0x5c8] sm:$0xff]  }
 0x649   :  { %15572 = vrcp.f32 %v3498_v22  ;;  %13459 = vmatpush3.bf16.msra.mxu1 %v15163_v59  ;;  %v15195_v22 = vld [vmem:[%s20111_s3 + $0x310] sm:$0xff]  }
 0x64a   :  { %13799 = vrot.lane.b32.xlu1 %v13798_v27, %s15702_s16  ;;  %15574 = vrcp.f32 %v3499_v32  ;;  %13460 = vmatprep.subr.bf16.mxu1 %v15165_v8  ;;  %v15198_v8 = vld [vmem:[%s20111_s3 + $0x358] sm:$0xff]   ;;  %v15193_v32 = vld [vmem:[%s20111_s3 + $0x588] sm:$0xff]   ;;  %v15196_v27 = vld [vmem:[%s20111_s3 + $0x5d0] sm:$0xff]  }
 0x64b   :  { %v15565_v2 = vpop.eup %15564  ;;  %15576 = vrcp.f32 %v5611_v9  ;;  %v15199_v9 = vld [vmem:[%s20111_s3 + $0x318] sm:$0xff]  }
 0x64c   :  { %v13803_v53 = vpack.i.bf16 %v19242_v14, %v15565_v2  ;;  %v19252_v3 = vpop.eup %15566 }
 0x64d   :  { %13461 = vmatpush3.bf16.msra.mxu1 %v15167_v7  ;;  %v19258_v63 = vpop.eup %15568  ;;  %v15197_v7 = vld [vmem:[%s20111_s3 + $0x590] sm:$0xff]  }
 0x64e   :  { %13804 = vrot.lane.b32.xlu1 %v13803_v53, %s15702_s16  ;;  %13462 = vmatprep.subr.bf16.mxu1 %v15169_v33  ;;  %v13813_v62 = vpack.i.bf16 %v19258_v63, %v19252_v3  ;;  %v15203_v33 = vld [vmem:[%s20111_s3 + $0x320] sm:$0xff]   ;;  %v15206_v53 = vld [vmem:[%s20111_s3 + $0x368] sm:$0xff]  }
 0x64f   :  { %v19269_v45 = vpop.eup %15570 }
 0x650   :  { %13794 = vrot.lane.b32.xlu0 %v13793_v25, %s15702_s16 }
 0x651   :  { %13463 = vmatpush3.bf16.msra.mxu1 %v15171_v42  ;;  %v15201_v42 = vld [vmem:[%s20111_s3 + $0x598] sm:$0xff]  }
 0x652   :  { %13814 = vrot.lane.b32.xlu1 %v13813_v62, %s15702_s16  ;;  %13464 = vmatprep.subr.bf16.mxu1 %v15173_v52  ;;  %v15204_v52 = vld [vmem:[%s20111_s3 + $0x5e0] sm:$0xff]   ;;  %v15207_v62 = vld [vmem:[%s20111_s3 + $0x328] sm:$0xff]  }
 0x653   :  { %v19275_v13 = vpop.eup %15572 }
 0x654   :  { %v13808_v44 = vpack.i.bf16 %v19275_v13, %v19269_v45  ;;  %v19282_v25 = vpop.eup %15574 }
 0x655   :  { %13465 = vmatpush3.bf16.msra.mxu1 %v15175_v34  ;;  %v19288_v39 = vpop.eup %15576  ;;  %v15210_v34 = vld [vmem:[%s20111_s3 + $0x370] sm:$0xff]  }
 0x656   :  { %13809 = vrot.lane.b32.xlu0 %v13808_v44, %s15702_s16  ;;  %13466 = vmatprep.subr.bf16.mxu1 %v15177_v41  ;;  %v13818_v21 = vpack.i.bf16 %v19282_v25, %v19288_v39  ;;  %v15205_v41 = vld [vmem:[%s20111_s3 + $0x5a0] sm:$0xff]   ;;  %v15208_v44 = vld [vmem:[%s20111_s3 + $0x5e8] sm:$0xff]  }
 0x659   :  { %13467 = vmatpush3.bf16.msra.mxu1 %v15179_v58  ;;  %v15211_v58 = vld [vmem:[%s20111_s3 + $0x330] sm:$0xff]  }
 0x65a   :  { %13819 = vrot.lane.b32.xlu0 %v13818_v21, %s15702_s16  ;;  %13468 = vmatprep.subr.bf16.mxu1 %v15181_v19  ;;  %v15214_v19 = vld [vmem:[%s20111_s3 + $0x378] sm:$0xff]   ;;  %v15209_v21 = vld [vmem:[%s20111_s3 + $0x5a8] sm:$0xff]  }
 0x65d   :  { %13469 = vmatpush3.bf16.msra.mxu1 %v15183_v57  ;;  %v15212_v57 = vld [vmem:[%s20111_s3 + $0x5f0] sm:$0xff]  }
 0x65e   :  { %13470 = vmatprep.subr.bf16.mxu1 %v15184_v43  ;;  %v15215_v43 = vld [vmem:[%s20111_s3 + $0x338] sm:$0xff]  }
 0x661   :  { %13471 = vmatpush3.bf16.msra.mxu1 %v15185_v50  ;;  %v15218_v50 = vld [vmem:[%s20111_s3 + $0x440] sm:$0xff]  }
 0x662   :  { %13500 = vmatprep.subr.bf16.mxu1 %v15188_v24  ;;  %v15213_v24 = vld [vmem:[%s20111_s3 + $0x5b0] sm:$0xff]  }
 0x687   :  { %v13790_v46 = vpop.permute.xlu1 %13789 }
 0x688   :  { %v13792_v17 = vunpack.i.h.bf16 %v13790_v46  ;;  %v13791_v6 = vunpack.i.l.bf16 %v13790_v46  ;;  %v15216_v46 = vld [vmem:[%s20111_s3 + $0x5f8] sm:$0xff]  }
 0x68a   :  { %v7409_v47 = vsel %vm2452_vm1, %v18784_v1, %v13792_v17  ;;  %v7410_v49 = vsel %vm2452_vm1, %v18786_v61, %v13791_v6  ;;  %v15191_v1 = vld [vmem:[%s20111_s3 + $0x308] sm:$0xff]   ;;  %v15217_v17 = vld [vmem:[%s20111_s3 + $0x5b8] sm:$0xff]   ;;  %v15220_v6 = vld [vmem:[%s20111_s3 + $0x6c0] sm:$0xff]  }
 0x68b   :  { %v7444_v40 = vpack.c.bf16 %v7409_v47, %v7409_v47  ;;  %v7445_v15 = vpack.c.bf16 %v7410_v49, %v7410_v49 }
 0x68c   :  { %v13785_v60 = vpop.permute.xlu0 %13784 }
 0x68d   :  { %7574 = vmatprep.mubr.bf16.mxu0 %v7445_v15  ;;  %v13787_v48 = vunpack.i.h.bf16 %v13785_v60  ;;  %v13786_v26 = vunpack.i.l.bf16 %v13785_v60 }
 0x68e   :  { %7575 = vmatmul.mubr.bf16.vlgmr.msra.gmra.mrb[56].mxu0 %v7444_v40 }
 0x68f   :  { %v13274_v56 = vpop.f32.mrb[48].mxu1  ;;  %13391 = vmatpush3.bf16.msra.mxu0 %v15187_v28  ;;  %v8369_v61 = vsel %vm2452_vm1, %v13787_v48, %v19242_v14  ;;  %v8370_v55 = vsel %vm2452_vm1, %v13786_v26, %v15565_v2  ;;  %v15202_v14 = vld [vmem:[%s20111_s3 + $0x360] sm:$0xff]   ;;  %v15200_v2 = vld [vmem:[%s20111_s3 + $0x5d8] sm:$0xff]  }
 0x690   :  { %v13275_v54 = vpop.f32.mrb[49].mxu1  ;;  %13392 = vmatprep.subr.bf16.mxu0 %v15190_v10  ;;  %v8404_v37 = vpack.c.bf16 %v8369_v61, %v8369_v61  ;;  %v8405_v4 = vpack.c.bf16 %v8370_v55, %v8370_v55 }
 0x691   :  { %v19327_v16 = vadd.f32 %v13275_v54, %v13274_v56  ;;  %v13277_v0 = vpop.f32.mrb[50].mxu1 }
 0x692   :  { %v13278_v59 = vpop.f32.mrb[51].mxu1  ;;  %8534 = vmatprep.mubr.bf16.mxu1 %v8405_v4 }
 0x693   :  { %13393 = vmatpush3.bf16.msra.mxu0 %v15191_v1  ;;  %8535 = vmatmul.mubr.bf16.vlgmr.msra.gmra.mrb[68].mxu1 %v8404_v37 }
 0x694   :  { %13394 = vmatprep.subr.bf16.mxu0 %v15194_v20  ;;  %13501 = vmatpush3.bf16.msra.mxu1 %v15189_v18 }
 0x695   :  { %13502 = vmatprep.subr.bf16.mxu1 %v15192_v12 }
 0x697   :  { %13395 = vmatpush3.bf16.msra.mxu0 %v15195_v22 }
 0x698   :  { %13396 = vmatprep.subr.bf16.mxu0 %v15198_v8  ;;  %13503 = vmatpush3.bf16.msra.mxu1 %v15193_v32 }
 0x699   :  { %13504 = vmatprep.subr.bf16.mxu1 %v15196_v27 }
 0x69b   :  { %13397 = vmatpush3.bf16.msra.mxu0 %v15199_v9 }
 0x69c   :  { %13398 = vmatprep.subr.bf16.mxu0 %v15202_v14  ;;  %13505 = vmatpush3.bf16.msra.mxu1 %v15197_v7 }
 0x69d   :  { %13506 = vmatprep.subr.bf16.mxu1 %v15200_v2  ;;  %v15221_v2 = vld [vmem:[%s20111_s3 + $0x680] sm:$0xff]  }
 0x69f   :  { %13399 = vmatpush3.bf16.msra.mxu0 %v15203_v33 }
 0x6a0   :  { %13400 = vmatprep.subr.bf16.mxu0 %v15206_v53  ;;  %13507 = vmatpush3.bf16.msra.mxu1 %v15201_v42  ;;  %v15224_v53 = vld [vmem:[%s20111_s3 + $0x6c8] sm:$0xff]  }
 0x6a1   :  { %13508 = vmatprep.subr.bf16.mxu1 %v15204_v52  ;;  %v15223_v42 = vld [vmem:[%s20111_s3 + $0x408] sm:$0xff]   ;;  %v15226_v52 = vld [vmem:[%s20111_s3 + $0x450] sm:$0xff]  }
 0x6a3   :  { %13401 = vmatpush3.bf16.msra.mxu0 %v15207_v62  ;;  %v15228_v62 = vld [vmem:[%s20111_s3 + $0x6d0] sm:$0xff]  }
 0x6a4   :  { %13402 = vmatprep.subr.bf16.mxu0 %v15210_v34  ;;  %13509 = vmatpush3.bf16.msra.mxu1 %v15205_v41 }
 0x6a5   :  { %13510 = vmatprep.subr.bf16.mxu1 %v15208_v44 }
 0x6a7   :  { %13403 = vmatpush3.bf16.msra.mxu0 %v15211_v58 }
 0x6a8   :  { %13404 = vmatprep.subr.bf16.mxu0 %v15214_v19  ;;  %13511 = vmatpush3.bf16.msra.mxu1 %v15209_v21 }
 0x6a9   :  { %13512 = vmatprep.subr.bf16.mxu1 %v15212_v57  ;;  %v15227_v57 = vld [vmem:[%s20111_s3 + $0x410] sm:$0xff]  }
 0x6ab   :  { %13405 = vmatpush3.bf16.msra.mxu0 %v15215_v43 }
 0x6ac   :  { %13434 = vmatprep.subr.bf16.mxu0 %v15218_v50  ;;  %13513 = vmatpush3.bf16.msra.mxu1 %v15213_v24 }
 0x6ad   :  { %13514 = vmatprep.subr.bf16.mxu1 %v15216_v46 }
 0x6af   :  { %v13296_v47 = vpop.f32.mrb[52].mxu1 }
 0x6b0   :  { %v13297_v49 = vpop.f32.mrb[53].mxu1  ;;  %13515 = vmatpush3.bf16.msra.mxu1 %v15217_v17 }
 0x6b1   :  { %v19413_v40 = vadd.f32 %v13297_v49, %v13296_v47  ;;  %v13299_v15 = vpop.f32.mrb[54].mxu1  ;;  %13544 = vmatprep.subr.bf16.mxu1 %v15220_v6  ;;  %v15229_v6 = vld [vmem:[%s20111_s3 + $0x690] sm:$0xff]   ;;  %v15230_v47 = vld [vmem:[%s20111_s3 + $0x458] sm:$0xff]  }
 0x6b2   :  { %v13300_v28 = vpop.f32.mrb[55].mxu1 }
 0x6c6   :  { %v6617_v10 = vpop.xlane.xlu1 %6616 }
 0x6c7   :  { %v4544_v60 = vpop.xlane.xlu0 %4543  ;;  %v6618_v48 = vmul.f32 0.5, %v6617_v10 }
 0x6c8   :  { %v4545_v26 = vmul.f32 0.5, %v4544_v60 }
 0x6c9   :  { %v6619_v56 = vsub.f32 %v18889_v30, %v6618_v48  ;;  %v6620_v1 = vsub.f32 %v18891_v35, %v6618_v48  ;;  %v15232_v48 = vld [vmem:[%s20111_s3 + $0x6d8] sm:$0xff]  }
 0x6ca   :  { %v4546_v61 = vsub.f32 %v18509_v36, %v4545_v26  ;;  %v4547_v54 = vsub.f32 %v18515_v23, %v4545_v26  ;;  %v13800_v55 = vpop.permute.xlu1 %13799 }
 0x6cb   :  { %v12323_v20 = vmul.f32 -1.442695, %v6619_v56  ;;  %v12324_v37 = vmul.f32 -1.442695, %v6620_v1  ;;  %v13795_v0 = vpop.permute.xlu0 %13794  ;;  %v13802_v4 = vunpack.i.h.bf16 %v13800_v55  ;;  %v13801_v18 = vunpack.i.l.bf16 %v13800_v55  ;;  %v15231_v1 = vld [vmem:[%s20111_s3 + $0x418] sm:$0xff]   ;;  %v15236_v55 = vld [vmem:[%s20111_s3 + $0x6e0] sm:$0xff]  }
 0x6cc   :  { %v11783_v59 = vmul.f32 -1.442695, %v4546_v61  ;;  %v11784_v12 = vmul.f32 -1.442695, %v4547_v54  ;;  %v13797_v22 = vunpack.i.h.bf16 %v13795_v0  ;;  %v13796_v8 = vunpack.i.l.bf16 %v13795_v0  ;;  %v15233_v61 = vld [vmem:[%s20111_s3 + $0x698] sm:$0xff]   ;;  %v15234_v54 = vld [vmem:[%s20111_s3 + $0x460] sm:$0xff]  }
 0x6cd   :  { %15578 = vpow2.f32 %v12323_v20  ;;  %v8753_v30 = vsel %vm2452_vm1, %v13802_v4, %v19258_v63  ;;  %v8754_v32 = vsel %vm2452_vm1, %v13801_v18, %v19252_v3  ;;  %v15219_v63 = vld [vmem:[%s20111_s3 + $0x400] sm:$0xff]   ;;  %v15238_v4 = vld [vmem:[%s20111_s3 + $0x468] sm:$0xff]  }
 0x6ce   :  { %15580 = vpow2.f32 %v11783_v59  ;;  %v7793_v36 = vsel %vm2452_vm1, %v18893_v11, %v13797_v22  ;;  %v19423_v35 = vpop.permute.xlu1 %13804  ;;  %v7794_v23 = vsel %vm2452_vm1, %v18887_v31, %v13796_v8  ;;  %v8788_v14 = vpack.c.bf16 %v8753_v30, %v8753_v30  ;;  %v15222_v31 = vld [vmem:[%s20111_s3 + $0x448] sm:$0xff]   ;;  %v15237_v0 = vld [vmem:[%s20111_s3 + $0x6a0] sm:$0xff]  }
 0x6cf   :  { %15582 = vpow2.f32 %v11784_v12  ;;  %v7828_v27 = vpack.c.bf16 %v7793_v36, %v7793_v36  ;;  %v13806_v9 = vunpack.i.l.bf16 %v19423_v35  ;;  %v7829_v7 = vpack.c.bf16 %v7794_v23, %v7794_v23  ;;  %v13810_v20 = vpop.permute.xlu0 %13809  ;;  %v15240_v18 = vld [vmem:[%s20111_s3 + $0x6e8] sm:$0xff]   ;;  %v15242_v36 = vld [vmem:[%s20111_s3 + $0x470] sm:$0xff]  }
 0x6d0   :  { %15584 = vpow2.f32 %v12324_v37  ;;  %v8789_v11 = vpack.c.bf16 %v8754_v32, %v8754_v32  ;;  %v15235_v37 = vld [vmem:[%s20111_s3 + $0x420] sm:$0xff]   ;;  %v13811_v59 = vunpack.i.l.bf16 %v13810_v20  ;;  %v15239_v22 = vld [vmem:[%s20111_s3 + $0x428] sm:$0xff]  }
 0x6d1   :  { %v8178_v3 = vsel %vm2452_vm1, %v19122_v29, %v13806_v9  ;;  %7958 = vmatprep.mubr.bf16.mxu0 %v7829_v7  ;;  %v15225_v29 = vld [vmem:[%s20111_s3 + $0x688] sm:$0xff]   ;;  %v15244_v9 = vld [vmem:[%s20111_s3 + $0x6f0] sm:$0xff]  }
 0x6d2   :  { %v8213_v33 = vpack.c.bf16 %v8178_v3, %v8178_v3  ;;  %7959 = vmatmul.mubr.bf16.vlgmr.msra.gmra.mrb[60].mxu0 %v7828_v27  ;;  %8918 = vmatprep.mubr.bf16.mxu1 %v8789_v11  ;;  %v15241_v30 = vld [vmem:[%s20111_s3 + $0x6a8] sm:$0xff]   ;;  %v15246_v3 = vld [vmem:[%s20111_s3 + $0x478] sm:$0xff]  }
 0x6d3   :  { %13435 = vmatpush3.bf16.msra.mxu0 %v15219_v63  ;;  %8919 = vmatmul.mubr.bf16.vlgmr.msra.gmra.mrb[72].mxu1 %v8788_v14  ;;  %v19511_v63 = vpop.permute.xlu1 %13814 }
 0x6d4   :  { %13545 = vmatpush3.bf16.msra.mxu1 %v15221_v2  ;;  %13436 = vmatprep.subr.bf16.mxu0 %v15222_v31  ;;  %v15243_v2 = vld [vmem:[%s20111_s3 + $0x430] sm:$0xff]  }
 0x6d5   :  { %8342 = vmatprep.mubr.bf16.mxu0 %v8213_v33  ;;  %13546 = vmatprep.subr.bf16.mxu1 %v15224_v53  ;;  %v15245_v31 = vld [vmem:[%s20111_s3 + $0x6b0] sm:$0xff]   ;;  %v13807_v33 = vunpack.i.h.bf16 %v19423_v35  ;;  %v15248_v53 = vld [vmem:[%s20111_s3 + $0x6f8] sm:$0xff]  }
 0x6d6   :  { %v13318_v41 = vpop.f32.mrb[52].mxu0  ;;  %v15249_v35 = vld [vmem:[%s20111_s3 + $0x6b8] sm:$0xff]  }
 0x6d7   :  { %v15579_v34 = vpop.eup %15578  ;;  %13437 = vmatpush3.bf16.msra.mxu0 %v15223_v42  ;;  %v13340_v19 = vpop.f32.mrb[56].mxu1  ;;  %v13816_v42 = vunpack.i.l.bf16 %v19511_v63 }
 0x6d8   :  { %v15581_v44 = vpop.eup %15580  ;;  %v6627_v58 = vadd.f32 1.0, %v15579_v34  ;;  %v13319_v21 = vpop.f32.mrb[53].mxu0  ;;  %13547 = vmatpush3.bf16.msra.mxu1 %v15225_v29  ;;  %13438 = vmatprep.subr.bf16.mxu0 %v15226_v52  ;;  %v15247_v52 = vld [vmem:[%s20111_s3 + $0x438] sm:$0xff]   ;;  %v13812_v34 = vunpack.i.h.bf16 %v13810_v20 }
 0x6d9   :  { %v15583_v43 = vpop.eup %15582  ;;  %v4554_v50 = vadd.f32 1.0, %v15581_v44  ;;  %v19459_v24 = vadd.f32 %v13319_v21, %v13318_v41  ;;  %v13341_v46 = vpop.f32.mrb[57].mxu1  ;;  %13548 = vmatprep.subr.bf16.mxu1 %v15228_v62  ;;  %v15250_v62 = vld [vmem:[%s20111_s3 + $0x540] sm:$0xff]   ;;  %v8177_v41 = vsel %vm2452_vm1, %v19117_v38, %v13807_v33  ;;  %v15279_v33 = vld [vmem:[%s20111_s3 + $0x538] sm:$0xff]  }
 0x6da   :  { %v13321_v17 = vpop.f32.mrb[54].mxu0  ;;  %v15585_v49 = vpop.eup %15584  ;;  %v4555_v15 = vadd.f32 1.0, %v15583_v43  ;;  %15586 = vrcp.f32 %v6627_v58  ;;  %v19467_v28 = vadd.f32 %v13341_v46, %v13340_v19  ;;  %v15252_v44 = vld [vmem:[%s20111_s3 + $0x7c0] sm:$0xff]   ;;  %v8562_v19 = vsel %vm2452_vm1, %v19232_v51, %v13816_v42 }
 0x6db   :  { %v13343_v10 = vpop.f32.mrb[58].mxu1  ;;  %v13322_v60 = vpop.f32.mrb[55].mxu0  ;;  %15588 = vrcp.f32 %v4554_v50  ;;  %v6628_v26 = vadd.f32 1.0, %v15585_v49  ;;  %13439 = vmatpush3.bf16.msra.mxu0 %v15227_v57  ;;  %v15251_v57 = vld [vmem:[%s20111_s3 + $0x500] sm:$0xff]   ;;  %v8212_v43 = vpack.c.bf16 %v8177_v41, %v8177_v41  ;;  %v15254_v50 = vld [vmem:[%s20111_s3 + $0x548] sm:$0xff]   ;;  %v8597_v46 = vpack.c.bf16 %v8562_v19, %v8562_v19 }
 0x6dc   :  { %v13344_v56 = vpop.f32.mrb[59].mxu1  ;;  %15590 = vrcp.f32 %v4555_v15  ;;  %13549 = vmatpush3.bf16.msra.mxu1 %v15229_v6  ;;  %13440 = vmatprep.subr.bf16.mxu0 %v15230_v47  ;;  %v19530_v29 = vpop.permute.xlu0 %13819  ;;  %v15253_v51 = vld [vmem:[%s20111_s3 + $0x780] sm:$0xff]   ;;  %v15256_v6 = vld [vmem:[%s20111_s3 + $0x7c8] sm:$0xff]   ;;  %v15258_v15 = vld [vmem:[%s20111_s3 + $0x550] sm:$0xff]  }
 0x6dd   :  { %15592 = vrcp.f32 %v6628_v26  ;;  %13550 = vmatprep.subr.bf16.mxu1 %v15232_v48  ;;  %v13821_v58 = vunpack.i.l.bf16 %v19530_v29  ;;  %v15255_v49 = vld [vmem:[%s20111_s3 + $0x508] sm:$0xff]   ;;  %v15260_v60 = vld [vmem:[%s20111_s3 + $0x7d0] sm:$0xff]  }
 0x6de   :  { %v15257_v10 = vld [vmem:[%s20111_s3 + $0x788] sm:$0xff]   ;;  %v15259_v26 = vld [vmem:[%s20111_s3 + $0x510] sm:$0xff]  }
 0x6df   :  { %13441 = vmatpush3.bf16.msra.mxu0 %v15231_v1  ;;  %v15262_v1 = vld [vmem:[%s20111_s3 + $0x558] sm:$0xff]   ;;  %v15285_v41 = vld [vmem:[%s20111_s3 + $0x608] sm:$0xff]  }
 0x6e0   :  { %13551 = vmatpush3.bf16.msra.mxu1 %v15233_v61  ;;  %13442 = vmatprep.subr.bf16.mxu0 %v15234_v54 }
 0x6e1   :  { %13552 = vmatprep.subr.bf16.mxu1 %v15236_v55  ;;  %v15261_v55 = vld [vmem:[%s20111_s3 + $0x790] sm:$0xff]  }
 0x6e3   :  { %13443 = vmatpush3.bf16.msra.mxu0 %v15235_v37  ;;  %v15264_v37 = vld [vmem:[%s20111_s3 + $0x7d8] sm:$0xff]  }
 0x6e4   :  { %v15587_v12 = vpop.eup %15586  ;;  %13553 = vmatpush3.bf16.msra.mxu1 %v15237_v0  ;;  %13444 = vmatprep.subr.bf16.mxu0 %v15238_v4  ;;  %v15263_v0 = vld [vmem:[%s20111_s3 + $0x518] sm:$0xff]   ;;  %v15266_v4 = vld [vmem:[%s20111_s3 + $0x560] sm:$0xff]  }
 0x6e5   :  { %v15589_v8 = vpop.eup %15588  ;;  %v9138_v23 = vsel %vm2452_vm1, %v13811_v59, %v15587_v12  ;;  %13554 = vmatprep.subr.bf16.mxu1 %v15240_v18  ;;  %v15265_v18 = vld [vmem:[%s20111_s3 + $0x798] sm:$0xff]   ;;  %v15268_v59 = vld [vmem:[%s20111_s3 + $0x7e0] sm:$0xff]  }
 0x6e6   :  { %v19506_v32 = vpop.eup %15590  ;;  %v13823_v27 = vpack.i.bf16 %v15589_v8, %v15587_v12  ;;  %v9173_v7 = vpack.c.bf16 %v9138_v23, %v9138_v23  ;;  %v9137_v21 = vsel %vm2452_vm1, %v13812_v34, %v15589_v8  ;;  %v15267_v12 = vld [vmem:[%s20111_s3 + $0x520] sm:$0xff]   ;;  %v15274_v23 = vld [vmem:[%s20111_s3 + $0x570] sm:$0xff]  }
 0x6e7   :  { %v15593_v14 = vpop.eup %15592  ;;  %13445 = vmatpush3.bf16.msra.mxu0 %v15239_v22  ;;  %v9172_v17 = vpack.c.bf16 %v9137_v21, %v9137_v21  ;;  %v15270_v22 = vld [vmem:[%s20111_s3 + $0x568] sm:$0xff]   ;;  %v15269_v8 = vld [vmem:[%s20111_s3 + $0x7a0] sm:$0xff]   ;;  %v15288_v21 = vld [vmem:[%s20111_s3 + $0x658] sm:$0xff]  }
 0x6e8   :  { %v13828_v11 = vpack.i.bf16 %v19506_v32, %v15593_v14  ;;  %13824 = vrot.lane.b32.xlu1 %v13823_v27, %s15702_s16  ;;  %13555 = vmatpush3.bf16.msra.mxu1 %v15241_v30  ;;  %v9522_v38 = vsel %vm2452_vm1, %v13821_v58, %v15593_v14  ;;  %v15272_v30 = vld [vmem:[%s20111_s3 + $0x7e8] sm:$0xff]   ;;  %v15287_v58 = vld [vmem:[%s20111_s3 + $0x610] sm:$0xff]  }
 0x6e9   :  { %13446 = vmatprep.subr.bf16.mxu0 %v15242_v36  ;;  %13556 = vmatprep.subr.bf16.mxu1 %v15244_v9  ;;  %v9557_v47 = vpack.c.bf16 %v9522_v38, %v9522_v38  ;;  %v15271_v36 = vld [vmem:[%s20111_s3 + $0x528] sm:$0xff]   ;;  %v15276_v9 = vld [vmem:[%s20111_s3 + $0x7f0] sm:$0xff]  }
 0x6ea   :  { %13829 = vrot.lane.b32.xlu0 %v13828_v11, %s15702_s16  ;;  %9302 = vmatprep.mubr.bf16.mxu1 %v9173_v7  ;;  %v15273_v27 = vld [vmem:[%s20111_s3 + $0x7a8] sm:$0xff]   ;;  %v15275_v7 = vld [vmem:[%s20111_s3 + $0x530] sm:$0xff]   ;;  %v15278_v11 = vld [vmem:[%s20111_s3 + $0x578] sm:$0xff]  }
 0x6eb   :  { %13447 = vmatpush3.bf16.msra.mxu0 %v15243_v2  ;;  %v13817_v2 = vunpack.i.h.bf16 %v19511_v63  ;;  %v15282_v63 = vld [vmem:[%s20111_s3 + $0x640] sm:$0xff]  }
 0x6ec   :  { %13557 = vmatpush3.bf16.msra.mxu1 %v15245_v31  ;;  %13448 = vmatprep.subr.bf16.mxu0 %v15246_v3  ;;  %v15277_v31 = vld [vmem:[%s20111_s3 + $0x7b0] sm:$0xff]   ;;  %v15280_v3 = vld [vmem:[%s20111_s3 + $0x7f8] sm:$0xff]  }
 0x6ed   :  { %13558 = vmatprep.subr.bf16.mxu1 %v15248_v53  ;;  %v13822_v53 = vunpack.i.h.bf16 %v19530_v29  ;;  %v8561_v42 = vsel %vm2452_vm1, %v19227_v5, %v13817_v2  ;;  %v15284_v5 = vld [vmem:[%s20111_s3 + $0x648] sm:$0xff]  }
 0x6ee   :  { %v8596_v34 = vpack.c.bf16 %v8561_v42, %v8561_v42  ;;  %v15310_v42 = vld [vmem:[%s20111_s3 + $0x770] sm:$0xff]  }
 0x6ef   :  { %13449 = vmatpush3.bf16.msra.mxu0 %v15247_v52  ;;  %v15281_v52 = vld [vmem:[%s20111_s3 + $0x7b8] sm:$0xff]  }
 0x6f0   :  { %13559 = vmatpush3.bf16.msra.mxu1 %v15249_v35  ;;  %13478 = vmatprep.subr.bf16.mxu0 %v15250_v62  ;;  %v9521_v35 = vsel %vm2452_vm1, %v13822_v53, %v19506_v32  ;;  %v15283_v62 = vld [vmem:[%s20111_s3 + $0x600] sm:$0xff]   ;;  %v15286_v32 = vld [vmem:[%s20111_s3 + $0x650] sm:$0xff]   ;;  %v15309_v53 = vld [vmem:[%s20111_s3 + $0x728] sm:$0xff]  }
 0x6f1   :  { %13588 = vmatprep.subr.bf16.mxu1 %v15252_v44  ;;  %v9556_v29 = vpack.c.bf16 %v9521_v35, %v9521_v35  ;;  %v15312_v35 = vld [vmem:[%s20111_s3 + $0x778] sm:$0xff]  }
 0x6f2   :  { %8343 = vmatmul.mubr.bf16.vlgmr.msra.gmra.mrb[64].mxu0 %v8212_v43 }
 0x6f3   :  { %13479 = vmatpush3.bf16.msra.mxu0 %v15251_v57  ;;  %8726 = vmatprep.mubr.bf16.mxu0 %v8597_v46  ;;  %v15290_v46 = vld [vmem:[%s20111_s3 + $0x660] sm:$0xff]  }
 0x6f4   :  { %9303 = vmatmul.mubr.bf16.vlgmr.msra.gmra.mrb[76].mxu1 %v9172_v17  ;;  %13480 = vmatprep.subr.bf16.mxu0 %v15254_v50  ;;  %v15289_v50 = vld [vmem:[%s20111_s3 + $0x618] sm:$0xff]   ;;  %v15292_v17 = vld [vmem:[%s20111_s3 + $0x668] sm:$0xff]  }
 0x6f5   :  { %13589 = vmatpush3.bf16.msra.mxu1 %v15253_v51  ;;  %9686 = vmatprep.mubr.bf16.mxu1 %v9557_v47  ;;  %v15291_v51 = vld [vmem:[%s20111_s3 + $0x620] sm:$0xff]   ;;  %v15294_v47 = vld [vmem:[%s20111_s3 + $0x670] sm:$0xff]  }
 0x6f6   :  { %13590 = vmatprep.subr.bf16.mxu1 %v15256_v6  ;;  %v15293_v6 = vld [vmem:[%s20111_s3 + $0x628] sm:$0xff]  }
 0x6f7   :  { %13481 = vmatpush3.bf16.msra.mxu0 %v15255_v49  ;;  %v13384_v48 = vpop.f32.mrb[60].mxu1  ;;  %v15295_v49 = vld [vmem:[%s20111_s3 + $0x630] sm:$0xff]  }
 0x6f8   :  { %v13385_v56 = vpop.f32.mrb[61].mxu1  ;;  %13482 = vmatprep.subr.bf16.mxu0 %v15258_v15  ;;  %v15296_v15 = vld [vmem:[%s20111_s3 + $0x678] sm:$0xff]  }
 0x6f9   :  { %13591 = vmatpush3.bf16.msra.mxu1 %v15257_v10  ;;  %v19581_v61 = vadd.f32 %v13385_v56, %v13384_v48  ;;  %v13387_v54 = vpop.f32.mrb[62].mxu1  ;;  %v15297_v10 = vld [vmem:[%s20111_s3 + $0x638] sm:$0xff]  }
 0x6fa   :  { %v13388_v20 = vpop.f32.mrb[63].mxu1  ;;  %13592 = vmatprep.subr.bf16.mxu1 %v15260_v60  ;;  %v15298_v60 = vld [vmem:[%s20111_s3 + $0x740] sm:$0xff]  }
 0x6fb   :  { %13483 = vmatpush3.bf16.msra.mxu0 %v15259_v26  ;;  %v7774_v14 = vsel %vm6813_vm3, %v19581_v61, -inf }
 0x6fc   :  { %13484 = vmatprep.subr.bf16.mxu0 %v15262_v1 }
 0x6fd   :  { %13593 = vmatpush3.bf16.msra.mxu1 %v15261_v55 }
 0x6fe   :  { %13594 = vmatprep.subr.bf16.mxu1 %v15264_v37 }
 0x6ff   :  { %13485 = vmatpush3.bf16.msra.mxu0 %v15263_v0 }
 0x700   :  { %13486 = vmatprep.subr.bf16.mxu0 %v15266_v4  ;;  %v15299_v4 = vld [vmem:[%s20111_s3 + $0x700] sm:$0xff]  }
 0x701   :  { %13595 = vmatpush3.bf16.msra.mxu1 %v15265_v18 }
 0x702   :  { %13596 = vmatprep.subr.bf16.mxu1 %v15268_v59  ;;  %v15300_v59 = vld [vmem:[%s20111_s3 + $0x748] sm:$0xff]  }
 0x703   :  { %13487 = vmatpush3.bf16.msra.mxu0 %v15267_v12 }
 0x704   :  { %13488 = vmatprep.subr.bf16.mxu0 %v15270_v22  ;;  %v15301_v22 = vld [vmem:[%s20111_s3 + $0x708] sm:$0xff]  }
 0x705   :  { %13597 = vmatpush3.bf16.msra.mxu1 %v15269_v8 }
 0x706   :  { %13598 = vmatprep.subr.bf16.mxu1 %v15272_v30 }
 0x707   :  { %13489 = vmatpush3.bf16.msra.mxu0 %v15271_v36 }
 0x708   :  { %13490 = vmatprep.subr.bf16.mxu0 %v15274_v23  ;;  %v15303_v23 = vld [vmem:[%s20111_s3 + $0x710] sm:$0xff]  }
 0x709   :  { %7775 = vmax.xlane.f32.xlu0 %v7774_v14  ;;  %13599 = vmatpush3.bf16.msra.mxu1 %v15273_v27 }
 0x70a   :  { %13600 = vmatprep.subr.bf16.mxu1 %v15276_v9  ;;  %v15304_v9 = vld [vmem:[%s20111_s3 + $0x758] sm:$0xff]  }
 0x70b   :  { %13491 = vmatpush3.bf16.msra.mxu0 %v15275_v7 }
 0x70c   :  { %13492 = vmatprep.subr.bf16.mxu0 %v15278_v11 }
 0x70d   :  { %13601 = vmatpush3.bf16.msra.mxu1 %v15277_v31  ;;  %v15305_v31 = vld [vmem:[%s20111_s3 + $0x718] sm:$0xff]  }
 0x70e   :  { %13602 = vmatprep.subr.bf16.mxu1 %v15280_v3  ;;  %v15306_v3 = vld [vmem:[%s20111_s3 + $0x760] sm:$0xff]  }
 0x70f   :  { %13493 = vmatpush3.bf16.msra.mxu0 %v15279_v33  ;;  %v15307_v33 = vld [vmem:[%s20111_s3 + $0x720] sm:$0xff]  }
 0x710   :  { %13522 = vmatprep.subr.bf16.mxu0 %v15282_v63  ;;  %v15308_v63 = vld [vmem:[%s20111_s3 + $0x768] sm:$0xff]  }
 0x711   :  { %13603 = vmatpush3.bf16.msra.mxu1 %v15281_v52  ;;  %v15311_v52 = vld [vmem:[%s20111_s3 + $0x730] sm:$0xff]  }
 0x712   :  { %8727 = vmatmul.mubr.bf16.vlgmr.msra.gmra.mrb[68].mxu0 %v8596_v34  ;;  %v15313_v34 = vld [vmem:[%s20111_s3 + $0x738] sm:$0xff]  }
 0x713   :  { %13523 = vmatpush3.bf16.msra.mxu0 %v15283_v62 }
 0x714   :  { %9687 = vmatmul.mubr.bf16.vlgmr.msra.gmra.mrb[80].mxu1 %v9556_v29  ;;  %13524 = vmatprep.subr.bf16.mxu0 %v15284_v5 }
 0x717   :  { %v13428_v44 = vpop.f32.mrb[64].mxu1  ;;  %13525 = vmatpush3.bf16.msra.mxu0 %v15285_v41 }
 0x718   :  { %v13429_v19 = vpop.f32.mrb[65].mxu1  ;;  %13526 = vmatprep.subr.bf16.mxu0 %v15286_v32 }
 0x719   :  { %v19672_v57 = vadd.f32 %v13429_v19, %v13428_v44  ;;  %v13431_v43 = vpop.f32.mrb[66].mxu1 }
 0x71a   :  { %v13432_v38 = vpop.f32.mrb[67].mxu1 }
 0x71b   :  { %13527 = vmatpush3.bf16.msra.mxu0 %v15287_v58 }
 0x71c   :  { %13528 = vmatprep.subr.bf16.mxu0 %v15288_v21 }
 0x71f   :  { %13529 = vmatpush3.bf16.msra.mxu0 %v15289_v50 }
 0x720   :  { %13530 = vmatprep.subr.bf16.mxu0 %v15290_v46 }
 0x723   :  { %13531 = vmatpush3.bf16.msra.mxu0 %v15291_v51 }
 0x724   :  { %13532 = vmatprep.subr.bf16.mxu0 %v15292_v17 }
 0x727   :  { %13533 = vmatpush3.bf16.msra.mxu0 %v15293_v6 }
 0x728   :  { %13534 = vmatprep.subr.bf16.mxu0 %v15294_v47 }
 0x72b   :  { %13535 = vmatpush3.bf16.msra.mxu0 %v15295_v49 }
 0x72c   :  { %13536 = vmatprep.subr.bf16.mxu0 %v15296_v15 }
 0x72f   :  { %13537 = vmatpush3.bf16.msra.mxu0 %v15297_v10 }
 0x730   :  { %13566 = vmatprep.subr.bf16.mxu0 %v15298_v60 }
 0x75a   :  { %v13825_v48 = vpop.permute.xlu1 %13824 }
 0x75b   :  { %v13827_v26 = vunpack.i.h.bf16 %v13825_v48  ;;  %v13826_v56 = vunpack.i.l.bf16 %v13825_v48 }
 0x75c   :  { %v13830_v1 = vpop.permute.xlu0 %13829 }
 0x75d   :  { %v13831_v54 = vunpack.i.l.bf16 %v13830_v1  ;;  %v8945_v55 = vsel %vm2452_vm1, %v19275_v13, %v13827_v26  ;;  %v8946_v20 = vsel %vm2452_vm1, %v19269_v45, %v13826_v56  ;;  %v13832_v62 = vunpack.i.h.bf16 %v13830_v1 }
 0x75e   :  { %v8980_v37 = vpack.c.bf16 %v8945_v55, %v8945_v55  ;;  %v8981_v0 = vpack.c.bf16 %v8946_v20, %v8946_v20  ;;  %v7006_v1 = vsel %vm6813_vm3, %v19413_v40, -inf  ;;  %v7390_v55 = vsel %vm6813_vm3, %v19467_v28, -inf }
 0x75f   :  { %v9330_v18 = vsel %vm2452_vm1, %v19288_v39, %v13831_v54  ;;  %v15302_v39 = vld [vmem:[%s20111_s3 + $0x750] sm:$0xff]   ;;  %v9329_v5 = vsel %vm2452_vm1, %v19282_v25, %v13832_v62 }
 0x760   :  { %9110 = vmatprep.mubr.bf16.mxu0 %v8981_v0  ;;  %v9365_v12 = vpack.c.bf16 %v9330_v18, %v9330_v18  ;;  %v9364_v29 = vpack.c.bf16 %v9329_v5, %v9329_v5 }
 0x761   :  { %9111 = vmatmul.mubr.bf16.vlgmr.msra.gmra.mrb[72].mxu0 %v8980_v37  ;;  %v13362_v13 = vpop.f32.mrb[56].mxu0 }
 0x762   :  { %13567 = vmatpush3.bf16.msra.mxu0 %v15299_v4  ;;  %9494 = vmatprep.mubr.bf16.mxu0 %v9365_v12  ;;  %v13363_v45 = vpop.f32.mrb[57].mxu0 }
 0x763   :  { %v19719_v8 = vadd.f32 %v13363_v45, %v13362_v13  ;;  %v13365_v30 = vpop.f32.mrb[58].mxu0  ;;  %13568 = vmatprep.subr.bf16.mxu0 %v15300_v59 }
 0x764   :  { %v13366_v36 = vpop.f32.mrb[59].mxu0 }
 0x766   :  { %13569 = vmatpush3.bf16.msra.mxu0 %v15301_v22  ;;  %v13472_v27 = vpop.f32.mrb[68].mxu1 }
 0x767   :  { %13570 = vmatprep.subr.bf16.mxu0 %v15302_v39  ;;  %v13473_v14 = vpop.f32.mrb[69].mxu1  ;;  %v8158_v39 = vsel %vm6813_vm3, %v19672_v57, -inf }
 0x768   :  { %v19730_v7 = vadd.f32 %v13473_v14, %v13472_v27  ;;  %v13475_v11 = vpop.f32.mrb[70].mxu1 }
 0x769   :  { %v13476_v2 = vpop.f32.mrb[71].mxu1 }
 0x76a   :  { %13571 = vmatpush3.bf16.msra.mxu0 %v15303_v23  ;;  %v8542_v56 = vsel %vm6813_vm3, %v19730_v7, -inf  ;;  %v7582_v2 = vsel %vm6813_vm3, %v19719_v8, -inf }
 0x76b   :  { %13572 = vmatprep.subr.bf16.mxu0 %v15304_v9 }
 0x76e   :  { %13573 = vmatpush3.bf16.msra.mxu0 %v15305_v31 }
 0x76f   :  { %13574 = vmatprep.subr.bf16.mxu0 %v15306_v3 }
 0x772   :  { %13575 = vmatpush3.bf16.msra.mxu0 %v15307_v33  ;;  %v15314_v33 = vld [vmem:[%s20112_s4 + $0xc0] sm:$0xff]  }
 0x773   :  { %13576 = vmatprep.subr.bf16.mxu0 %v15308_v63  ;;  %v15315_v63 = vld [vmem:[%s20112_s4 + $0x80] sm:$0xff]   ;;  %13632 = vmatprep.subr.bf16.mxu1 %v15314_v33 }
 0x774   :  { %13633 = vmatpush3.bf16.msra.mxu1 %v15315_v63 }
 0x776   :  { %13577 = vmatpush3.bf16.msra.mxu0 %v15309_v53 }
 0x777   :  { %13578 = vmatprep.subr.bf16.mxu0 %v15310_v42 }
 0x77a   :  { %13579 = vmatpush3.bf16.msra.mxu0 %v15311_v52 }
 0x77b   :  { %13580 = vmatprep.subr.bf16.mxu0 %v15312_v35 }
 0x77e   :  { %13581 = vmatpush3.bf16.msra.mxu0 %v15313_v34  ;;  %v15316_v34 = vld [vmem:[%s20112_s4 + $0xc8] sm:$0xff]  }
 0x77f   :  { %13634 = vmatprep.subr.bf16.mxu1 %v15316_v34  ;;  %v15348_v34 = vld [vmem:[%s20112_s4 + $0x48] sm:$0xff]  }
 0x781   :  { %9495 = vmatmul.mubr.bf16.vlgmr.msra.gmra.mrb[76].mxu0 %v9364_v29  ;;  %v15317_v29 = vld [vmem:[%s20112_s4 + $0x88] sm:$0xff]  }
 0x782   :  { %13635 = vmatpush3.bf16.msra.mxu1 %v15317_v29 }
 0x796   :  { %v7776_v31 = vpop.xlane.xlu0 %7775 }
 0x797   :  { %v7777_v3 = vmul.f32 0.5, %v7776_v31 }
 0x799   :  { %v7778_v53 = vsub.f32 %v19581_v61, %v7777_v3 }
 0x7a5   :  { %v13406_v41 = vpop.f32.mrb[60].mxu0 }
 0x7a6   :  { %v13407_v32 = vpop.f32.mrb[61].mxu0  ;;  %v13516_v44 = vpop.f32.mrb[72].mxu1 }
 0x7a7   :  { %v19761_v58 = vadd.f32 %v13407_v32, %v13406_v41  ;;  %v13409_v19 = vpop.f32.mrb[62].mxu0  ;;  %v13517_v21 = vpop.f32.mrb[73].mxu1  ;;  %v12586_v41 = vmul.f32 -1.442695, %v7778_v53 }
 0x7a8   :  { %v19763_v43 = vadd.f32 %v13517_v21, %v13516_v44  ;;  %v13410_v38 = vpop.f32.mrb[63].mxu0  ;;  %v13519_v50 = vpop.f32.mrb[74].mxu1  ;;  %v15318_v44 = vld [vmem:[%s20112_s4 + $0xd0] sm:$0xff]  }
 0x7a9   :  { %v13520_v46 = vpop.f32.mrb[75].mxu1  ;;  %v15319_v21 = vld [vmem:[%s20112_s4 + $0x90] sm:$0xff]   ;;  %15594 = vpow2.f32 %v12586_v41  ;;  %v7966_v38 = vsel %vm6813_vm3, %v19761_v58, -inf  ;;  %13636 = vmatprep.subr.bf16.mxu1 %v15318_v44 }
 0x7aa   :  { %v8926_v54 = vsel %vm6813_vm3, %v19763_v43, -inf  ;;  %13637 = vmatpush3.bf16.msra.mxu1 %v15319_v21  ;;  %v15320_v46 = vld [vmem:[%s20112_s4 + $0xd8] sm:$0xff]   ;;  %v15349_v21 = vld [vmem:[%s20112_s4 + $0x8] sm:$0xff]  }
 0x7ab   :  { %13638 = vmatprep.subr.bf16.mxu1 %v15320_v46 }
 0x7c5   :  { %v13450_v51 = vpop.f32.mrb[64].mxu0 }
 0x7c6   :  { %v13451_v17 = vpop.f32.mrb[65].mxu0 }
 0x7c7   :  { %v19765_v6 = vadd.f32 %v13451_v17, %v13450_v51  ;;  %v13560_v25 = vpop.f32.mrb[76].mxu1  ;;  %v13453_v47 = vpop.f32.mrb[66].mxu0  ;;  %v15321_v51 = vld [vmem:[%s20112_s4 + $0x98] sm:$0xff]   ;;  %v15322_v17 = vld [vmem:[%s20112_s4 + $0xe0] sm:$0xff]  }
 0x7c8   :  { %v13561_v49 = vpop.f32.mrb[77].mxu1  ;;  %v13454_v15 = vpop.f32.mrb[67].mxu0  ;;  %13639 = vmatpush3.bf16.msra.mxu1 %v15321_v51 }
 0x7c9   :  { %v19767_v10 = vadd.f32 %v13561_v49, %v13560_v25  ;;  %v13563_v60 = vpop.f32.mrb[78].mxu1  ;;  %v8350_v47 = vsel %vm6813_vm3, %v19765_v6, -inf  ;;  %v15323_v49 = vld [vmem:[%s20112_s4 + $0xa0] sm:$0xff]   ;;  %13640 = vmatprep.subr.bf16.mxu1 %v15322_v17  ;;  %v15324_v15 = vld [vmem:[%s20112_s4 + $0xe8] sm:$0xff]  }
 0x7ca   :  { %v13564_v48 = vpop.f32.mrb[79].mxu1  ;;  %v15325_v60 = vld [vmem:[%s20112_s4 + $0xa8] sm:$0xff]  }
 0x7cb   :  { %v9310_v26 = vsel %vm6813_vm3, %v19767_v10, -inf  ;;  %v15595_v48 = vpop.eup %15594 }
 0x7cc   :  { %9311 = vmax.xlane.f32.xlu1 %v9310_v26  ;;  %13641 = vmatpush3.bf16.msra.mxu1 %v15323_v49  ;;  %v7782_v26 = vadd.f32 1.0, %v15595_v48 }
 0x7cd   :  { %13642 = vmatprep.subr.bf16.mxu1 %v15324_v15  ;;  %v15354_v15 = vld [vmem:[%s20112_s4 + $0x60] sm:$0xff]  }
 0x7d0   :  { %8543 = vmax.xlane.f32.xlu1 %v8542_v56  ;;  %13643 = vmatpush3.bf16.msra.mxu1 %v15325_v60  ;;  %v15326_v56 = vld [vmem:[%s20112_s4 + $0xf0] sm:$0xff]  }
 0x7d1   :  { %13644 = vmatprep.subr.bf16.mxu1 %v15326_v56  ;;  %v15357_v56 = vld [vmem:[%s20112_s4 + $0x28] sm:$0xff]  }
 0x7d4   :  { %7007 = vmax.xlane.f32.xlu1 %v7006_v1 }
 0x7d8   :  { %8927 = vmax.xlane.f32.xlu1 %v8926_v54  ;;  %v15327_v54 = vld [vmem:[%s20112_s4 + $0xb0] sm:$0xff]  }
 0x7d9   :  { %13645 = vmatpush3.bf16.msra.mxu1 %v15327_v54 }
 0x7dc   :  { %7391 = vmax.xlane.f32.xlu1 %v7390_v55 }
 0x7e5   :  { %v13494_v20 = vpop.f32.mrb[68].mxu0 }
 0x7e6   :  { %v13495_v37 = vpop.f32.mrb[69].mxu0 }
 0x7e7   :  { %v19779_v0 = vadd.f32 %v13495_v37, %v13494_v20  ;;  %v13604_v4 = vpop.f32.mrb[80].mxu1  ;;  %v13497_v18 = vpop.f32.mrb[70].mxu0  ;;  %v15328_v20 = vld [vmem:[%s20112_s4 + $0xf8] sm:$0xff]  }
 0x7e8   :  { %v13605_v59 = vpop.f32.mrb[81].mxu1  ;;  %v13498_v12 = vpop.f32.mrb[71].mxu0  ;;  %v15329_v37 = vld [vmem:[%s20112_s4 + $0xb8] sm:$0xff]   ;;  %13646 = vmatprep.subr.bf16.mxu1 %v15328_v20  ;;  %v15358_v20 = vld [vmem:[%s20112_s4 + $0x70] sm:$0xff]  }
 0x7e9   :  { %v19781_v13 = vadd.f32 %v13605_v59, %v13604_v4  ;;  %v13607_v45 = vpop.f32.mrb[82].mxu1  ;;  %13647 = vmatpush3.bf16.msra.mxu1 %v15329_v37  ;;  %v15330_v4 = vld [vmem:[%s20112_s4 + $0x1c0] sm:$0xff]  }
 0x7ea   :  { %v13608_v22 = vpop.f32.mrb[83].mxu1  ;;  %13676 = vmatprep.subr.bf16.mxu1 %v15330_v4  ;;  %v15359_v4 = vld [vmem:[%s20112_s4 + $0x30] sm:$0xff]  }
 0x7eb   :  { %v9694_v30 = vsel %vm6813_vm3, %v19781_v13, -inf }
 0x7ec   :  { %9695 = vmax.xlane.f32.xlu0 %v9694_v30 }
 0x7f0   :  { %8159 = vmax.xlane.f32.xlu0 %v8158_v39 }
 0x834   :  { %v13538_v36 = vpop.f32.mrb[72].mxu0 }
 0x835   :  { %v13539_v23 = vpop.f32.mrb[73].mxu0 }
 0x836   :  { %v19787_v27 = vadd.f32 %v13539_v23, %v13538_v36  ;;  %v13541_v9 = vpop.f32.mrb[74].mxu0 }
 0x837   :  { %v13542_v14 = vpop.f32.mrb[75].mxu0 }
 0x838   :  { %v9118_v11 = vsel %vm6813_vm3, %v19787_v27, -inf }
 0x839   :  { %9119 = vmax.xlane.f32.xlu0 %v9118_v11 }
 0x83d   :  { %7583 = vmax.xlane.f32.xlu0 %v7582_v2 }
 0x854   :  { %v13582_v42 = vpop.f32.mrb[76].mxu0 }
 0x855   :  { %v13583_v52 = vpop.f32.mrb[77].mxu0 }
 0x856   :  { %v19800_v35 = vadd.f32 %v13583_v52, %v13582_v42  ;;  %v13585_v62 = vpop.f32.mrb[78].mxu0  ;;  %v15346_v52 = vld [vmem:[%s20112_s4 + $0x40] sm:$0xff]  }
 0x857   :  { %v13586_v5 = vpop.f32.mrb[79].mxu0  ;;  %v15347_v62 = vld [vmem:[%s20112_s4] sm:$0xff]   ;;  %13610 = vmatprep.subr.bf16.mxu0 %v15346_v52 }
 0x858   :  { %v9502_v61 = vsel %vm6813_vm3, %v19800_v35, -inf  ;;  %13611 = vmatpush3.bf16.msra.mxu0 %v15347_v62 }
 0x859   :  { %9503 = vmax.xlane.f32.xlu0 %v9502_v61  ;;  %v9312_v32 = vpop.xlane.xlu1 %9311  ;;  %13612 = vmatprep.subr.bf16.mxu0 %v15348_v34 }
 0x85a   :  { %v9313_v19 = vmul.f32 0.5, %v9312_v32 }
 0x85c   :  { %v9314_v50 = vsub.f32 %v19767_v10, %v9313_v19  ;;  %v6814_v10 = vsel %vm6813_vm3, %v19327_v16, -inf  ;;  %13613 = vmatpush3.bf16.msra.mxu0 %v15349_v21 }
 0x85d   :  { %7967 = vmax.xlane.f32.xlu0 %v7966_v38  ;;  %v8544_v42 = vpop.xlane.xlu1 %8543 }
 0x85e   :  { %v12978_v25 = vmul.f32 -1.442695, %v9314_v50  ;;  %v8545_v41 = vmul.f32 0.5, %v8544_v42 }
 0x860   :  { %15596 = vpow2.f32 %v12978_v25  ;;  %v8546_v38 = vsub.f32 %v19730_v7, %v8545_v41  ;;  %v15350_v25 = vld [vmem:[%s20112_s4 + $0x50] sm:$0xff]  }
 0x861   :  { %8351 = vmax.xlane.f32.xlu0 %v8350_v47  ;;  %15598 = vrcp.f32 %v7782_v26  ;;  %v7008_v5 = vpop.xlane.xlu1 %7007  ;;  %13614 = vmatprep.subr.bf16.mxu0 %v15350_v25  ;;  %v15356_v26 = vld [vmem:[%s20112_s4 + $0x68] sm:$0xff]  }
 0x862   :  { %v7009_v32 = vmul.f32 0.5, %v7008_v5  ;;  %v12782_v47 = vmul.f32 -1.442695, %v8546_v38  ;;  %v15334_v38 = vld [vmem:[%s20112_s4 + $0x1d0] sm:$0xff]  }
 0x864   :  { %v7010_v51 = vsub.f32 %v19413_v40, %v7009_v32  ;;  %v15352_v40 = vld [vmem:[%s20112_s4 + $0x58] sm:$0xff]  }
 0x865   :  { %6815 = vmax.xlane.f32.xlu0 %v6814_v10  ;;  %v15355_v10 = vld [vmem:[%s20112_s4 + $0x20] sm:$0xff]  }
 0x866   :  { %v12390_v7 = vmul.f32 -1.442695, %v7010_v51  ;;  %v15335_v51 = vld [vmem:[%s20112_s4 + $0x190] sm:$0xff]  }
 0x86a   :  { %v15597_v1 = vpop.eup %15596 }
 0x86b   :  { %v9318_v55 = vadd.f32 1.0, %v15597_v1  ;;  %v15599_v18 = vpop.eup %15598 }
 0x86d   :  { %15600 = vrcp.f32 %v9318_v55 }
 0x877   :  { %v15601_v59 = vpop.eup %15600 }
 0x878   :  { %v13833_v12 = vpack.i.bf16 %v15599_v18, %v15601_v59 }
 0x879   :  { %v9696_v45 = vpop.xlane.xlu0 %9695 }
 0x87a   :  { %v9697_v22 = vmul.f32 0.5, %v9696_v45  ;;  %13834 = vrot.lane.b32.xlu1 %v13833_v12, %s15702_s16  ;;  %v15360_v12 = vld [vmem:[%s20112_s4 + $0x78] sm:$0xff]  }
 0x87b   :  { %v15361_v45 = vld [vmem:[%s20112_s4 + $0x38] sm:$0xff]  }
 0x87c   :  { %v9698_v30 = vsub.f32 %v19781_v13, %v9697_v22  ;;  %v8734_v13 = vsel %vm6813_vm3, %v19779_v0, -inf  ;;  %v8928_v22 = vpop.xlane.xlu1 %8927 }
 0x87d   :  { %v8160_v39 = vpop.xlane.xlu0 %8159 }
 0x87e   :  { %v13076_v36 = vmul.f32 -1.442695, %v9698_v30  ;;  %v8161_v23 = vmul.f32 0.5, %v8160_v39  ;;  %v15362_v30 = vld [vmem:[%s20112_s4 + $0x140] sm:$0xff]  }
 0x880   :  { %15602 = vpow2.f32 %v13076_v36  ;;  %v8162_v9 = vsub.f32 %v19672_v57, %v8161_v23  ;;  %v7198_v57 = vsel %vm6813_vm3, %v19459_v24, -inf }
 0x882   :  { %v12684_v14 = vmul.f32 -1.442695, %v8162_v9 }
 0x884   :  { %15604 = vpow2.f32 %v12684_v14  ;;  %v7392_v14 = vpop.xlane.xlu1 %7391 }
 0x88a   :  { %v15603_v11 = vpop.eup %15602 }
 0x88b   :  { %v9702_v2 = vadd.f32 1.0, %v15603_v11 }
 0x88d   :  { %15606 = vrcp.f32 %v9702_v2 }
 0x88e   :  { %v15605_v31 = vpop.eup %15604 }
 0x88f   :  { %v8166_v3 = vadd.f32 1.0, %v15605_v31 }
 0x891   :  { %15608 = vrcp.f32 %v8166_v3  ;;  %v8929_v3 = vmul.f32 0.5, %v8928_v22 }
 0x893   :  { %v8930_v5 = vsub.f32 %v19763_v43, %v8929_v3 }
 0x895   :  { %v12880_v21 = vmul.f32 -1.442695, %v8930_v5 }
 0x897   :  { %v15607_v33 = vpop.eup %15606 }
 0x89b   :  { %v15609_v63 = vpop.eup %15608 }
 0x89c   :  { %v13838_v53 = vpack.i.bf16 %v15609_v63, %v15607_v33 }
 0x89e   :  { %8735 = vmax.xlane.f32.xlu1 %v8734_v13  ;;  %13839 = vrot.lane.b32.xlu0 %v13838_v53, %s15702_s16  ;;  %v7393_v53 = vmul.f32 0.5, %v7392_v14 }
 0x8bd   :  { %7199 = vmax.xlane.f32.xlu0 %v7198_v57 }
 0x8c6   :  { %v9120_v29 = vpop.xlane.xlu0 %9119 }
 0x8c7   :  { %v9121_v61 = vmul.f32 0.5, %v9120_v29 }
 0x8c9   :  { %v9122_v44 = vsub.f32 %v19787_v27, %v9121_v61  ;;  %v15351_v27 = vld [vmem:[%s20112_s4 + $0x10] sm:$0xff]  }
 0x8ca   :  { %v7584_v19 = vpop.xlane.xlu0 %7583  ;;  %13615 = vmatpush3.bf16.msra.mxu0 %v15351_v27 }
 0x8cb   :  { %v12929_v50 = vmul.f32 -1.442695, %v9122_v44  ;;  %v7585_v46 = vmul.f32 0.5, %v7584_v19  ;;  %13616 = vmatprep.subr.bf16.mxu0 %v15352_v40  ;;  %v15332_v19 = vld [vmem:[%s20112_s4 + $0x1c8] sm:$0xff]   ;;  %v15339_v40 = vld [vmem:[%s20112_s4 + $0x1a0] sm:$0xff]  }
 0x8cd   :  { %15610 = vpow2.f32 %v12929_v50  ;;  %v7586_v17 = vsub.f32 %v19719_v8, %v7585_v46  ;;  %v15353_v8 = vld [vmem:[%s20112_s4 + $0x18] sm:$0xff]  }
 0x8ce   :  { %13617 = vmatpush3.bf16.msra.mxu0 %v15353_v8 }
 0x8cf   :  { %v12537_v49 = vmul.f32 -1.442695, %v7586_v17  ;;  %13618 = vmatprep.subr.bf16.mxu0 %v15354_v15  ;;  %v15336_v17 = vld [vmem:[%s20112_s4 + $0x1d8] sm:$0xff]   ;;  %v15340_v15 = vld [vmem:[%s20112_s4 + $0x1e8] sm:$0xff]  }
 0x8d1   :  { %15612 = vpow2.f32 %v12537_v49  ;;  %v15338_v49 = vld [vmem:[%s20112_s4 + $0x1e0] sm:$0xff]  }
 0x8d2   :  { %15614 = vpow2.f32 %v12782_v47  ;;  %13619 = vmatpush3.bf16.msra.mxu0 %v15355_v10  ;;  %v15337_v47 = vld [vmem:[%s20112_s4 + $0x198] sm:$0xff]  }
 0x8d3   :  { %15616 = vpow2.f32 %v12390_v7  ;;  %13620 = vmatprep.subr.bf16.mxu0 %v15356_v26  ;;  %v15342_v26 = vld [vmem:[%s20112_s4 + $0x1f0] sm:$0xff]  }
 0x8d6   :  { %13621 = vmatpush3.bf16.msra.mxu0 %v15357_v56 }
 0x8d7   :  { %v15611_v60 = vpop.eup %15610  ;;  %13622 = vmatprep.subr.bf16.mxu0 %v15358_v20  ;;  %v15343_v20 = vld [vmem:[%s20112_s4 + $0x1b0] sm:$0xff]  }
 0x8d8   :  { %v9126_v48 = vadd.f32 1.0, %v15611_v60 }
 0x8da   :  { %15618 = vrcp.f32 %v9126_v48  ;;  %13623 = vmatpush3.bf16.msra.mxu0 %v15359_v4  ;;  %v15341_v48 = vld [vmem:[%s20112_s4 + $0x1a8] sm:$0xff]  }
 0x8db   :  { %v15613_v1 = vpop.eup %15612  ;;  %13624 = vmatprep.subr.bf16.mxu0 %v15360_v12 }
 0x8dc   :  { %v7590_v54 = vadd.f32 1.0, %v15613_v1  ;;  %v15615_v55 = vpop.eup %15614 }
 0x8dd   :  { %v15617_v37 = vpop.eup %15616  ;;  %v8550_v18 = vadd.f32 1.0, %v15615_v55 }
 0x8de   :  { %15620 = vrcp.f32 %v7590_v54  ;;  %v7014_v59 = vadd.f32 1.0, %v15617_v37  ;;  %13625 = vmatpush3.bf16.msra.mxu0 %v15361_v45  ;;  %v15344_v37 = vld [vmem:[%s20112_s4 + $0x1f8] sm:$0xff]  }
 0x8df   :  { %15622 = vrcp.f32 %v8550_v18  ;;  %13654 = vmatprep.subr.bf16.mxu0 %v15362_v30  ;;  %v15345_v18 = vld [vmem:[%s20112_s4 + $0x1b8] sm:$0xff]  }
 0x8e0   :  { %15624 = vrcp.f32 %v7014_v59 }
 0x8e4   :  { %v15619_v36 = vpop.eup %15618 }
 0x8e6   :  { %v9504_v39 = vpop.xlane.xlu0 %9503 }
 0x8e7   :  { %v9505_v23 = vmul.f32 0.5, %v9504_v39 }
 0x8e8   :  { %v15621_v9 = vpop.eup %15620 }
 0x8e9   :  { %v9506_v11 = vsub.f32 %v19800_v35, %v9505_v23  ;;  %v13843_v2 = vpack.i.bf16 %v15621_v9, %v15619_v36  ;;  %v15623_v42 = vpop.eup %15622  ;;  %v7394_v35 = vsub.f32 %v19467_v28, %v7393_v53  ;;  %v15333_v28 = vld [vmem:[%s20112_s4 + $0x188] sm:$0xff]  }
 0x8ea   :  { %v7968_v31 = vpop.xlane.xlu0 %7967  ;;  %v15625_v34 = vpop.eup %15624 }
 0x8eb   :  { %v13027_v33 = vmul.f32 -1.442695, %v9506_v11  ;;  %v7969_v63 = vmul.f32 0.5, %v7968_v31  ;;  %13844 = vrot.lane.b32.xlu1 %v13843_v2, %s15702_s16  ;;  %v12488_v43 = vmul.f32 -1.442695, %v7394_v35 }
 0x8ec   :  { %v13835_v13 = vpop.permute.xlu1 %13834 }
 0x8ed   :  { %15626 = vpow2.f32 %v13027_v33  ;;  %v7970_v57 = vsub.f32 %v19761_v58, %v7969_v63  ;;  %v13837_v52 = vunpack.i.h.bf16 %v13835_v13  ;;  %v13836_v62 = vunpack.i.l.bf16 %v13835_v13  ;;  %v15331_v58 = vld [vmem:[%s20112_s4 + $0x180] sm:$0xff]  }
 0x8ee   :  { %v8352_v1 = vpop.xlane.xlu0 %8351 }
 0x8ef   :  { %v12635_v29 = vmul.f32 -1.442695, %v7970_v57  ;;  %v9904_v41 = vsel %vm2452_vm1, %v15625_v34, %v13837_v52  ;;  %v9905_v61 = vsel %vm2452_vm1, %v15623_v42, %v13836_v62  ;;  %v8353_v14 = vmul.f32 0.5, %v8352_v1 }
 0x8f0   :  { %v9939_v32 = vpack.c.bf16 %v9904_v41, %v9904_v41  ;;  %v9940_v44 = vpack.c.bf16 %v9905_v61, %v9905_v61 }
 0x8f1   :  { %15628 = vpow2.f32 %v12635_v29  ;;  %v8354_v2 = vsub.f32 %v19765_v6, %v8353_v14 }
 0x8f2   :  { %10069 = vmatprep.mubr.bf16.mxu1 %v9940_v44  ;;  %15630 = vpow2.f32 %v12880_v21  ;;  %v6816_v4 = vpop.xlane.xlu0 %6815 }
 0x8f3   :  { %10070 = vmatmul.mubr.bf16.vlgmr.msra.gmra.mrb[84].mxu1 %v9939_v32  ;;  %15632 = vpow2.f32 %v12488_v43  ;;  %v6817_v11 = vmul.f32 0.5, %v6816_v4  ;;  %v12733_v3 = vmul.f32 -1.442695, %v8354_v2 }
 0x8f4   :  { %13677 = vmatpush3.bf16.msra.mxu1 %v15331_v58 }
 0x8f5   :  { %13678 = vmatprep.subr.bf16.mxu1 %v15332_v19  ;;  %v6818_v31 = vsub.f32 %v19327_v16, %v6817_v11 }
 0x8f7   :  { %v15627_v50 = vpop.eup %15626  ;;  %v12341_v33 = vmul.f32 -1.442695, %v6818_v31 }
 0x8f8   :  { %v9510_v46 = vadd.f32 1.0, %v15627_v50  ;;  %13679 = vmatpush3.bf16.msra.mxu1 %v15333_v28  ;;  %v15363_v28 = vld [vmem:[%s20112_s4 + $0x100] sm:$0xff]   ;;  %v15367_v50 = vld [vmem:[%s20112_s4 + $0x110] sm:$0xff]  }
 0x8f9   :  { %13680 = vmatprep.subr.bf16.mxu1 %v15334_v38  ;;  %v15366_v38 = vld [vmem:[%s20112_s4 + $0x150] sm:$0xff]  }
 0x8fa   :  { %15634 = vrcp.f32 %v9510_v46  ;;  %v15368_v46 = vld [vmem:[%s20112_s4 + $0x158] sm:$0xff]  }
 0x8fb   :  { %v15629_v25 = vpop.eup %15628 }
 0x8fc   :  { %v7974_v27 = vadd.f32 1.0, %v15629_v25  ;;  %13681 = vmatpush3.bf16.msra.mxu1 %v15335_v51  ;;  %v15631_v7 = vpop.eup %15630 }
 0x8fd   :  { %13682 = vmatprep.subr.bf16.mxu1 %v15336_v17  ;;  %v15633_v8 = vpop.eup %15632  ;;  %v8934_v10 = vadd.f32 1.0, %v15631_v7  ;;  %v15369_v17 = vld [vmem:[%s20112_s4 + $0x118] sm:$0xff]   ;;  %v15371_v7 = vld [vmem:[%s20112_s4 + $0x120] sm:$0xff]  }
 0x8fe   :  { %15636 = vrcp.f32 %v7974_v27  ;;  %v7398_v60 = vadd.f32 1.0, %v15633_v8  ;;  %v15370_v27 = vld [vmem:[%s20112_s4 + $0x160] sm:$0xff]   ;;  %v15373_v8 = vld [vmem:[%s20112_s4 + $0x128] sm:$0xff]  }
 0x8ff   :  { %15638 = vrcp.f32 %v8934_v10  ;;  %v15375_v10 = vld [vmem:[%s20112_s4 + $0x130] sm:$0xff]  }
 0x900   :  { %13683 = vmatpush3.bf16.msra.mxu1 %v15337_v47  ;;  %15640 = vrcp.f32 %v7398_v60  ;;  %v15376_v60 = vld [vmem:[%s20112_s4 + $0x178] sm:$0xff]  }
 0x901   :  { %13684 = vmatprep.subr.bf16.mxu1 %v15338_v49  ;;  %15642 = vpow2.f32 %v12733_v3 }
 0x902   :  { %15644 = vpow2.f32 %v12341_v33 }
 0x904   :  { %13685 = vmatpush3.bf16.msra.mxu1 %v15339_v40  ;;  %v15635_v56 = vpop.eup %15634  ;;  %v15372_v40 = vld [vmem:[%s20112_s4 + $0x168] sm:$0xff]  }
 0x905   :  { %13686 = vmatprep.subr.bf16.mxu1 %v15340_v15  ;;  %v15374_v15 = vld [vmem:[%s20112_s4 + $0x170] sm:$0xff]  }
 0x908   :  { %v15637_v54 = vpop.eup %15636  ;;  %13687 = vmatpush3.bf16.msra.mxu1 %v15341_v48 }
 0x909   :  { %v13848_v55 = vpack.i.bf16 %v15637_v54, %v15635_v56  ;;  %13688 = vmatprep.subr.bf16.mxu1 %v15342_v26  ;;  %v15639_v12 = vpop.eup %15638  ;;  %v15377_v26 = vld [vmem:[%s20112_s4 + $0x138] sm:$0xff]  }
 0x90a   :  { %v15641_v30 = vpop.eup %15640 }
 0x90b   :  { %13849 = vrot.lane.b32.xlu0 %v13848_v55, %s15702_s16  ;;  %v15643_v63 = vpop.eup %15642 }
 0x90c   :  { %13689 = vmatpush3.bf16.msra.mxu1 %v15343_v20  ;;  %v15645_v53 = vpop.eup %15644  ;;  %v8358_v13 = vadd.f32 1.0, %v15643_v63 }
 0x90d   :  { %13690 = vmatprep.subr.bf16.mxu1 %v15344_v37  ;;  %v6822_v57 = vadd.f32 1.0, %v15645_v53 }
 0x90e   :  { %15646 = vrcp.f32 %v8358_v13 }
 0x90f   :  { %15648 = vrcp.f32 %v6822_v57 }
 0x910   :  { %v13840_v59 = vpop.permute.xlu0 %13839  ;;  %13691 = vmatpush3.bf16.msra.mxu1 %v15345_v18 }
 0x911   :  { %v13842_v45 = vunpack.i.h.bf16 %v13840_v59  ;;  %v13841_v22 = vunpack.i.l.bf16 %v13840_v59 }
 0x913   :  { %v10288_v39 = vsel %vm2452_vm1, %v15641_v30, %v13842_v45  ;;  %v10289_v36 = vsel %vm2452_vm1, %v15639_v12, %v13841_v22 }
 0x914   :  { %v10323_v23 = vpack.c.bf16 %v10288_v39, %v10288_v39  ;;  %v10324_v9 = vpack.c.bf16 %v10289_v36, %v10289_v36 }
 0x916   :  { %10453 = vmatprep.mubr.bf16.mxu1 %v10324_v9 }
 0x917   :  { %10454 = vmatmul.mubr.bf16.vlgmr.msra.gmra.mrb[88].mxu1 %v10323_v23 }
 0x918   :  { %v15647_v16 = vpop.eup %15646 }
 0x919   :  { %v15649_v61 = vpop.eup %15648 }
 0x92b   :  { %v8736_v42 = vpop.xlane.xlu1 %8735 }
 0x92c   :  { %v8737_v62 = vmul.f32 0.5, %v8736_v42 }
 0x92e   :  { %v8738_v5 = vsub.f32 %v19779_v0, %v8737_v62  ;;  %v15365_v0 = vld [vmem:[%s20112_s4 + $0x108] sm:$0xff]  }
 0x930   :  { %v12831_v32 = vmul.f32 -1.442695, %v8738_v5 }
 0x932   :  { %15650 = vpow2.f32 %v12831_v32  ;;  %v15381_v32 = vld [vmem:[%s20113_s5 + $0x8] sm:$0xff]  }
 0x93c   :  { %v15651_v51 = vpop.eup %15650 }
 0x93d   :  { %v8742_v47 = vadd.f32 1.0, %v15651_v51  ;;  %v15388_v51 = vld [vmem:[%s20113_s5 + $0x68] sm:$0xff]  }
 0x94a   :  { %v7200_v52 = vpop.xlane.xlu0 %7199 }
 0x94b   :  { %v7201_v34 = vmul.f32 0.5, %v7200_v52 }
 0x94d   :  { %v7202_v6 = vsub.f32 %v19459_v24, %v7201_v34  ;;  %v15364_v24 = vld [vmem:[%s20112_s4 + $0x148] sm:$0xff]  }
 0x94f   :  { %v12439_v44 = vmul.f32 -1.442695, %v7202_v6 }
 0x951   :  { %15652 = vpow2.f32 %v12439_v44 }
 0x952   :  { %15654 = vrcp.f32 %v8742_v47 }
 0x95b   :  { %v15653_v25 = vpop.eup %15652 }
 0x95c   :  { %v7206_v49 = vadd.f32 1.0, %v15653_v25  ;;  %v15655_v56 = vpop.eup %15654 }
 0x95d   :  { %v13845_v29 = vpop.permute.xlu1 %13844 }
 0x95e   :  { %v13847_v35 = vunpack.i.h.bf16 %v13845_v29  ;;  %v13846_v41 = vunpack.i.l.bf16 %v13845_v29  ;;  %15656 = vrcp.f32 %v7206_v49  ;;  %v15391_v49 = vld [vmem:[%s20113_s5 + $0x30] sm:$0xff]  }
 0x960   :  { %v9713_v58 = vsel %vm2452_vm1, %v15649_v61, %v13847_v35  ;;  %v9714_v19 = vsel %vm2452_vm1, %v15647_v16, %v13846_v41  ;;  %v15378_v16 = vld [vmem:[%s20113_s5 + $0x40] sm:$0xff]   ;;  %v15380_v61 = vld [vmem:[%s20113_s5 + $0x48] sm:$0xff]  }
 0x961   :  { %v9747_v21 = vpack.c.bf16 %v9713_v58, %v9713_v58  ;;  %v9748_v43 = vpack.c.bf16 %v9714_v19, %v9714_v19  ;;  %v15379_v35 = vld [vmem:[%s20113_s5] sm:$0xff]   ;;  %v15382_v19 = vld [vmem:[%s20113_s5 + $0x50] sm:$0xff]  }
 0x963   :  { %9877 = vmatprep.mubr.bf16.mxu0 %v9748_v43  ;;  %v15383_v43 = vld [vmem:[%s20113_s5 + $0x10] sm:$0xff]  }
 0x964   :  { %9878 = vmatmul.mubr.bf16.vlgmr.msra.gmra.mrb[80].mxu0 %v9747_v21 }
 0x965   :  { %13655 = vmatpush3.bf16.msra.mxu0 %v15363_v28 }
 0x966   :  { %13656 = vmatprep.subr.bf16.mxu0 %v15364_v24  ;;  %v15384_v24 = vld [vmem:[%s20113_s5 + $0x58] sm:$0xff]  }
 0x968   :  { %v15657_v55 = vpop.eup %15656 }
 0x969   :  { %13657 = vmatpush3.bf16.msra.mxu0 %v15365_v0  ;;  %v15385_v0 = vld [vmem:[%s20113_s5 + $0x18] sm:$0xff]  }
 0x96a   :  { %13658 = vmatprep.subr.bf16.mxu0 %v15366_v38  ;;  %v15386_v38 = vld [vmem:[%s20113_s5 + $0x60] sm:$0xff]  }
 0x96d   :  { %13659 = vmatpush3.bf16.msra.mxu0 %v15367_v50 }
 0x96e   :  { %13660 = vmatprep.subr.bf16.mxu0 %v15368_v46  ;;  %v15387_v46 = vld [vmem:[%s20113_s5 + $0x20] sm:$0xff]  }
 0x971   :  { %13661 = vmatpush3.bf16.msra.mxu0 %v15369_v17  ;;  %v15389_v17 = vld [vmem:[%s20113_s5 + $0x28] sm:$0xff]  }
 0x972   :  { %13662 = vmatprep.subr.bf16.mxu0 %v15370_v27  ;;  %v15390_v27 = vld [vmem:[%s20113_s5 + $0x70] sm:$0xff]  }
 0x975   :  { %13663 = vmatpush3.bf16.msra.mxu0 %v15371_v7 }
 0x976   :  { %13664 = vmatprep.subr.bf16.mxu0 %v15372_v40 }
 0x979   :  { %13665 = vmatpush3.bf16.msra.mxu0 %v15373_v8  ;;  %v15392_v8 = vld [vmem:[%s20113_s5 + $0x78] sm:$0xff]  }
 0x97a   :  { %13666 = vmatprep.subr.bf16.mxu0 %v15374_v15  ;;  %v15393_v15 = vld [vmem:[%s20113_s5 + $0x38] sm:$0xff]  }
 0x97d   :  { %13667 = vmatpush3.bf16.msra.mxu0 %v15375_v10  ;;  %v13850_v48 = vpop.permute.xlu0 %13849 }
 0x97e   :  { %v13852_v1 = vunpack.i.h.bf16 %v13850_v48  ;;  %v13851_v54 = vunpack.i.l.bf16 %v13850_v48  ;;  %13668 = vmatprep.subr.bf16.mxu0 %v15376_v60 }
 0x980   :  { %v10096_v20 = vsel %vm2452_vm1, %v15657_v55, %v13852_v1  ;;  %v10097_v37 = vsel %vm2452_vm1, %v15655_v56, %v13851_v54 }
 0x981   :  { %v10131_v4 = vpack.c.bf16 %v10096_v20, %v10096_v20  ;;  %13669 = vmatpush3.bf16.msra.mxu0 %v15377_v26  ;;  %v10132_v18 = vpack.c.bf16 %v10097_v37, %v10097_v37 }
 0x982   :  { %13698 = vmatprep.subr.bf16.mxu0 %v15378_v16 }
 0x983   :  { %10261 = vmatprep.mubr.bf16.mxu0 %v10132_v18 }
 0x984   :  { %10262 = vmatmul.mubr.bf16.vlgmr.msra.gmra.mrb[84].mxu0 %v10131_v4 }
 0x985   :  { %13699 = vmatpush3.bf16.msra.mxu0 %v15379_v35 }
 0x986   :  { %13700 = vmatprep.subr.bf16.mxu0 %v15380_v61 }
 0x989   :  { %13701 = vmatpush3.bf16.msra.mxu0 %v15381_v32 }
 0x98a   :  { %13702 = vmatprep.subr.bf16.mxu0 %v15382_v19 }
 0x98d   :  { %13703 = vmatpush3.bf16.msra.mxu0 %v15383_v43 }
 0x98e   :  { %13704 = vmatprep.subr.bf16.mxu0 %v15384_v24 }
 0x991   :  { %13705 = vmatpush3.bf16.msra.mxu0 %v15385_v0 }
 0x992   :  { %13706 = vmatprep.subr.bf16.mxu0 %v15386_v38 }
 0x995   :  { %13707 = vmatpush3.bf16.msra.mxu0 %v15387_v46 }
 0x996   :  { %13708 = vmatprep.subr.bf16.mxu0 %v15388_v51 }
 0x999   :  { %13709 = vmatpush3.bf16.msra.mxu0 %v15389_v17 }
 0x99a   :  { %13710 = vmatprep.subr.bf16.mxu0 %v15390_v27 }
 0x99d   :  { %13711 = vmatpush3.bf16.msra.mxu0 %v15391_v49 }
 0x99e   :  { %13712 = vmatprep.subr.bf16.mxu0 %v15392_v8 }
 0x9a1   :  { %13713 = vmatpush3.bf16.msra.mxu0 %v15393_v15 }
 0x9c6   :  { %v13648_v59 = vpop.f32.mrb[84].mxu1 }
 0x9c7   :  { %v13649_v12 = vpop.f32.mrb[85].mxu1 }
 0x9c8   :  { %v13650_v45 = vadd.f32 %v13649_v12, %v13648_v59  ;;  %v13651_v22 = vpop.f32.mrb[86].mxu1 }
 0x9c9   :  { %v13652_v30 = vpop.f32.mrb[87].mxu1 }
 0x9ca   :  { %v10077_v39 = vsel %vm6813_vm3, %v13650_v45, -inf }
 0x9cb   :  { %10078 = vmax.xlane.f32.xlu0 %v10077_v39 }
 0x9ea   :  { %v13692_v36 = vpop.f32.mrb[88].mxu1 }
 0x9eb   :  { %v13693_v23 = vpop.f32.mrb[89].mxu1 }
 0x9ec   :  { %v13694_v9 = vadd.f32 %v13693_v23, %v13692_v36  ;;  %v13695_v14 = vpop.f32.mrb[90].mxu1 }
 0x9ed   :  { %v13696_v11 = vpop.f32.mrb[91].mxu1 }
 0x9ee   :  { %v10461_v2 = vsel %vm6813_vm3, %v13694_v9, -inf }
 0x9ef   :  { %10462 = vmax.xlane.f32.xlu1 %v10461_v2 }
 0xa37   :  { %v13626_v31 = vpop.f32.mrb[80].mxu0 }
 0xa38   :  { %v13627_v3 = vpop.f32.mrb[81].mxu0 }
 0xa39   :  { %v20029_v33 = vadd.f32 %v13627_v3, %v13626_v31  ;;  %v13629_v63 = vpop.f32.mrb[82].mxu0 }
 0xa3a   :  { %v13630_v53 = vpop.f32.mrb[83].mxu0 }
 0xa3b   :  { %v9885_v5 = vsel %vm6813_vm3, %v20029_v33, -inf }
 0xa57   :  { %v13670_v13 = vpop.f32.mrb[84].mxu0 }
 0xa58   :  { %v13671_v57 = vpop.f32.mrb[85].mxu0  ;;  %v10079_v6 = vpop.xlane.xlu0 %10078 }
 0xa59   :  { %v20031_v42 = vadd.f32 %v13671_v57, %v13670_v13  ;;  %v13673_v52 = vpop.f32.mrb[86].mxu0  ;;  %v10080_v29 = vmul.f32 0.5, %v10079_v6 }
 0xa5a   :  { %v13674_v62 = vpop.f32.mrb[87].mxu0 }
 0xa5b   :  { %v10269_v34 = vsel %vm6813_vm3, %v20031_v42, -inf  ;;  %v10081_v41 = vsub.f32 %v13650_v45, %v10080_v29 }
 0xa5c   :  { %10270 = vmax.xlane.f32.xlu1 %v10269_v34 }
 0xa5d   :  { %v13142_v44 = vmul.f32 -1.442695, %v10081_v41 }
 0xa5f   :  { %15658 = vpow2.f32 %v13142_v44 }
 0xa60   :  { %9886 = vmax.xlane.f32.xlu1 %v9885_v5 }
 0xa69   :  { %v15659_v25 = vpop.eup %15658 }
 0xa6a   :  { %v10085_v47 = vadd.f32 1.0, %v15659_v25 }
 0xa7c   :  { %v10463_v58 = vpop.xlane.xlu1 %10462 }
 0xa7d   :  { %v10464_v21 = vmul.f32 0.5, %v10463_v58 }
 0xa7f   :  { %v10465_v28 = vsub.f32 %v13694_v9, %v10464_v21 }
 0xa81   :  { %v13240_v50 = vmul.f32 -1.442695, %v10465_v28 }
 0xa83   :  { %15660 = vpow2.f32 %v13240_v50 }
 0xa84   :  { %15662 = vrcp.f32 %v10085_v47 }
 0xa8d   :  { %v15661_v7 = vpop.eup %15660 }
 0xa8e   :  { %v10469_v40 = vadd.f32 1.0, %v15661_v7  ;;  %v15663_v10 = vpop.eup %15662 }
 0xa90   :  { %15664 = vrcp.f32 %v10469_v40 }
 0xa9a   :  { %v15665_v60 = vpop.eup %15664 }
 0xa9b   :  { %v13853_v48 = vpack.i.bf16 %v15665_v60, %v15663_v10 }
 0xa9d   :  { %13854 = vrot.lane.b32.xlu1 %v13853_v48, %s15702_s16 }
 0xae9   :  { %v10271_v26 = vpop.xlane.xlu1 %10270 }
 0xaea   :  { %v10272_v56 = vmul.f32 0.5, %v10271_v26 }
 0xaec   :  { %v10273_v54 = vsub.f32 %v20031_v42, %v10272_v56 }
 0xaed   :  { %v9887_v1 = vpop.xlane.xlu1 %9886 }
 0xaee   :  { %v9888_v55 = vmul.f32 0.5, %v9887_v1  ;;  %v13191_v37 = vmul.f32 -1.442695, %v10273_v54 }
 0xaf0   :  { %v9889_v20 = vsub.f32 %v20029_v33, %v9888_v55  ;;  %15666 = vpow2.f32 %v13191_v37  ;;  %v13241_v33 = vld [vmem:[%s20114_s6] ss:$0 sm:$0xff]  ;;  %s10678_s6 = sshll.u32 %s15704_s18, 4  ;;  %s10679_s6 = int_to_ptr.vmem [resolvable:$true] %s10678_s6 }
 0xaf1   :  { %s15678_s19 = scalar_lea.vmem %s10679_s6, 32  ;;  %p15683_p1 = scmp.lt.s32.totalorder %s10679_s6, %s10679_s6 }
 0xaf2   :  { %v13093_v4 = vmul.f32 -1.442695, %v9889_v20  ;;  %p15679_p0 = scmp.ne.s32.totalorder %s10679_s6, %s15678_s19  ;;  %p15684_p2 = scmp.lt.s32.totalorder %s15678_s19, %s15678_s19 }
 0xaf4   :  { %15668 = vpow2.f32 %v13093_v4  ;;  %p15685_p3 = por %p15684_p2, %p15683_p1 }
 0xaf6   :  { %p15686_p4 = pnand %p15685_p3, %p15679_p0 }
 0xafa   :  { %v15667_v18 = vpop.eup %15666 }
 0xafb   :  { %v10277_v12 = vadd.f32 1.0, %v15667_v18 }
 0xafd   :  { %15670 = vrcp.f32 %v10277_v12 }
 0xafe   :  { %v15669_v59 = vpop.eup %15668 }
 0xaff   :  { %v9893_v45 = vadd.f32 1.0, %v15669_v59 }
 0xb01   :  { %15672 = vrcp.f32 %v9893_v45 }
 0xb07   :  { %v15671_v30 = vpop.eup %15670 }
 0xb0b   :  { %v15673_v23 = vpop.eup %15672 }
 0xb0f   :  { %v13855_v22 = vpop.permute.xlu1 %13854 }
 0xb10   :  { %v13857_v39 = vunpack.i.h.bf16 %v13855_v22  ;;  %v13856_v36 = vunpack.i.l.bf16 %v13855_v22 }
 0xb12   :  { %v10480_v9 = vsel %vm2452_vm1, %v15673_v23, %v13856_v36  ;;  %v10481_v14 = vsel %vm2452_vm1, %v15671_v30, %v13857_v39 }
 0xb13   :  { %v10482_v11 = vpack.c.bf16 %v10480_v9, %v10480_v9  ;;  %v10483_v2 = vpack.c.bf16 %v10481_v14, %v10481_v14 }
 0xb15   :  { %10651 = vmatprep.mubr.bf16.mxu0 %v10483_v2 }
 0xb16   :  { %10652 = vmatmul.mubr.bf16.vlgmr.msra.gmra.mrb[88].mxu0 %v10482_v11 }
 0xbe9   :  { %v13714_v31 = vpop.f32.mrb[88].mxu0 }
 0xbea   :  { %v13715_v3 = vpop.f32.mrb[89].mxu0 }
 0xbeb   :  { %v13716_v63 = vadd.f32 %v13715_v3, %v13714_v31  ;;  %v13717_v53 = vpop.f32.mrb[90].mxu0 }
 0xbec   :  { %v13718_v13 = vpop.f32.mrb[91].mxu0 }
 0xbed   :  { %v10654_v57 = vadd.f32 %v13716_v63, %v13241_v33 }
 0xbef   :  { %v10660_v42 = vsel %vm10659_vm4, %v10654_v57, -inf }
 0xbf0   :  { %10661 = vmax.xlane.f32.xlu0 %v10660_v42 }
 0xc7d   :  { %v10662_v52 = vpop.xlane.xlu0 %10661 }
 0xc7e   :  { %v10663_v62 = vsub.f32 %v10654_v57, %v10662_v52 }
 0xc80   :  { %v10664_v34 = vmul.f32 1.442695, %v10663_v62 }
 0xc82   :  { %15674 = vpow2.f32 %v10664_v34 }
 0xc8c   :  { %v15675_v5 = vpop.eup %15674 }
 0xc8d   :  { %v10666_v6 = vsel %vm10659_vm4, %v15675_v5, 0.0 }
 0xc8e   :  { %10667 = vadd.xlane.f32.xlu0 %v10666_v6 }
 0xd1b   :  { %v10668_v29 = vpop.xlane.xlu0 %10667 }
 0xd1c   :  { %15676 = vrcp.f32 %v10668_v29 }
 0xd26   :  { %v15677_v16 = vpop.eup %15676 }
 0xd27   :  { %v10670_v35 = vmul.f32 %v15677_v16, %v15675_v5 }
 0xd29   :  { %10671 = vst.msk [vmem:[#allocation2] sm:$0x3] %vm10659_vm4, %v10670_v35 }
 0xd2a   :  { %15689 = shalt.err (!%p15686_p4)
}
 0xd2b   :  { %s15690_s22 = scalar_lea.hbm %s20115_s7, 32 }
 0xd2c   :  { %p15691_p5 = scmp.ne.s32.totalorder %s20115_s7, %s15690_s22  ;;  %p15694_p6 = scmp.lt.u32.totalorder %s15690_s22, %s20115_s7 }
 0xd2e   :  { %p15696_p7 = pnand %p15694_p6, %p15691_p5 }
 0xd30   :  { %15699 = shalt.err (!%p15696_p7)
}
 0xd31   :  { %10681 = dma.vmem_to_hbm [thread:$0]  %s10679_s6, 32, %s20115_s7, [#allocation3]  }
 0xd32   :  { %15700 = dma.done.wait [#allocation3], 32  }
 0xd33   :  { %15701 = vsyncadd [#allocation3], 4294967264 }
 0xd34   :  { %10685 = vsyncpa [#allocation3], 1 }

</bundles_post_ra>
